<compile_context>
chip_gen: v6e
topology: v6e:2x2x1
jax: 0.10.0
libtpu: 0.0.40
codegen_flags: <defaults>
</compile_context>

<pallas_src>
import jax
import jax.numpy as jnp
from jax import lax
from jax.experimental import pallas as pl
from jax.experimental.pallas import tpu as pltpu

B = 2             # batch
C_IN = 4          # input channels
H = W = 16        # spatial
F = 32            # backbone feature channels
OUT = 1           # regression output dim
HW = H * W
NR = B * HW       # batch*spatial = lane axis of every activation (512)
C_PAD = 32        # every conv input padded to F rows -> single stacked weight
NON_CENTER_TAPS = (0, 1, 2, 3, 5, 6, 7, 8)   # 3x3 taps minus the center (4)
OUT_LANES = 128   # lane-dense kernel output row


def _fused_kernel(x_ref, m_ref, w_ref, b_ref, wh_ref, out_ref):
    # x_ref : (C_PAD, NR)        input; rows >= C_IN are zero
    # m_ref : (8, NR)            boundary masks for the 8 non-center taps
    # w_ref : (3, 9, F, C_PAD)   per-conv, per-tap weights (K zero-padded)
    # b_ref : (F, 4)             cols 0..2 = conv biases, col 3 row 0 = head bias
    # wh_ref: (OUT, F)           regression head weight (transposed)
    # out_ref: (OUT, OUT_LANES)  lane-dense output; lanes 0..B-1 hold results

    def conv3x3(a, ci, extra=None):
        # Center tap needs no roll and no mask; fold bias (and the optional
        # residual term) into the accumulator init.
        acc = (jnp.dot(w_ref[ci, 4], a, preferred_element_type=jnp.float32)
               + b_ref[:, ci:ci + 1])
        if extra is not None:
            acc = acc + extra
        for mrow, tap in enumerate(NON_CENTER_TAPS):
            oy, ox = tap // 3 - 1, tap % 3 - 1
            d = oy * W + ox                                # lane offset of tap
            shifted = pltpu.roll(a, (-d) % NR, 1)          # XLU lane rotation
            acc = acc + jnp.dot(w_ref[ci, tap],
                                shifted * m_ref[mrow:mrow + 1, :],
                                preferred_element_type=jnp.float32)
        return acc

    # --- backbone: conv stem + residual basic block ---
    h1 = jnp.maximum(conv3x3(x_ref[...], 0), 0.0)            # stem + relu
    h2 = jnp.maximum(conv3x3(h1, 1), 0.0)                    # block conv a + relu
    act = jnp.maximum(conv3x3(h2, 2, extra=h1), 0.0)         # block conv b + skip

    # --- regression head BEFORE pooling (algebraically identical) ---
    tmp = jnp.dot(wh_ref[...], act, preferred_element_type=jnp.float32)  # (OUT, NR)
    lane = lax.broadcasted_iota(jnp.int32, (OUT, OUT_LANES), 1)
    out_row = jnp.zeros((OUT, OUT_LANES), jnp.float32)
    for b in range(B):
        seg = jnp.sum(tmp[:, b * HW:(b + 1) * HW], axis=1, keepdims=True)
        out_row = out_row + jnp.where(lane == b, seg, 0.0)
    out_ref[...] = out_row * (1.0 / HW) + b_ref[0:1, 3:4]


def _make_tap_masks():
    """(8, NR) f32 boundary masks for the non-center taps (constant under jit)."""
    lane = jnp.arange(NR)
    pp = (lane % HW) // W
    qq = lane % W
    rows = []
    for tap in NON_CENTER_TAPS:
        oy, ox = tap // 3 - 1, tap % 3 - 1
        valid = ((pp + oy >= 0) & (pp + oy < H) &
                 (qq + ox >= 0) & (qq + ox < W))
        rows.append(valid.astype(jnp.float32))
    return jnp.stack(rows)


def _prep_conv_weight(w, cin):
    """HWIO (3,3,cin,F) -> (9, F, C_PAD): per-tap (F, cin) weights, K zero-padded."""
    wt = jnp.transpose(w.reshape(9, cin, F), (0, 2, 1))       # (9, F, cin)
    return jnp.pad(wt, ((0, 0), (0, 0), (0, C_PAD - cin)))


def _fused_forward(x_t, masks, w_all, b_all, wht):
    return pl.pallas_call(
        _fused_kernel,
        out_shape=jax.ShapeDtypeStruct((OUT, OUT_LANES), jnp.float32),
        in_specs=[pl.BlockSpec(memory_space=pltpu.MemorySpace.VMEM)] * 5,
        out_specs=pl.BlockSpec(memory_space=pltpu.MemorySpace.VMEM),
    )(x_t, masks, w_all, b_all, wht)


@jax.jit
def resnet_regression_head_forward(x_nchw, params):
    w1, b1, w2, b2, w3, b3, wh, bh = params
    x = x_nchw.astype(jnp.float32)
    # NCHW -> (C_IN, B*H*W): lane r = b*HW + p*W + q; pad channel rows to C_PAD.
    x_t = jnp.transpose(x, (1, 0, 2, 3)).reshape(C_IN, NR)
    x_t = jnp.pad(x_t, ((0, C_PAD - C_IN), (0, 0)))

    w_all = jnp.stack([_prep_conv_weight(w1, C_IN),
                       _prep_conv_weight(w2, F),
                       _prep_conv_weight(w3, F)])             # (3, 9, F, C_PAD)
    bh_col = jnp.pad(bh.reshape(1, OUT), ((0, F - 1), (0, 0)))    # (F, 1)
    b_all = jnp.concatenate([jnp.stack([b1, b2, b3], axis=1), bh_col],
                            axis=1)                           # (F, 4)
    masks = _make_tap_masks()                                 # (8, NR)

    out_row = _fused_forward(x_t, masks, w_all, b_all, wh.T)  # (OUT, 128)
    return out_row[0, :B].reshape(B, OUT)


def init_params(key):
    ks = jax.random.split(key, 8)

    def conv_w(k, cin, cout):
        w = jax.random.normal(k, (3, 3, cin, cout), jnp.float32)
        return w * (1.0 / jnp.sqrt(9.0 * cin))

    w1 = conv_w(ks[0], C_IN, F)
    b1 = jax.random.normal(ks[1], (F,), jnp.float32) * 0.01
    w2 = conv_w(ks[2], F, F)
    b2 = jax.random.normal(ks[3], (F,), jnp.float32) * 0.01
    w3 = conv_w(ks[4], F, F)
    b3 = jax.random.normal(ks[5], (F,), jnp.float32) * 0.01
    wh = jax.random.normal(ks[6], (F, OUT), jnp.float32) * (1.0 / jnp.sqrt(F))
    bh = jax.random.normal(ks[7], (OUT,), jnp.float32) * 0.01
    return (w1, b1, w2, b2, w3, b3, wh, bh)


def reference_forward(x_nchw, params):
    """Pure-JAX reference of the same backbone + head."""
    w1, b1, w2, b2, w3, b3, wh, bh = params
    x = jnp.transpose(x_nchw, (0, 2, 3, 1)).astype(jnp.float32)

    def conv(xx, w, b):
        y = lax.conv_general_dilated(
            xx, w, (1, 1), 'SAME',
            dimension_numbers=('NHWC', 'HWIO', 'NHWC'))
        return y + b.reshape(1, 1, 1, -1)

    h1 = jax.nn.relu(conv(x, w1, b1))
    h2 = jax.nn.relu(conv(h1, w2, b2))
    h3 = conv(h2, w3, b3)
    out = jax.nn.relu(h3 + h1)
    feat = out.mean(axis=(1, 2))
    return feat @ wh + bh


if __name__ == "__main__":
    key = jax.random.PRNGKey(0)
    kx, kp = jax.random.split(key)
    x = jax.random.normal(kx, (B, C_IN, H, W), jnp.float32)   # NCHW, like PyTorch
    params = init_params(kp)

    y = resnet_regression_head_forward(x, params)
    jax.block_until_ready(y)

    y_ref = reference_forward(x, params)
    assert y.shape == (B, OUT), y.shape
    assert jnp.allclose(y, y_ref, rtol=2e-3, atol=2e-3), (y, y_ref)
    print("KERNEL_OK")
</pallas_src>

<mosaic_0001>
module attributes {stable_mosaic.version = 11 : i64} {
  func.func @_fused_kernel(%arg0: memref<32x512xf32, #tpu.memory_space<vmem>>, %arg1: memref<8x512xf32, #tpu.memory_space<vmem>>, %arg2: memref<3x9x32x32xf32, #tpu.memory_space<vmem>>, %arg3: memref<32x4xf32, #tpu.memory_space<vmem>>, %arg4: memref<1x32xf32, #tpu.memory_space<vmem>>, %arg5: memref<1x128xf32, #tpu.memory_space<vmem>>) attributes {dimension_semantics = [], scalar_prefetch = 0 : i64, scratch_operands = 0 : i64, tpu.core_type = #tpu.core_type<tc>} {
    %c0 = arith.constant 0 : index
    %c0_0 = arith.constant 0 : index
    %0 = vector.load %arg0[%c0, %c0_0] : memref<32x512xf32, #tpu.memory_space<vmem>>, vector<32x512xf32>
    %c0_1 = arith.constant 0 : index
    %c4 = arith.constant 4 : index
    %c0_2 = arith.constant 0 : index
    %c0_3 = arith.constant 0 : index
    %1 = vector.load %arg2[%c0_1, %c4, %c0_2, %c0_3] : memref<3x9x32x32xf32, #tpu.memory_space<vmem>>, vector<1x1x32x32xf32>
    %2 = vector.shape_cast %1 : vector<1x1x32x32xf32> to vector<32x32xf32>
    %cst = arith.constant dense<0.000000e+00> : vector<32x512xf32>
    %3 = tpu.matmul %2, %0, %cst {dimension_numbers = #tpu.dot_dimension_numbers<[1], [0], [0], [1], [0, 0, 1, 1], [], []>} : vector<32x32xf32>, vector<32x512xf32>, vector<32x512xf32> -> vector<32x512xf32>
    %c0_4 = arith.constant 0 : index
    %c0_5 = arith.constant 0 : index
    %4 = vector.load %arg3[%c0_4, %c0_5] : memref<32x4xf32, #tpu.memory_space<vmem>>, vector<32x1xf32>
    %5 = vector.broadcast %4 : vector<32x1xf32> to vector<32x512xf32>
    %6 = arith.addf %3, %5 : vector<32x512xf32>
    %c17_i32 = arith.constant 17 : i32
    %7 = tpu.dynamic_rotate %0 by %c17_i32 dim 1 : vector<32x512xf32>, i32 -> vector<32x512xf32>
    %c0_6 = arith.constant 0 : index
    %c0_7 = arith.constant 0 : index
    %c0_8 = arith.constant 0 : index
    %c0_9 = arith.constant 0 : index
    %8 = vector.load %arg2[%c0_6, %c0_7, %c0_8, %c0_9] : memref<3x9x32x32xf32, #tpu.memory_space<vmem>>, vector<1x1x32x32xf32>
    %9 = vector.shape_cast %8 : vector<1x1x32x32xf32> to vector<32x32xf32>
    %c0_10 = arith.constant 0 : index
    %c0_11 = arith.constant 0 : index
    %10 = vector.load %arg1[%c0_10, %c0_11] : memref<8x512xf32, #tpu.memory_space<vmem>>, vector<1x512xf32>
    %11 = vector.broadcast %10 : vector<1x512xf32> to vector<32x512xf32>
    %12 = arith.mulf %7, %11 : vector<32x512xf32>
    %cst_12 = arith.constant dense<0.000000e+00> : vector<32x512xf32>
    %13 = tpu.matmul %9, %12, %cst_12 {dimension_numbers = #tpu.dot_dimension_numbers<[1], [0], [0], [1], [0, 0, 1, 1], [], []>} : vector<32x32xf32>, vector<32x512xf32>, vector<32x512xf32> -> vector<32x512xf32>
    %14 = arith.addf %6, %13 : vector<32x512xf32>
    %c16_i32 = arith.constant 16 : i32
    %15 = tpu.dynamic_rotate %0 by %c16_i32 dim 1 : vector<32x512xf32>, i32 -> vector<32x512xf32>
    %c0_13 = arith.constant 0 : index
    %c1 = arith.constant 1 : index
    %c0_14 = arith.constant 0 : index
    %c0_15 = arith.constant 0 : index
    %16 = vector.load %arg2[%c0_13, %c1, %c0_14, %c0_15] : memref<3x9x32x32xf32, #tpu.memory_space<vmem>>, vector<1x1x32x32xf32>
    %17 = vector.shape_cast %16 : vector<1x1x32x32xf32> to vector<32x32xf32>
    %c1_16 = arith.constant 1 : index
    %c0_17 = arith.constant 0 : index
    %18 = vector.load %arg1[%c1_16, %c0_17] : memref<8x512xf32, #tpu.memory_space<vmem>>, vector<1x512xf32>
    %19 = vector.broadcast %18 : vector<1x512xf32> to vector<32x512xf32>
    %20 = arith.mulf %15, %19 : vector<32x512xf32>
    %cst_18 = arith.constant dense<0.000000e+00> : vector<32x512xf32>
    %21 = tpu.matmul %17, %20, %cst_18 {dimension_numbers = #tpu.dot_dimension_numbers<[1], [0], [0], [1], [0, 0, 1, 1], [], []>} : vector<32x32xf32>, vector<32x512xf32>, vector<32x512xf32> -> vector<32x512xf32>
    %22 = arith.addf %14, %21 : vector<32x512xf32>
    %c15_i32 = arith.constant 15 : i32
    %23 = tpu.dynamic_rotate %0 by %c15_i32 dim 1 : vector<32x512xf32>, i32 -> vector<32x512xf32>
    %c0_19 = arith.constant 0 : index
    %c2 = arith.constant 2 : index
    %c0_20 = arith.constant 0 : index
    %c0_21 = arith.constant 0 : index
    %24 = vector.load %arg2[%c0_19, %c2, %c0_20, %c0_21] : memref<3x9x32x32xf32, #tpu.memory_space<vmem>>, vector<1x1x32x32xf32>
    %25 = vector.shape_cast %24 : vector<1x1x32x32xf32> to vector<32x32xf32>
    %c2_22 = arith.constant 2 : index
    %c0_23 = arith.constant 0 : index
    %26 = vector.load %arg1[%c2_22, %c0_23] : memref<8x512xf32, #tpu.memory_space<vmem>>, vector<1x512xf32>
    %27 = vector.broadcast %26 : vector<1x512xf32> to vector<32x512xf32>
    %28 = arith.mulf %23, %27 : vector<32x512xf32>
    %cst_24 = arith.constant dense<0.000000e+00> : vector<32x512xf32>
    %29 = tpu.matmul %25, %28, %cst_24 {dimension_numbers = #tpu.dot_dimension_numbers<[1], [0], [0], [1], [0, 0, 1, 1], [], []>} : vector<32x32xf32>, vector<32x512xf32>, vector<32x512xf32> -> vector<32x512xf32>
    %30 = arith.addf %22, %29 : vector<32x512xf32>
    %c1_i32 = arith.constant 1 : i32
    %31 = tpu.dynamic_rotate %0 by %c1_i32 dim 1 : vector<32x512xf32>, i32 -> vector<32x512xf32>
    %c0_25 = arith.constant 0 : index
    %c3 = arith.constant 3 : index
    %c0_26 = arith.constant 0 : index
    %c0_27 = arith.constant 0 : index
    %32 = vector.load %arg2[%c0_25, %c3, %c0_26, %c0_27] : memref<3x9x32x32xf32, #tpu.memory_space<vmem>>, vector<1x1x32x32xf32>
    %33 = vector.shape_cast %32 : vector<1x1x32x32xf32> to vector<32x32xf32>
    %c3_28 = arith.constant 3 : index
    %c0_29 = arith.constant 0 : index
    %34 = vector.load %arg1[%c3_28, %c0_29] : memref<8x512xf32, #tpu.memory_space<vmem>>, vector<1x512xf32>
    %35 = vector.broadcast %34 : vector<1x512xf32> to vector<32x512xf32>
    %36 = arith.mulf %31, %35 : vector<32x512xf32>
    %cst_30 = arith.constant dense<0.000000e+00> : vector<32x512xf32>
    %37 = tpu.matmul %33, %36, %cst_30 {dimension_numbers = #tpu.dot_dimension_numbers<[1], [0], [0], [1], [0, 0, 1, 1], [], []>} : vector<32x32xf32>, vector<32x512xf32>, vector<32x512xf32> -> vector<32x512xf32>
    %38 = arith.addf %30, %37 : vector<32x512xf32>
    %c511_i32 = arith.constant 511 : i32
    %39 = tpu.dynamic_rotate %0 by %c511_i32 dim 1 : vector<32x512xf32>, i32 -> vector<32x512xf32>
    %c0_31 = arith.constant 0 : index
    %c5 = arith.constant 5 : index
    %c0_32 = arith.constant 0 : index
    %c0_33 = arith.constant 0 : index
    %40 = vector.load %arg2[%c0_31, %c5, %c0_32, %c0_33] : memref<3x9x32x32xf32, #tpu.memory_space<vmem>>, vector<1x1x32x32xf32>
    %41 = vector.shape_cast %40 : vector<1x1x32x32xf32> to vector<32x32xf32>
    %c4_34 = arith.constant 4 : index
    %c0_35 = arith.constant 0 : index
    %42 = vector.load %arg1[%c4_34, %c0_35] : memref<8x512xf32, #tpu.memory_space<vmem>>, vector<1x512xf32>
    %43 = vector.broadcast %42 : vector<1x512xf32> to vector<32x512xf32>
    %44 = arith.mulf %39, %43 : vector<32x512xf32>
    %cst_36 = arith.constant dense<0.000000e+00> : vector<32x512xf32>
    %45 = tpu.matmul %41, %44, %cst_36 {dimension_numbers = #tpu.dot_dimension_numbers<[1], [0], [0], [1], [0, 0, 1, 1], [], []>} : vector<32x32xf32>, vector<32x512xf32>, vector<32x512xf32> -> vector<32x512xf32>
    %46 = arith.addf %38, %45 : vector<32x512xf32>
    %c497_i32 = arith.constant 497 : i32
    %47 = tpu.dynamic_rotate %0 by %c497_i32 dim 1 : vector<32x512xf32>, i32 -> vector<32x512xf32>
    %c0_37 = arith.constant 0 : index
    %c6 = arith.constant 6 : index
    %c0_38 = arith.constant 0 : index
    %c0_39 = arith.constant 0 : index
    %48 = vector.load %arg2[%c0_37, %c6, %c0_38, %c0_39] : memref<3x9x32x32xf32, #tpu.memory_space<vmem>>, vector<1x1x32x32xf32>
    %49 = vector.shape_cast %48 : vector<1x1x32x32xf32> to vector<32x32xf32>
    %c5_40 = arith.constant 5 : index
    %c0_41 = arith.constant 0 : index
    %50 = vector.load %arg1[%c5_40, %c0_41] : memref<8x512xf32, #tpu.memory_space<vmem>>, vector<1x512xf32>
    %51 = vector.broadcast %50 : vector<1x512xf32> to vector<32x512xf32>
    %52 = arith.mulf %47, %51 : vector<32x512xf32>
    %cst_42 = arith.constant dense<0.000000e+00> : vector<32x512xf32>
    %53 = tpu.matmul %49, %52, %cst_42 {dimension_numbers = #tpu.dot_dimension_numbers<[1], [0], [0], [1], [0, 0, 1, 1], [], []>} : vector<32x32xf32>, vector<32x512xf32>, vector<32x512xf32> -> vector<32x512xf32>
    %54 = arith.addf %46, %53 : vector<32x512xf32>
    %c496_i32 = arith.constant 496 : i32
    %55 = tpu.dynamic_rotate %0 by %c496_i32 dim 1 : vector<32x512xf32>, i32 -> vector<32x512xf32>
    %c0_43 = arith.constant 0 : index
    %c7 = arith.constant 7 : index
    %c0_44 = arith.constant 0 : index
    %c0_45 = arith.constant 0 : index
    %56 = vector.load %arg2[%c0_43, %c7, %c0_44, %c0_45] : memref<3x9x32x32xf32, #tpu.memory_space<vmem>>, vector<1x1x32x32xf32>
    %57 = vector.shape_cast %56 : vector<1x1x32x32xf32> to vector<32x32xf32>
    %c6_46 = arith.constant 6 : index
    %c0_47 = arith.constant 0 : index
    %58 = vector.load %arg1[%c6_46, %c0_47] : memref<8x512xf32, #tpu.memory_space<vmem>>, vector<1x512xf32>
    %59 = vector.broadcast %58 : vector<1x512xf32> to vector<32x512xf32>
    %60 = arith.mulf %55, %59 : vector<32x512xf32>
    %cst_48 = arith.constant dense<0.000000e+00> : vector<32x512xf32>
    %61 = tpu.matmul %57, %60, %cst_48 {dimension_numbers = #tpu.dot_dimension_numbers<[1], [0], [0], [1], [0, 0, 1, 1], [], []>} : vector<32x32xf32>, vector<32x512xf32>, vector<32x512xf32> -> vector<32x512xf32>
    %62 = arith.addf %54, %61 : vector<32x512xf32>
    %c495_i32 = arith.constant 495 : i32
    %63 = tpu.dynamic_rotate %0 by %c495_i32 dim 1 : vector<32x512xf32>, i32 -> vector<32x512xf32>
    %c0_49 = arith.constant 0 : index
    %c8 = arith.constant 8 : index
    %c0_50 = arith.constant 0 : index
    %c0_51 = arith.constant 0 : index
    %64 = vector.load %arg2[%c0_49, %c8, %c0_50, %c0_51] : memref<3x9x32x32xf32, #tpu.memory_space<vmem>>, vector<1x1x32x32xf32>
    %65 = vector.shape_cast %64 : vector<1x1x32x32xf32> to vector<32x32xf32>
    %c7_52 = arith.constant 7 : index
    %c0_53 = arith.constant 0 : index
    %66 = vector.load %arg1[%c7_52, %c0_53] : memref<8x512xf32, #tpu.memory_space<vmem>>, vector<1x512xf32>
    %67 = vector.broadcast %66 : vector<1x512xf32> to vector<32x512xf32>
    %68 = arith.mulf %63, %67 : vector<32x512xf32>
    %cst_54 = arith.constant dense<0.000000e+00> : vector<32x512xf32>
    %69 = tpu.matmul %65, %68, %cst_54 {dimension_numbers = #tpu.dot_dimension_numbers<[1], [0], [0], [1], [0, 0, 1, 1], [], []>} : vector<32x32xf32>, vector<32x512xf32>, vector<32x512xf32> -> vector<32x512xf32>
    %70 = arith.addf %62, %69 : vector<32x512xf32>
    %cst_55 = arith.constant 0.000000e+00 : f32
    %71 = vector.broadcast %cst_55 : f32 to vector<32x512xf32>
    %72 = arith.maximumf %70, %71 : vector<32x512xf32>
    %c1_56 = arith.constant 1 : index
    %c4_57 = arith.constant 4 : index
    %c0_58 = arith.constant 0 : index
    %c0_59 = arith.constant 0 : index
    %73 = vector.load %arg2[%c1_56, %c4_57, %c0_58, %c0_59] : memref<3x9x32x32xf32, #tpu.memory_space<vmem>>, vector<1x1x32x32xf32>
    %74 = vector.shape_cast %73 : vector<1x1x32x32xf32> to vector<32x32xf32>
    %cst_60 = arith.constant dense<0.000000e+00> : vector<32x512xf32>
    %75 = tpu.matmul %74, %72, %cst_60 {dimension_numbers = #tpu.dot_dimension_numbers<[1], [0], [0], [1], [0, 0, 1, 1], [], []>} : vector<32x32xf32>, vector<32x512xf32>, vector<32x512xf32> -> vector<32x512xf32>
    %c0_61 = arith.constant 0 : index
    %c1_62 = arith.constant 1 : index
    %76 = vector.load %arg3[%c0_61, %c1_62] : memref<32x4xf32, #tpu.memory_space<vmem>>, vector<32x1xf32>
    %77 = vector.broadcast %76 : vector<32x1xf32> to vector<32x512xf32>
    %78 = arith.addf %75, %77 : vector<32x512xf32>
    %c17_i32_63 = arith.constant 17 : i32
    %79 = tpu.dynamic_rotate %72 by %c17_i32_63 dim 1 : vector<32x512xf32>, i32 -> vector<32x512xf32>
    %c1_64 = arith.constant 1 : index
    %c0_65 = arith.constant 0 : index
    %c0_66 = arith.constant 0 : index
    %c0_67 = arith.constant 0 : index
    %80 = vector.load %arg2[%c1_64, %c0_65, %c0_66, %c0_67] : memref<3x9x32x32xf32, #tpu.memory_space<vmem>>, vector<1x1x32x32xf32>
    %81 = vector.shape_cast %80 : vector<1x1x32x32xf32> to vector<32x32xf32>
    %c0_68 = arith.constant 0 : index
    %c0_69 = arith.constant 0 : index
    %82 = vector.load %arg1[%c0_68, %c0_69] : memref<8x512xf32, #tpu.memory_space<vmem>>, vector<1x512xf32>
    %83 = vector.broadcast %82 : vector<1x512xf32> to vector<32x512xf32>
    %84 = arith.mulf %79, %83 : vector<32x512xf32>
    %cst_70 = arith.constant dense<0.000000e+00> : vector<32x512xf32>
    %85 = tpu.matmul %81, %84, %cst_70 {dimension_numbers = #tpu.dot_dimension_numbers<[1], [0], [0], [1], [0, 0, 1, 1], [], []>} : vector<32x32xf32>, vector<32x512xf32>, vector<32x512xf32> -> vector<32x512xf32>
    %86 = arith.addf %78, %85 : vector<32x512xf32>
    %c16_i32_71 = arith.constant 16 : i32
    %87 = tpu.dynamic_rotate %72 by %c16_i32_71 dim 1 : vector<32x512xf32>, i32 -> vector<32x512xf32>
    %c1_72 = arith.constant 1 : index
    %c1_73 = arith.constant 1 : index
    %c0_74 = arith.constant 0 : index
    %c0_75 = arith.constant 0 : index
    %88 = vector.load %arg2[%c1_72, %c1_73, %c0_74, %c0_75] : memref<3x9x32x32xf32, #tpu.memory_space<vmem>>, vector<1x1x32x32xf32>
    %89 = vector.shape_cast %88 : vector<1x1x32x32xf32> to vector<32x32xf32>
    %c1_76 = arith.constant 1 : index
    %c0_77 = arith.constant 0 : index
    %90 = vector.load %arg1[%c1_76, %c0_77] : memref<8x512xf32, #tpu.memory_space<vmem>>, vector<1x512xf32>
    %91 = vector.broadcast %90 : vector<1x512xf32> to vector<32x512xf32>
    %92 = arith.mulf %87, %91 : vector<32x512xf32>
    %cst_78 = arith.constant dense<0.000000e+00> : vector<32x512xf32>
    %93 = tpu.matmul %89, %92, %cst_78 {dimension_numbers = #tpu.dot_dimension_numbers<[1], [0], [0], [1], [0, 0, 1, 1], [], []>} : vector<32x32xf32>, vector<32x512xf32>, vector<32x512xf32> -> vector<32x512xf32>
    %94 = arith.addf %86, %93 : vector<32x512xf32>
    %c15_i32_79 = arith.constant 15 : i32
    %95 = tpu.dynamic_rotate %72 by %c15_i32_79 dim 1 : vector<32x512xf32>, i32 -> vector<32x512xf32>
    %c1_80 = arith.constant 1 : index
    %c2_81 = arith.constant 2 : index
    %c0_82 = arith.constant 0 : index
    %c0_83 = arith.constant 0 : index
    %96 = vector.load %arg2[%c1_80, %c2_81, %c0_82, %c0_83] : memref<3x9x32x32xf32, #tpu.memory_space<vmem>>, vector<1x1x32x32xf32>
    %97 = vector.shape_cast %96 : vector<1x1x32x32xf32> to vector<32x32xf32>
    %c2_84 = arith.constant 2 : index
    %c0_85 = arith.constant 0 : index
    %98 = vector.load %arg1[%c2_84, %c0_85] : memref<8x512xf32, #tpu.memory_space<vmem>>, vector<1x512xf32>
    %99 = vector.broadcast %98 : vector<1x512xf32> to vector<32x512xf32>
    %100 = arith.mulf %95, %99 : vector<32x512xf32>
    %cst_86 = arith.constant dense<0.000000e+00> : vector<32x512xf32>
    %101 = tpu.matmul %97, %100, %cst_86 {dimension_numbers = #tpu.dot_dimension_numbers<[1], [0], [0], [1], [0, 0, 1, 1], [], []>} : vector<32x32xf32>, vector<32x512xf32>, vector<32x512xf32> -> vector<32x512xf32>
    %102 = arith.addf %94, %101 : vector<32x512xf32>
    %c1_i32_87 = arith.constant 1 : i32
    %103 = tpu.dynamic_rotate %72 by %c1_i32_87 dim 1 : vector<32x512xf32>, i32 -> vector<32x512xf32>
    %c1_88 = arith.constant 1 : index
    %c3_89 = arith.constant 3 : index
    %c0_90 = arith.constant 0 : index
    %c0_91 = arith.constant 0 : index
    %104 = vector.load %arg2[%c1_88, %c3_89, %c0_90, %c0_91] : memref<3x9x32x32xf32, #tpu.memory_space<vmem>>, vector<1x1x32x32xf32>
    %105 = vector.shape_cast %104 : vector<1x1x32x32xf32> to vector<32x32xf32>
    %c3_92 = arith.constant 3 : index
    %c0_93 = arith.constant 0 : index
    %106 = vector.load %arg1[%c3_92, %c0_93] : memref<8x512xf32, #tpu.memory_space<vmem>>, vector<1x512xf32>
    %107 = vector.broadcast %106 : vector<1x512xf32> to vector<32x512xf32>
    %108 = arith.mulf %103, %107 : vector<32x512xf32>
    %cst_94 = arith.constant dense<0.000000e+00> : vector<32x512xf32>
    %109 = tpu.matmul %105, %108, %cst_94 {dimension_numbers = #tpu.dot_dimension_numbers<[1], [0], [0], [1], [0, 0, 1, 1], [], []>} : vector<32x32xf32>, vector<32x512xf32>, vector<32x512xf32> -> vector<32x512xf32>
    %110 = arith.addf %102, %109 : vector<32x512xf32>
    %c511_i32_95 = arith.constant 511 : i32
    %111 = tpu.dynamic_rotate %72 by %c511_i32_95 dim 1 : vector<32x512xf32>, i32 -> vector<32x512xf32>
    %c1_96 = arith.constant 1 : index
    %c5_97 = arith.constant 5 : index
    %c0_98 = arith.constant 0 : index
    %c0_99 = arith.constant 0 : index
    %112 = vector.load %arg2[%c1_96, %c5_97, %c0_98, %c0_99] : memref<3x9x32x32xf32, #tpu.memory_space<vmem>>, vector<1x1x32x32xf32>
    %113 = vector.shape_cast %112 : vector<1x1x32x32xf32> to vector<32x32xf32>
    %c4_100 = arith.constant 4 : index
    %c0_101 = arith.constant 0 : index
    %114 = vector.load %arg1[%c4_100, %c0_101] : memref<8x512xf32, #tpu.memory_space<vmem>>, vector<1x512xf32>
    %115 = vector.broadcast %114 : vector<1x512xf32> to vector<32x512xf32>
    %116 = arith.mulf %111, %115 : vector<32x512xf32>
    %cst_102 = arith.constant dense<0.000000e+00> : vector<32x512xf32>
    %117 = tpu.matmul %113, %116, %cst_102 {dimension_numbers = #tpu.dot_dimension_numbers<[1], [0], [0], [1], [0, 0, 1, 1], [], []>} : vector<32x32xf32>, vector<32x512xf32>, vector<32x512xf32> -> vector<32x512xf32>
    %118 = arith.addf %110, %117 : vector<32x512xf32>
    %c497_i32_103 = arith.constant 497 : i32
    %119 = tpu.dynamic_rotate %72 by %c497_i32_103 dim 1 : vector<32x512xf32>, i32 -> vector<32x512xf32>
    %c1_104 = arith.constant 1 : index
    %c6_105 = arith.constant 6 : index
    %c0_106 = arith.constant 0 : index
    %c0_107 = arith.constant 0 : index
    %120 = vector.load %arg2[%c1_104, %c6_105, %c0_106, %c0_107] : memref<3x9x32x32xf32, #tpu.memory_space<vmem>>, vector<1x1x32x32xf32>
    %121 = vector.shape_cast %120 : vector<1x1x32x32xf32> to vector<32x32xf32>
    %c5_108 = arith.constant 5 : index
    %c0_109 = arith.constant 0 : index
    %122 = vector.load %arg1[%c5_108, %c0_109] : memref<8x512xf32, #tpu.memory_space<vmem>>, vector<1x512xf32>
    %123 = vector.broadcast %122 : vector<1x512xf32> to vector<32x512xf32>
    %124 = arith.mulf %119, %123 : vector<32x512xf32>
    %cst_110 = arith.constant dense<0.000000e+00> : vector<32x512xf32>
    %125 = tpu.matmul %121, %124, %cst_110 {dimension_numbers = #tpu.dot_dimension_numbers<[1], [0], [0], [1], [0, 0, 1, 1], [], []>} : vector<32x32xf32>, vector<32x512xf32>, vector<32x512xf32> -> vector<32x512xf32>
    %126 = arith.addf %118, %125 : vector<32x512xf32>
    %c496_i32_111 = arith.constant 496 : i32
    %127 = tpu.dynamic_rotate %72 by %c496_i32_111 dim 1 : vector<32x512xf32>, i32 -> vector<32x512xf32>
    %c1_112 = arith.constant 1 : index
    %c7_113 = arith.constant 7 : index
    %c0_114 = arith.constant 0 : index
    %c0_115 = arith.constant 0 : index
    %128 = vector.load %arg2[%c1_112, %c7_113, %c0_114, %c0_115] : memref<3x9x32x32xf32, #tpu.memory_space<vmem>>, vector<1x1x32x32xf32>
    %129 = vector.shape_cast %128 : vector<1x1x32x32xf32> to vector<32x32xf32>
    %c6_116 = arith.constant 6 : index
    %c0_117 = arith.constant 0 : index
    %130 = vector.load %arg1[%c6_116, %c0_117] : memref<8x512xf32, #tpu.memory_space<vmem>>, vector<1x512xf32>
    %131 = vector.broadcast %130 : vector<1x512xf32> to vector<32x512xf32>
    %132 = arith.mulf %127, %131 : vector<32x512xf32>
    %cst_118 = arith.constant dense<0.000000e+00> : vector<32x512xf32>
    %133 = tpu.matmul %129, %132, %cst_118 {dimension_numbers = #tpu.dot_dimension_numbers<[1], [0], [0], [1], [0, 0, 1, 1], [], []>} : vector<32x32xf32>, vector<32x512xf32>, vector<32x512xf32> -> vector<32x512xf32>
    %134 = arith.addf %126, %133 : vector<32x512xf32>
    %c495_i32_119 = arith.constant 495 : i32
    %135 = tpu.dynamic_rotate %72 by %c495_i32_119 dim 1 : vector<32x512xf32>, i32 -> vector<32x512xf32>
    %c1_120 = arith.constant 1 : index
    %c8_121 = arith.constant 8 : index
    %c0_122 = arith.constant 0 : index
    %c0_123 = arith.constant 0 : index
    %136 = vector.load %arg2[%c1_120, %c8_121, %c0_122, %c0_123] : memref<3x9x32x32xf32, #tpu.memory_space<vmem>>, vector<1x1x32x32xf32>
    %137 = vector.shape_cast %136 : vector<1x1x32x32xf32> to vector<32x32xf32>
    %c7_124 = arith.constant 7 : index
    %c0_125 = arith.constant 0 : index
    %138 = vector.load %arg1[%c7_124, %c0_125] : memref<8x512xf32, #tpu.memory_space<vmem>>, vector<1x512xf32>
    %139 = vector.broadcast %138 : vector<1x512xf32> to vector<32x512xf32>
    %140 = arith.mulf %135, %139 : vector<32x512xf32>
    %cst_126 = arith.constant dense<0.000000e+00> : vector<32x512xf32>
    %141 = tpu.matmul %137, %140, %cst_126 {dimension_numbers = #tpu.dot_dimension_numbers<[1], [0], [0], [1], [0, 0, 1, 1], [], []>} : vector<32x32xf32>, vector<32x512xf32>, vector<32x512xf32> -> vector<32x512xf32>
    %142 = arith.addf %134, %141 : vector<32x512xf32>
    %cst_127 = arith.constant 0.000000e+00 : f32
    %143 = vector.broadcast %cst_127 : f32 to vector<32x512xf32>
    %144 = arith.maximumf %142, %143 : vector<32x512xf32>
    %c2_128 = arith.constant 2 : index
    %c4_129 = arith.constant 4 : index
    %c0_130 = arith.constant 0 : index
    %c0_131 = arith.constant 0 : index
    %145 = vector.load %arg2[%c2_128, %c4_129, %c0_130, %c0_131] : memref<3x9x32x32xf32, #tpu.memory_space<vmem>>, vector<1x1x32x32xf32>
    %146 = vector.shape_cast %145 : vector<1x1x32x32xf32> to vector<32x32xf32>
    %cst_132 = arith.constant dense<0.000000e+00> : vector<32x512xf32>
    %147 = tpu.matmul %146, %144, %cst_132 {dimension_numbers = #tpu.dot_dimension_numbers<[1], [0], [0], [1], [0, 0, 1, 1], [], []>} : vector<32x32xf32>, vector<32x512xf32>, vector<32x512xf32> -> vector<32x512xf32>
    %c0_133 = arith.constant 0 : index
    %c2_134 = arith.constant 2 : index
    %148 = vector.load %arg3[%c0_133, %c2_134] : memref<32x4xf32, #tpu.memory_space<vmem>>, vector<32x1xf32>
    %149 = vector.broadcast %148 : vector<32x1xf32> to vector<32x512xf32>
    %150 = arith.addf %147, %149 : vector<32x512xf32>
    %151 = arith.addf %150, %72 : vector<32x512xf32>
    %c17_i32_135 = arith.constant 17 : i32
    %152 = tpu.dynamic_rotate %144 by %c17_i32_135 dim 1 : vector<32x512xf32>, i32 -> vector<32x512xf32>
    %c2_136 = arith.constant 2 : index
    %c0_137 = arith.constant 0 : index
    %c0_138 = arith.constant 0 : index
    %c0_139 = arith.constant 0 : index
    %153 = vector.load %arg2[%c2_136, %c0_137, %c0_138, %c0_139] : memref<3x9x32x32xf32, #tpu.memory_space<vmem>>, vector<1x1x32x32xf32>
    %154 = vector.shape_cast %153 : vector<1x1x32x32xf32> to vector<32x32xf32>
    %c0_140 = arith.constant 0 : index
    %c0_141 = arith.constant 0 : index
    %155 = vector.load %arg1[%c0_140, %c0_141] : memref<8x512xf32, #tpu.memory_space<vmem>>, vector<1x512xf32>
    %156 = vector.broadcast %155 : vector<1x512xf32> to vector<32x512xf32>
    %157 = arith.mulf %152, %156 : vector<32x512xf32>
    %cst_142 = arith.constant dense<0.000000e+00> : vector<32x512xf32>
    %158 = tpu.matmul %154, %157, %cst_142 {dimension_numbers = #tpu.dot_dimension_numbers<[1], [0], [0], [1], [0, 0, 1, 1], [], []>} : vector<32x32xf32>, vector<32x512xf32>, vector<32x512xf32> -> vector<32x512xf32>
    %159 = arith.addf %151, %158 : vector<32x512xf32>
    %c16_i32_143 = arith.constant 16 : i32
    %160 = tpu.dynamic_rotate %144 by %c16_i32_143 dim 1 : vector<32x512xf32>, i32 -> vector<32x512xf32>
    %c2_144 = arith.constant 2 : index
    %c1_145 = arith.constant 1 : index
    %c0_146 = arith.constant 0 : index
    %c0_147 = arith.constant 0 : index
    %161 = vector.load %arg2[%c2_144, %c1_145, %c0_146, %c0_147] : memref<3x9x32x32xf32, #tpu.memory_space<vmem>>, vector<1x1x32x32xf32>
    %162 = vector.shape_cast %161 : vector<1x1x32x32xf32> to vector<32x32xf32>
    %c1_148 = arith.constant 1 : index
    %c0_149 = arith.constant 0 : index
    %163 = vector.load %arg1[%c1_148, %c0_149] : memref<8x512xf32, #tpu.memory_space<vmem>>, vector<1x512xf32>
    %164 = vector.broadcast %163 : vector<1x512xf32> to vector<32x512xf32>
    %165 = arith.mulf %160, %164 : vector<32x512xf32>
    %cst_150 = arith.constant dense<0.000000e+00> : vector<32x512xf32>
    %166 = tpu.matmul %162, %165, %cst_150 {dimension_numbers = #tpu.dot_dimension_numbers<[1], [0], [0], [1], [0, 0, 1, 1], [], []>} : vector<32x32xf32>, vector<32x512xf32>, vector<32x512xf32> -> vector<32x512xf32>
    %167 = arith.addf %159, %166 : vector<32x512xf32>
    %c15_i32_151 = arith.constant 15 : i32
    %168 = tpu.dynamic_rotate %144 by %c15_i32_151 dim 1 : vector<32x512xf32>, i32 -> vector<32x512xf32>
    %c2_152 = arith.constant 2 : index
    %c2_153 = arith.constant 2 : index
    %c0_154 = arith.constant 0 : index
    %c0_155 = arith.constant 0 : index
    %169 = vector.load %arg2[%c2_152, %c2_153, %c0_154, %c0_155] : memref<3x9x32x32xf32, #tpu.memory_space<vmem>>, vector<1x1x32x32xf32>
    %170 = vector.shape_cast %169 : vector<1x1x32x32xf32> to vector<32x32xf32>
    %c2_156 = arith.constant 2 : index
    %c0_157 = arith.constant 0 : index
    %171 = vector.load %arg1[%c2_156, %c0_157] : memref<8x512xf32, #tpu.memory_space<vmem>>, vector<1x512xf32>
    %172 = vector.broadcast %171 : vector<1x512xf32> to vector<32x512xf32>
    %173 = arith.mulf %168, %172 : vector<32x512xf32>
    %cst_158 = arith.constant dense<0.000000e+00> : vector<32x512xf32>
    %174 = tpu.matmul %170, %173, %cst_158 {dimension_numbers = #tpu.dot_dimension_numbers<[1], [0], [0], [1], [0, 0, 1, 1], [], []>} : vector<32x32xf32>, vector<32x512xf32>, vector<32x512xf32> -> vector<32x512xf32>
    %175 = arith.addf %167, %174 : vector<32x512xf32>
    %c1_i32_159 = arith.constant 1 : i32
    %176 = tpu.dynamic_rotate %144 by %c1_i32_159 dim 1 : vector<32x512xf32>, i32 -> vector<32x512xf32>
    %c2_160 = arith.constant 2 : index
    %c3_161 = arith.constant 3 : index
    %c0_162 = arith.constant 0 : index
    %c0_163 = arith.constant 0 : index
    %177 = vector.load %arg2[%c2_160, %c3_161, %c0_162, %c0_163] : memref<3x9x32x32xf32, #tpu.memory_space<vmem>>, vector<1x1x32x32xf32>
    %178 = vector.shape_cast %177 : vector<1x1x32x32xf32> to vector<32x32xf32>
    %c3_164 = arith.constant 3 : index
    %c0_165 = arith.constant 0 : index
    %179 = vector.load %arg1[%c3_164, %c0_165] : memref<8x512xf32, #tpu.memory_space<vmem>>, vector<1x512xf32>
    %180 = vector.broadcast %179 : vector<1x512xf32> to vector<32x512xf32>
    %181 = arith.mulf %176, %180 : vector<32x512xf32>
    %cst_166 = arith.constant dense<0.000000e+00> : vector<32x512xf32>
    %182 = tpu.matmul %178, %181, %cst_166 {dimension_numbers = #tpu.dot_dimension_numbers<[1], [0], [0], [1], [0, 0, 1, 1], [], []>} : vector<32x32xf32>, vector<32x512xf32>, vector<32x512xf32> -> vector<32x512xf32>
    %183 = arith.addf %175, %182 : vector<32x512xf32>
    %c511_i32_167 = arith.constant 511 : i32
    %184 = tpu.dynamic_rotate %144 by %c511_i32_167 dim 1 : vector<32x512xf32>, i32 -> vector<32x512xf32>
    %c2_168 = arith.constant 2 : index
    %c5_169 = arith.constant 5 : index
    %c0_170 = arith.constant 0 : index
    %c0_171 = arith.constant 0 : index
    %185 = vector.load %arg2[%c2_168, %c5_169, %c0_170, %c0_171] : memref<3x9x32x32xf32, #tpu.memory_space<vmem>>, vector<1x1x32x32xf32>
    %186 = vector.shape_cast %185 : vector<1x1x32x32xf32> to vector<32x32xf32>
    %c4_172 = arith.constant 4 : index
    %c0_173 = arith.constant 0 : index
    %187 = vector.load %arg1[%c4_172, %c0_173] : memref<8x512xf32, #tpu.memory_space<vmem>>, vector<1x512xf32>
    %188 = vector.broadcast %187 : vector<1x512xf32> to vector<32x512xf32>
    %189 = arith.mulf %184, %188 : vector<32x512xf32>
    %cst_174 = arith.constant dense<0.000000e+00> : vector<32x512xf32>
    %190 = tpu.matmul %186, %189, %cst_174 {dimension_numbers = #tpu.dot_dimension_numbers<[1], [0], [0], [1], [0, 0, 1, 1], [], []>} : vector<32x32xf32>, vector<32x512xf32>, vector<32x512xf32> -> vector<32x512xf32>
    %191 = arith.addf %183, %190 : vector<32x512xf32>
    %c497_i32_175 = arith.constant 497 : i32
    %192 = tpu.dynamic_rotate %144 by %c497_i32_175 dim 1 : vector<32x512xf32>, i32 -> vector<32x512xf32>
    %c2_176 = arith.constant 2 : index
    %c6_177 = arith.constant 6 : index
    %c0_178 = arith.constant 0 : index
    %c0_179 = arith.constant 0 : index
    %193 = vector.load %arg2[%c2_176, %c6_177, %c0_178, %c0_179] : memref<3x9x32x32xf32, #tpu.memory_space<vmem>>, vector<1x1x32x32xf32>
    %194 = vector.shape_cast %193 : vector<1x1x32x32xf32> to vector<32x32xf32>
    %c5_180 = arith.constant 5 : index
    %c0_181 = arith.constant 0 : index
    %195 = vector.load %arg1[%c5_180, %c0_181] : memref<8x512xf32, #tpu.memory_space<vmem>>, vector<1x512xf32>
    %196 = vector.broadcast %195 : vector<1x512xf32> to vector<32x512xf32>
    %197 = arith.mulf %192, %196 : vector<32x512xf32>
    %cst_182 = arith.constant dense<0.000000e+00> : vector<32x512xf32>
    %198 = tpu.matmul %194, %197, %cst_182 {dimension_numbers = #tpu.dot_dimension_numbers<[1], [0], [0], [1], [0, 0, 1, 1], [], []>} : vector<32x32xf32>, vector<32x512xf32>, vector<32x512xf32> -> vector<32x512xf32>
    %199 = arith.addf %191, %198 : vector<32x512xf32>
    %c496_i32_183 = arith.constant 496 : i32
    %200 = tpu.dynamic_rotate %144 by %c496_i32_183 dim 1 : vector<32x512xf32>, i32 -> vector<32x512xf32>
    %c2_184 = arith.constant 2 : index
    %c7_185 = arith.constant 7 : index
    %c0_186 = arith.constant 0 : index
    %c0_187 = arith.constant 0 : index
    %201 = vector.load %arg2[%c2_184, %c7_185, %c0_186, %c0_187] : memref<3x9x32x32xf32, #tpu.memory_space<vmem>>, vector<1x1x32x32xf32>
    %202 = vector.shape_cast %201 : vector<1x1x32x32xf32> to vector<32x32xf32>
    %c6_188 = arith.constant 6 : index
    %c0_189 = arith.constant 0 : index
    %203 = vector.load %arg1[%c6_188, %c0_189] : memref<8x512xf32, #tpu.memory_space<vmem>>, vector<1x512xf32>
    %204 = vector.broadcast %203 : vector<1x512xf32> to vector<32x512xf32>
    %205 = arith.mulf %200, %204 : vector<32x512xf32>
    %cst_190 = arith.constant dense<0.000000e+00> : vector<32x512xf32>
    %206 = tpu.matmul %202, %205, %cst_190 {dimension_numbers = #tpu.dot_dimension_numbers<[1], [0], [0], [1], [0, 0, 1, 1], [], []>} : vector<32x32xf32>, vector<32x512xf32>, vector<32x512xf32> -> vector<32x512xf32>
    %207 = arith.addf %199, %206 : vector<32x512xf32>
    %c495_i32_191 = arith.constant 495 : i32
    %208 = tpu.dynamic_rotate %144 by %c495_i32_191 dim 1 : vector<32x512xf32>, i32 -> vector<32x512xf32>
    %c2_192 = arith.constant 2 : index
    %c8_193 = arith.constant 8 : index
    %c0_194 = arith.constant 0 : index
    %c0_195 = arith.constant 0 : index
    %209 = vector.load %arg2[%c2_192, %c8_193, %c0_194, %c0_195] : memref<3x9x32x32xf32, #tpu.memory_space<vmem>>, vector<1x1x32x32xf32>
    %210 = vector.shape_cast %209 : vector<1x1x32x32xf32> to vector<32x32xf32>
    %c7_196 = arith.constant 7 : index
    %c0_197 = arith.constant 0 : index
    %211 = vector.load %arg1[%c7_196, %c0_197] : memref<8x512xf32, #tpu.memory_space<vmem>>, vector<1x512xf32>
    %212 = vector.broadcast %211 : vector<1x512xf32> to vector<32x512xf32>
    %213 = arith.mulf %208, %212 : vector<32x512xf32>
    %cst_198 = arith.constant dense<0.000000e+00> : vector<32x512xf32>
    %214 = tpu.matmul %210, %213, %cst_198 {dimension_numbers = #tpu.dot_dimension_numbers<[1], [0], [0], [1], [0, 0, 1, 1], [], []>} : vector<32x32xf32>, vector<32x512xf32>, vector<32x512xf32> -> vector<32x512xf32>
    %215 = arith.addf %207, %214 : vector<32x512xf32>
    %cst_199 = arith.constant 0.000000e+00 : f32
    %216 = vector.broadcast %cst_199 : f32 to vector<32x512xf32>
    %217 = arith.maximumf %215, %216 : vector<32x512xf32>
    %c0_200 = arith.constant 0 : index
    %c0_201 = arith.constant 0 : index
    %218 = vector.load %arg4[%c0_200, %c0_201] : memref<1x32xf32, #tpu.memory_space<vmem>>, vector<1x32xf32>
    %cst_202 = arith.constant dense<0.000000e+00> : vector<1x512xf32>
    %219 = tpu.matmul %218, %217, %cst_202 {dimension_numbers = #tpu.dot_dimension_numbers<[1], [0], [0], [1], [0, 0, 1, 1], [], []>} : vector<1x32xf32>, vector<32x512xf32>, vector<1x512xf32> -> vector<1x512xf32>
    %220 = tpu.iota {dimensions = array<i32: 1>} : vector<1x128xi32>
    %cst_203 = arith.constant 0.000000e+00 : f32
    %221 = vector.broadcast %cst_203 : f32 to vector<1x128xf32>
    %222 = vector.extract_strided_slice %219 {offsets = [0, 0], sizes = [1, 256], strides = [1, 1]} : vector<1x512xf32> to vector<1x256xf32>
    %cst_204 = arith.constant dense<0.000000e+00> : vector<1xf32>
    %223 = vector.multi_reduction <add>, %222, %cst_204 [1] : vector<1x256xf32> to vector<1xf32>
    %224 = vector.shape_cast %223 : vector<1xf32> to vector<1x1xf32>
    %c0_i32 = arith.constant 0 : i32
    %225 = vector.broadcast %c0_i32 : i32 to vector<1x128xi32>
    %226 = arith.cmpi eq, %220, %225 : vector<1x128xi32>
    %cst_205 = arith.constant 0.000000e+00 : f32
    %227 = vector.shape_cast %224 : vector<1x1xf32> to vector<1x1xf32>
    %228 = vector.broadcast %227 : vector<1x1xf32> to vector<1x128xf32>
    %229 = vector.broadcast %cst_205 : f32 to vector<1x128xf32>
    %230 = arith.select %226, %228, %229 : vector<1x128xi1>, vector<1x128xf32>
    %231 = arith.addf %221, %230 : vector<1x128xf32>
    %232 = vector.extract_strided_slice %219 {offsets = [0, 256], sizes = [1, 256], strides = [1, 1]} : vector<1x512xf32> to vector<1x256xf32>
    %cst_206 = arith.constant dense<0.000000e+00> : vector<1xf32>
    %233 = vector.multi_reduction <add>, %232, %cst_206 [1] : vector<1x256xf32> to vector<1xf32>
    %234 = vector.shape_cast %233 : vector<1xf32> to vector<1x1xf32>
    %c1_i32_207 = arith.constant 1 : i32
    %235 = vector.broadcast %c1_i32_207 : i32 to vector<1x128xi32>
    %236 = arith.cmpi eq, %220, %235 : vector<1x128xi32>
    %cst_208 = arith.constant 0.000000e+00 : f32
    %237 = vector.shape_cast %234 : vector<1x1xf32> to vector<1x1xf32>
    %238 = vector.broadcast %237 : vector<1x1xf32> to vector<1x128xf32>
    %239 = vector.broadcast %cst_208 : f32 to vector<1x128xf32>
    %240 = arith.select %236, %238, %239 : vector<1x128xi1>, vector<1x128xf32>
    %241 = arith.addf %231, %240 : vector<1x128xf32>
    %cst_209 = arith.constant 3.906250e-03 : f32
    %242 = vector.broadcast %cst_209 : f32 to vector<1x128xf32>
    %243 = arith.mulf %241, %242 : vector<1x128xf32>
    %c0_210 = arith.constant 0 : index
    %c3_211 = arith.constant 3 : index
    %244 = vector.load %arg3[%c0_210, %c3_211] : memref<32x4xf32, #tpu.memory_space<vmem>>, vector<1x1xf32>
    %245 = vector.broadcast %244 : vector<1x1xf32> to vector<1x128xf32>
    %246 = arith.addf %243, %245 : vector<1x128xf32>
    %c0_212 = arith.constant 0 : index
    %c0_213 = arith.constant 0 : index
    %247 = vector.load %arg5[%c0_212, %c0_213] : memref<1x128xf32, #tpu.memory_space<vmem>>, vector<1x128xf32>
    tpu.vector_store %arg5[%c0_212, %c0_213], %246 {strides = array<i32>} : memref<1x128xf32, #tpu.memory_space<vmem>>, vector<1x128xf32>,
    return
  }
}

</mosaic_0001>

<bundles_post_ra>
// kernel: resnet_regression_head_forward.1
= control target key start
LH: loop header
LB: loop body
LE: loop exit
PB: predicated region body
PF: predicated region fallthrough
CT: control target
= control target key end

     0   :  { %v12885_v2 = vmov 0.0   ;;  %s8074_s22 = smov 17   ;;  %vm65_vm0 = vcmask 261120   ;;  %s8075_s10 = smov 16   ;;  %v288_v21 = vlaneseq  ;;  %vm7680_vm9 = vcmask 1040384   ;;  %s12879_s0 = inlined_call_operand.vmem [shape: f32[32,512], index: 0, kind: input, shape index: {}]   ;;  %s12880_s2 = inlined_call_operand.vmem [shape: f32[3,9,32,32], index: 2, kind: input, shape index: {}]   ;;  %s12881_s1 = inlined_call_operand.vmem [shape: f32[8,512], index: 1, kind: input, shape index: {}]   ;;  %s12882_s3 = inlined_call_operand.vmem [shape: f32[32,4], index: 3, kind: input, shape index: {}]   ;;  %s12883_s4 = inlined_call_operand.vmem [shape: f32[1,32], index: 4, kind: input, shape index: {}]   ;;  %s12884_s5 = inlined_call_operand.vmem [shape: f32[1,128], index: 5, kind: output, shape index: {}]  }
   0x1   :  { %v8119_v0 = vld [vmem:[%s12879_s0 + $0x70] sm:$0xff]  ;;  %v8124_v1 = vld [vmem:[%s12879_s0 + $0x60] sm:$0xff]  ;;  %142 = vmatprep.mubr.f32.mxu0 %v12885_v2  ;;  %231 = vmatprep.mubr.f32.mxu1 %v12885_v2  ;;  %v8135_v3 = vld [vmem:[%s12879_s0 + $0x78] sm:$0xff]  ;;  %s8076_s11 = smov 15   ;;  %s8077_s12 = smov 1  }
   0x2   :  { %278 = vrot.lane.b32.xlu1 %v8119_v0, %s8074_s22  ;;  %262 = vrot.lane.b32.xlu0 %v8124_v1, %s8074_s22  ;;  %v8140_v4 = vld [vmem:[%s12879_s0 + $0x68] sm:$0xff]  ;;  %v8152_v6 = vld [vmem:[%s12879_s0 + $0x58] sm:$0xff]  ;;  %v314_v22 = vshrl.u32 %v288_v21, 7  ;;  %v8358_v23 = vand.u32 127, %v288_v21  ;;  %s8078_s15 = smov 127   ;;  %s8079_s27 = smov 113  }
   0x3   :  { %191 = vmatprep.subr.mxu1 %v8135_v3  ;;  %102 = vmatprep.subr.mxu0 %v8140_v4  ;;  %v8147_v5 = vld [vmem:[%s12879_s0 + $0x48] sm:$0xff]  ;;  %v8165_v7 = vld [vmem:[%s12879_s0 + $0x40] sm:$0xff]  ;;  %v8170_v8 = vld [vmem:[%s12879_s0 + $0x50] sm:$0xff]  ;;  %s8081_s17 = smov 112   ;;  %s8082_s30 = smov 111  }
   0x4   :  { %103 = vmatpush1.msra.mxu0 %v8124_v1  ;;  %192 = vmatpush1.msra.mxu1 %v8119_v0  ;;  %v8175_v9 = vld [vmem:[%s12879_s0 + $0x28] sm:$0xff]  ;;  %v8180_v10 = vld [vmem:[%s12879_s0 + $0x38] sm:$0xff]  ;;  %v8187_v11 = vld [vmem:[%s12879_s0 + $0x20] sm:$0xff]  ;;  %13040 = vst [vmem:[#allocation2_spill] sm:$0xff] %v8358_v23  ;;  %v8360_v24 = vsub.s32 0, %v314_v22  ;;  %v8362_v25 = vsub.s32 2, %v314_v22 }
   0x5   :  { %104 = vmatprep.subr.mxu0 %v8147_v5  ;;  %193 = vmatprep.subr.mxu1 %v8152_v6  ;;  %v8192_v12 = vld [vmem:[%s12879_s0 + $0x30] sm:$0xff]  ;;  %v8199_v13 = vld [vmem:[%s12879_s0 + $0x8] sm:$0xff]  ;;  %v8210_v14 = vld [vmem:[%s12879_s0 + $0x18] sm:$0xff]  ;;  %v8364_v26 = vsub.s32 1, %v314_v22  ;;  %v8369_v28 = vsub.s32 3, %v314_v22  ;;  %vm290_vm1 = vcmp.lt.s32.totalorder %v8358_v23, 17 }
   0x6   :  { %286 = vrot.lane.b32.xlu1 %v8135_v3, %s8074_s22  ;;  %270 = vrot.lane.b32.xlu0 %v8140_v4, %s8074_s22  ;;  %v7710_v15 = vld [vmem:[%s12880_s2 + $0x80] sm:$0xff]  ;;  %v8223_v17 = vld [vmem:[%s12879_s0 + $0x10] sm:$0xff]  ;;  %vm587_vm2 = vcmp.lt.s32.totalorder %v8358_v23, 16  ;;  %vm886_vm3 = vcmp.lt.s32.totalorder %v8358_v23, 15  ;;  %vm1185_vm4 = vcmp.lt.s32.totalorder %v8358_v23, 1  ;;  %vm1484_vm5 = vcmp.lt.s32.totalorder %v8358_v23, 127 }
   0x7   :  { %105 = vmatpush1.msra.mxu0 %v8165_v7  ;;  %194 = vmatpush1.msra.mxu1 %v8170_v8  ;;  %v8218_v16 = vld [vmem:[%s12879_s0] sm:$0xff]  ;;  %v7711_v18 = vld [vmem:[%s12880_s2 + $0x88] sm:$0xff]  ;;  %v7712_v19 = vld [vmem:[%s12880_s2 + $0x90] sm:$0xff]  ;;  %vm1783_vm6 = vcmp.lt.s32.totalorder %v8358_v23, 113  ;;  %vm2082_vm7 = vcmp.lt.s32.totalorder %v8358_v23, 112  ;;  %vm2381_vm8 = vcmp.lt.s32.totalorder %v8358_v23, 111 }
   0x8   :  { %106 = vmatprep.subr.mxu0 %v8175_v9  ;;  %195 = vmatprep.subr.mxu1 %v8180_v10  ;;  %v7713_v20 = vld [vmem:[%s12880_s2 + $0x98] sm:$0xff] }
   0x9   :  { %107 = vmatpush1.msra.mxu0 %v8187_v11  ;;  %196 = vmatpush1.msra.mxu1 %v8192_v12  ;;  %v311_v27 = vld [vmem:[%s12881_s1] ss:$8 sm:$0xf] }
   0xa   :  { %268 = vrot.lane.b32.xlu1 %v8147_v5, %s8074_s22  ;;  %260 = vrot.lane.b32.xlu0 %v8165_v7, %s8074_s22  ;;  %v8377_v31 = vrot.slane %v311_v27, %v8360_v24  ;;  %v8380_v32 = vrot.slane %v311_v27, %v8362_v25  ;;  %v8383_v33 = vrot.slane %v311_v27, %v8364_v26 }
   0xb   :  { %197 = vmatprep.subr.mxu1 %v8210_v14  ;;  %108 = vmatprep.subr.mxu0 %v8199_v13  ;;  %v8386_v34 = vrot.slane %v311_v27, %v8369_v28 }
   0xc   :  { %109 = vmatpush1.msra.mxu0 %v8218_v16  ;;  %198 = vmatpush1.msra.mxu1 %v8223_v17  ;;  %13041 = vst [vmem:[#allocation3_spill] sm:$0xff] %v8377_v31  ;;  %13042 = vst [vmem:[#allocation4_spill] sm:$0xff] %v8380_v32 }
   0xd   :  { %7714 = vmatmul.mubr.msk.f32.vlgmr.msra.gmra.mxu0 %vm65_vm0, %v7710_v15  ;;  %7718 = vmatmul.mubr.msk.f32.vlgmr.msra.gmra.mxu1 %vm65_vm0, %v7710_v15  ;;  %13043 = vst [vmem:[#allocation5_spill] sm:$0xff] %v8383_v33  ;;  %13044 = vst [vmem:[#allocation6_spill] sm:$0xff] %v8386_v34 }
   0xe   :  { %284 = vrot.lane.b32.xlu1 %v8152_v6, %s8074_s22  ;;  %276 = vrot.lane.b32.xlu0 %v8170_v8, %s8074_s22 }
   0xf   :  { %148 = vmatprep.mubr.f32.mxu0 %v12885_v2  ;;  %237 = vmatprep.mubr.f32.mxu1 %v12885_v2 }
  0x11   :  { %7715 = vmatmul.mubr.msk.f32.gmra.mxu0 %vm65_vm0, %v7711_v18  ;;  %7719 = vmatmul.mubr.msk.f32.gmra.mxu1 %vm65_vm0, %v7711_v18 }
  0x12   :  { %266 = vrot.lane.b32.xlu1 %v8175_v9, %s8074_s22  ;;  %258 = vrot.lane.b32.xlu0 %v8187_v11, %s8074_s22 }
  0x13   :  { %154 = vmatprep.mubr.f32.mxu0 %v12885_v2  ;;  %243 = vmatprep.mubr.f32.mxu1 %v12885_v2 }
  0x15   :  { %7716 = vmatmul.mubr.msk.f32.gmra.mxu0 %vm65_vm0, %v7712_v19  ;;  %7720 = vmatmul.mubr.msk.f32.gmra.mxu1 %vm65_vm0, %v7712_v19 }
  0x16   :  { %282 = vrot.lane.b32.xlu1 %v8180_v10, %s8074_s22  ;;  %274 = vrot.lane.b32.xlu0 %v8192_v12, %s8074_s22 }
  0x17   :  { %160 = vmatprep.mubr.f32.mxu0 %v12885_v2  ;;  %249 = vmatprep.mubr.f32.mxu1 %v12885_v2 }
  0x19   :  { %7717 = vmatmul.mubr.msk.f32.gmra.mxu0 %vm65_vm0, %v7713_v20  ;;  %7721 = vmatmul.mubr.msk.f32.gmra.mxu1 %vm65_vm0, %v7713_v20 }
  0x1a   :  { %264 = vrot.lane.b32.xlu1 %v8199_v13, %s8074_s22  ;;  %256 = vrot.lane.b32.xlu0 %v8218_v16, %s8074_s22 }
  0x1b   :  { %425 = vmatprep.mubr.f32.mxu0 %v12885_v2  ;;  %514 = vmatprep.mubr.f32.mxu1 %v12885_v2 }
  0x1e   :  { %280 = vrot.lane.b32.xlu1 %v8210_v14, %s8074_s22  ;;  %272 = vrot.lane.b32.xlu0 %v8223_v17, %s8074_s22 }
  0x22   :  { %569 = vrot.lane.b32.xlu1 %v8140_v4, %s8075_s10  ;;  %561 = vrot.lane.b32.xlu0 %v8124_v1, %s8075_s10 }
  0x26   :  { %585 = vrot.lane.b32.xlu1 %v8135_v3, %s8075_s10  ;;  %577 = vrot.lane.b32.xlu0 %v8119_v0, %s8075_s10 }
  0x2a   :  { %567 = vrot.lane.b32.xlu1 %v8147_v5, %s8075_s10  ;;  %559 = vrot.lane.b32.xlu0 %v8165_v7, %s8075_s10 }
  0x2e   :  { %583 = vrot.lane.b32.xlu1 %v8152_v6, %s8075_s10  ;;  %575 = vrot.lane.b32.xlu0 %v8170_v8, %s8075_s10 }
  0x32   :  { %565 = vrot.lane.b32.xlu1 %v8175_v9, %s8075_s10  ;;  %557 = vrot.lane.b32.xlu0 %v8187_v11, %s8075_s10 }
  0x36   :  { %581 = vrot.lane.b32.xlu1 %v8180_v10, %s8075_s10  ;;  %573 = vrot.lane.b32.xlu0 %v8192_v12, %s8075_s10 }
  0x3a   :  { %563 = vrot.lane.b32.xlu1 %v8199_v13, %s8075_s10  ;;  %555 = vrot.lane.b32.xlu0 %v8218_v16, %s8075_s10 }
  0x3e   :  { %579 = vrot.lane.b32.xlu1 %v8210_v14, %s8075_s10  ;;  %571 = vrot.lane.b32.xlu0 %v8223_v17, %s8075_s10 }
  0x42   :  { %868 = vrot.lane.b32.xlu1 %v8140_v4, %s8076_s11  ;;  %860 = vrot.lane.b32.xlu0 %v8124_v1, %s8076_s11 }
  0x46   :  { %884 = vrot.lane.b32.xlu1 %v8135_v3, %s8076_s11  ;;  %876 = vrot.lane.b32.xlu0 %v8119_v0, %s8076_s11 }
  0x4a   :  { %866 = vrot.lane.b32.xlu1 %v8147_v5, %s8076_s11  ;;  %858 = vrot.lane.b32.xlu0 %v8165_v7, %s8076_s11 }
  0x4e   :  { %882 = vrot.lane.b32.xlu1 %v8152_v6, %s8076_s11  ;;  %874 = vrot.lane.b32.xlu0 %v8170_v8, %s8076_s11 }
  0x52   :  { %864 = vrot.lane.b32.xlu1 %v8175_v9, %s8076_s11  ;;  %856 = vrot.lane.b32.xlu0 %v8187_v11, %s8076_s11 }
  0x56   :  { %880 = vrot.lane.b32.xlu1 %v8180_v10, %s8076_s11  ;;  %872 = vrot.lane.b32.xlu0 %v8192_v12, %s8076_s11 }
  0x5a   :  { %862 = vrot.lane.b32.xlu1 %v8199_v13, %s8076_s11  ;;  %854 = vrot.lane.b32.xlu0 %v8218_v16, %s8076_s11 }
  0x5e   :  { %878 = vrot.lane.b32.xlu1 %v8210_v14, %s8076_s11  ;;  %870 = vrot.lane.b32.xlu0 %v8223_v17, %s8076_s11 }
  0x62   :  { %1167 = vrot.lane.b32.xlu1 %v8140_v4, %s8077_s12  ;;  %1159 = vrot.lane.b32.xlu0 %v8124_v1, %s8077_s12 }
  0x66   :  { %1183 = vrot.lane.b32.xlu1 %v8135_v3, %s8077_s12  ;;  %1175 = vrot.lane.b32.xlu0 %v8119_v0, %s8077_s12 }
  0x6a   :  { %1165 = vrot.lane.b32.xlu1 %v8147_v5, %s8077_s12  ;;  %1157 = vrot.lane.b32.xlu0 %v8165_v7, %s8077_s12 }
  0x6e   :  { %1181 = vrot.lane.b32.xlu1 %v8152_v6, %s8077_s12  ;;  %1173 = vrot.lane.b32.xlu0 %v8170_v8, %s8077_s12 }
  0x72   :  { %1163 = vrot.lane.b32.xlu1 %v8175_v9, %s8077_s12  ;;  %1155 = vrot.lane.b32.xlu0 %v8187_v11, %s8077_s12 }
  0x74   :  { %v279_v29 = vpop.permute.xlu1 %278  ;;  %v263_v30 = vpop.permute.xlu0 %262 }
  0x76   :  { %1179 = vrot.lane.b32.xlu1 %v8180_v10, %s8077_s12  ;;  %1171 = vrot.lane.b32.xlu0 %v8192_v12, %s8077_s12 }
  0x78   :  { %v287_v35 = vpop.permute.xlu1 %286  ;;  %v271_v36 = vpop.permute.xlu0 %270 }
  0x79   :  { %v294_v37 = vsel %vm290_vm1, %v279_v29, %v287_v35  ;;  %v306_v38 = vsel %vm290_vm1, %v287_v35, %v263_v30  ;;  %v298_v39 = vsel %vm290_vm1, %v271_v36, %v279_v29  ;;  %v302_v40 = vsel %vm290_vm1, %v263_v30, %v271_v36  ;;  %v7734_v35 = vld [vmem:[%s12881_s1 + $0x1] ss:$8 sm:$0xf] }
  0x7a   :  { %v345_v41 = vmul.f32 %v8377_v31, %v306_v38  ;;  %v347_v42 = vmul.f32 %v8380_v32, %v298_v39  ;;  %1161 = vrot.lane.b32.xlu1 %v8199_v13, %s8077_s12  ;;  %1153 = vrot.lane.b32.xlu0 %v8218_v16, %s8077_s12  ;;  %v346_v43 = vmul.f32 %v8383_v33, %v302_v40 }
  0x7b   :  { %v348_v44 = vmul.f32 %v8386_v34, %v294_v37 }
  0x7c   :  { %v269_v45 = vpop.permute.xlu1 %268  ;;  %v261_v46 = vpop.permute.xlu0 %260  ;;  %385 = vmatprep.subr.mxu0 %v346_v43 }
  0x7d   :  { %v301_v47 = vsel %vm290_vm1, %v261_v46, %v269_v45  ;;  %474 = vmatprep.subr.mxu1 %v348_v44  ;;  %386 = vmatpush1.msra.mxu0 %v345_v41  ;;  %v8467_v44 = vrot.slane %v7734_v35, %v8364_v26 }
  0x7e   :  { %475 = vmatpush1.msra.mxu1 %v347_v42  ;;  %1177 = vrot.lane.b32.xlu1 %v8210_v14, %s8077_s12  ;;  %v342_v48 = vmul.f32 %v8383_v33, %v301_v47 }
  0x7f   :  { %1169 = vrot.lane.b32.xlu0 %v8223_v17, %s8077_s12  ;;  %13045 = vst [vmem:[#allocation7_spill] sm:$0xff] %v8467_v44 }
  0x80   :  { %v285_v49 = vpop.permute.xlu1 %284  ;;  %v277_v50 = vpop.permute.xlu0 %276  ;;  %387 = vmatprep.subr.mxu0 %v342_v48 }
  0x81   :  { %v305_v51 = vsel %vm290_vm1, %v285_v49, %v261_v46  ;;  %v293_v52 = vsel %vm290_vm1, %v277_v50, %v285_v49  ;;  %v297_v53 = vsel %vm290_vm1, %v269_v45, %v277_v50  ;;  %v307_v45 = vld [vmem:[%s12880_s2] sm:$0xff]  ;;  %v8477_v49 = vrot.slane %v7734_v35, %v8360_v24 }
  0x82   :  { %v341_v54 = vmul.f32 %v8377_v31, %v305_v51  ;;  %v343_v55 = vmul.f32 %v8380_v32, %v297_v53  ;;  %1466 = vrot.lane.b32.xlu1 %v8140_v4, %s8078_s15  ;;  %v344_v56 = vmul.f32 %v8386_v34, %v293_v52  ;;  %v8483_v50 = vrot.slane %v7734_v35, %v8362_v25  ;;  %v308_v53 = vld [vmem:[%s12880_s2 + $0x8] sm:$0xff] }
  0x83   :  { %1458 = vrot.lane.b32.xlu0 %v8124_v1, %s8078_s15  ;;  %13046 = vst [vmem:[#allocation8_spill] sm:$0xff] %v8477_v49  ;;  %v8487_v52 = vrot.slane %v7734_v35, %v8369_v28 }
  0x84   :  { %v267_v57 = vpop.permute.xlu1 %266  ;;  %v259_v58 = vpop.permute.xlu0 %258  ;;  %388 = vmatpush1.msra.mxu0 %v341_v54  ;;  %476 = vmatprep.subr.mxu1 %v344_v56  ;;  %13047 = vst [vmem:[#allocation9_spill] sm:$0xff] %v8483_v50 }
  0x85   :  { %v300_v59 = vsel %vm290_vm1, %v259_v58, %v267_v57  ;;  %477 = vmatpush1.msra.mxu1 %v343_v55  ;;  %13048 = vst [vmem:[#allocation10_spill] sm:$0xff] %v8487_v52 }
  0x86   :  { %1482 = vrot.lane.b32.xlu1 %v8135_v3, %s8078_s15  ;;  %v338_v60 = vmul.f32 %v8383_v33, %v300_v59 }
  0x87   :  { %1474 = vrot.lane.b32.xlu0 %v8119_v0, %s8078_s15 }
  0x88   :  { %v283_v61 = vpop.permute.xlu1 %282  ;;  %v275_v62 = vpop.permute.xlu0 %274  ;;  %389 = vmatprep.subr.mxu0 %v338_v60 }
  0x89   :  { %v304_v63 = vsel %vm290_vm1, %v283_v61, %v259_v58  ;;  %v292_v15 = vsel %vm290_vm1, %v275_v62, %v283_v61  ;;  %v296_v18 = vsel %vm290_vm1, %v267_v57, %v275_v62  ;;  %v309_v62 = vld [vmem:[%s12880_s2 + $0x10] sm:$0xff] }
  0x8a   :  { %v337_v19 = vmul.f32 %v8377_v31, %v304_v63  ;;  %v339_v20 = vmul.f32 %v8380_v32, %v296_v18  ;;  %1464 = vrot.lane.b32.xlu1 %v8147_v5, %s8078_s15  ;;  %v340_v21 = vmul.f32 %v8386_v34, %v292_v15 }
  0x8b   :  { %1456 = vrot.lane.b32.xlu0 %v8165_v7, %s8078_s15 }
  0x8c   :  { %478 = vmatprep.subr.mxu1 %v340_v21  ;;  %v265_v22 = vpop.permute.xlu1 %264  ;;  %v257_v27 = vpop.permute.xlu0 %256  ;;  %390 = vmatpush1.msra.mxu0 %v337_v19 }
  0x8d   :  { %v299_v29 = vsel %vm290_vm1, %v257_v27, %v265_v22  ;;  %479 = vmatpush1.msra.mxu1 %v339_v20  ;;  %v310_v20 = vld [vmem:[%s12880_s2 + $0x18] sm:$0xff] }
  0x8e   :  { %1480 = vrot.lane.b32.xlu1 %v8152_v6, %s8078_s15  ;;  %v334_v30 = vmul.f32 %v8383_v33, %v299_v29 }
  0x8f   :  { %1472 = vrot.lane.b32.xlu0 %v8170_v8, %s8078_s15 }
  0x90   :  { %v281_v36 = vpop.permute.xlu1 %280  ;;  %v273_v37 = vpop.permute.xlu0 %272  ;;  %391 = vmatprep.subr.mxu0 %v334_v30 }
  0x91   :  { %v303_v38 = vsel %vm290_vm1, %v281_v36, %v257_v27  ;;  %v291_v39 = vsel %vm290_vm1, %v273_v37, %v281_v36  ;;  %v295_v40 = vsel %vm290_vm1, %v265_v22, %v273_v37 }
  0x92   :  { %v333_v41 = vmul.f32 %v8377_v31, %v303_v38  ;;  %v335_v42 = vmul.f32 %v8380_v32, %v295_v40  ;;  %1462 = vrot.lane.b32.xlu1 %v8175_v9, %s8078_s15  ;;  %v336_v43 = vmul.f32 %v8386_v34, %v291_v39 }
  0x93   :  { %1454 = vrot.lane.b32.xlu0 %v8187_v11, %s8078_s15 }
  0x94   :  { %v570_v46 = vpop.permute.xlu1 %569  ;;  %480 = vmatprep.subr.mxu1 %v336_v43  ;;  %v562_v47 = vpop.permute.xlu0 %561  ;;  %392 = vmatpush1.msra.mxu0 %v333_v41 }
  0x95   :  { %v599_v48 = vsel %vm587_vm2, %v562_v47, %v570_v46  ;;  %481 = vmatpush1.msra.mxu1 %v335_v42  ;;  %7722 = vmatmul.mubr.msk.f32.vlgmr.msra.gmra.mxu0 %vm65_vm0, %v307_v45 }
  0x96   :  { %1478 = vrot.lane.b32.xlu1 %v8180_v10, %s8078_s15  ;;  %v645_v51 = vmul.f32 %v8467_v44, %v599_v48  ;;  %7726 = vmatmul.mubr.msk.f32.vlgmr.msra.gmra.mxu1 %vm65_vm0, %v307_v45 }
  0x97   :  { %1470 = vrot.lane.b32.xlu0 %v8192_v12, %s8078_s15  ;;  %431 = vmatprep.mubr.f32.mxu0 %v12885_v2 }
  0x98   :  { %v586_v54 = vpop.permute.xlu1 %585  ;;  %v578_v55 = vpop.permute.xlu0 %577  ;;  %684 = vmatprep.subr.mxu0 %v645_v51  ;;  %520 = vmatprep.mubr.f32.mxu1 %v12885_v2 }
  0x99   :  { %v603_v56 = vsel %vm587_vm2, %v586_v54, %v562_v47  ;;  %v591_v57 = vsel %vm587_vm2, %v578_v55, %v586_v54  ;;  %v595_v58 = vsel %vm587_vm2, %v570_v46, %v578_v55  ;;  %7723 = vmatmul.mubr.msk.f32.gmra.mxu0 %vm65_vm0, %v308_v53 }
  0x9a   :  { %v644_v59 = vmul.f32 %v8477_v49, %v603_v56  ;;  %v646_v60 = vmul.f32 %v8483_v50, %v595_v58  ;;  %1460 = vrot.lane.b32.xlu1 %v8199_v13, %s8078_s15  ;;  %v647_v61 = vmul.f32 %v8487_v52, %v591_v57  ;;  %7727 = vmatmul.mubr.msk.f32.gmra.mxu1 %vm65_vm0, %v308_v53  ;;  %v7747_v58 = vld [vmem:[%s12881_s1 + $0x2] ss:$8 sm:$0xf] }
  0x9b   :  { %1452 = vrot.lane.b32.xlu0 %v8218_v16, %s8078_s15  ;;  %437 = vmatprep.mubr.f32.mxu0 %v12885_v2 }
  0x9c   :  { %v568_v63 = vpop.permute.xlu1 %567  ;;  %773 = vmatprep.subr.mxu1 %v647_v61  ;;  %v560_v15 = vpop.permute.xlu0 %559  ;;  %685 = vmatpush1.msra.mxu0 %v644_v59 }
  0x9d   :  { %v598_v18 = vsel %vm587_vm2, %v560_v15, %v568_v63  ;;  %774 = vmatpush1.msra.mxu1 %v646_v60  ;;  %526 = vmatprep.mubr.f32.mxu1 %v12885_v2 }
  0x9e   :  { %1476 = vrot.lane.b32.xlu1 %v8210_v14, %s8078_s15  ;;  %v641_v19 = vmul.f32 %v8467_v44, %v598_v18  ;;  %7724 = vmatmul.mubr.msk.f32.gmra.mxu0 %vm65_vm0, %v309_v62 }
  0x9f   :  { %1468 = vrot.lane.b32.xlu0 %v8223_v17, %s8078_s15  ;;  %7728 = vmatmul.mubr.msk.f32.gmra.mxu1 %vm65_vm0, %v309_v62 }
  0xa0   :  { %v584_v21 = vpop.permute.xlu1 %583  ;;  %v576_v22 = vpop.permute.xlu0 %575  ;;  %686 = vmatprep.subr.mxu0 %v641_v19  ;;  %443 = vmatprep.mubr.f32.mxu0 %v12885_v2 }
  0xa1   :  { %v602_v27 = vsel %vm587_vm2, %v584_v21, %v560_v15  ;;  %v590_v29 = vsel %vm587_vm2, %v576_v22, %v584_v21  ;;  %v594_v30 = vsel %vm587_vm2, %v568_v63, %v576_v22  ;;  %532 = vmatprep.mubr.f32.mxu1 %v12885_v2  ;;  %v7730_v21 = vld [vmem:[%s12880_s2 + $0x20] sm:$0xff] }
  0xa2   :  { %v640_v35 = vmul.f32 %v8477_v49, %v602_v27  ;;  %v642_v36 = vmul.f32 %v8483_v50, %v594_v30  ;;  %1765 = vrot.lane.b32.xlu1 %v8140_v4, %s8079_s27  ;;  %v643_v37 = vmul.f32 %v8487_v52, %v590_v29  ;;  %7725 = vmatmul.mubr.msk.f32.gmra.mxu0 %vm65_vm0, %v310_v20 }
  0xa3   :  { %1757 = vrot.lane.b32.xlu0 %v8124_v1, %s8079_s27  ;;  %7729 = vmatmul.mubr.msk.f32.gmra.mxu1 %vm65_vm0, %v310_v20  ;;  %v8591_v20 = vrot.slane %v7747_v58, %v8364_v26  ;;  %v8601_v30 = vrot.slane %v7747_v58, %v8360_v24 }
  0xa4   :  { %v566_v38 = vpop.permute.xlu1 %565  ;;  %775 = vmatprep.subr.mxu1 %v643_v37  ;;  %v558_v39 = vpop.permute.xlu0 %557  ;;  %687 = vmatpush1.msra.mxu0 %v640_v35  ;;  %v8607_v35 = vrot.slane %v7747_v58, %v8362_v25  ;;  %v8611_v37 = vrot.slane %v7747_v58, %v8369_v28 }
  0xa5   :  { %v597_v40 = vsel %vm587_vm2, %v558_v39, %v566_v38  ;;  %776 = vmatpush1.msra.mxu1 %v642_v36  ;;  %724 = vmatprep.mubr.f32.mxu0 %v12885_v2  ;;  %13049 = vst [vmem:[#allocation11_spill] sm:$0xff] %v8591_v20  ;;  %13050 = vst [vmem:[#allocation12_spill] sm:$0xff] %v8601_v30 }
  0xa6   :  { %1781 = vrot.lane.b32.xlu1 %v8135_v3, %s8079_s27  ;;  %v637_v41 = vmul.f32 %v8467_v44, %v597_v40  ;;  %813 = vmatprep.mubr.f32.mxu1 %v12885_v2  ;;  %13051 = vst [vmem:[#allocation13_spill] sm:$0xff] %v8607_v35  ;;  %13052 = vst [vmem:[#allocation14_spill] sm:$0xff] %v8611_v37 }
  0xa7   :  { %1773 = vrot.lane.b32.xlu0 %v8119_v0, %s8079_s27 }
  0xa8   :  { %v582_v42 = vpop.permute.xlu1 %581  ;;  %v574_v43 = vpop.permute.xlu0 %573  ;;  %688 = vmatprep.subr.mxu0 %v637_v41 }
  0xa9   :  { %v601_v45 = vsel %vm587_vm2, %v582_v42, %v558_v39  ;;  %v589_v46 = vsel %vm587_vm2, %v574_v43, %v582_v42  ;;  %v593_v47 = vsel %vm587_vm2, %v566_v38, %v574_v43  ;;  %v7731_v38 = vld [vmem:[%s12880_s2 + $0x28] sm:$0xff] }
  0xaa   :  { %v636_v48 = vmul.f32 %v8477_v49, %v601_v45  ;;  %v638_v51 = vmul.f32 %v8483_v50, %v593_v47  ;;  %1763 = vrot.lane.b32.xlu1 %v8147_v5, %s8079_s27  ;;  %v639_v53 = vmul.f32 %v8487_v52, %v589_v46  ;;  %v8080_v45 = vmov 0  }
  0xab   :  { %1755 = vrot.lane.b32.xlu0 %v8165_v7, %s8079_s27  ;;  %8053 = vset.pattern.permute.xlu1 %v8080_v45 }
  0xac   :  { %v564_v54 = vpop.permute.xlu1 %563  ;;  %777 = vmatprep.subr.mxu1 %v639_v53  ;;  %v556_v55 = vpop.permute.xlu0 %555  ;;  %689 = vmatpush1.msra.mxu0 %v636_v48 }
  0xad   :  { %v596_v56 = vsel %vm587_vm2, %v556_v55, %v564_v54  ;;  %778 = vmatpush1.msra.mxu1 %v638_v51  ;;  %8052 = vset.pattern.permute.xlu0 %v8080_v45  ;;  %v7732_v51 = vld [vmem:[%s12880_s2 + $0x30] sm:$0xff] }
  0xae   :  { %1779 = vrot.lane.b32.xlu1 %v8152_v6, %s8079_s27  ;;  %v633_v57 = vmul.f32 %v8467_v44, %v596_v56 }
  0xaf   :  { %1771 = vrot.lane.b32.xlu0 %v8170_v8, %s8079_s27 }
  0xb0   :  { %v580_v59 = vpop.permute.xlu1 %579  ;;  %v572_v60 = vpop.permute.xlu0 %571  ;;  %690 = vmatprep.subr.mxu0 %v633_v57  ;;  %v7733_v57 = vld [vmem:[%s12880_s2 + $0x38] sm:$0xff] }
  0xb1   :  { %v600_v61 = vsel %vm587_vm2, %v580_v59, %v556_v55  ;;  %v588_v62 = vsel %vm587_vm2, %v572_v60, %v580_v59  ;;  %v592_v63 = vsel %vm587_vm2, %v564_v54, %v572_v60 }
  0xb2   :  { %v632_v15 = vmul.f32 %v8477_v49, %v600_v61  ;;  %v634_v18 = vmul.f32 %v8483_v50, %v592_v63  ;;  %1761 = vrot.lane.b32.xlu1 %v8175_v9, %s8079_s27  ;;  %v635_v19 = vmul.f32 %v8487_v52, %v588_v62 }
  0xb3   :  { %1753 = vrot.lane.b32.xlu0 %v8187_v11, %s8079_s27 }
  0xb4   :  { %v869_v22 = vpop.permute.xlu1 %868  ;;  %779 = vmatprep.subr.mxu1 %v635_v19  ;;  %v861_v27 = vpop.permute.xlu0 %860  ;;  %691 = vmatpush1.msra.mxu0 %v632_v15 }
  0xb5   :  { %v898_v29 = vsel %vm886_vm3, %v861_v27, %v869_v22  ;;  %780 = vmatpush1.msra.mxu1 %v634_v18  ;;  %7735 = vmatmul.mubr.msk.f32.vlgmr.msra.gmra.mxu0 %vm65_vm0, %v7730_v21 }
  0xb6   :  { %1777 = vrot.lane.b32.xlu1 %v8180_v10, %s8079_s27  ;;  %v944_v36 = vmul.f32 %v8591_v20, %v898_v29  ;;  %7739 = vmatmul.mubr.msk.f32.vlgmr.msra.gmra.mxu1 %vm65_vm0, %v7730_v21 }
  0xb7   :  { %1769 = vrot.lane.b32.xlu0 %v8192_v12, %s8079_s27  ;;  %730 = vmatprep.mubr.f32.mxu0 %v12885_v2 }
  0xb8   :  { %v885_v39 = vpop.permute.xlu1 %884  ;;  %v877_v40 = vpop.permute.xlu0 %876  ;;  %983 = vmatprep.subr.mxu0 %v944_v36  ;;  %819 = vmatprep.mubr.f32.mxu1 %v12885_v2 }
  0xb9   :  { %v902_v41 = vsel %vm886_vm3, %v885_v39, %v861_v27  ;;  %v890_v42 = vsel %vm886_vm3, %v877_v40, %v885_v39  ;;  %v894_v43 = vsel %vm886_vm3, %v869_v22, %v877_v40  ;;  %7736 = vmatmul.mubr.msk.f32.gmra.mxu0 %vm65_vm0, %v7731_v38 }
  0xba   :  { %v943_v46 = vmul.f32 %v8601_v30, %v902_v41  ;;  %v945_v47 = vmul.f32 %v8607_v35, %v894_v43  ;;  %1759 = vrot.lane.b32.xlu1 %v8199_v13, %s8079_s27  ;;  %v946_v48 = vmul.f32 %v8611_v37, %v890_v42  ;;  %7740 = vmatmul.mubr.msk.f32.gmra.mxu1 %vm65_vm0, %v7731_v38 }
  0xbb   :  { %1751 = vrot.lane.b32.xlu0 %v8218_v16, %s8079_s27  ;;  %736 = vmatprep.mubr.f32.mxu0 %v12885_v2 }
  0xbc   :  { %v867_v53 = vpop.permute.xlu1 %866  ;;  %1072 = vmatprep.subr.mxu1 %v946_v48  ;;  %v859_v54 = vpop.permute.xlu0 %858  ;;  %984 = vmatpush1.msra.mxu0 %v943_v46 }
  0xbd   :  { %v897_v55 = vsel %vm886_vm3, %v859_v54, %v867_v53  ;;  %1073 = vmatpush1.msra.mxu1 %v945_v47  ;;  %825 = vmatprep.mubr.f32.mxu1 %v12885_v2 }
  0xbe   :  { %1775 = vrot.lane.b32.xlu1 %v8210_v14, %s8079_s27  ;;  %v940_v56 = vmul.f32 %v8591_v20, %v897_v55  ;;  %7737 = vmatmul.mubr.msk.f32.gmra.mxu0 %vm65_vm0, %v7732_v51 }
  0xbf   :  { %1767 = vrot.lane.b32.xlu0 %v8223_v17, %s8079_s27  ;;  %7741 = vmatmul.mubr.msk.f32.gmra.mxu1 %vm65_vm0, %v7732_v51  ;;  %v7760_v51 = vld [vmem:[%s12881_s1 + $0x3] ss:$8 sm:$0xf] }
  0xc0   :  { %v883_v58 = vpop.permute.xlu1 %882  ;;  %v875_v59 = vpop.permute.xlu0 %874  ;;  %985 = vmatprep.subr.mxu0 %v940_v56  ;;  %742 = vmatprep.mubr.f32.mxu0 %v12885_v2 }
  0xc1   :  { %v901_v60 = vsel %vm886_vm3, %v883_v58, %v859_v54  ;;  %v889_v61 = vsel %vm886_vm3, %v875_v59, %v883_v58  ;;  %v893_v62 = vsel %vm886_vm3, %v867_v53, %v875_v59  ;;  %831 = vmatprep.mubr.f32.mxu1 %v12885_v2 }
  0xc2   :  { %v939_v63 = vmul.f32 %v8601_v30, %v901_v60  ;;  %v941_v15 = vmul.f32 %v8607_v35, %v893_v62  ;;  %2064 = vrot.lane.b32.xlu1 %v8140_v4, %s8081_s17  ;;  %v942_v18 = vmul.f32 %v8611_v37, %v889_v61  ;;  %7738 = vmatmul.mubr.msk.f32.gmra.mxu0 %vm65_vm0, %v7733_v57  ;;  %v7743_v62 = vld [vmem:[%s12880_s2 + $0x40] sm:$0xff] }
  0xc3   :  { %2056 = vrot.lane.b32.xlu0 %v8124_v1, %s8081_s17  ;;  %7742 = vmatmul.mubr.msk.f32.gmra.mxu1 %vm65_vm0, %v7733_v57  ;;  %v8715_v61 = vrot.slane %v7760_v51, %v8364_v26 }
  0xc4   :  { %v865_v19 = vpop.permute.xlu1 %864  ;;  %1074 = vmatprep.subr.mxu1 %v942_v18  ;;  %v857_v21 = vpop.permute.xlu0 %856  ;;  %986 = vmatpush1.msra.mxu0 %v939_v63 }
  0xc5   :  { %v896_v22 = vsel %vm886_vm3, %v857_v21, %v865_v19  ;;  %1075 = vmatpush1.msra.mxu1 %v941_v15  ;;  %1023 = vmatprep.mubr.f32.mxu0 %v12885_v2  ;;  %13053 = vst [vmem:[#allocation15_spill] sm:$0xff] %v8715_v61 }
  0xc6   :  { %2080 = vrot.lane.b32.xlu1 %v8135_v3, %s8081_s17  ;;  %v936_v27 = vmul.f32 %v8591_v20, %v896_v22  ;;  %1112 = vmatprep.mubr.f32.mxu1 %v12885_v2 }
  0xc7   :  { %2072 = vrot.lane.b32.xlu0 %v8119_v0, %s8081_s17 }
  0xc8   :  { %v881_v29 = vpop.permute.xlu1 %880  ;;  %v873_v36 = vpop.permute.xlu0 %872  ;;  %987 = vmatprep.subr.mxu0 %v936_v27  ;;  %v8735_v27 = vrot.slane %v7760_v51, %v8369_v28 }
  0xc9   :  { %v900_v38 = vsel %vm886_vm3, %v881_v29, %v857_v21  ;;  %v888_v39 = vsel %vm886_vm3, %v873_v36, %v881_v29  ;;  %v892_v40 = vsel %vm886_vm3, %v865_v19, %v873_v36  ;;  %v8725_v19 = vrot.slane %v7760_v51, %v8360_v24  ;;  %v7744_v29 = vld [vmem:[%s12880_s2 + $0x48] sm:$0xff] }
  0xca   :  { %v935_v41 = vmul.f32 %v8601_v30, %v900_v38  ;;  %v937_v42 = vmul.f32 %v8607_v35, %v892_v40  ;;  %2062 = vrot.lane.b32.xlu1 %v8147_v5, %s8081_s17  ;;  %v938_v43 = vmul.f32 %v8611_v37, %v888_v39  ;;  %v8731_v21 = vrot.slane %v7760_v51, %v8362_v25 }
  0xcb   :  { %2054 = vrot.lane.b32.xlu0 %v8165_v7, %s8081_s17  ;;  %13054 = vst [vmem:[#allocation16_spill] sm:$0xff] %v8725_v19  ;;  %13056 = vst [vmem:[#allocation18_spill] sm:$0xff] %v8735_v27 }
  0xcc   :  { %v863_v45 = vpop.permute.xlu1 %862  ;;  %1076 = vmatprep.subr.mxu1 %v938_v43  ;;  %v855_v46 = vpop.permute.xlu0 %854  ;;  %988 = vmatpush1.msra.mxu0 %v935_v41  ;;  %13055 = vst [vmem:[#allocation17_spill] sm:$0xff] %v8731_v21  ;;  %v7745_v43 = vld [vmem:[%s12880_s2 + $0x50] sm:$0xff] }
  0xcd   :  { %v895_v47 = vsel %vm886_vm3, %v855_v46, %v863_v45  ;;  %1077 = vmatpush1.msra.mxu1 %v937_v42 }
  0xce   :  { %2078 = vrot.lane.b32.xlu1 %v8152_v6, %s8081_s17  ;;  %v932_v48 = vmul.f32 %v8591_v20, %v895_v47  ;;  %v7746_v47 = vld [vmem:[%s12880_s2 + $0x58] sm:$0xff] }
  0xcf   :  { %2070 = vrot.lane.b32.xlu0 %v8170_v8, %s8081_s17 }
  0xd0   :  { %v879_v53 = vpop.permute.xlu1 %878  ;;  %v871_v54 = vpop.permute.xlu0 %870  ;;  %989 = vmatprep.subr.mxu0 %v932_v48 }
  0xd1   :  { %v899_v55 = vsel %vm886_vm3, %v879_v53, %v855_v46  ;;  %v887_v56 = vsel %vm886_vm3, %v871_v54, %v879_v53  ;;  %v891_v57 = vsel %vm886_vm3, %v863_v45, %v871_v54 }
  0xd2   :  { %v931_v58 = vmul.f32 %v8601_v30, %v899_v55  ;;  %v933_v59 = vmul.f32 %v8607_v35, %v891_v57  ;;  %2060 = vrot.lane.b32.xlu1 %v8175_v9, %s8081_s17  ;;  %v934_v60 = vmul.f32 %v8611_v37, %v887_v56 }
  0xd3   :  { %2052 = vrot.lane.b32.xlu0 %v8187_v11, %s8081_s17 }
  0xd4   :  { %v1168_v63 = vpop.permute.xlu1 %1167  ;;  %1078 = vmatprep.subr.mxu1 %v934_v60  ;;  %v1160_v15 = vpop.permute.xlu0 %1159  ;;  %990 = vmatpush1.msra.mxu0 %v931_v58 }
  0xd5   :  { %v1197_v18 = vsel %vm1185_vm4, %v1160_v15, %v1168_v63  ;;  %1079 = vmatpush1.msra.mxu1 %v933_v59  ;;  %7748 = vmatmul.mubr.msk.f32.vlgmr.msra.gmra.mxu0 %vm65_vm0, %v7743_v62 }
  0xd6   :  { %2076 = vrot.lane.b32.xlu1 %v8180_v10, %s8081_s17  ;;  %v1243_v22 = vmul.f32 %v8715_v61, %v1197_v18  ;;  %7752 = vmatmul.mubr.msk.f32.vlgmr.msra.gmra.mxu1 %vm65_vm0, %v7743_v62 }
  0xd7   :  { %2068 = vrot.lane.b32.xlu0 %v8192_v12, %s8081_s17  ;;  %1029 = vmatprep.mubr.f32.mxu0 %v12885_v2 }
  0xd8   :  { %v1184_v10 = vpop.permute.xlu1 %1183  ;;  %v1176_v36 = vpop.permute.xlu0 %1175  ;;  %1282 = vmatprep.subr.mxu0 %v1243_v22  ;;  %1118 = vmatprep.mubr.f32.mxu1 %v12885_v2 }
  0xd9   :  { %v1201_v38 = vsel %vm1185_vm4, %v1184_v10, %v1160_v15  ;;  %v1189_v39 = vsel %vm1185_vm4, %v1176_v36, %v1184_v10  ;;  %v1193_v40 = vsel %vm1185_vm4, %v1168_v63, %v1176_v36  ;;  %7749 = vmatmul.mubr.msk.f32.gmra.mxu0 %vm65_vm0, %v7744_v29 }
  0xda   :  { %v1242_v12 = vmul.f32 %v8725_v19, %v1201_v38  ;;  %v1244_v41 = vmul.f32 %v8731_v21, %v1193_v40  ;;  %2058 = vrot.lane.b32.xlu1 %v8199_v13, %s8081_s17  ;;  %v1245_v42 = vmul.f32 %v8735_v27, %v1189_v39  ;;  %7753 = vmatmul.mubr.msk.f32.gmra.mxu1 %vm65_vm0, %v7744_v29 }
  0xdb   :  { %2050 = vrot.lane.b32.xlu0 %v8218_v16, %s8081_s17  ;;  %1035 = vmatprep.mubr.f32.mxu0 %v12885_v2 }
  0xdc   :  { %v1166_v45 = vpop.permute.xlu1 %1165  ;;  %1371 = vmatprep.subr.mxu1 %v1245_v42  ;;  %v1158_v46 = vpop.permute.xlu0 %1157  ;;  %1283 = vmatpush1.msra.mxu0 %v1242_v12 }
  0xdd   :  { %v1196_v13 = vsel %vm1185_vm4, %v1158_v46, %v1166_v45  ;;  %1372 = vmatpush1.msra.mxu1 %v1244_v41  ;;  %1124 = vmatprep.mubr.f32.mxu1 %v12885_v2 }
  0xde   :  { %2074 = vrot.lane.b32.xlu1 %v8210_v14, %s8081_s17  ;;  %v1239_v16 = vmul.f32 %v8715_v61, %v1196_v13  ;;  %7750 = vmatmul.mubr.msk.f32.gmra.mxu0 %vm65_vm0, %v7745_v43  ;;  %v8060_v13 = vld [vmem:[%s12879_s0 + $0x30] sm:$0xff] }
  0xdf   :  { %2066 = vrot.lane.b32.xlu0 %v8223_v17, %s8081_s17  ;;  %7754 = vmatmul.mubr.msk.f32.gmra.mxu1 %vm65_vm0, %v7745_v43  ;;  %v7773_v43 = vld [vmem:[%s12881_s1 + $0x4] ss:$8 sm:$0xf] }
  0xe0   :  { %v1182_v48 = vpop.permute.xlu1 %1181  ;;  %v1174_v51 = vpop.permute.xlu0 %1173  ;;  %1284 = vmatprep.subr.mxu0 %v1239_v16  ;;  %1041 = vmatprep.mubr.f32.mxu0 %v12885_v2  ;;  %v8859_v16 = vrot.slane %v7773_v43, %v8362_v25 }
  0xe1   :  { %v1200_v14 = vsel %vm1185_vm4, %v1182_v48, %v1158_v46  ;;  %v1188_v53 = vsel %vm1185_vm4, %v1174_v51, %v1182_v48  ;;  %v1192_v17 = vsel %vm1185_vm4, %v1166_v45, %v1174_v51  ;;  %1130 = vmatprep.mubr.f32.mxu1 %v12885_v2  ;;  %v7757_v46 = vld [vmem:[%s12880_s2 + $0x68] sm:$0xff]  ;;  %v8866_v48 = vrot.slane %v7773_v43, %v8360_v24 }
  0xe2   :  { %v1238_v54 = vmul.f32 %v8725_v19, %v1200_v14  ;;  %v1240_v55 = vmul.f32 %v8731_v21, %v1192_v17  ;;  %2363 = vrot.lane.b32.xlu1 %v8140_v4, %s8082_s30  ;;  %v1241_v56 = vmul.f32 %v8735_v27, %v1188_v53  ;;  %7751 = vmatmul.mubr.msk.f32.gmra.mxu0 %vm65_vm0, %v7746_v47 }
  0xe3   :  { %2355 = vrot.lane.b32.xlu0 %v8124_v1, %s8082_s30  ;;  %7755 = vmatmul.mubr.msk.f32.gmra.mxu1 %vm65_vm0, %v7746_v47  ;;  %13058 = vst [vmem:[#allocation20_spill] sm:$0xff] %v8859_v16  ;;  %v8862_v47 = vrot.slane %v7773_v43, %v8364_v26  ;;  %13060 = vst [vmem:[#allocation22_spill] sm:$0xff] %v8866_v48 }
  0xe4   :  { %v1164_v57 = vpop.permute.xlu1 %1163  ;;  %1373 = vmatprep.subr.mxu1 %v1241_v56  ;;  %v1156_v58 = vpop.permute.xlu0 %1155  ;;  %1285 = vmatpush1.msra.mxu0 %v1238_v54  ;;  %v8061_v56 = vld [vmem:[%s12879_s0 + $0x8] sm:$0xff] }
  0xe5   :  { %v1195_v59 = vsel %vm1185_vm4, %v1156_v58, %v1164_v57  ;;  %1374 = vmatpush1.msra.mxu1 %v1240_v55  ;;  %1322 = vmatprep.mubr.f32.mxu0 %v12885_v2  ;;  %13059 = vst [vmem:[#allocation21_spill] sm:$0xff] %v8862_v47 }
  0xe6   :  { %2379 = vrot.lane.b32.xlu1 %v8135_v3, %s8082_s30  ;;  %v1235_v4 = vmul.f32 %v8715_v61, %v1195_v59  ;;  %1411 = vmatprep.mubr.f32.mxu1 %v12885_v2  ;;  %v8062_v59 = vld [vmem:[%s12879_s0] sm:$0xff] }
  0xe7   :  { %2371 = vrot.lane.b32.xlu0 %v8119_v0, %s8082_s30 }
  0xe8   :  { %v1180_v1 = vpop.permute.xlu1 %1179  ;;  %v1172_v60 = vpop.permute.xlu0 %1171  ;;  %1286 = vmatprep.subr.mxu0 %v1235_v4 }
  0xe9   :  { %v1199_v62 = vsel %vm1185_vm4, %v1180_v1, %v1156_v58  ;;  %v1187_v63 = vsel %vm1185_vm4, %v1172_v60, %v1180_v1  ;;  %v1191_v15 = vsel %vm1185_vm4, %v1164_v57, %v1172_v60 }
  0xea   :  { %v1234_v3 = vmul.f32 %v8725_v19, %v1199_v62  ;;  %v1236_v18 = vmul.f32 %v8731_v21, %v1191_v15  ;;  %2361 = vrot.lane.b32.xlu1 %v8147_v5, %s8082_s30  ;;  %v1237_v0 = vmul.f32 %v8735_v27, %v1187_v63  ;;  %v7758_v62 = vld [vmem:[%s12880_s2 + $0x70] sm:$0xff]  ;;  %v8063_v15 = vld [vmem:[%s12879_s0 + $0x18] sm:$0xff] }
  0xeb   :  { %2353 = vrot.lane.b32.xlu0 %v8165_v7, %s8082_s30 }
  0xec   :  { %v1162_v22 = vpop.permute.xlu1 %1161  ;;  %1375 = vmatprep.subr.mxu1 %v1237_v0  ;;  %v1154_v29 = vpop.permute.xlu0 %1153  ;;  %1287 = vmatpush1.msra.mxu0 %v1234_v3  ;;  %v8064_v3 = vld [vmem:[%s12879_s0 + $0x10] sm:$0xff] }
  0xed   :  { %v1194_v10 = vsel %vm1185_vm4, %v1154_v29, %v1162_v22  ;;  %1376 = vmatpush1.msra.mxu1 %v1236_v18  ;;  %v43_v18 = vld [vmem:[%s12882_s3 + $0x10] sm:$0xff] }
  0xee   :  { %2377 = vrot.lane.b32.xlu1 %v8152_v6, %s8082_s30  ;;  %v1231_v36 = vmul.f32 %v8715_v61, %v1194_v10  ;;  %v7756_v6 = vld [vmem:[%s12880_s2 + $0x60] sm:$0xff] }
  0xef   :  { %2369 = vrot.lane.b32.xlu0 %v8170_v8, %s8082_s30 }
  0xf0   :  { %v1178_v5 = vpop.permute.xlu1 %1177  ;;  %1288 = vmatprep.subr.mxu0 %v1231_v36 }
  0xf1   :  { %v1198_v7 = vsel %vm1185_vm4, %v1178_v5, %v1154_v29  ;;  %v1170_v38 = vpop.permute.xlu0 %1169  ;;  %v44_v29 = vld [vmem:[%s12882_s3 + $0x18] sm:$0xff] }
  0xf2   :  { %v1230_v39 = vmul.f32 %v8725_v19, %v1198_v7  ;;  %v1186_v40 = vsel %vm1185_vm4, %v1170_v38, %v1178_v5  ;;  %v1190_v12 = vsel %vm1185_vm4, %v1162_v22, %v1170_v38  ;;  %2359 = vrot.lane.b32.xlu1 %v8175_v9, %s8082_s30  ;;  %v8059_v9 = vld [vmem:[%s12879_s0 + $0x38] sm:$0xff] }
  0xf3   :  { %v1232_v8 = vmul.f32 %v8731_v21, %v1190_v12  ;;  %2351 = vrot.lane.b32.xlu0 %v8187_v11, %s8082_s30  ;;  %v1233_v41 = vmul.f32 %v8735_v27, %v1186_v40  ;;  %v8849_v11 = vrot.slane %v7773_v43, %v8369_v28  ;;  %v7759_v22 = vld [vmem:[%s12880_s2 + $0x78] sm:$0xff]  ;;  %v42_v43 = vld [vmem:[%s12882_s3 + $0x8] sm:$0xff] }
  0xf4   :  { %v1467_v42 = vpop.permute.xlu1 %1466  ;;  %1289 = vmatpush1.msra.mxu0 %v1230_v39 }
  0xf5   :  { %1377 = vmatprep.subr.mxu1 %v1233_v41  ;;  %v1459_v45 = vpop.permute.xlu0 %1458  ;;  %7761 = vmatmul.mubr.msk.f32.vlgmr.msra.gmra.mxu0 %vm65_vm0, %v7756_v6  ;;  %13057 = vst [vmem:[#allocation19_spill] sm:$0xff] %v8849_v11  ;;  %v41_v41 = vld [vmem:[%s12882_s3] sm:$0xff] }
  0xf6   :  { %1378 = vmatpush1.msra.mxu1 %v1232_v8  ;;  %2375 = vrot.lane.b32.xlu1 %v8059_v9, %s8082_s30  ;;  %v1496_v14 = vsel %vm1484_vm5, %v1459_v45, %v1467_v42 }
  0xf7   :  { %2367 = vrot.lane.b32.xlu0 %v8060_v13, %s8082_s30  ;;  %7765 = vmatmul.mubr.msk.f32.vlgmr.msra.gmra.mxu1 %vm65_vm0, %v7756_v6  ;;  %v1541_v1 = vmul.f32 %v8866_v48, %v1496_v14 }
  0xf8   :  { %v1483_v51 = vpop.permute.xlu1 %1482  ;;  %1328 = vmatprep.mubr.f32.mxu0 %v12885_v2  ;;  %1417 = vmatprep.mubr.f32.mxu1 %v12885_v2 }
  0xf9   :  { %v1500_v53 = vsel %vm1484_vm5, %v1483_v51, %v1459_v45  ;;  %v1475_v17 = vpop.permute.xlu0 %1474  ;;  %7762 = vmatmul.mubr.msk.f32.gmra.mxu0 %vm65_vm0, %v7757_v46 }
  0xfa   :  { %v1488_v54 = vsel %vm1484_vm5, %v1475_v17, %v1483_v51  ;;  %v1492_v55 = vsel %vm1484_vm5, %v1467_v42, %v1475_v17  ;;  %2357 = vrot.lane.b32.xlu1 %v8061_v56, %s8082_s30  ;;  %v1544_v57 = vmul.f32 %v8849_v11, %v1500_v53  ;;  %1334 = vmatprep.mubr.f32.mxu0 %v12885_v2 }
  0xfb   :  { %v1543_v58 = vmul.f32 %v8859_v16, %v1488_v54  ;;  %2349 = vrot.lane.b32.xlu0 %v8062_v59, %s8082_s30  ;;  %v1542_v4 = vmul.f32 %v8862_v47, %v1492_v55  ;;  %7766 = vmatmul.mubr.msk.f32.gmra.mxu1 %vm65_vm0, %v7757_v46 }
  0xfc   :  { %v1465_v60 = vpop.permute.xlu1 %1464  ;;  %1670 = vmatprep.subr.mxu1 %v1544_v57  ;;  %1423 = vmatprep.mubr.f32.mxu1 %v12885_v2 }
  0xfd   :  { %v1457_v63 = vpop.permute.xlu0 %1456  ;;  %1581 = vmatprep.subr.mxu0 %v1542_v4  ;;  %1671 = vmatpush1.msra.mxu1 %v1543_v58 }
  0xfe   :  { %1582 = vmatpush1.msra.mxu0 %v1541_v1  ;;  %2373 = vrot.lane.b32.xlu1 %v8063_v15, %s8082_s30  ;;  %v1495_v10 = vsel %vm1484_vm5, %v1457_v63, %v1465_v60 }
  0xff   :  { %2365 = vrot.lane.b32.xlu0 %v8064_v3, %s8082_s30  ;;  %7763 = vmatmul.mubr.msk.f32.gmra.mxu0 %vm65_vm0, %v7758_v62  ;;  %v1537_v6 = vmul.f32 %v8866_v48, %v1495_v10 }
 0x100   :  { %v1481_v0 = vpop.permute.xlu1 %1480  ;;  %1340 = vmatprep.mubr.f32.mxu0 %v12885_v2  ;;  %7767 = vmatmul.mubr.msk.f32.gmra.mxu1 %vm65_vm0, %v7758_v62 }
 0x101   :  { %v1499_v36 = vsel %vm1484_vm5, %v1481_v0, %v1457_v63  ;;  %v1473_v5 = vpop.permute.xlu0 %1472  ;;  %1429 = vmatprep.mubr.f32.mxu1 %v12885_v2 }
 0x102   :  { %v1487_v7 = vsel %vm1484_vm5, %v1473_v5, %v1481_v0  ;;  %v1491_v38 = vsel %vm1484_vm5, %v1465_v60, %v1473_v5  ;;  %v1540_v39 = vmul.f32 %v8849_v11, %v1499_v36  ;;  %57 = vperm.xlu1 %8053, %v43_v18   ;;  %v7769_v18 = vld [vmem:[%s12880_s2 + $0xa0] sm:$0xff] }
 0x103   :  { %v1539_v40 = vmul.f32 %v8859_v16, %v1487_v7  ;;  %v1538_v12 = vmul.f32 %v8862_v47, %v1491_v38  ;;  %7764 = vmatmul.mubr.msk.f32.gmra.mxu0 %vm65_vm0, %v7759_v22  ;;  %62 = vperm.xlu0 %8052, %v44_v29   ;;  %v7786_v29 = vld [vmem:[%s12881_s1 + $0x5] ss:$8 sm:$0xf] }
 0x104   :  { %v1463_v8 = vpop.permute.xlu1 %1462  ;;  %1672 = vmatprep.subr.mxu1 %v1540_v39  ;;  %7768 = vmatmul.mubr.msk.f32.gmra.mxu1 %vm65_vm0, %v7759_v22  ;;  %v8973_v36 = vrot.slane %v7786_v29, %v8369_v28  ;;  %v8977_v5 = vrot.slane %v7786_v29, %v8362_v25  ;;  %v7770_v7 = vld [vmem:[%s12880_s2 + $0xa8] sm:$0xff]  ;;  %v8984_v38 = vrot.slane %v7786_v29, %v8364_v26 }
 0x105   :  { %v1455_v42 = vpop.permute.xlu0 %1454  ;;  %1583 = vmatprep.subr.mxu0 %v1538_v12  ;;  %1673 = vmatpush1.msra.mxu1 %v1539_v40  ;;  %v8987_v39 = vrot.slane %v7786_v29, %v8360_v24 }
 0x106   :  { %1584 = vmatpush1.msra.mxu0 %v1537_v6  ;;  %1621 = vmatprep.mubr.f32.mxu0 %v12885_v2  ;;  %v1494_v9 = vsel %vm1484_vm5, %v1455_v42, %v1463_v8  ;;  %13061 = vst [vmem:[#allocation23_spill] sm:$0xff] %v8973_v36  ;;  %13062 = vst [vmem:[#allocation24_spill] sm:$0xff] %v8977_v5 }
 0x107   :  { %1710 = vmatprep.mubr.f32.mxu1 %v12885_v2  ;;  %47 = vperm.xlu0 %8052, %v41_v41   ;;  %v1533_v55 = vmul.f32 %v8866_v48, %v1494_v9  ;;  %13063 = vst [vmem:[#allocation25_spill] sm:$0xff] %v8984_v38  ;;  %13064 = vst [vmem:[#allocation26_spill] sm:$0xff] %v8987_v39 }
 0x108   :  { %v1479_v45 = vpop.permute.xlu1 %1478  ;;  %52 = vperm.xlu1 %8053, %v42_v43  }
 0x109   :  { %v1498_v46 = vsel %vm1484_vm5, %v1479_v45, %v1455_v42  ;;  %v1471_v13 = vpop.permute.xlu0 %1470 }
 0x10a   :  { %v1486_v51 = vsel %vm1484_vm5, %v1471_v13, %v1479_v45  ;;  %v1490_v14 = vsel %vm1484_vm5, %v1463_v8, %v1471_v13  ;;  %v1536_v53 = vmul.f32 %v8849_v11, %v1498_v46  ;;  %v7771_v46 = vld [vmem:[%s12880_s2 + $0xb0] sm:$0xff] }
 0x10b   :  { %v1535_v17 = vmul.f32 %v8859_v16, %v1486_v51  ;;  %v1534_v54 = vmul.f32 %v8862_v47, %v1490_v14 }
 0x10c   :  { %v1461_v56 = vpop.permute.xlu1 %1460  ;;  %1674 = vmatprep.subr.mxu1 %v1536_v53  ;;  %v7772_v53 = vld [vmem:[%s12880_s2 + $0xb8] sm:$0xff] }
 0x10d   :  { %v1453_v57 = vpop.permute.xlu0 %1452  ;;  %1585 = vmatprep.subr.mxu0 %v1534_v54  ;;  %1675 = vmatpush1.msra.mxu1 %v1535_v17 }
 0x10e   :  { %1586 = vmatpush1.msra.mxu0 %v1533_v55  ;;  %v1493_v59 = vsel %vm1484_vm5, %v1453_v57, %v1461_v56 }
 0x10f   :  { %v1529_v0 = vmul.f32 %v8866_v48, %v1493_v59 }
 0x110   :  { %v1477_v58 = vpop.permute.xlu1 %1476 }
 0x111   :  { %v1497_v4 = vsel %vm1484_vm5, %v1477_v58, %v1453_v57  ;;  %v1469_v1 = vpop.permute.xlu0 %1468 }
 0x112   :  { %v1485_v60 = vsel %vm1484_vm5, %v1469_v1, %v1477_v58  ;;  %v1489_v62 = vsel %vm1484_vm5, %v1461_v56, %v1469_v1  ;;  %v1532_v63 = vmul.f32 %v8849_v11, %v1497_v4 }
 0x113   :  { %v1531_v15 = vmul.f32 %v8859_v16, %v1485_v60  ;;  %v1530_v3 = vmul.f32 %v8862_v47, %v1489_v62 }
 0x114   :  { %v1766_v22 = vpop.permute.xlu1 %1765  ;;  %1676 = vmatprep.subr.mxu1 %v1532_v63 }
 0x115   :  { %v1758_v10 = vpop.permute.xlu0 %1757  ;;  %1587 = vmatprep.subr.mxu0 %v1530_v3  ;;  %1677 = vmatpush1.msra.mxu1 %v1531_v15 }
 0x116   :  { %1588 = vmatpush1.msra.mxu0 %v1529_v0  ;;  %7778 = vmatmul.mubr.msk.f32.vlgmr.msra.gmra.mxu1 %vm65_vm0, %v7769_v18  ;;  %v1795_v12 = vsel %vm1783_vm6, %v1758_v10, %v1766_v22 }
 0x117   :  { %7774 = vmatmul.mubr.msk.f32.vlgmr.msra.gmra.mxu0 %vm65_vm0, %v7769_v18  ;;  %1716 = vmatprep.mubr.f32.mxu1 %v12885_v2  ;;  %v1840_v13 = vmul.f32 %v8987_v39, %v1795_v12 }
 0x118   :  { %v1782_v40 = vpop.permute.xlu1 %1781  ;;  %1627 = vmatprep.mubr.f32.mxu0 %v12885_v2 }
 0x119   :  { %v1799_v6 = vsel %vm1783_vm6, %v1782_v40, %v1758_v10  ;;  %v1774_v8 = vpop.permute.xlu0 %1773 }
 0x11a   :  { %v1787_v41 = vsel %vm1783_vm6, %v1774_v8, %v1782_v40  ;;  %v1791_v42 = vsel %vm1783_vm6, %v1766_v22, %v1774_v8  ;;  %7779 = vmatmul.mubr.msk.f32.gmra.mxu1 %vm65_vm0, %v7770_v7  ;;  %v1843_v43 = vmul.f32 %v8973_v36, %v1799_v6 }
 0x11b   :  { %v1842_v45 = vmul.f32 %v8977_v5, %v1787_v41  ;;  %7775 = vmatmul.mubr.msk.f32.gmra.mxu0 %vm65_vm0, %v7770_v7  ;;  %v1841_v9 = vmul.f32 %v8984_v38, %v1791_v42  ;;  %1722 = vmatprep.mubr.f32.mxu1 %v12885_v2 }
 0x11c   :  { %v1764_v51 = vpop.permute.xlu1 %1763  ;;  %1969 = vmatprep.subr.mxu1 %v1843_v43  ;;  %1633 = vmatprep.mubr.f32.mxu0 %v12885_v2 }
 0x11d   :  { %v1756_v14 = vpop.permute.xlu0 %1755  ;;  %1880 = vmatprep.subr.mxu0 %v1841_v9  ;;  %1970 = vmatpush1.msra.mxu1 %v1842_v45 }
 0x11e   :  { %1881 = vmatpush1.msra.mxu0 %v1840_v13  ;;  %7780 = vmatmul.mubr.msk.f32.gmra.mxu1 %vm65_vm0, %v7771_v46  ;;  %v1794_v54 = vsel %vm1783_vm6, %v1756_v14, %v1764_v51 }
 0x11f   :  { %7776 = vmatmul.mubr.msk.f32.gmra.mxu0 %vm65_vm0, %v7771_v46  ;;  %1728 = vmatprep.mubr.f32.mxu1 %v12885_v2  ;;  %v1836_v60 = vmul.f32 %v8987_v39, %v1794_v54 }
 0x120   :  { %v1780_v17 = vpop.permute.xlu1 %1779  ;;  %1639 = vmatprep.mubr.f32.mxu0 %v12885_v2 }
 0x121   :  { %v1798_v55 = vsel %vm1783_vm6, %v1780_v17, %v1756_v14  ;;  %v1772_v56 = vpop.permute.xlu0 %1771 }
 0x122   :  { %v1786_v57 = vsel %vm1783_vm6, %v1772_v56, %v1780_v17  ;;  %v1790_v58 = vsel %vm1783_vm6, %v1764_v51, %v1772_v56  ;;  %7781 = vmatmul.mubr.msk.f32.gmra.mxu1 %vm65_vm0, %v7772_v53  ;;  %v1839_v59 = vmul.f32 %v8973_v36, %v1798_v55  ;;  %v7799_v55 = vld [vmem:[%s12881_s1 + $0x6] ss:$8 sm:$0xf] }
 0x123   :  { %v1838_v4 = vmul.f32 %v8977_v5, %v1786_v57  ;;  %7777 = vmatmul.mubr.msk.f32.gmra.mxu0 %vm65_vm0, %v7772_v53  ;;  %v1837_v1 = vmul.f32 %v8984_v38, %v1790_v58  ;;  %2009 = vmatprep.mubr.f32.mxu1 %v12885_v2  ;;  %v7782_v53 = vld [vmem:[%s12880_s2 + $0xc0] sm:$0xff]  ;;  %v9062_v57 = vpop.f32.mrf.mxu0  ;;  %v9067_v58 = vrot.slane %v7799_v55, %v8369_v28 }
 0x124   :  { %v1762_v62 = vpop.permute.xlu1 %1761  ;;  %1971 = vmatprep.subr.mxu1 %v1839_v59  ;;  %1920 = vmatprep.mubr.f32.mxu0 %v12885_v2  ;;  %v9069_v59 = vpop.f32.mrf.mxu1 }
 0x125   :  { %v1754_v63 = vpop.permute.xlu0 %1753  ;;  %1882 = vmatprep.subr.mxu0 %v1837_v1  ;;  %1972 = vmatpush1.msra.mxu1 %v1838_v4  ;;  %13065 = vst [vmem:[#allocation27_spill] sm:$0xff] %v9067_v58  ;;  %v9073_v4 = vrot.slane %v7799_v55, %v8362_v25  ;;  %v7783_v1 = vld [vmem:[%s12880_s2 + $0xc8] sm:$0xff] }
 0x126   :  { %1883 = vmatpush1.msra.mxu0 %v1836_v60  ;;  %v1793_v3 = vsel %vm1783_vm6, %v1754_v63, %v1762_v62  ;;  %v9080_v60 = vrot.slane %v7799_v55, %v8364_v26 }
 0x127   :  { %v1832_v12 = vmul.f32 %v8987_v39, %v1793_v3  ;;  %13066 = vst [vmem:[#allocation28_spill] sm:$0xff] %v9073_v4 }
 0x128   :  { %v1778_v15 = vpop.permute.xlu1 %1777  ;;  %13067 = vst [vmem:[#allocation29_spill] sm:$0xff] %v9080_v60 }
 0x129   :  { %v1797_v18 = vsel %vm1783_vm6, %v1778_v15, %v1754_v63  ;;  %v1770_v0 = vpop.permute.xlu0 %1769 }
 0x12a   :  { %v1785_v22 = vsel %vm1783_vm6, %v1770_v0, %v1778_v15  ;;  %v1789_v29 = vsel %vm1783_vm6, %v1762_v62, %v1770_v0  ;;  %v1835_v10 = vmul.f32 %v8973_v36, %v1797_v18  ;;  %v9083_v62 = vrot.slane %v7799_v55, %v8360_v24  ;;  %v9090_v0 = vpop.f32.mrf.mxu0 }
 0x12b   :  { %v1834_v7 = vmul.f32 %v8977_v5, %v1785_v22  ;;  %v1833_v40 = vmul.f32 %v8984_v38, %v1789_v29 }
 0x12c   :  { %v1760_v6 = vpop.permute.xlu1 %1759  ;;  %1973 = vmatprep.subr.mxu1 %v1835_v10  ;;  %13068 = vst [vmem:[#allocation30_spill] sm:$0xff] %v9083_v62 }
 0x12d   :  { %v1752_v8 = vpop.permute.xlu0 %1751  ;;  %1884 = vmatprep.subr.mxu0 %v1833_v40  ;;  %1974 = vmatpush1.msra.mxu1 %v1834_v7  ;;  %v9098_v7 = vpop.f32.mrf.mxu1 }
 0x12e   :  { %1885 = vmatpush1.msra.mxu0 %v1832_v12  ;;  %v1792_v42 = vsel %vm1783_vm6, %v1752_v8, %v1760_v6 }
 0x12f   :  { %v1828_v17 = vmul.f32 %v8987_v39, %v1792_v42 }
 0x130   :  { %v1776_v41 = vpop.permute.xlu1 %1775 }
 0x131   :  { %v1796_v43 = vsel %vm1783_vm6, %v1776_v41, %v1752_v8  ;;  %v1768_v45 = vpop.permute.xlu0 %1767 }
 0x132   :  { %v1784_v9 = vsel %vm1783_vm6, %v1768_v45, %v1776_v41  ;;  %v1788_v46 = vsel %vm1783_vm6, %v1760_v6, %v1768_v45  ;;  %v1831_v13 = vmul.f32 %v8973_v36, %v1796_v43  ;;  %v7784_v6 = vld [vmem:[%s12880_s2 + $0xd0] sm:$0xff]  ;;  %v9109_v43 = vpop.f32.mrf.mxu0  ;;  %v9112_v45 = vpop.f32.mrf.mxu1 }
 0x133   :  { %v1830_v51 = vmul.f32 %v8977_v5, %v1784_v9  ;;  %v1829_v14 = vmul.f32 %v8984_v38, %v1788_v46  ;;  %v7785_v9 = vld [vmem:[%s12880_s2 + $0xd8] sm:$0xff] }
 0x134   :  { %v2065_v54 = vpop.permute.xlu1 %2064  ;;  %1975 = vmatprep.subr.mxu1 %v1831_v13 }
 0x135   :  { %v2057_v56 = vpop.permute.xlu0 %2056  ;;  %1886 = vmatprep.subr.mxu0 %v1829_v14  ;;  %1976 = vmatpush1.msra.mxu1 %v1830_v51 }
 0x136   :  { %1887 = vmatpush1.msra.mxu0 %v1828_v17  ;;  %7791 = vmatmul.mubr.msk.f32.vlgmr.msra.gmra.mxu1 %vm65_vm0, %v7782_v53  ;;  %v2094_v15 = vsel %vm2082_vm7, %v2057_v56, %v2065_v54 }
 0x137   :  { %7787 = vmatmul.mubr.msk.f32.vlgmr.msra.gmra.mxu0 %vm65_vm0, %v7782_v53  ;;  %2015 = vmatprep.mubr.f32.mxu1 %v12885_v2  ;;  %v2139_v8 = vmul.f32 %v9083_v62, %v2094_v15  ;;  %v9124_v53 = vpop.f32.mrf.mxu0 }
 0x138   :  { %v2081_v63 = vpop.permute.xlu1 %2080  ;;  %1926 = vmatprep.mubr.f32.mxu0 %v12885_v2 }
 0x139   :  { %v2098_v3 = vsel %vm2082_vm7, %v2081_v63, %v2057_v56  ;;  %v2073_v18 = vpop.permute.xlu0 %2072  ;;  %v9132_v56 = vpop.f32.mrf.mxu1 }
 0x13a   :  { %v2086_v22 = vsel %vm2082_vm7, %v2073_v18, %v2081_v63  ;;  %v2090_v29 = vsel %vm2082_vm7, %v2065_v54, %v2073_v18  ;;  %7792 = vmatmul.mubr.msk.f32.gmra.mxu1 %vm65_vm0, %v7783_v1  ;;  %v2142_v10 = vmul.f32 %v9067_v58, %v2098_v3 }
 0x13b   :  { %v2141_v40 = vmul.f32 %v9073_v4, %v2086_v22  ;;  %7788 = vmatmul.mubr.msk.f32.gmra.mxu0 %vm65_vm0, %v7783_v1  ;;  %v2140_v12 = vmul.f32 %v9080_v60, %v2090_v29  ;;  %2021 = vmatprep.mubr.f32.mxu1 %v12885_v2  ;;  %v9140_v22 = vpop.f32.mrf.mxu0  ;;  %v9142_v29 = vpop.f32.mrf.mxu1 }
 0x13c   :  { %v2063_v41 = vpop.permute.xlu1 %2062  ;;  %2268 = vmatprep.subr.mxu1 %v2142_v10  ;;  %1932 = vmatprep.mubr.f32.mxu0 %v12885_v2 }
 0x13d   :  { %v2055_v42 = vpop.permute.xlu0 %2054  ;;  %2179 = vmatprep.subr.mxu0 %v2140_v12  ;;  %2269 = vmatpush1.msra.mxu1 %v2141_v40 }
 0x13e   :  { %2180 = vmatpush1.msra.mxu0 %v2139_v8  ;;  %7793 = vmatmul.mubr.msk.f32.gmra.mxu1 %vm65_vm0, %v7784_v6  ;;  %v2093_v13 = vsel %vm2082_vm7, %v2055_v42, %v2063_v41  ;;  %v9148_v8 = vpop.f32.mrf.mxu0 }
 0x13f   :  { %7789 = vmatmul.mubr.msk.f32.gmra.mxu0 %vm65_vm0, %v7784_v6  ;;  %2027 = vmatprep.mubr.f32.mxu1 %v12885_v2  ;;  %v2135_v15 = vmul.f32 %v9083_v62, %v2093_v13 }
 0x140   :  { %v2079_v46 = vpop.permute.xlu1 %2078  ;;  %1938 = vmatprep.mubr.f32.mxu0 %v12885_v2 }
 0x141   :  { %v2097_v51 = vsel %vm2082_vm7, %v2079_v46, %v2055_v42  ;;  %v2071_v14 = vpop.permute.xlu0 %2070 }
 0x142   :  { %v2085_v17 = vsel %vm2082_vm7, %v2071_v14, %v2079_v46  ;;  %v2089_v54 = vsel %vm2082_vm7, %v2063_v41, %v2071_v14  ;;  %7794 = vmatmul.mubr.msk.f32.gmra.mxu1 %vm65_vm0, %v7785_v9  ;;  %v2138_v55 = vmul.f32 %v9067_v58, %v2097_v51  ;;  %v9155_v46 = vpop.f32.mrf.mxu1 }
 0x143   :  { %v2137_v1 = vmul.f32 %v9073_v4, %v2085_v17  ;;  %7790 = vmatmul.mubr.msk.f32.gmra.mxu0 %vm65_vm0, %v7785_v9  ;;  %v2136_v63 = vmul.f32 %v9080_v60, %v2089_v54  ;;  %2308 = vmatprep.mubr.f32.mxu1 %v12885_v2 }
 0x144   :  { %v2061_v3 = vpop.permute.xlu1 %2060  ;;  %2270 = vmatprep.subr.mxu1 %v2138_v55  ;;  %2219 = vmatprep.mubr.f32.mxu0 %v12885_v2  ;;  %v9160_v55 = vpop.f32.mrf.mxu0 }
 0x145   :  { %v2053_v18 = vpop.permute.xlu0 %2052  ;;  %2181 = vmatprep.subr.mxu0 %v2136_v63  ;;  %2271 = vmatpush1.msra.mxu1 %v2137_v1  ;;  %v9162_v1 = vpop.f32.mrf.mxu1 }
 0x146   :  { %2182 = vmatpush1.msra.mxu0 %v2135_v15  ;;  %v2092_v40 = vsel %vm2082_vm7, %v2053_v18, %v2061_v3 }
 0x147   :  { %v2131_v14 = vmul.f32 %v9083_v62, %v2092_v40 }
 0x148   :  { %v2077_v10 = vpop.permute.xlu1 %2076 }
 0x149   :  { %v2096_v12 = vsel %vm2082_vm7, %v2077_v10, %v2053_v18  ;;  %v2069_v6 = vpop.permute.xlu0 %2068 }
 0x14a   :  { %v2084_v41 = vsel %vm2082_vm7, %v2069_v6, %v2077_v10  ;;  %v2088_v42 = vsel %vm2082_vm7, %v2061_v3, %v2069_v6  ;;  %v2134_v9 = vmul.f32 %v9067_v58, %v2096_v12  ;;  %v9168_v10 = vpop.f32.mrf.mxu0 }
 0x14b   :  { %v2133_v13 = vmul.f32 %v9073_v4, %v2084_v41  ;;  %v2132_v51 = vmul.f32 %v9080_v60, %v2088_v42  ;;  %v9175_v41 = vpop.f32.mrf.mxu1 }
 0x14c   :  { %v2059_v17 = vpop.permute.xlu1 %2058  ;;  %2272 = vmatprep.subr.mxu1 %v2134_v9 }
 0x14d   :  { %v2051_v54 = vpop.permute.xlu0 %2050  ;;  %2183 = vmatprep.subr.mxu0 %v2132_v51  ;;  %2273 = vmatpush1.msra.mxu1 %v2133_v13  ;;  %v7795_v13 = vld [vmem:[%s12880_s2 + $0xe0] sm:$0xff] }
 0x14e   :  { %2184 = vmatpush1.msra.mxu0 %v2131_v14  ;;  %v2091_v15 = vsel %vm2082_vm7, %v2051_v54, %v2059_v17 }
 0x14f   :  { %v2127_v51 = vmul.f32 %v9083_v62, %v2091_v15 }
 0x150   :  { %v2075_v63 = vpop.permute.xlu1 %2074 }
 0x151   :  { %v2095_v3 = vsel %vm2082_vm7, %v2075_v63, %v2051_v54  ;;  %v2067_v18 = vpop.permute.xlu0 %2066 }
 0x152   :  { %v2083_v40 = vsel %vm2082_vm7, %v2067_v18, %v2075_v63  ;;  %v2087_v12 = vsel %vm2082_vm7, %v2059_v17, %v2067_v18  ;;  %v2130_v6 = vmul.f32 %v9067_v58, %v2095_v3  ;;  %v7812_v17 = vld [vmem:[%s12881_s1 + $0x7] ss:$8 sm:$0xf] }
 0x153   :  { %v2129_v42 = vmul.f32 %v9073_v4, %v2083_v40  ;;  %v2128_v9 = vmul.f32 %v9080_v60, %v2087_v12  ;;  %v9191_v3 = vrot.slane %v7812_v17, %v8369_v28  ;;  %v9197_v18 = vrot.slane %v7812_v17, %v8362_v25  ;;  %v7796_v40 = vld [vmem:[%s12880_s2 + $0xe8] sm:$0xff] }
 0x154   :  { %v2364_v14 = vpop.permute.xlu1 %2363  ;;  %2274 = vmatprep.subr.mxu1 %v2130_v6  ;;  %v9204_v12 = vrot.slane %v7812_v17, %v8364_v26  ;;  %v9207_v6 = vrot.slane %v7812_v17, %v8360_v24  ;;  %v13073_v4 = vmov 0.0  }
 0x155   :  { %v2356_v54 = vpop.permute.xlu0 %2355  ;;  %2185 = vmatprep.subr.mxu0 %v2128_v9  ;;  %2275 = vmatpush1.msra.mxu1 %v2129_v42  ;;  %v9186_v63 = vpop.f32.mrf.mxu0  ;;  %13069 = vst [vmem:[#allocation31_spill] sm:$0xff] %v9191_v3  ;;  %13070 = vst [vmem:[#allocation32_spill] sm:$0xff] %v9197_v18 }
 0x156   :  { %2186 = vmatpush1.msra.mxu0 %v2127_v51  ;;  %7804 = vmatmul.mubr.msk.f32.vlgmr.msra.gmra.mxu1 %vm65_vm0, %v7795_v13  ;;  %v9193_v15 = vpop.f32.mrf.mxu1  ;;  %13071 = vst [vmem:[#allocation33_spill] sm:$0xff] %v9204_v12  ;;  %13072 = vst [vmem:[#allocation34_spill] sm:$0xff] %v9207_v6  ;;  %v2393_v42 = vsel %vm2381_vm8, %v2356_v54, %v2364_v14 }
 0x157   :  { %7800 = vmatmul.mubr.msk.f32.vlgmr.msra.gmra.mxu0 %vm65_vm0, %v7795_v13  ;;  %2314 = vmatprep.mubr.f32.mxu1 %v12885_v2  ;;  %v9214_v13 = vpop.f32.mrf.mxu0 }
 0x158   :  { %v2380_v28 = vpop.permute.xlu1 %2379  ;;  %2225 = vmatprep.mubr.f32.mxu0 %v12885_v2  ;;  %v9222_v17 = vpop.f32.mrf.mxu1 }
 0x159   :  { %v2397_v25 = vsel %vm2381_vm8, %v2380_v28, %v2356_v54  ;;  %v2372_v9 = vpop.permute.xlu0 %2371 }
 0x15a   :  { %v2385_v51 = vsel %vm2381_vm8, %v2372_v9, %v2380_v28  ;;  %v2389_v26 = vsel %vm2381_vm8, %v2364_v14, %v2372_v9  ;;  %7805 = vmatmul.mubr.msk.f32.gmra.mxu1 %vm65_vm0, %v7796_v40  ;;  %v2441_v24 = vmul.f32 %v9191_v3, %v2397_v25  ;;  %v7797_v28 = vld [vmem:[%s12880_s2 + $0xf0] sm:$0xff]  ;;  %v2438_v14 = vmul.f32 %v9207_v6, %v2393_v42  ;;  %v7798_v42 = vld [vmem:[%s12880_s2 + $0xf8] sm:$0xff] }
 0x15b   :  { %v2440_v2 = vmul.f32 %v9197_v18, %v2385_v51  ;;  %7801 = vmatmul.mubr.msk.f32.gmra.mxu0 %vm65_vm0, %v7796_v40  ;;  %v2439_v54 = vmul.f32 %v9204_v12, %v2389_v26  ;;  %2320 = vmatprep.mubr.f32.mxu1 %v13073_v4  ;;  %v9233_v51 = vpop.f32.mrf.mxu0  ;;  %v9236_v40 = vpop.f32.mrf.mxu1 }
 0x15c   :  { %v2362_v9 = vpop.permute.xlu1 %2361  ;;  %2567 = vmatprep.subr.mxu1 %v2441_v24  ;;  %2231 = vmatprep.mubr.f32.mxu0 %v13073_v4 }
 0x15d   :  { %v2354_v25 = vpop.permute.xlu0 %2353  ;;  %2478 = vmatprep.subr.mxu0 %v2439_v54  ;;  %2568 = vmatpush1.msra.mxu1 %v2440_v2  ;;  %v9256_v60 = vpop.f32.mrf.mxu1 }
 0x15e   :  { %2479 = vmatpush1.msra.mxu0 %v2438_v14  ;;  %7806 = vmatmul.mubr.msk.f32.gmra.mxu1 %vm65_vm0, %v7797_v28  ;;  %v2392_v2 = vsel %vm2381_vm8, %v2354_v25, %v2362_v9  ;;  %v9248_v14 = vpop.f32.mrf.mxu0 }
 0x15f   :  { %7802 = vmatmul.mubr.msk.f32.gmra.mxu0 %vm65_vm0, %v7797_v28  ;;  %2326 = vmatprep.mubr.f32.mxu1 %v13073_v4  ;;  %v2434_v39 = vmul.f32 %v9207_v6, %v2392_v2 }
 0x160   :  { %v2378_v26 = vpop.permute.xlu1 %2377  ;;  %2237 = vmatprep.mubr.f32.mxu0 %v13073_v4 }
 0x161   :  { %v2396_v24 = vsel %vm2381_vm8, %v2378_v26, %v2354_v25  ;;  %v2370_v54 = vpop.permute.xlu0 %2369 }
 0x162   :  { %v2384_v28 = vsel %vm2381_vm8, %v2370_v54, %v2378_v26  ;;  %v2388_v62 = vsel %vm2381_vm8, %v2362_v9, %v2370_v54  ;;  %7807 = vmatmul.mubr.msk.f32.gmra.mxu1 %vm65_vm0, %v7798_v42  ;;  %v2437_v58 = vmul.f32 %v9191_v3, %v2396_v24  ;;  %v9264_v24 = vpop.f32.mrf.mxu0  ;;  %v9266_v54 = vpop.f32.mrf.mxu1 }
 0x163   :  { %v2436_v5 = vmul.f32 %v9197_v18, %v2384_v28  ;;  %7803 = vmatmul.mubr.msk.f32.gmra.mxu0 %vm65_vm0, %v7798_v42  ;;  %v2435_v25 = vmul.f32 %v9204_v12, %v2388_v62  ;;  %2607 = vmatprep.mubr.f32.mxu1 %v13073_v4 }
 0x164   :  { %v2360_v26 = vpop.permute.xlu1 %2359  ;;  %2569 = vmatprep.subr.mxu1 %v2437_v58  ;;  %2518 = vmatprep.mubr.f32.mxu0 %v13073_v4  ;;  %v9272_v36 = vpop.f32.mrf.mxu0 }
 0x165   :  { %v2352_v9 = vpop.permute.xlu0 %2351  ;;  %2480 = vmatprep.subr.mxu0 %v2435_v25  ;;  %2570 = vmatpush1.msra.mxu1 %v2436_v5  ;;  %v9279_v25 = vpop.f32.mrf.mxu1 }
 0x166   :  { %2481 = vmatpush1.msra.mxu0 %v2434_v39  ;;  %v2391_v62 = vsel %vm2381_vm8, %v2352_v9, %v2360_v26  ;;  %v445_v47 = vpop.f32.mrf.mxu0 }
 0x167   :  { %v2430_v48 = vmul.f32 %v9207_v6, %v2391_v62 }
 0x168   :  { %v2376_v28 = vpop.permute.xlu1 %2375 }
 0x169   :  { %v2395_v42 = vsel %vm2381_vm8, %v2376_v28, %v2352_v9  ;;  %v2368_v2 = vpop.permute.xlu0 %2367 }
 0x16a   :  { %v2383_v58 = vsel %vm2381_vm8, %v2368_v2, %v2376_v28  ;;  %v2387_v5 = vsel %vm2381_vm8, %v2360_v26, %v2368_v2  ;;  %v2433_v39 = vmul.f32 %v9191_v3, %v2395_v42  ;;  %v534_v28 = vpop.f32.mrf.mxu1 }
 0x16b   :  { %v2432_v38 = vmul.f32 %v9197_v18, %v2383_v58  ;;  %v2431_v16 = vmul.f32 %v9204_v12, %v2387_v5  ;;  %v9288_v58 = vpop.f32.mrf.mxu0 }
 0x16c   :  { %v2358_v9 = vpop.permute.xlu1 %2357  ;;  %2571 = vmatprep.subr.mxu1 %v2433_v39 }
 0x16d   :  { %v2350_v11 = vpop.permute.xlu0 %2349  ;;  %2482 = vmatprep.subr.mxu0 %v2431_v16  ;;  %2572 = vmatpush1.msra.mxu1 %v2432_v38 }
 0x16e   :  { %2483 = vmatpush1.msra.mxu0 %v2430_v48  ;;  %v2390_v26 = vsel %vm2381_vm8, %v2350_v11, %v2358_v9  ;;  %v9295_v48 = vpop.f32.mrf.mxu1 }
 0x16f   :  { %v2426_v19 = vmul.f32 %v9207_v6, %v2390_v26  ;;  %v7811_v6 = vld [vmem:[%s12880_s2 + $0x118] sm:$0xff] }
 0x170   :  { %v2374_v21 = vpop.permute.xlu1 %2373 }
 0x171   :  { %v2394_v42 = vsel %vm2381_vm8, %v2374_v21, %v2350_v11  ;;  %v2366_v2 = vpop.permute.xlu0 %2365  ;;  %v7808_v11 = vld [vmem:[%s12880_s2 + $0x100] sm:$0xff] }
 0x172   :  { %v2382_v62 = vsel %vm2381_vm8, %v2366_v2, %v2374_v21  ;;  %v2386_v16 = vsel %vm2381_vm8, %v2358_v9, %v2366_v2  ;;  %v2429_v38 = vmul.f32 %v9191_v3, %v2394_v42  ;;  %v7809_v42 = vld [vmem:[%s12880_s2 + $0x108] sm:$0xff] }
 0x173   :  { %v2428_v5 = vmul.f32 %v9197_v18, %v2382_v62  ;;  %v2427_v39 = vmul.f32 %v9204_v12, %v2386_v16  ;;  %v7810_v16 = vld [vmem:[%s12880_s2 + $0x110] sm:$0xff] }
 0x174   :  { %2573 = vmatprep.subr.mxu1 %v2429_v38 }
 0x175   :  { %2484 = vmatprep.subr.mxu0 %v2427_v39  ;;  %2574 = vmatpush1.msra.mxu1 %v2428_v5  ;;  %v726_v21 = vpop.f32.mrf.mxu0 }
 0x176   :  { %2485 = vmatpush1.msra.mxu0 %v2426_v19  ;;  %7817 = vmatmul.mubr.msk.f32.vlgmr.msra.gmra.mxu1 %vm65_vm0, %v7808_v11  ;;  %v815_v9 = vpop.f32.mrf.mxu1 }
 0x177   :  { %7813 = vmatmul.mubr.msk.f32.vlgmr.msra.gmra.mxu0 %vm65_vm0, %v7808_v11  ;;  %2613 = vmatprep.mubr.f32.mxu1 %v13073_v4  ;;  %v9309_v2 = vpop.f32.mrf.mxu0 }
 0x178   :  { %2524 = vmatprep.mubr.f32.mxu0 %v13073_v4  ;;  %v9312_v26 = vpop.f32.mrf.mxu1 }
 0x179   :  { %v732_v62 = vpop.f32.mrf.mxu0 }
 0x17a   :  { %7818 = vmatmul.mubr.msk.f32.gmra.mxu1 %vm65_vm0, %v7809_v42  ;;  %v821_v19 = vpop.f32.mrf.mxu1 }
 0x17b   :  { %7814 = vmatmul.mubr.msk.f32.gmra.mxu0 %vm65_vm0, %v7809_v42  ;;  %2619 = vmatprep.mubr.f32.mxu1 %v13073_v4  ;;  %v9320_v38 = vpop.f32.mrf.mxu0 }
 0x17c   :  { %2530 = vmatprep.mubr.f32.mxu0 %v13073_v4  ;;  %v9323_v5 = vpop.f32.mrf.mxu1 }
 0x17d   :  { %v9325_v39 = vpop.permute.xlu1 %57 }
 0x17e   :  { %7819 = vmatmul.mubr.msk.f32.gmra.mxu1 %vm65_vm0, %v7810_v16  ;;  %v738_v11 = vpop.f32.mrf.mxu0  ;;  %v9328_v18 = vpop.permute.xlu0 %62  ;;  %v246_v42 = vadd.f32 %v9142_v29, %v9325_v39  ;;  %v157_v27 = vadd.f32 %v9140_v22, %v9325_v39 }
 0x17f   :  { %7815 = vmatmul.mubr.msk.f32.gmra.mxu0 %vm65_vm0, %v7810_v16  ;;  %2625 = vmatprep.mubr.f32.mxu1 %v13073_v4  ;;  %v827_v3 = vpop.f32.mrf.mxu1  ;;  %v163_v12 = vadd.f32 %v9160_v55, %v9328_v18  ;;  %v252_v61 = vadd.f32 %v9162_v1, %v9328_v18 }
 0x180   :  { %2536 = vmatprep.mubr.f32.mxu0 %v13073_v4  ;;  %v9344_v29 = vpop.f32.mrf.mxu0  ;;  %v549_v16 = vadd.f32 %v9266_v54, %v246_v42  ;;  %v547_v54 = vadd.f32 %v9264_v24, %v157_v27 }
 0x181   :  { %v9347_v35 = vpop.f32.mrf.mxu1  ;;  %v551_v20 = vadd.f32 %v445_v47, %v163_v12  ;;  %v553_v37 = vadd.f32 %v534_v28, %v252_v61 }
 0x182   :  { %7820 = vmatmul.mubr.msk.f32.gmra.mxu1 %vm65_vm0, %v7811_v6  ;;  %v744_v30 = vpop.f32.mrf.mxu0  ;;  %v9350_v55 = vpop.permute.xlu0 %47  ;;  %v848_v50 = vadd.f32 %v827_v3, %v549_v16  ;;  %v846_v12 = vadd.f32 %v738_v11, %v547_v54 }
 0x183   :  { %7816 = vmatmul.mubr.msk.f32.gmra.mxu0 %vm65_vm0, %v7811_v6  ;;  %v833_v1 = vpop.f32.mrf.mxu1  ;;  %v850_v22 = vadd.f32 %v744_v30, %v551_v20  ;;  %v9353_v52 = vpop.permute.xlu1 %52  ;;  %v145_v49 = vadd.f32 %v9062_v57, %v9350_v55  ;;  %v234_v3 = vadd.f32 %v9069_v59, %v9350_v55  ;;  %2850 = vmatprep.mubr.f32.mxu1 %v13073_v4 }
 0x184   :  { %v852_v42 = vadd.f32 %v833_v1, %v553_v37  ;;  %v151_v61 = vadd.f32 %v9109_v43, %v9353_v52  ;;  %2761 = vmatprep.mubr.f32.mxu0 %v13073_v4  ;;  %v240_v37 = vadd.f32 %v9112_v45, %v9353_v52 }
 0x185   :  { %v539_v47 = vadd.f32 %v9186_v63, %v145_v49  ;;  %v541_v57 = vadd.f32 %v9193_v15, %v234_v3  ;;  %v9370_v49 = vpop.f32.mrf.mxu0  ;;  %v9372_v63 = vpop.f32.mrf.mxu1 }
 0x186   :  { %v543_v20 = vadd.f32 %v9233_v51, %v151_v61  ;;  %v545_v6 = vadd.f32 %v9236_v40, %v240_v37 }
 0x187   :  { %v838_v30 = vadd.f32 %v726_v21, %v539_v47  ;;  %v840_v43 = vadd.f32 %v815_v9, %v541_v57 }
 0x188   :  { %v842_v27 = vadd.f32 %v732_v62, %v543_v20  ;;  %v844_v24 = vadd.f32 %v821_v19, %v545_v6 }
 0x195   :  { %v1025_v59 = vpop.f32.mrf.mxu0 }
 0x196   :  { %v1114_v28 = vpop.f32.mrf.mxu1  ;;  %v9374_v16 = vadd.f32 %v1025_v59, %v838_v30 }
 0x197   :  { %v9376_v51 = vpop.f32.mrf.mxu0  ;;  %v9378_v15 = vadd.f32 %v1114_v28, %v840_v43 }
 0x198   :  { %v9380_v21 = vpop.f32.mrf.mxu1 }
 0x199   :  { %v1031_v62 = vpop.f32.mrf.mxu0 }
 0x19a   :  { %v1120_v45 = vpop.f32.mrf.mxu1  ;;  %v1141_v9 = vadd.f32 %v1031_v62, %v842_v27 }
 0x19b   :  { %v9382_v11 = vpop.f32.mrf.mxu0  ;;  %v1143_v40 = vadd.f32 %v1120_v45, %v844_v24 }
 0x19c   :  { %v9384_v19 = vpop.f32.mrf.mxu1 }
 0x19e   :  { %v1037_v1 = vpop.f32.mrf.mxu0 }
 0x19f   :  { %v1126_v54 = vpop.f32.mrf.mxu1  ;;  %v1145_v61 = vadd.f32 %v1037_v1, %v846_v12 }
 0x1a0   :  { %v9386_v47 = vpop.f32.mrf.mxu0  ;;  %v1147_v3 = vadd.f32 %v1126_v54, %v848_v50 }
 0x1a1   :  { %v9388_v20 = vpop.f32.mrf.mxu1 }
 0x1a2   :  { %v1043_v30 = vpop.f32.mrf.mxu0 }
 0x1a3   :  { %v9390_v57 = vadd.f32 %v1043_v30, %v850_v22  ;;  %v1132_v37 = vpop.f32.mrf.mxu1 }
 0x1a4   :  { %v9392_v43 = vadd.f32 %v1132_v37, %v852_v42  ;;  %v9394_v27 = vpop.f32.mrf.mxu0 }
 0x1a5   :  { %13074 = vst [vmem:[#allocation35_spill] sm:$0xff] %v9390_v57  ;;  %v9396_v6 = vpop.f32.mrf.mxu1 }
 0x1a6   :  { %13075 = vst [vmem:[#allocation36_spill] sm:$0xff] %v9392_v43 }
 0x1b5   :  { %v9398_v24 = vpop.f32.mrf.mxu0 }
 0x1b7   :  { %v9400_v59 = vpop.f32.mrf.mxu0  ;;  %v9402_v12 = vpop.f32.mrf.mxu1 }
 0x1b9   :  { %v1330_v28 = vpop.f32.mrf.mxu0  ;;  %v9404_v50 = vpop.f32.mrf.mxu1 }
 0x1ba   :  { %v9406_v62 = vadd.f32 %v1330_v28, %v1141_v9 }
 0x1bb   :  { %v9408_v22 = vpop.f32.mrf.mxu0  ;;  %v1419_v45 = vpop.f32.mrf.mxu1 }
 0x1bc   :  { %13076 = vst [vmem:[#allocation37_spill] sm:$0xff] %v9406_v62  ;;  %v9410_v42 = vadd.f32 %v1419_v45, %v1143_v40 }
 0x1bd   :  { %v9412_v1 = vpop.f32.mrf.mxu1 }
 0x1be   :  { %13077 = vst [vmem:[#allocation38_spill] sm:$0xff] %v9410_v42  ;;  %13078 = vst [vmem:[#allocation39_spill] sm:$0xff] %v9412_v1 }
 0x1bf   :  { %v1336_v54 = vpop.f32.mrf.mxu0 }
 0x1c0   :  { %v9414_v30 = vadd.f32 %v1336_v54, %v1145_v61  ;;  %v1425_v37 = vpop.f32.mrf.mxu1 }
 0x1c1   :  { %v9416_v44 = vadd.f32 %v1425_v37, %v1147_v3  ;;  %v9420_v34 = vpop.f32.mrf.mxu0 }
 0x1c2   :  { %13079 = vst [vmem:[#allocation40_spill] sm:$0xff] %v9414_v30  ;;  %v9418_v32 = vpop.f32.mrf.mxu1 }
 0x1c3   :  { %13080 = vst [vmem:[#allocation41_spill] sm:$0xff] %v9416_v44  ;;  %13081 = vst [vmem:[#allocation42_spill] sm:$0xff] %v9418_v32  ;;  %v9424_v9 = vpop.f32.mrf.mxu0 }
 0x1c4   :  { %v9422_v31 = vpop.f32.mrf.mxu1  ;;  %13083 = vst [vmem:[#allocation44_spill] sm:$0xff] %v9424_v9 }
 0x1c5   :  { %13082 = vst [vmem:[#allocation43_spill] sm:$0xff] %v9422_v31  ;;  %v9428_v40 = vpop.f32.mrf.mxu0 }
 0x1c6   :  { %v9426_v28 = vpop.f32.mrf.mxu1  ;;  %13085 = vst [vmem:[#allocation46_spill] sm:$0xff] %v9428_v40 }
 0x1c7   :  { %13084 = vst [vmem:[#allocation45_spill] sm:$0xff] %v9426_v28 }
 0x1d6   :  { %v9430_v45 = vpop.f32.mrf.mxu1 }
 0x1d7   :  { %v9432_v33 = vpop.f32.mrf.mxu0 }
 0x1d8   :  { %v9434_v61 = vpop.f32.mrf.mxu1 }
 0x1d9   :  { %v9436_v3 = vpop.f32.mrf.mxu0 }
 0x1da   :  { %v9438_v54 = vpop.f32.mrf.mxu1 }
 0x1db   :  { %13086 = vst [vmem:[#allocation47_spill] sm:$0xff] %v9438_v54  ;;  %v9440_v37 = vpop.f32.mrf.mxu0 }
 0x1dc   :  { %13087 = vst [vmem:[#allocation48_spill] sm:$0xff] %v9440_v37  ;;  %v9442_v23 = vpop.f32.mrf.mxu1 }
 0x1dd   :  { %13088 = vst [vmem:[#allocation49_spill] sm:$0xff] %v9442_v23  ;;  %v9444_v4 = vpop.f32.mrf.mxu0 }
 0x1de   :  { %13089 = vst [vmem:[#allocation50_spill] sm:$0xff] %v9444_v4  ;;  %v9446_v30 = vpop.f32.mrf.mxu1 }
 0x1df   :  { %13090 = vst [vmem:[#allocation51_spill] sm:$0xff] %v9446_v30  ;;  %v9448_v44 = vpop.f32.mrf.mxu0 }
 0x1e0   :  { %13091 = vst [vmem:[#allocation52_spill] sm:$0xff] %v9448_v44  ;;  %v9450_v62 = vpop.f32.mrf.mxu1 }
 0x1e1   :  { %13092 = vst [vmem:[#allocation53_spill] sm:$0xff] %v9450_v62  ;;  %v9452_v42 = vpop.f32.mrf.mxu0 }
 0x1e2   :  { %13093 = vst [vmem:[#allocation54_spill] sm:$0xff] %v9452_v42  ;;  %v9454_v28 = vpop.f32.mrf.mxu1 }
 0x1e3   :  { %13094 = vst [vmem:[#allocation55_spill] sm:$0xff] %v9454_v28  ;;  %v9456_v31 = vpop.f32.mrf.mxu0 }
 0x1e4   :  { %13095 = vst [vmem:[#allocation56_spill] sm:$0xff] %v9456_v31  ;;  %v9458_v43 = vpop.f32.mrf.mxu1 }
 0x1e5   :  { %13096 = vst [vmem:[#allocation57_spill] sm:$0xff] %v9458_v43  ;;  %v9460_v54 = vpop.f32.mrf.mxu0 }
 0x1e6   :  { %13097 = vst [vmem:[#allocation58_spill] sm:$0xff] %v9460_v54 }
 0x1f6   :  { %v9462_v37 = vpop.f32.mrf.mxu1 }
 0x1f7   :  { %v1922_v23 = vpop.f32.mrf.mxu0 }
 0x1f8   :  { %v9464_v4 = vpop.f32.mrf.mxu1 }
 0x1f9   :  { %v9466_v30 = vpop.f32.mrf.mxu0 }
 0x1fa   :  { %v9468_v44 = vpop.f32.mrf.mxu1 }
 0x1fb   :  { %13098 = vst [vmem:[#allocation59_spill] sm:$0xff] %v9468_v44  ;;  %v9470_v62 = vpop.f32.mrf.mxu0 }
 0x1fc   :  { %13099 = vst [vmem:[#allocation60_spill] sm:$0xff] %v9470_v62  ;;  %v9472_v42 = vpop.f32.mrf.mxu1 }
 0x1fd   :  { %13100 = vst [vmem:[#allocation61_spill] sm:$0xff] %v9472_v42  ;;  %v9474_v28 = vpop.f32.mrf.mxu0 }
 0x1fe   :  { %13101 = vst [vmem:[#allocation62_spill] sm:$0xff] %v9474_v28  ;;  %v9476_v31 = vpop.f32.mrf.mxu1 }
 0x1ff   :  { %13102 = vst [vmem:[#allocation63_spill] sm:$0xff] %v9476_v31  ;;  %v9478_v43 = vpop.f32.mrf.mxu0 }
 0x200   :  { %13103 = vst [vmem:[#allocation64_spill] sm:$0xff] %v9478_v43  ;;  %v9480_v54 = vpop.f32.mrf.mxu1 }
 0x201   :  { %13104 = vst [vmem:[#allocation65_spill] sm:$0xff] %v9480_v54  ;;  %v9482_v32 = vpop.f32.mrf.mxu0  ;;  %v147_v54 = vadd.f32 %v9090_v0, %v9350_v55  ;;  %v242_v0 = vadd.f32 %v9132_v56, %v9353_v52 }
 0x202   :  { %13105 = vst [vmem:[#allocation66_spill] sm:$0xff] %v9482_v32  ;;  %v9484_v40 = vpop.f32.mrf.mxu1  ;;  %v236_v32 = vadd.f32 %v9098_v7, %v9350_v55 }
 0x203   :  { %13106 = vst [vmem:[#allocation67_spill] sm:$0xff] %v9484_v40  ;;  %v9486_v9 = vpop.f32.mrf.mxu0  ;;  %v546_v56 = vadd.f32 %v9256_v60, %v242_v0 }
 0x204   :  { %13107 = vst [vmem:[#allocation68_spill] sm:$0xff] %v9486_v9  ;;  %v9488_v57 = vpop.f32.mrf.mxu1  ;;  %v542_v9 = vadd.f32 %v9222_v17, %v236_v32  ;;  %v248_v32 = vadd.f32 %v9155_v46, %v9325_v39  ;;  %v254_v17 = vadd.f32 %v9175_v41, %v9328_v18 }
 0x205   :  { %13108 = vst [vmem:[#allocation69_spill] sm:$0xff] %v9488_v57  ;;  %v9490_v44 = vpop.f32.mrf.mxu0 }
 0x206   :  { %13109 = vst [vmem:[#allocation70_spill] sm:$0xff] %v9490_v44  ;;  %v540_v44 = vadd.f32 %v9214_v13, %v147_v54  ;;  %v165_v13 = vadd.f32 %v9168_v10, %v9328_v18  ;;  %v550_v46 = vadd.f32 %v9279_v25, %v248_v32  ;;  %v554_v41 = vadd.f32 %v9295_v48, %v254_v17 }
 0x207   :  { %v1436_v18 = vadd.f32 %v9398_v24, %v9374_v16  ;;  %v1438_v25 = vadd.f32 %v9402_v12, %v9378_v15 }
 0x208   :  { %v839_v55 = vadd.f32 %v9309_v2, %v540_v44  ;;  %v552_v2 = vadd.f32 %v9288_v58, %v165_v13 }
 0x209   :  { %v1735_v48 = vadd.f32 %v9432_v33, %v1436_v18  ;;  %v13122_v18 = vld [vmem:[#allocation45_spill] sm:$0xff] }
 0x20a   :  { %v1138_v10 = vadd.f32 %v9376_v51, %v839_v55  ;;  %v851_v16 = vadd.f32 %v9370_v49, %v552_v2  ;;  %v13120_v2 = vld [vmem:[#allocation36_spill] sm:$0xff] }
 0x20b   :  { %v2034_v24 = vadd.f32 %v1922_v23, %v1735_v48 }
 0x20c   :  { %v1437_v58 = vadd.f32 %v9400_v59, %v1138_v10  ;;  %v1150_v23 = vadd.f32 %v9394_v27, %v851_v16  ;;  %v13119_v10 = vld [vmem:[#allocation42_spill] sm:$0xff]  ;;  %v13126_v16 = vld [vmem:[#allocation37_spill] sm:$0xff] }
 0x216   :  { %v9492_v62 = vpop.f32.mrf.mxu1 }
 0x217   :  { %v2221_v42 = vpop.f32.mrf.mxu0 }
 0x218   :  { %v9494_v28 = vpop.f32.mrf.mxu1 }
 0x219   :  { %13110 = vst [vmem:[#allocation71_spill] sm:$0xff] %v9494_v28  ;;  %v2223_v31 = vpop.f32.mrf.mxu0 }
 0x21a   :  { %v9496_v1 = vpop.f32.mrf.mxu1 }
 0x21b   :  { %13111 = vst [vmem:[#allocation72_spill] sm:$0xff] %v9496_v1  ;;  %v9498_v43 = vpop.f32.mrf.mxu0  ;;  %v159_v1 = vadd.f32 %v9148_v8, %v9325_v39  ;;  %v841_v8 = vadd.f32 %v9312_v26, %v542_v9  ;;  %v845_v39 = vadd.f32 %v9323_v5, %v546_v56  ;;  %v1736_v5 = vadd.f32 %v9436_v3, %v1437_v58 }
 0x21c   :  { %13112 = vst [vmem:[#allocation73_spill] sm:$0xff] %v9498_v43  ;;  %v9504_v40 = vpop.f32.mrf.mxu1  ;;  %v153_v43 = vadd.f32 %v9124_v53, %v9353_v52 }
 0x21d   :  { %v9506_v57 = vpop.f32.mrf.mxu0  ;;  %v548_v53 = vadd.f32 %v9272_v36, %v159_v1  ;;  %v1140_v26 = vadd.f32 %v9380_v21, %v841_v8  ;;  %v849_v21 = vadd.f32 %v9347_v35, %v550_v46  ;;  %v1144_v33 = vadd.f32 %v9384_v19, %v845_v39 }
 0x21e   :  { %v9510_v28 = vpop.f32.mrf.mxu1  ;;  %v544_v52 = vadd.f32 %v9248_v14, %v153_v43  ;;  %v853_v43 = vadd.f32 %v9372_v63, %v554_v41  ;;  %v2035_v12 = vadd.f32 %v9466_v30, %v1736_v5  ;;  %v13129_v5 = vld [vmem:[#allocation49_spill] sm:$0xff] }
 0x21f   :  { %v9518_v7 = vpop.f32.mrf.mxu0  ;;  %v847_v14 = vadd.f32 %v9344_v29, %v548_v53  ;;  %v1439_v29 = vadd.f32 %v9404_v50, %v1140_v26  ;;  %v2333_v50 = vadd.f32 %v2221_v42, %v2034_v24  ;;  %v13113_v42 = vld [vmem:[#allocation39_spill] sm:$0xff] }
 0x220   :  { %v9528_v54 = vpop.f32.mrf.mxu1  ;;  %v843_v60 = vadd.f32 %v9320_v38, %v544_v52  ;;  %v1737_v38 = vadd.f32 %v9430_v45, %v1438_v25  ;;  %v1148_v45 = vadd.f32 %v9388_v20, %v849_v21  ;;  %v2334_v0 = vadd.f32 %v2223_v31, %v2035_v12  ;;  %v13114_v27 = vld [vmem:[#allocation71_spill] sm:$0xff]  ;;  %v13118_v52 = vld [vmem:[#allocation46_spill] sm:$0xff]  ;;  %v13127_v21 = vld [vmem:[#allocation48_spill] sm:$0xff] }
 0x221   :  { %v9533_v44 = vpop.f32.mrf.mxu0  ;;  %v1146_v59 = vadd.f32 %v9386_v47, %v847_v14  ;;  %v1738_v35 = vadd.f32 %v9434_v61, %v1439_v29  ;;  %v1152_v47 = vadd.f32 %v9396_v6, %v853_v43  ;;  %v1443_v13 = vadd.f32 %v13113_v42, %v1144_v33  ;;  %v13123_v14 = vld [vmem:[#allocation38_spill] sm:$0xff]  ;;  %v13133_v12 = vld [vmem:[#allocation52_spill] sm:$0xff] }
 0x222   :  { %v9542_v36 = vpop.f32.mrf.mxu1  ;;  %v1142_v15 = vadd.f32 %v9382_v11, %v843_v60  ;;  %v2036_v63 = vadd.f32 %v9462_v37, %v1737_v38  ;;  %v1449_v56 = vadd.f32 %v13118_v52, %v1150_v23  ;;  %v13124_v60 = vld [vmem:[#allocation47_spill] sm:$0xff]  ;;  %v1739_v43 = vadd.f32 %v13127_v21, %v13126_v16  ;;  %v13128_v29 = vld [vmem:[#allocation50_spill] sm:$0xff] }
 0x223   :  { %v9547_v51 = vpop.f32.mrf.mxu0  ;;  %v2037_v11 = vadd.f32 %v9464_v4, %v1738_v35  ;;  %v1445_v30 = vadd.f32 %v9420_v34, %v1146_v59  ;;  %v13116_v4 = vld [vmem:[#allocation35_spill] sm:$0xff]  ;;  %v1451_v26 = vadd.f32 %v13122_v18, %v1152_v47  ;;  %v1741_v39 = vadd.f32 %v13124_v60, %v13123_v14  ;;  %v13130_v59 = vld [vmem:[#allocation41_spill] sm:$0xff] }
 0x224   :  { %v9559_v1 = vpop.f32.mrf.mxu1  ;;  %v2335_v19 = vadd.f32 %v9492_v62, %v2036_v63  ;;  %v1441_v37 = vadd.f32 %v9408_v22, %v1142_v15  ;;  %v13117_v62 = vld [vmem:[#allocation44_spill] sm:$0xff]  ;;  %v1447_v22 = vadd.f32 %v13119_v10, %v1148_v45  ;;  %v13121_v34 = vld [vmem:[#allocation43_spill] sm:$0xff]  ;;  %v1742_v24 = vadd.f32 %v13129_v5, %v1443_v13  ;;  %v13135_v45 = vld [vmem:[#allocation53_spill] sm:$0xff] }
 0x225   :  { %v9564_v49 = vpop.f32.mrf.mxu0  ;;  %v2336_v17 = vadd.f32 %v13114_v27, %v2037_v11  ;;  %v1448_v31 = vadd.f32 %v13117_v62, %v13116_v4  ;;  %v1450_v46 = vadd.f32 %v13121_v34, %v13120_v2  ;;  %v13131_v15 = vld [vmem:[#allocation51_spill] sm:$0xff]  ;;  %v13132_v63 = vld [vmem:[#allocation40_spill] sm:$0xff]  ;;  %v13140_v13 = vld [vmem:[#allocation57_spill] sm:$0xff] }
 0x226   :  { %v1740_v38 = vadd.f32 %v13128_v29, %v1441_v37  ;;  %v1745_v33 = vadd.f32 %v13131_v15, %v13130_v59  ;;  %v1746_v47 = vadd.f32 %v13135_v45, %v1447_v22  ;;  %v13139_v37 = vld [vmem:[#allocation58_spill] sm:$0xff]  ;;  %v13143_v62 = vld [vmem:[#allocation61_spill] sm:$0xff]  ;;  %v13146_v2 = vld [vmem:[#allocation68_spill] sm:$0xff] }
 0x227   :  { %v1748_v42 = vadd.f32 %v13139_v37, %v1449_v56  ;;  %v13147_v56 = vld [vmem:[#allocation67_spill] sm:$0xff]  ;;  %v13148_v18 = vld [vmem:[#allocation69_spill] sm:$0xff]  ;;  %v13152_v29 = vld [vmem:[#allocation70_spill] sm:$0xff] }
 0x228   :  { %v13149_v60 = vld [vmem:[#allocation63_spill] sm:$0xff] }
 0x229   :  { %v2044_v16 = vadd.f32 %v13149_v60, %v1745_v33  ;;  %v2047_v5 = vadd.f32 %v13152_v29, %v1748_v42  ;;  %v7823_v60 = vld [vmem:[%s12880_s2 + $0x1b0] sm:$0xff] }
 0x236   :  { %v2609_v9 = vpop.f32.mrf.mxu1 }
 0x237   :  { %v2520_v3 = vpop.f32.mrf.mxu0  ;;  %v2634_v6 = vadd.f32 %v2609_v9, %v2335_v19  ;;  %v13134_v9 = vld [vmem:[#allocation54_spill] sm:$0xff]  ;;  %v13137_v19 = vld [vmem:[#allocation56_spill] sm:$0xff] }
 0x238   :  { %v2632_v55 = vadd.f32 %v2520_v3, %v2333_v50  ;;  %v2611_v61 = vpop.f32.mrf.mxu1  ;;  %v1743_v50 = vadd.f32 %v13133_v12, %v13132_v63  ;;  %v1744_v23 = vadd.f32 %v13134_v9, %v1445_v30  ;;  %v13142_v30 = vld [vmem:[#allocation59_spill] sm:$0xff] }
 0x239   :  { %v2522_v32 = vpop.f32.mrf.mxu0  ;;  %v2635_v25 = vadd.f32 %v2611_v61, %v2336_v17  ;;  %v9609_v3 = vmax.f32 %v2634_v6, 0.0  ;;  %v13141_v17 = vld [vmem:[#allocation60_spill] sm:$0xff]  ;;  %v2040_v4 = vadd.f32 %v13142_v30, %v1741_v39  ;;  %v2041_v6 = vadd.f32 %v13143_v62, %v1742_v24  ;;  %v13150_v39 = vld [vmem:[#allocation66_spill] sm:$0xff] }
 0x23a   :  { %v9578_v20 = vmax.f32 %v2632_v55, 0.0  ;;  %v2633_v8 = vadd.f32 %v2522_v32, %v2334_v0  ;;  %v9580_v53 = vpop.f32.mrf.mxu1  ;;  %v1747_v0 = vadd.f32 %v13137_v19, %v1448_v31  ;;  %v13138_v55 = vld [vmem:[#allocation55_spill] sm:$0xff]  ;;  %v1750_v32 = vadd.f32 %v13140_v13, %v1451_v26  ;;  %v13145_v31 = vld [vmem:[#allocation62_spill] sm:$0xff] }
 0x23b   :  { %v9588_v41 = vpop.f32.mrf.mxu0  ;;  %13136 = vst [vmem:[#allocation35_spill] sm:$0xff] %v9609_v3  ;;  %v1749_v61 = vadd.f32 %v13138_v55, %v1450_v46  ;;  %v9620_v52 = vmax.f32 %v2635_v25, 0.0  ;;  %v2039_v22 = vadd.f32 %v13145_v31, %v1740_v38  ;;  %v2043_v21 = vadd.f32 %v13150_v39, %v1744_v23  ;;  %v13153_v38 = vld [vmem:[#allocation64_spill] sm:$0xff] }
 0x23c   :  { %13115 = vst [vmem:[#allocation39_spill] sm:$0xff] %v9578_v20  ;;  %v9593_v58 = vmax.f32 %v2633_v8, 0.0  ;;  %2875 = vrot.lane.b32.xlu1 %v9578_v20, %s8074_s22  ;;  %v9597_v48 = vpop.f32.mrf.mxu1  ;;  %v2038_v8 = vadd.f32 %v13141_v17, %v1739_v43  ;;  %v2046_v34 = vadd.f32 %v13146_v2, %v1747_v0  ;;  %v2049_v26 = vadd.f32 %v13148_v18, %v1750_v32  ;;  %v13151_v43 = vld [vmem:[#allocation65_spill] sm:$0xff]  ;;  %v7821_v2 = vld [vmem:[%s12880_s2 + $0x1a0] sm:$0xff]  ;;  %v7822_v18 = vld [vmem:[%s12880_s2 + $0x1a8] sm:$0xff] }
 0x23d   :  { %v2528_v35 = vpop.f32.mrf.mxu0  ;;  %13144 = vst [vmem:[#allocation44_spill] sm:$0xff] %v9620_v52  ;;  %v2048_v46 = vadd.f32 %v13147_v56, %v1749_v61  ;;  %v2045_v25 = vadd.f32 %v13151_v43, %v1746_v47  ;;  %v2042_v59 = vadd.f32 %v13153_v38, %v1743_v50  ;;  %v2338_v33 = vadd.f32 %v9506_v57, %v2039_v22 }
 0x23e   :  { %13125 = vst [vmem:[#allocation71_spill] sm:$0xff] %v9593_v58  ;;  %2883 = vrot.lane.b32.xlu0 %v9593_v58, %s8074_s22  ;;  %v2621_v11 = vpop.f32.mrf.mxu1  ;;  %v2345_v15 = vadd.f32 %v9547_v51, %v2046_v34  ;;  %v2348_v12 = vadd.f32 %v9559_v1, %v2049_v26  ;;  %v2342_v23 = vadd.f32 %v9533_v44, %v2043_v21  ;;  %v13168_v56 = vmov 0.0   ;;  %v7824_v21 = vld [vmem:[%s12880_s2 + $0x1b8] sm:$0xff] }
 0x23f   :  { %v2532_v27 = vpop.f32.mrf.mxu0  ;;  %v2347_v63 = vadd.f32 %v9542_v36, %v2048_v46  ;;  %v2344_v45 = vadd.f32 %v9528_v54, %v2045_v25  ;;  %v2346_v47 = vadd.f32 %v9564_v49, %v2047_v5  ;;  %v2341_v50 = vadd.f32 %v9518_v7, %v2042_v59  ;;  %v13154_v54 = vld [vmem:[#allocation72_spill] sm:$0xff]  ;;  %v13156_v7 = vld [vmem:[#allocation73_spill] sm:$0xff] }
 0x240   :  { %2891 = vrot.lane.b32.xlu1 %v9609_v3, %s8074_s22  ;;  %v2623_v10 = vpop.f32.mrf.mxu1  ;;  %v2343_v1 = vadd.f32 %v9510_v28, %v2044_v16  ;;  %v2339_v44 = vadd.f32 %v13154_v54, %v2040_v4  ;;  %v2340_v49 = vadd.f32 %v9504_v40, %v2041_v6  ;;  %v2337_v32 = vadd.f32 %v13156_v7, %v2038_v8 }
 0x241   :  { %v2534_v14 = vpop.f32.mrf.mxu0  ;;  %v2643_v57 = vadd.f32 %v2623_v10, %v2344_v45  ;;  %v2640_v42 = vadd.f32 %v2532_v27, %v2341_v50  ;;  %v2637_v17 = vadd.f32 %v2528_v35, %v2338_v33 }
 0x242   :  { %2899 = vrot.lane.b32.xlu0 %v9620_v52, %s8074_s22  ;;  %v2627_v24 = vpop.f32.mrf.mxu1  ;;  %v2641_v61 = vadd.f32 %v2534_v14, %v2342_v23  ;;  %v2642_v30 = vadd.f32 %v2621_v11, %v2343_v1  ;;  %v2639_v28 = vadd.f32 %v9597_v48, %v2340_v49  ;;  %v2636_v40 = vadd.f32 %v9588_v41, %v2337_v32 }
 0x243   :  { %v2538_v9 = vpop.f32.mrf.mxu0  ;;  %v2646_v0 = vadd.f32 %v2627_v24, %v2347_v63  ;;  %v2638_v27 = vadd.f32 %v9580_v53, %v2339_v44  ;;  %v9667_v35 = vmax.f32 %v2643_v57, 0.0  ;;  %v9672_v48 = vmax.f32 %v2640_v42, 0.0 }
 0x244   :  { %3150 = vrot.lane.b32.xlu1 %v9578_v20, %s8075_s10  ;;  %v2629_v19 = vpop.f32.mrf.mxu1  ;;  %v2644_v51 = vadd.f32 %v2538_v9, %v2345_v15  ;;  %v9665_v8 = vmax.f32 %v2641_v61, 0.0  ;;  %v9676_v11 = vmax.f32 %v2637_v17, 0.0  ;;  %v9678_v41 = vmax.f32 %v2642_v30, 0.0 }
 0x245   :  { %v2540_v36 = vpop.f32.mrf.mxu0  ;;  %v2647_v55 = vadd.f32 %v2629_v19, %v2348_v12  ;;  %v9660_v31 = vmax.f32 %v2646_v0, 0.0  ;;  %13161 = vst [vmem:[#allocation38_spill] sm:$0xff] %v9667_v35  ;;  %13162 = vst [vmem:[#allocation47_spill] sm:$0xff] %v9672_v48  ;;  %v9682_v53 = vmax.f32 %v2639_v28, 0.0  ;;  %v9687_v4 = vmax.f32 %v2636_v40, 0.0 }
 0x246   :  { %v2645_v37 = vadd.f32 %v2540_v36, %v2346_v47  ;;  %3158 = vrot.lane.b32.xlu0 %v9593_v58, %s8075_s10  ;;  %v9658_v10 = vmax.f32 %v2644_v51, 0.0  ;;  %13160 = vst [vmem:[#allocation45_spill] sm:$0xff] %v9665_v8  ;;  %13163 = vst [vmem:[#allocation37_spill] sm:$0xff] %v9676_v11  ;;  %v9689_v6 = vmax.f32 %v2638_v27, 0.0  ;;  %v8083_v32 = vmov 1  }
 0x247   :  { %v9650_v13 = vmax.f32 %v2647_v55, 0.0  ;;  %13159 = vst [vmem:[#allocation43_spill] sm:$0xff] %v9660_v31  ;;  %13164 = vst [vmem:[#allocation48_spill] sm:$0xff] %v9678_v41  ;;  %8054 = vset.pattern.permute.xlu1 %v8083_v32  ;;  %8055 = vset.pattern.permute.xlu0 %v8083_v32 }
 0x248   :  { %v9653_v62 = vmax.f32 %v2645_v37, 0.0  ;;  %3166 = vrot.lane.b32.xlu1 %v9609_v3, %s8075_s10  ;;  %13158 = vst [vmem:[#allocation36_spill] sm:$0xff] %v9658_v10  ;;  %13165 = vst [vmem:[#allocation50_spill] sm:$0xff] %v9682_v53 }
 0x249   :  { %13155 = vst [vmem:[#allocation46_spill] sm:$0xff] %v9650_v13  ;;  %2810 = vmatprep.subr.mxu1 %v9650_v13  ;;  %13166 = vst [vmem:[#allocation49_spill] sm:$0xff] %v9687_v4 }
 0x24a   :  { %13157 = vst [vmem:[#allocation42_spill] sm:$0xff] %v9653_v62  ;;  %2721 = vmatprep.subr.mxu0 %v9653_v62  ;;  %3174 = vrot.lane.b32.xlu0 %v9620_v52, %s8075_s10  ;;  %13167 = vst [vmem:[#allocation41_spill] sm:$0xff] %v9689_v6 }
 0x24b   :  { %2722 = vmatpush1.msra.mxu0 %v9658_v10  ;;  %2811 = vmatpush1.msra.mxu1 %v9660_v31 }
 0x24c   :  { %2723 = vmatprep.subr.mxu0 %v9665_v8  ;;  %2812 = vmatprep.subr.mxu1 %v9667_v35 }
 0x24d   :  { %3425 = vrot.lane.b32.xlu1 %v9578_v20, %s8076_s11  ;;  %2724 = vmatpush1.msra.mxu0 %v9672_v48 }
 0x24e   :  { %2813 = vmatpush1.msra.mxu1 %v9678_v41  ;;  %2725 = vmatprep.subr.mxu0 %v9676_v11 }
 0x24f   :  { %2814 = vmatprep.subr.mxu1 %v9682_v53  ;;  %3433 = vrot.lane.b32.xlu0 %v9593_v58, %s8076_s11 }
 0x250   :  { %2726 = vmatpush1.msra.mxu0 %v9687_v4  ;;  %2815 = vmatpush1.msra.mxu1 %v9689_v6 }
 0x251   :  { %2727 = vmatprep.subr.mxu0 %v9593_v58  ;;  %2816 = vmatprep.subr.mxu1 %v9620_v52 }
 0x252   :  { %3441 = vrot.lane.b32.xlu1 %v9609_v3, %s8076_s11  ;;  %2728 = vmatpush1.msra.mxu0 %v9578_v20 }
 0x253   :  { %2817 = vmatpush1.msra.mxu1 %v9609_v3  ;;  %3449 = vrot.lane.b32.xlu0 %v9620_v52, %s8076_s11 }
 0x254   :  { %7825 = vmatmul.mubr.msk.f32.vlgmr.msra.gmra.mxu0 %vm65_vm0, %v7821_v2  ;;  %7829 = vmatmul.mubr.msk.f32.vlgmr.msra.gmra.mxu1 %vm65_vm0, %v7821_v2 }
 0x255   :  { %2767 = vmatprep.mubr.f32.mxu0 %v13168_v56  ;;  %2856 = vmatprep.mubr.f32.mxu1 %v13168_v56 }
 0x256   :  { %3700 = vrot.lane.b32.xlu1 %v9578_v20, %s8077_s12 }
 0x257   :  { %3708 = vrot.lane.b32.xlu0 %v9593_v58, %s8077_s12 }
 0x258   :  { %7826 = vmatmul.mubr.msk.f32.gmra.mxu0 %vm65_vm0, %v7822_v18  ;;  %7830 = vmatmul.mubr.msk.f32.gmra.mxu1 %vm65_vm0, %v7822_v18 }
 0x259   :  { %2773 = vmatprep.mubr.f32.mxu0 %v13168_v56  ;;  %2862 = vmatprep.mubr.f32.mxu1 %v13168_v56 }
 0x25a   :  { %3716 = vrot.lane.b32.xlu1 %v9609_v3, %s8077_s12 }
 0x25b   :  { %3724 = vrot.lane.b32.xlu0 %v9620_v52, %s8077_s12 }
 0x25c   :  { %7827 = vmatmul.mubr.msk.f32.gmra.mxu0 %vm65_vm0, %v7823_v60  ;;  %7831 = vmatmul.mubr.msk.f32.gmra.mxu1 %vm65_vm0, %v7823_v60 }
 0x25d   :  { %2779 = vmatprep.mubr.f32.mxu0 %v13168_v56  ;;  %2868 = vmatprep.mubr.f32.mxu1 %v13168_v56 }
 0x25e   :  { %3975 = vrot.lane.b32.xlu1 %v9578_v20, %s8078_s15 }
 0x25f   :  { %3983 = vrot.lane.b32.xlu0 %v9593_v58, %s8078_s15 }
 0x260   :  { %7828 = vmatmul.mubr.msk.f32.gmra.mxu0 %vm65_vm0, %v7824_v21  ;;  %7832 = vmatmul.mubr.msk.f32.gmra.mxu1 %vm65_vm0, %v7824_v21 }
 0x261   :  { %3020 = vmatprep.mubr.f32.mxu0 %v13168_v56  ;;  %3109 = vmatprep.mubr.f32.mxu1 %v13168_v56 }
 0x262   :  { %3991 = vrot.lane.b32.xlu1 %v9609_v3, %s8078_s15 }
 0x263   :  { %3999 = vrot.lane.b32.xlu0 %v9620_v52, %s8078_s15 }
 0x266   :  { %2877 = vrot.lane.b32.xlu1 %v9687_v4, %s8074_s22 }
 0x267   :  { %2885 = vrot.lane.b32.xlu0 %v9676_v11, %s8074_s22 }
 0x26a   :  { %2893 = vrot.lane.b32.xlu1 %v9689_v6, %s8074_s22 }
 0x26b   :  { %2901 = vrot.lane.b32.xlu0 %v9682_v53, %s8074_s22 }
 0x26e   :  { %3152 = vrot.lane.b32.xlu1 %v9687_v4, %s8075_s10 }
 0x26f   :  { %3160 = vrot.lane.b32.xlu0 %v9676_v11, %s8075_s10 }
 0x272   :  { %3168 = vrot.lane.b32.xlu1 %v9689_v6, %s8075_s10 }
 0x273   :  { %3176 = vrot.lane.b32.xlu0 %v9682_v53, %s8075_s10 }
 0x276   :  { %3427 = vrot.lane.b32.xlu1 %v9687_v4, %s8076_s11 }
 0x277   :  { %3435 = vrot.lane.b32.xlu0 %v9676_v11, %s8076_s11 }
 0x27a   :  { %3443 = vrot.lane.b32.xlu1 %v9689_v6, %s8076_s11 }
 0x27b   :  { %3451 = vrot.lane.b32.xlu0 %v9682_v53, %s8076_s11 }
 0x27e   :  { %3702 = vrot.lane.b32.xlu1 %v9687_v4, %s8077_s12 }
 0x27f   :  { %3710 = vrot.lane.b32.xlu0 %v9676_v11, %s8077_s12 }
 0x282   :  { %3718 = vrot.lane.b32.xlu1 %v9689_v6, %s8077_s12 }
 0x283   :  { %3726 = vrot.lane.b32.xlu0 %v9682_v53, %s8077_s12 }
 0x286   :  { %3977 = vrot.lane.b32.xlu1 %v9687_v4, %s8078_s15 }
 0x287   :  { %3985 = vrot.lane.b32.xlu0 %v9676_v11, %s8078_s15 }
 0x28a   :  { %3993 = vrot.lane.b32.xlu1 %v9689_v6, %s8078_s15 }
 0x28b   :  { %4001 = vrot.lane.b32.xlu0 %v9682_v53, %s8078_s15 }
 0x28e   :  { %2879 = vrot.lane.b32.xlu1 %v9672_v48, %s8074_s22 }
 0x28f   :  { %2887 = vrot.lane.b32.xlu0 %v9665_v8, %s8074_s22 }
 0x292   :  { %2895 = vrot.lane.b32.xlu1 %v9678_v41, %s8074_s22 }
 0x293   :  { %2903 = vrot.lane.b32.xlu0 %v9667_v35, %s8074_s22 }
 0x296   :  { %3154 = vrot.lane.b32.xlu1 %v9672_v48, %s8075_s10 }
 0x297   :  { %3162 = vrot.lane.b32.xlu0 %v9665_v8, %s8075_s10 }
 0x29a   :  { %3170 = vrot.lane.b32.xlu1 %v9678_v41, %s8075_s10 }
 0x29b   :  { %3178 = vrot.lane.b32.xlu0 %v9667_v35, %s8075_s10 }
 0x29e   :  { %3429 = vrot.lane.b32.xlu1 %v9672_v48, %s8076_s11 }
 0x29f   :  { %3437 = vrot.lane.b32.xlu0 %v9665_v8, %s8076_s11 }
 0x2a2   :  { %3445 = vrot.lane.b32.xlu1 %v9678_v41, %s8076_s11 }
 0x2a3   :  { %3453 = vrot.lane.b32.xlu0 %v9667_v35, %s8076_s11 }
 0x2a6   :  { %3704 = vrot.lane.b32.xlu1 %v9672_v48, %s8077_s12 }
 0x2a7   :  { %3712 = vrot.lane.b32.xlu0 %v9665_v8, %s8077_s12 }
 0x2aa   :  { %3720 = vrot.lane.b32.xlu1 %v9678_v41, %s8077_s12 }
 0x2ab   :  { %3728 = vrot.lane.b32.xlu0 %v9667_v35, %s8077_s12 }
 0x2ae   :  { %3979 = vrot.lane.b32.xlu1 %v9672_v48, %s8078_s15  ;;  %v9796_v22 = vpop.permute.xlu1 %2875 }
 0x2af   :  { %3987 = vrot.lane.b32.xlu0 %v9665_v8, %s8078_s15 }
 0x2b0   :  { %v9803_v34 = vpop.permute.xlu0 %2883 }
 0x2b2   :  { %3995 = vrot.lane.b32.xlu1 %v9678_v41, %s8078_s15  ;;  %v9811_v46 = vpop.permute.xlu1 %2891 }
 0x2b3   :  { %4003 = vrot.lane.b32.xlu0 %v9667_v35, %s8078_s15 }
 0x2b4   :  { %v9818_v26 = vpop.permute.xlu0 %2899 }
 0x2b6   :  { %4254 = vrot.lane.b32.xlu1 %v9672_v48, %s8079_s27  ;;  %v9826_v14 = vpop.permute.xlu1 %3150 }
 0x2b7   :  { %4262 = vrot.lane.b32.xlu0 %v9665_v8, %s8079_s27 }
 0x2b8   :  { %v9833_v16 = vpop.permute.xlu0 %3158 }
 0x2ba   :  { %4270 = vrot.lane.b32.xlu1 %v9678_v41, %s8079_s27  ;;  %v9841_v39 = vpop.permute.xlu1 %3166 }
 0x2bb   :  { %4278 = vrot.lane.b32.xlu0 %v9667_v35, %s8079_s27 }
 0x2bc   :  { %v9848_v43 = vpop.permute.xlu0 %3174 }
 0x2be   :  { %2881 = vrot.lane.b32.xlu1 %v9658_v10, %s8074_s22 }
 0x2bf   :  { %2889 = vrot.lane.b32.xlu0 %v9653_v62, %s8074_s22  ;;  %v9858_v25 = vpop.permute.xlu1 %3425 }
 0x2c1   :  { %v9860_v29 = vpop.permute.xlu0 %3433 }
 0x2c2   :  { %2897 = vrot.lane.b32.xlu1 %v9660_v31, %s8074_s22 }
 0x2c3   :  { %2905 = vrot.lane.b32.xlu0 %v9650_v13, %s8074_s22 }
 0x2c4   :  { %v9866_v5 = vpop.permute.xlu1 %3441 }
 0x2c5   :  { %v9868_v24 = vpop.permute.xlu0 %3449 }
 0x2c6   :  { %4252 = vrot.lane.b32.xlu1 %v9687_v4, %s8079_s27 }
 0x2c7   :  { %4260 = vrot.lane.b32.xlu0 %v9676_v11, %s8079_s27 }
 0x2c8   :  { %v9874_v38 = vpop.permute.xlu1 %3700 }
 0x2c9   :  { %13169 = vst [vmem:[#allocation51_spill] sm:$0xff] %v9874_v38  ;;  %v9876_v59 = vpop.permute.xlu0 %3708 }
 0x2ca   :  { %13170 = vst [vmem:[#allocation40_spill] sm:$0xff] %v9876_v59  ;;  %3156 = vrot.lane.b32.xlu1 %v9658_v10, %s8075_s10 }
 0x2cb   :  { %4276 = vrot.lane.b32.xlu0 %v9682_v53, %s8079_s27 }
 0x2cc   :  { %v9882_v15 = vpop.permute.xlu1 %3716 }
 0x2cd   :  { %13171 = vst [vmem:[#allocation52_spill] sm:$0xff] %v9882_v15  ;;  %v9884_v63 = vpop.permute.xlu0 %3724 }
 0x2ce   :  { %13172 = vst [vmem:[#allocation54_spill] sm:$0xff] %v9884_v63  ;;  %3172 = vrot.lane.b32.xlu1 %v9660_v31, %s8075_s10 }
 0x2cf   :  { %3164 = vrot.lane.b32.xlu0 %v9653_v62, %s8075_s10 }
 0x2d0   :  { %v9890_v12 = vpop.permute.xlu1 %3975 }
 0x2d1   :  { %13173 = vst [vmem:[#allocation53_spill] sm:$0xff] %v9890_v12  ;;  %v9892_v9 = vpop.permute.xlu0 %3983 }
 0x2d2   :  { %13174 = vst [vmem:[#allocation56_spill] sm:$0xff] %v9892_v9  ;;  %3431 = vrot.lane.b32.xlu1 %v9658_v10, %s8076_s11 }
 0x2d3   :  { %3180 = vrot.lane.b32.xlu0 %v9650_v13, %s8075_s10 }
 0x2d4   :  { %v9898_v33 = vpop.permute.xlu1 %3991 }
 0x2d5   :  { %13175 = vst [vmem:[#allocation55_spill] sm:$0xff] %v9898_v33  ;;  %v9900_v23 = vpop.permute.xlu0 %3999 }
 0x2d6   :  { %13176 = vst [vmem:[#allocation58_spill] sm:$0xff] %v9900_v23  ;;  %3447 = vrot.lane.b32.xlu1 %v9660_v31, %s8076_s11 }
 0x2d7   :  { %3439 = vrot.lane.b32.xlu0 %v9653_v62, %s8076_s11 }
 0x2d8   :  { %v9906_v45 = vpop.permute.xlu1 %2877 }
 0x2d9   :  { %v9908_v47 = vpop.permute.xlu0 %2885 }
 0x2da   :  { %3706 = vrot.lane.b32.xlu1 %v9658_v10, %s8077_s12 }
 0x2db   :  { %3455 = vrot.lane.b32.xlu0 %v9650_v13, %s8076_s11 }
 0x2dc   :  { %v9914_v19 = vpop.permute.xlu1 %2893 }
 0x2dd   :  { %v9916_v50 = vpop.permute.xlu0 %2901 }
 0x2de   :  { %3722 = vrot.lane.b32.xlu1 %v9660_v31, %s8077_s12 }
 0x2df   :  { %3714 = vrot.lane.b32.xlu0 %v9653_v62, %s8077_s12 }
 0x2e0   :  { %v9922_v51 = vpop.permute.xlu1 %3152 }
 0x2e1   :  { %v9924_v0 = vpop.permute.xlu0 %3160 }
 0x2e2   :  { %3981 = vrot.lane.b32.xlu1 %v9658_v10, %s8078_s15 }
 0x2e3   :  { %3730 = vrot.lane.b32.xlu0 %v9650_v13, %s8077_s12 }
 0x2e4   :  { %v9930_v36 = vpop.permute.xlu1 %3168 }
 0x2e5   :  { %v9932_v55 = vpop.permute.xlu0 %3176 }
 0x2e6   :  { %3997 = vrot.lane.b32.xlu1 %v9660_v31, %s8078_s15 }
 0x2e7   :  { %3989 = vrot.lane.b32.xlu0 %v9653_v62, %s8078_s15 }
 0x2e8   :  { %v9938_v1 = vpop.permute.xlu1 %3427 }
 0x2e9   :  { %v9940_v61 = vpop.permute.xlu0 %3435 }
 0x2ea   :  { %4256 = vrot.lane.b32.xlu1 %v9658_v10, %s8079_s27 }
 0x2eb   :  { %4005 = vrot.lane.b32.xlu0 %v9650_v13, %s8078_s15 }
 0x2ec   :  { %v9946_v57 = vpop.permute.xlu1 %3443 }
 0x2ed   :  { %v9948_v37 = vpop.permute.xlu0 %3451 }
 0x2ee   :  { %4272 = vrot.lane.b32.xlu1 %v9660_v31, %s8079_s27 }
 0x2ef   :  { %4264 = vrot.lane.b32.xlu0 %v9653_v62, %s8079_s27 }
 0x2f0   :  { %v9954_v54 = vpop.permute.xlu1 %3702 }
 0x2f1   :  { %v9956_v44 = vpop.permute.xlu0 %3710 }
 0x2f2   :  { %4268 = vrot.lane.b32.xlu1 %v9689_v6, %s8079_s27 }
 0x2f3   :  { %4280 = vrot.lane.b32.xlu0 %v9650_v13, %s8079_s27 }
 0x2f4   :  { %v9962_v49 = vpop.permute.xlu1 %3718 }
 0x2f5   :  { %13177 = vst [vmem:[#allocation57_spill] sm:$0xff] %v9962_v49  ;;  %v9964_v42 = vpop.permute.xlu0 %3726 }
 0x2f6   :  { %13178 = vst [vmem:[#allocation60_spill] sm:$0xff] %v9964_v42  ;;  %4250 = vrot.lane.b32.xlu1 %v9578_v20, %s8079_s27 }
 0x2f7   :  { %4258 = vrot.lane.b32.xlu0 %v9593_v58, %s8079_s27 }
 0x2f8   :  { %v9970_v7 = vpop.permute.xlu1 %3977 }
 0x2f9   :  { %13179 = vst [vmem:[#allocation59_spill] sm:$0xff] %v9970_v7  ;;  %v9972_v17 = vpop.permute.xlu0 %3985 }
 0x2fa   :  { %13180 = vst [vmem:[#allocation61_spill] sm:$0xff] %v9972_v17  ;;  %4266 = vrot.lane.b32.xlu1 %v9609_v3, %s8079_s27 }
 0x2fb   :  { %4274 = vrot.lane.b32.xlu0 %v9620_v52, %s8079_s27 }
 0x2fc   :  { %v9978_v30 = vpop.permute.xlu1 %3993 }
 0x2fd   :  { %13181 = vst [vmem:[#allocation62_spill] sm:$0xff] %v9978_v30  ;;  %v9980_v28 = vpop.permute.xlu0 %4001 }
 0x2fe   :  { %13182 = vst [vmem:[#allocation68_spill] sm:$0xff] %v9980_v28  ;;  %4531 = vrot.lane.b32.xlu1 %v9658_v10, %s8081_s17 }
 0x2ff   :  { %4539 = vrot.lane.b32.xlu0 %v9653_v62, %s8081_s17 }
 0x300   :  { %v9986_v40 = vpop.permute.xlu1 %2879 }
 0x301   :  { %v9988_v27 = vpop.permute.xlu0 %2887 }
 0x302   :  { %4547 = vrot.lane.b32.xlu1 %v9660_v31, %s8081_s17 }
 0x303   :  { %4555 = vrot.lane.b32.xlu0 %v9650_v13, %s8081_s17 }
 0x304   :  { %v9994_v2 = vpop.permute.xlu1 %2895 }
 0x305   :  { %v2904_v18 = vpop.permute.xlu0 %2903 }
 0x306   :  { %4529 = vrot.lane.b32.xlu1 %v9672_v48, %s8081_s17 }
 0x307   :  { %4537 = vrot.lane.b32.xlu0 %v9665_v8, %s8081_s17 }
 0x308   :  { %v10000_v60 = vpop.permute.xlu1 %3154 }
 0x309   :  { %v10002_v21 = vpop.permute.xlu0 %3162 }
 0x30a   :  { %4545 = vrot.lane.b32.xlu1 %v9678_v41, %s8081_s17 }
 0x30b   :  { %4553 = vrot.lane.b32.xlu0 %v9667_v35, %s8081_s17 }
 0x30c   :  { %v10008_v32 = vpop.permute.xlu1 %3170 }
 0x30d   :  { %v10010_v23 = vpop.permute.xlu0 %3178 }
 0x30e   :  { %4527 = vrot.lane.b32.xlu1 %v9687_v4, %s8081_s17 }
 0x30f   :  { %4535 = vrot.lane.b32.xlu0 %v9676_v11, %s8081_s17 }
 0x310   :  { %v10016_v12 = vpop.permute.xlu1 %3429 }
 0x311   :  { %v10018_v9 = vpop.permute.xlu0 %3437 }
 0x312   :  { %4543 = vrot.lane.b32.xlu1 %v9689_v6, %s8081_s17 }
 0x313   :  { %4551 = vrot.lane.b32.xlu0 %v9682_v53, %s8081_s17 }
 0x314   :  { %v10024_v33 = vpop.permute.xlu1 %3445 }
 0x315   :  { %v10026_v28 = vpop.permute.xlu0 %3453 }
 0x316   :  { %4525 = vrot.lane.b32.xlu1 %v9578_v20, %s8081_s17 }
 0x317   :  { %4533 = vrot.lane.b32.xlu0 %v9593_v58, %s8081_s17 }
 0x318   :  { %v10032_v7 = vpop.permute.xlu1 %3704 }
 0x319   :  { %v10034_v17 = vpop.permute.xlu0 %3712 }
 0x31a   :  { %4541 = vrot.lane.b32.xlu1 %v9609_v3, %s8081_s17 }
 0x31b   :  { %4549 = vrot.lane.b32.xlu0 %v9620_v52, %s8081_s17 }
 0x31c   :  { %v10040_v30 = vpop.permute.xlu1 %3720 }
 0x31d   :  { %v10042_v15 = vpop.permute.xlu0 %3728 }
 0x31e   :  { %4806 = vrot.lane.b32.xlu1 %v9658_v10, %s8082_s30 }
 0x31f   :  { %4814 = vrot.lane.b32.xlu0 %v9653_v62, %s8082_s30 }
 0x320   :  { %v10048_v63 = vpop.permute.xlu1 %3979 }
 0x321   :  { %13183 = vst [vmem:[#allocation67_spill] sm:$0xff] %v10048_v63  ;;  %v10050_v38 = vpop.permute.xlu0 %3987  ;;  %v13193_v63 = vld [vmem:[#allocation3_spill] sm:$0xff] }
 0x322   :  { %13184 = vst [vmem:[#allocation69_spill] sm:$0xff] %v10050_v38  ;;  %4822 = vrot.lane.b32.xlu1 %v9660_v31, %s8082_s30 }
 0x323   :  { %4830 = vrot.lane.b32.xlu0 %v9650_v13, %s8082_s30 }
 0x324   :  { %v10056_v59 = vpop.permute.xlu1 %3995 }
 0x325   :  { %13185 = vst [vmem:[#allocation63_spill] sm:$0xff] %v10056_v59  ;;  %v10058_v49 = vpop.permute.xlu0 %4003 }
 0x326   :  { %13186 = vst [vmem:[#allocation66_spill] sm:$0xff] %v10058_v49  ;;  %4804 = vrot.lane.b32.xlu1 %v9672_v48, %s8082_s30  ;;  %v2921_v49 = vsel %vm290_vm1, %v2904_v18, %v9986_v40 }
 0x327   :  { %4812 = vrot.lane.b32.xlu0 %v9665_v8, %s8082_s30 }
 0x328   :  { %v10064_v62 = vpop.permute.xlu1 %4254 }
 0x329   :  { %13187 = vst [vmem:[#allocation65_spill] sm:$0xff] %v10064_v62  ;;  %v10066_v10 = vpop.permute.xlu0 %4262 }
 0x32a   :  { %13188 = vst [vmem:[#allocation70_spill] sm:$0xff] %v10066_v10  ;;  %4820 = vrot.lane.b32.xlu1 %v9678_v41, %s8082_s30 }
 0x32b   :  { %4828 = vrot.lane.b32.xlu0 %v9667_v35, %s8082_s30  ;;  %v13192_v35 = vld [vmem:[#allocation5_spill] sm:$0xff] }
 0x32c   :  { %v10072_v13 = vpop.permute.xlu1 %4270 }
 0x32d   :  { %13189 = vst [vmem:[#allocation64_spill] sm:$0xff] %v10072_v13  ;;  %v10074_v31 = vpop.permute.xlu0 %4278  ;;  %v2915_v13 = vsel %vm290_vm1, %v9796_v22, %v9803_v34 }
 0x32e   :  { %13190 = vst [vmem:[#allocation72_spill] sm:$0xff] %v10074_v31  ;;  %4802 = vrot.lane.b32.xlu1 %v9687_v4, %s8082_s30  ;;  %v2917_v4 = vsel %vm290_vm1, %v9986_v40, %v9988_v27  ;;  %v2913_v40 = vsel %vm290_vm1, %v9988_v27, %v9994_v2  ;;  %v2936_v27 = vmul.f32 %v2921_v49, %v13193_v63 }
 0x32f   :  { %4810 = vrot.lane.b32.xlu0 %v9676_v11, %s8082_s30  ;;  %v2929_v49 = vmul.f32 %v2915_v13, %v13192_v35 }
 0x330   :  { %v2882_v8 = vpop.permute.xlu1 %2881 }
 0x331   :  { %v2890_v48 = vpop.permute.xlu0 %2889 }
 0x332   :  { %v2918_v10 = vsel %vm290_vm1, %v2882_v8, %v2890_v48  ;;  %4818 = vrot.lane.b32.xlu1 %v9689_v6, %s8082_s30 }
 0x333   :  { %4826 = vrot.lane.b32.xlu0 %v9682_v53, %s8082_s30  ;;  %v2941_v41 = vmul.f32 %v2918_v10, %v13192_v35 }
 0x334   :  { %v2898_v31 = vpop.permute.xlu1 %2897 }
 0x335   :  { %v2906_v11 = vpop.permute.xlu0 %2905  ;;  %2980 = vmatprep.subr.mxu0 %v2941_v41  ;;  %v2914_v6 = vsel %vm290_vm1, %v2890_v48, %v2898_v31  ;;  %v2909_v41 = vsel %vm290_vm1, %v9994_v2, %v2904_v18 }
 0x336   :  { %v2910_v53 = vsel %vm290_vm1, %v2898_v31, %v2906_v11  ;;  %v2922_v10 = vsel %vm290_vm1, %v2906_v11, %v2882_v8  ;;  %4800 = vrot.lane.b32.xlu1 %v9578_v20, %s8082_s30  ;;  %v13194_v31 = vld [vmem:[#allocation6_spill] sm:$0xff]  ;;  %v2907_v8 = vsel %vm290_vm1, %v9811_v46, %v9818_v26  ;;  %v2916_v11 = vsel %vm290_vm1, %v9906_v45, %v9908_v47  ;;  %v13195_v20 = vld [vmem:[#allocation4_spill] sm:$0xff] }
 0x337   :  { %v2940_v38 = vmul.f32 %v2922_v10, %v13193_v63  ;;  %4808 = vrot.lane.b32.xlu0 %v9593_v58, %s8082_s30  ;;  %v2943_v48 = vmul.f32 %v2910_v53, %v13194_v31  ;;  %v2937_v10 = vmul.f32 %v2917_v4, %v13192_v35  ;;  %v2908_v53 = vsel %vm290_vm1, %v9914_v19, %v9916_v50 }
 0x338   :  { %v10125_v18 = vpop.permute.xlu1 %4252  ;;  %v2920_v58 = vsel %vm290_vm1, %v9916_v50, %v9906_v45  ;;  %v2942_v59 = vmul.f32 %v2914_v6, %v13195_v20  ;;  %v2912_v4 = vsel %vm290_vm1, %v9908_v47, %v9914_v19  ;;  %v2939_v2 = vmul.f32 %v2909_v41, %v13194_v31 }
 0x339   :  { %v10137_v42 = vpop.permute.xlu0 %4260  ;;  %2981 = vmatpush1.msra.mxu0 %v2940_v38  ;;  %3069 = vmatprep.subr.mxu1 %v2943_v48  ;;  %v2919_v6 = vsel %vm290_vm1, %v9818_v26, %v9796_v22  ;;  %v2938_v38 = vmul.f32 %v2913_v40, %v13195_v20  ;;  %v2933_v45 = vmul.f32 %v2916_v11, %v13192_v35  ;;  %v13196_v40 = vld [vmem:[#allocation7_spill] sm:$0xff] }
 0x33a   :  { %4816 = vrot.lane.b32.xlu1 %v9609_v3, %s8082_s30  ;;  %2982 = vmatprep.subr.mxu0 %v2937_v10  ;;  %v2911_v47 = vsel %vm290_vm1, %v9803_v34, %v9811_v46  ;;  %v2932_v19 = vmul.f32 %v2920_v58, %v13193_v63  ;;  %v2935_v22 = vmul.f32 %v2908_v53, %v13194_v31  ;;  %v7833_v58 = vld [vmem:[%s12880_s2 + $0x120] sm:$0xff]  ;;  %v8065_v53 = vld [vmem:[%s12882_s3 + $0x18] sm:$0xff] }
 0x33b   :  { %3070 = vmatpush1.msra.mxu1 %v2942_v59  ;;  %4824 = vrot.lane.b32.xlu0 %v9620_v52, %s8082_s30  ;;  %v2934_v26 = vmul.f32 %v2912_v4, %v13195_v20  ;;  %v2928_v41 = vmul.f32 %v2919_v6, %v13193_v63  ;;  %v2931_v34 = vmul.f32 %v2907_v8, %v13194_v31  ;;  %v7834_v8 = vld [vmem:[%s12880_s2 + $0x128] sm:$0xff] }
 0x33c   :  { %3071 = vmatprep.subr.mxu1 %v2939_v2  ;;  %v3157_v50 = vpop.permute.xlu1 %3156  ;;  %2983 = vmatpush1.msra.mxu0 %v2936_v27  ;;  %v2930_v46 = vmul.f32 %v2911_v47, %v13195_v20  ;;  %v8066_v27 = vld [vmem:[%s12882_s3 + $0x10] sm:$0xff]  ;;  %v3192_v2 = vsel %vm587_vm2, %v10000_v60, %v10002_v21 }
 0x33d   :  { %2984 = vmatprep.subr.mxu0 %v2933_v45  ;;  %3072 = vmatpush1.msra.mxu1 %v2938_v38  ;;  %v10162_v59 = vpop.permute.xlu0 %4276 }
 0x33e   :  { %2985 = vmatpush1.msra.mxu0 %v2932_v19  ;;  %3073 = vmatprep.subr.mxu1 %v2935_v22  ;;  %v7835_v19 = vld [vmem:[%s12880_s2 + $0x130] sm:$0xff]  ;;  %v3184_v22 = vsel %vm587_vm2, %v10008_v32, %v10010_v23 }
 0x33f   :  { %2986 = vmatprep.subr.mxu0 %v2929_v49  ;;  %3074 = vmatpush1.msra.mxu1 %v2934_v26  ;;  %v13197_v26 = vld [vmem:[#allocation8_spill] sm:$0xff] }
 0x340   :  { %3075 = vmatprep.subr.mxu1 %v2931_v34  ;;  %v3173_v48 = vpop.permute.xlu1 %3172  ;;  %2987 = vmatpush1.msra.mxu0 %v2928_v41  ;;  %v13198_v41 = vld [vmem:[#allocation10_spill] sm:$0xff] }
 0x341   :  { %7837 = vmatmul.mubr.msk.f32.vlgmr.msra.gmra.mxu0 %vm65_vm0, %v7833_v58  ;;  %3076 = vmatpush1.msra.mxu1 %v2930_v46  ;;  %v3165_v13 = vpop.permute.xlu0 %3164 }
 0x342   :  { %v3193_v11 = vsel %vm587_vm2, %v3157_v50, %v3165_v13  ;;  %7841 = vmatmul.mubr.msk.f32.vlgmr.msra.gmra.mxu1 %vm65_vm0, %v7833_v58  ;;  %3026 = vmatprep.mubr.f32.mxu0 %v13168_v56  ;;  %v3189_v38 = vsel %vm587_vm2, %v3165_v13, %v3173_v48  ;;  %v3196_v58 = vsel %vm587_vm2, %v10010_v23, %v10000_v60  ;;  %v13199_v13 = vld [vmem:[#allocation9_spill] sm:$0xff] }
 0x343   :  { %3115 = vmatprep.mubr.f32.mxu1 %v13168_v56  ;;  %v3216_v10 = vmul.f32 %v3193_v11, %v13196_v40  ;;  %2682 = vperm.xlu1 %8054, %v8065_v53   ;;  %v3217_v11 = vmul.f32 %v3189_v38, %v13199_v13  ;;  %v3195_v53 = vsel %vm587_vm2, %v9932_v55, %v9922_v51 }
 0x344   :  { %v3432_v4 = vpop.permute.xlu1 %3431  ;;  %2678 = vperm.xlu0 %8055, %v8066_v27   ;;  %v3188_v23 = vsel %vm587_vm2, %v10002_v21, %v10008_v32  ;;  %v3214_v60 = vmul.f32 %v3184_v22, %v13198_v41  ;;  %v3190_v27 = vsel %vm587_vm2, %v9826_v14, %v9833_v16  ;;  %v7836_v21 = vld [vmem:[%s12880_s2 + $0x138] sm:$0xff]  ;;  %v3182_v32 = vsel %vm587_vm2, %v9841_v39, %v9848_v43 }
 0x345   :  { %7838 = vmatmul.mubr.msk.f32.gmra.mxu0 %vm65_vm0, %v7834_v8  ;;  %v3181_v6 = vpop.permute.xlu0 %3180  ;;  %3255 = vmatprep.subr.mxu0 %v3216_v10  ;;  %v3212_v10 = vmul.f32 %v3192_v2, %v13196_v40  ;;  %v3211_v2 = vmul.f32 %v3196_v58, %v13197_v26 }
 0x346   :  { %v3185_v45 = vsel %vm587_vm2, %v3173_v48, %v3181_v6  ;;  %v3197_v47 = vsel %vm587_vm2, %v3181_v6, %v3157_v50  ;;  %7842 = vmatmul.mubr.msk.f32.gmra.mxu1 %vm65_vm0, %v7834_v8  ;;  %3032 = vmatprep.mubr.f32.mxu0 %v13168_v56  ;;  %v8067_v50 = vld [vmem:[%s12882_s3 + $0x8] sm:$0xff]  ;;  %v3191_v48 = vsel %vm587_vm2, %v9922_v51, %v9924_v0 }
 0x347   :  { %v3215_v49 = vmul.f32 %v3197_v47, %v13197_v26  ;;  %3121 = vmatprep.mubr.f32.mxu1 %v13168_v56  ;;  %v3218_v34 = vmul.f32 %v3185_v45, %v13198_v41  ;;  %2674 = vperm.xlu1 %8054, %v8067_v50   ;;  %v3183_v51 = vsel %vm587_vm2, %v9930_v36, %v9932_v55 }
 0x348   :  { %v3448_v46 = vpop.permute.xlu1 %3447  ;;  %v3187_v6 = vsel %vm587_vm2, %v9924_v0, %v9930_v36  ;;  %v3208_v38 = vmul.f32 %v3191_v48, %v13196_v40  ;;  %v3194_v45 = vsel %vm587_vm2, %v9848_v43, %v9826_v14  ;;  %v3207_v47 = vmul.f32 %v3195_v53, %v13197_v26 }
 0x349   :  { %7839 = vmatmul.mubr.msk.f32.gmra.mxu0 %vm65_vm0, %v7835_v19  ;;  %v3440_v8 = vpop.permute.xlu0 %3439  ;;  %3344 = vmatprep.subr.mxu1 %v3218_v34  ;;  %v3186_v36 = vsel %vm587_vm2, %v9833_v16, %v9841_v39  ;;  %v3210_v22 = vmul.f32 %v3183_v51, %v13198_v41  ;;  %v3204_v14 = vmul.f32 %v3190_v27, %v13196_v40  ;;  %v13201_v27 = vld [vmem:[#allocation14_spill] sm:$0xff] }
 0x34a   :  { %7843 = vmatmul.mubr.msk.f32.gmra.mxu1 %vm65_vm0, %v7835_v19  ;;  %3256 = vmatpush1.msra.mxu0 %v3215_v49  ;;  %v3213_v19 = vmul.f32 %v3188_v23, %v13199_v13  ;;  %v3209_v43 = vmul.f32 %v3187_v6, %v13199_v13  ;;  %v3203_v50 = vmul.f32 %v3194_v45, %v13197_v26  ;;  %v13200_v23 = vld [vmem:[#allocation12_spill] sm:$0xff] }
 0x34b   :  { %3257 = vmatprep.subr.mxu0 %v3212_v10  ;;  %3345 = vmatpush1.msra.mxu1 %v3217_v11  ;;  %v3468_v16 = vsel %vm886_vm3, %v3432_v4, %v3440_v8  ;;  %v3206_v39 = vmul.f32 %v3182_v32, %v13198_v41  ;;  %v3205_v48 = vmul.f32 %v3186_v36, %v13199_v13 }
 0x34c   :  { %3346 = vmatprep.subr.mxu1 %v3214_v60  ;;  %v10254_v55 = vpop.permute.xlu1 %3706  ;;  %3038 = vmatprep.mubr.f32.mxu0 %v13168_v56  ;;  %v3467_v11 = vsel %vm886_vm3, %v10016_v12, %v10018_v9  ;;  %v3464_v53 = vsel %vm886_vm3, %v3440_v8, %v3448_v46  ;;  %v3466_v6 = vsel %vm886_vm3, %v9938_v1, %v9940_v61 }
 0x34d   :  { %3258 = vmatpush1.msra.mxu0 %v3211_v2  ;;  %3127 = vmatprep.mubr.f32.mxu1 %v13168_v56  ;;  %v3456_v0 = vpop.permute.xlu0 %3455  ;;  %v3459_v2 = vsel %vm886_vm3, %v10024_v33, %v10026_v28  ;;  %v3465_v36 = vsel %vm886_vm3, %v9858_v25, %v9860_v29 }
 0x34e   :  { %7840 = vmatmul.mubr.msk.f32.gmra.mxu0 %vm65_vm0, %v7836_v21  ;;  %3259 = vmatprep.subr.mxu0 %v3208_v38  ;;  %v3460_v49 = vsel %vm886_vm3, %v3448_v46, %v3456_v0  ;;  %v3472_v34 = vsel %vm886_vm3, %v3456_v0, %v3432_v4  ;;  %v7845_v4 = vld [vmem:[%s12880_s2 + $0x140] sm:$0xff]  ;;  %v3471_v46 = vsel %vm886_vm3, %v10026_v28, %v10016_v12  ;;  %v13203_v38 = vld [vmem:[#allocation13_spill] sm:$0xff] }
 0x34f   :  { %3347 = vmatpush1.msra.mxu1 %v3213_v19  ;;  %3260 = vmatpush1.msra.mxu0 %v3207_v47  ;;  %v3490_v60 = vmul.f32 %v3472_v34, %v13200_v23  ;;  %v3493_v51 = vmul.f32 %v3460_v49, %v13201_v27  ;;  %v3492_v45 = vmul.f32 %v3464_v53, %v13203_v38 }
 0x350   :  { %7844 = vmatmul.mubr.msk.f32.gmra.mxu1 %vm65_vm0, %v7836_v21  ;;  %3348 = vmatprep.subr.mxu1 %v3210_v22  ;;  %v10282_v58 = vpop.permute.xlu1 %3722  ;;  %v13202_v21 = vld [vmem:[#allocation11_spill] sm:$0xff]  ;;  %v3470_v12 = vsel %vm886_vm3, %v9948_v37, %v9938_v1  ;;  %v3463_v28 = vsel %vm886_vm3, %v10018_v9, %v10024_v33  ;;  %v3489_v0 = vmul.f32 %v3459_v2, %v13201_v27 }
 0x351   :  { %3261 = vmatprep.subr.mxu0 %v3204_v14  ;;  %3349 = vmatpush1.msra.mxu1 %v3209_v43  ;;  %v10292_v10 = vpop.permute.xlu0 %3714  ;;  %v3491_v32 = vmul.f32 %v3468_v16, %v13202_v21  ;;  %v3487_v47 = vmul.f32 %v3467_v11, %v13202_v21  ;;  %v3458_v22 = vsel %vm886_vm3, %v9946_v57, %v9948_v37  ;;  %v7846_v9 = vld [vmem:[%s12880_s2 + $0x148] sm:$0xff] }
 0x352   :  { %3350 = vmatprep.subr.mxu1 %v3206_v39  ;;  %3262 = vmatpush1.msra.mxu0 %v3203_v50  ;;  %v3486_v1 = vmul.f32 %v3471_v46, %v13200_v23  ;;  %v3462_v33 = vsel %vm886_vm3, %v9940_v61, %v9946_v57  ;;  %v3483_v14 = vmul.f32 %v3466_v6, %v13202_v21 }
 0x353   :  { %3295 = vmatprep.mubr.f32.mxu0 %v13168_v56  ;;  %3351 = vmatpush1.msra.mxu1 %v3205_v48  ;;  %v3457_v37 = vsel %vm886_vm3, %v9866_v5, %v9868_v24  ;;  %v3482_v49 = vmul.f32 %v3470_v12, %v13200_v23  ;;  %v3488_v34 = vmul.f32 %v3463_v28, %v13203_v38  ;;  %v8068_v12 = vld [vmem:[%s12882_s3] sm:$0xff] }
 0x354   :  { %7849 = vmatmul.mubr.msk.f32.vlgmr.msra.gmra.mxu0 %vm65_vm0, %v7845_v4  ;;  %3384 = vmatprep.mubr.f32.mxu1 %v13168_v56  ;;  %v10310_v8 = vpop.permute.xlu1 %3981  ;;  %v3469_v57 = vsel %vm886_vm3, %v9868_v24, %v9858_v25  ;;  %v3485_v50 = vmul.f32 %v3458_v22, %v13201_v27  ;;  %v3479_v16 = vmul.f32 %v3465_v36, %v13202_v21 }
 0x355   :  { %3530 = vmatprep.subr.mxu0 %v3491_v32  ;;  %7853 = vmatmul.mubr.msk.f32.vlgmr.msra.gmra.mxu1 %vm65_vm0, %v7845_v4  ;;  %v10319_v19 = vpop.permute.xlu0 %3730  ;;  %v3461_v39 = vsel %vm886_vm3, %v9860_v29, %v9866_v5  ;;  %v3484_v48 = vmul.f32 %v3462_v33, %v13203_v38  ;;  %v3743_v24 = vsel %vm1185_vm4, %v10254_v55, %v10292_v10  ;;  %v7847_v4 = vld [vmem:[%s12880_s2 + $0x150] sm:$0xff]  ;;  %v13205_v32 = vld [vmem:[#allocation15_spill] sm:$0xff] }
 0x356   :  { %3531 = vmatpush1.msra.mxu0 %v3490_v60  ;;  %3619 = vmatprep.subr.mxu1 %v3493_v51  ;;  %v3735_v25 = vsel %vm1185_vm4, %v10282_v58, %v10319_v19  ;;  %v3481_v11 = vmul.f32 %v3457_v37, %v13201_v27  ;;  %v3478_v5 = vmul.f32 %v3469_v57, %v13200_v23  ;;  %v13204_v51 = vld [vmem:[#allocation18_spill] sm:$0xff]  ;;  %v13207_v37 = vld [vmem:[#allocation17_spill] sm:$0xff] }
 0x357   :  { %3532 = vmatprep.subr.mxu0 %v3487_v47  ;;  %3620 = vmatpush1.msra.mxu1 %v3492_v45  ;;  %v3480_v60 = vmul.f32 %v3461_v39, %v13203_v38  ;;  %v3768_v2 = vmul.f32 %v3735_v25, %v13204_v51  ;;  %v3766_v46 = vmul.f32 %v3743_v24, %v13205_v32  ;;  %v7848_v45 = vld [vmem:[%s12880_s2 + $0x158] sm:$0xff]  ;;  %v13210_v25 = vld [vmem:[#allocation40_spill] sm:$0xff]  ;;  %v13211_v24 = vld [vmem:[#allocation51_spill] sm:$0xff] }
 0x358   :  { %3621 = vmatprep.subr.mxu1 %v3489_v0  ;;  %3301 = vmatprep.mubr.f32.mxu0 %v13168_v56  ;;  %v10348_v43 = vpop.permute.xlu1 %3997  ;;  %v3747_v28 = vsel %vm1185_vm4, %v10319_v19, %v10254_v55  ;;  %v3742_v36 = vsel %vm1185_vm4, %v10032_v7, %v10034_v17  ;;  %v3739_v22 = vsel %vm1185_vm4, %v10292_v10, %v10282_v58  ;;  %v7857_v55 = vld [vmem:[%s12880_s2 + $0x160] sm:$0xff] }
 0x359   :  { %3533 = vmatpush1.msra.mxu0 %v3486_v1  ;;  %3390 = vmatprep.mubr.f32.mxu1 %v13168_v56  ;;  %v10357_v61 = vpop.permute.xlu0 %3989  ;;  %v3734_v1 = vsel %vm1185_vm4, %v10040_v30, %v10042_v15  ;;  %v3746_v58 = vsel %vm1185_vm4, %v10042_v15, %v10032_v7  ;;  %v3738_v10 = vsel %vm1185_vm4, %v10034_v17, %v10040_v30 }
 0x35a   :  { %7850 = vmatmul.mubr.msk.f32.gmra.mxu0 %vm65_vm0, %v7846_v9  ;;  %3534 = vmatprep.subr.mxu0 %v3483_v14  ;;  %v3741_v14 = vsel %vm1185_vm4, %v9954_v54, %v9956_v44  ;;  %v3762_v15 = vmul.f32 %v3742_v36, %v13205_v32  ;;  %v3764_v57 = vmul.f32 %v3734_v1, %v13204_v51 }
 0x35b   :  { %3622 = vmatpush1.msra.mxu1 %v3488_v34  ;;  %3535 = vmatpush1.msra.mxu0 %v3482_v49  ;;  %v3767_v49 = vmul.f32 %v3739_v22, %v13207_v37  ;;  %v13208_v34 = vld [vmem:[#allocation60_spill] sm:$0xff]  ;;  %v4014_v1 = vsel %vm1484_vm5, %v10357_v61, %v10348_v43 }
 0x35c   :  { %7854 = vmatmul.mubr.msk.f32.gmra.mxu1 %vm65_vm0, %v7846_v9  ;;  %3623 = vmatprep.subr.mxu1 %v3485_v50  ;;  %v10381_v29 = vpop.permute.xlu1 %4256  ;;  %v13206_v9 = vld [vmem:[#allocation16_spill] sm:$0xff]  ;;  %v3745_v17 = vsel %vm1185_vm4, %v13208_v34, %v9954_v54  ;;  %v7858_v54 = vld [vmem:[%s12880_s2 + $0x168] sm:$0xff] }
 0x35d   :  { %3536 = vmatprep.subr.mxu0 %v3479_v16  ;;  %3624 = vmatpush1.msra.mxu1 %v3484_v48  ;;  %v10387_v53 = vpop.permute.xlu0 %4005  ;;  %v3765_v33 = vmul.f32 %v3747_v28, %v13206_v9  ;;  %v3761_v30 = vmul.f32 %v3746_v58, %v13206_v9  ;;  %v13209_v16 = vld [vmem:[#allocation57_spill] sm:$0xff]  ;;  %v3763_v48 = vmul.f32 %v3738_v10, %v13207_v37 }
 0x35e   :  { %3625 = vmatprep.subr.mxu1 %v3481_v11  ;;  %3307 = vmatprep.mubr.f32.mxu0 %v13168_v56  ;;  %v3733_v39 = vsel %vm1185_vm4, %v13209_v16, %v13208_v34  ;;  %v3740_v11 = vsel %vm1185_vm4, %v13211_v24, %v13210_v25 }
 0x35f   :  { %3537 = vmatpush1.msra.mxu0 %v3478_v5  ;;  %3396 = vmatprep.mubr.f32.mxu1 %v13168_v56  ;;  %v3737_v5 = vsel %vm1185_vm4, %v9956_v44, %v13209_v16  ;;  %v3760_v36 = vmul.f32 %v3733_v39, %v13204_v51  ;;  %v3754_v58 = vmul.f32 %v3740_v11, %v13205_v32  ;;  %v13215_v16 = vld [vmem:[#allocation19_spill] sm:$0xff] }
 0x360   :  { %7851 = vmatmul.mubr.msk.f32.gmra.mxu0 %vm65_vm0, %v7847_v4  ;;  %3626 = vmatpush1.msra.mxu1 %v3480_v60  ;;  %v10395_v6 = vpop.permute.xlu1 %4272  ;;  %v13212_v60 = vld [vmem:[#allocation54_spill] sm:$0xff]  ;;  %v13216_v11 = vld [vmem:[#allocation63_spill] sm:$0xff] }
 0x361   :  { %3805 = vmatprep.subr.mxu0 %v3766_v46  ;;  %7855 = vmatmul.mubr.msk.f32.gmra.mxu1 %vm65_vm0, %v7847_v4  ;;  %v10401_v47 = vpop.permute.xlu0 %4264  ;;  %v3758_v4 = vmul.f32 %v3741_v14, %v13205_v32 }
 0x362   :  { %3894 = vmatprep.subr.mxu1 %v3768_v2  ;;  %3313 = vmatprep.mubr.f32.mxu0 %v13168_v56  ;;  %v13213_v2 = vld [vmem:[#allocation52_spill] sm:$0xff] }
 0x363   :  { %3402 = vmatprep.mubr.f32.mxu1 %v13168_v56  ;;  %2670 = vperm.xlu1 %8054, %v8068_v12   ;;  %v3732_v46 = vsel %vm1185_vm4, %v13213_v2, %v13212_v60  ;;  %v3757_v12 = vmul.f32 %v3745_v17, %v13206_v9  ;;  %v3736_v28 = vsel %vm1185_vm4, %v13210_v25, %v13213_v2  ;;  %v13214_v17 = vld [vmem:[#allocation21_spill] sm:$0xff] }
 0x364   :  { %7852 = vmatmul.mubr.msk.f32.gmra.mxu0 %vm65_vm0, %v7848_v45  ;;  %v10413_v0 = vpop.permute.xlu1 %4268  ;;  %v3756_v14 = vmul.f32 %v3732_v46, %v13204_v51  ;;  %v13218_v46 = vld [vmem:[#allocation67_spill] sm:$0xff] }
 0x365   :  { %7856 = vmatmul.mubr.msk.f32.gmra.mxu1 %vm65_vm0, %v7848_v45  ;;  %3570 = vmatprep.mubr.f32.mxu0 %v13168_v56  ;;  %v10428_v19 = vpop.permute.xlu0 %4280  ;;  %v3744_v45 = vsel %vm1185_vm4, %v13212_v60, %v13211_v24  ;;  %v4018_v24 = vsel %vm1484_vm5, %v10310_v8, %v10357_v61  ;;  %v7869_v60 = vld [vmem:[%s12880_s2 + $0x180] sm:$0xff]  ;;  %v4010_v61 = vsel %vm1484_vm5, %v10348_v43, %v10387_v53 }
 0x366   :  { %3659 = vmatprep.mubr.f32.mxu1 %v13168_v56  ;;  %v3753_v10 = vmul.f32 %v3744_v45, %v13206_v9 }
 0x368   :  { %7861 = vmatmul.mubr.msk.f32.vlgmr.msra.gmra.mxu0 %vm65_vm0, %v7857_v55  ;;  %v10451_v7 = vpop.permute.xlu1 %4250 }
 0x369   :  { %3806 = vmatpush1.msra.mxu0 %v3765_v33  ;;  %7865 = vmatmul.mubr.msk.f32.vlgmr.msra.gmra.mxu1 %vm65_vm0, %v7857_v55  ;;  %v10460_v50 = vpop.permute.xlu0 %4258  ;;  %v3759_v55 = vmul.f32 %v3737_v5, %v13207_v37  ;;  %v4022_v33 = vsel %vm1484_vm5, %v10387_v53, %v10310_v8  ;;  %v13217_v5 = vld [vmem:[#allocation69_spill] sm:$0xff] }
 0x36a   :  { %3807 = vmatprep.subr.mxu0 %v3762_v15  ;;  %3895 = vmatpush1.msra.mxu1 %v3767_v49  ;;  %v3755_v49 = vmul.f32 %v3736_v28, %v13207_v37  ;;  %v7859_v15 = vld [vmem:[%s12880_s2 + $0x170] sm:$0xff]  ;;  %v4043_v39 = vmul.f32 %v4022_v33, %v13215_v16  ;;  %v4017_v8 = vsel %vm1484_vm5, %v13218_v46, %v13217_v5  ;;  %v13220_v28 = vld [vmem:[#allocation61_spill] sm:$0xff]  ;;  %v13223_v33 = vld [vmem:[#allocation59_spill] sm:$0xff] }
 0x36b   :  { %3808 = vmatpush1.msra.mxu0 %v3761_v30  ;;  %3896 = vmatprep.subr.mxu1 %v3764_v57  ;;  %v4041_v30 = vmul.f32 %v4014_v1, %v13214_v17 }
 0x36c   :  { %3897 = vmatpush1.msra.mxu1 %v3763_v48  ;;  %3576 = vmatprep.mubr.f32.mxu0 %v13168_v56  ;;  %v10489_v44 = vpop.permute.xlu1 %4266  ;;  %v7860_v48 = vld [vmem:[%s12880_s2 + $0x178] sm:$0xff] }
 0x36d   :  { %3809 = vmatprep.subr.mxu0 %v3758_v4  ;;  %7862 = vmatmul.mubr.msk.f32.gmra.mxu0 %vm65_vm0, %v7858_v54  ;;  %v10497_v22 = vpop.permute.xlu0 %4274  ;;  %v4013_v4 = vsel %vm1484_vm5, %v13217_v5, %v13216_v11 }
 0x36e   :  { %3665 = vmatprep.mubr.f32.mxu1 %v13168_v56  ;;  %3810 = vmatpush1.msra.mxu0 %v3757_v12  ;;  %v13219_v12 = vld [vmem:[#allocation62_spill] sm:$0xff]  ;;  %v4037_v53 = vmul.f32 %v4013_v4, %v13214_v17  ;;  %v7870_v4 = vld [vmem:[%s12880_s2 + $0x188] sm:$0xff] }
 0x36f   :  { %3898 = vmatprep.subr.mxu1 %v3760_v36  ;;  %7866 = vmatmul.mubr.msk.f32.gmra.mxu1 %vm65_vm0, %v7858_v54  ;;  %v4012_v36 = vsel %vm1484_vm5, %v13220_v28, %v13219_v12 }
 0x370   :  { %3811 = vmatprep.subr.mxu0 %v3754_v58  ;;  %3899 = vmatpush1.msra.mxu1 %v3759_v55  ;;  %v10517_v34 = vpop.permute.xlu1 %4531  ;;  %v13221_v55 = vld [vmem:[#allocation66_spill] sm:$0xff]  ;;  %v4033_v5 = vmul.f32 %v4012_v36, %v13214_v17  ;;  %v13228_v36 = vld [vmem:[#allocation53_spill] sm:$0xff] }
 0x371   :  { %3812 = vmatpush1.msra.mxu0 %v3753_v10  ;;  %3900 = vmatprep.subr.mxu1 %v3756_v14  ;;  %v10520_v57 = vpop.permute.xlu0 %4539  ;;  %v4021_v1 = vsel %vm1484_vm5, %v13221_v55, %v13218_v46  ;;  %v13222_v58 = vld [vmem:[#allocation22_spill] sm:$0xff]  ;;  %v4009_v43 = vsel %vm1484_vm5, %v13216_v11, %v13221_v55  ;;  %v4016_v14 = vsel %vm1484_vm5, %v13223_v33, %v13220_v28 }
 0x372   :  { %3901 = vmatpush1.msra.mxu1 %v3755_v49  ;;  %3582 = vmatprep.mubr.f32.mxu0 %v13168_v56  ;;  %v4040_v10 = vmul.f32 %v4018_v24, %v13222_v58  ;;  %v4036_v49 = vmul.f32 %v4017_v8, %v13222_v58  ;;  %v4039_v11 = vmul.f32 %v4021_v1, %v13215_v16  ;;  %v13226_v8 = vld [vmem:[#allocation55_spill] sm:$0xff] }
 0x373   :  { %4080 = vmatprep.subr.mxu0 %v4041_v30  ;;  %7863 = vmatmul.mubr.msk.f32.gmra.mxu0 %vm65_vm0, %v7859_v15 }
 0x374   :  { %3671 = vmatprep.mubr.f32.mxu1 %v13168_v56  ;;  %4169 = vmatprep.subr.mxu1 %v4043_v39  ;;  %v10529_v54 = vpop.permute.xlu1 %4547 }
 0x375   :  { %7867 = vmatmul.mubr.msk.f32.gmra.mxu1 %vm65_vm0, %v7859_v15  ;;  %3588 = vmatprep.mubr.f32.mxu0 %v13168_v56  ;;  %v10533_v25 = vpop.permute.xlu0 %4555  ;;  %v13224_v15 = vld [vmem:[#allocation20_spill] sm:$0xff] }
 0x376   :  { %3677 = vmatprep.mubr.f32.mxu1 %v13168_v56  ;;  %v4042_v30 = vmul.f32 %v4010_v61, %v13224_v15  ;;  %v13227_v61 = vld [vmem:[#allocation56_spill] sm:$0xff]  ;;  %v4038_v55 = vmul.f32 %v4009_v43, %v13224_v15 }
 0x377   :  { %7864 = vmatmul.mubr.msk.f32.gmra.mxu0 %vm65_vm0, %v7860_v48  ;;  %v4011_v28 = vsel %vm1484_vm5, %v13227_v61, %v13226_v8  ;;  %v4015_v1 = vsel %vm1484_vm5, %v13228_v36, %v13227_v61 }
 0x378   :  { %3845 = vmatprep.mubr.f32.mxu0 %v13168_v56  ;;  %v10549_v2 = vpop.permute.xlu1 %4529 }
 0x379   :  { %7868 = vmatmul.mubr.msk.f32.gmra.mxu1 %vm65_vm0, %v7860_v48  ;;  %v10560_v45 = vpop.permute.xlu0 %4537  ;;  %v13225_v48 = vld [vmem:[#allocation68_spill] sm:$0xff] }
 0x37a   :  { %3934 = vmatprep.mubr.f32.mxu1 %v13168_v56  ;;  %v4020_v24 = vsel %vm1484_vm5, %v13225_v48, %v13223_v33  ;;  %v4032_v33 = vmul.f32 %v4016_v14, %v13222_v58  ;;  %v4289_v14 = vsel %vm1783_vm6, %v10401_v47, %v10395_v6 }
 0x37b   :  { %7873 = vmatmul.mubr.msk.f32.vlgmr.msra.gmra.mxu0 %vm65_vm0, %v7869_v60  ;;  %v4035_v43 = vmul.f32 %v4020_v24, %v13215_v16  ;;  %v4297_v24 = vsel %vm1783_vm6, %v10428_v19, %v10381_v29 }
 0x37c   :  { %4081 = vmatpush1.msra.mxu0 %v4040_v10  ;;  %3851 = vmatprep.mubr.f32.mxu0 %v13168_v56  ;;  %v10585_v39 = vpop.permute.xlu1 %4545  ;;  %v13229_v10 = vld [vmem:[#allocation58_spill] sm:$0xff] }
 0x37d   :  { %7877 = vmatmul.mubr.msk.f32.vlgmr.msra.gmra.mxu1 %vm65_vm0, %v7869_v60  ;;  %4082 = vmatprep.subr.mxu0 %v4037_v53  ;;  %v10597_v46 = vpop.permute.xlu0 %4553  ;;  %v4008_v60 = vsel %vm1484_vm5, %v13219_v12, %v13225_v48  ;;  %v4019_v53 = vsel %vm1484_vm5, %v13229_v10, %v13228_v36  ;;  %v4007_v12 = vsel %vm1484_vm5, %v13226_v8, %v13229_v10 }
 0x37e   :  { %4170 = vmatpush1.msra.mxu1 %v4042_v30  ;;  %4083 = vmatpush1.msra.mxu0 %v4036_v49  ;;  %v4034_v30 = vmul.f32 %v4008_v60, %v13224_v15  ;;  %v4029_v48 = vmul.f32 %v4011_v28, %v13214_v17  ;;  %v4031_v8 = vmul.f32 %v4019_v53, %v13215_v16  ;;  %v7871_v28 = vld [vmem:[%s12880_s2 + $0x190] sm:$0xff]  ;;  %v13230_v60 = vld [vmem:[#allocation25_spill] sm:$0xff] }
 0x37f   :  { %4171 = vmatprep.subr.mxu1 %v4039_v11  ;;  %4084 = vmatprep.subr.mxu0 %v4033_v5  ;;  %v4028_v5 = vmul.f32 %v4015_v1, %v13222_v58  ;;  %v4030_v61 = vmul.f32 %v4007_v12, %v13224_v15  ;;  %v7872_v53 = vld [vmem:[%s12880_s2 + $0x198] sm:$0xff] }
 0x380   :  { %4172 = vmatpush1.msra.mxu1 %v4038_v55  ;;  %7874 = vmatmul.mubr.msk.f32.gmra.mxu0 %vm65_vm0, %v7870_v4  ;;  %v10623_v49 = vpop.permute.xlu1 %4527  ;;  %v4316_v55 = vmul.f32 %v4289_v14, %v13230_v60  ;;  %v13233_v14 = vld [vmem:[#allocation70_spill] sm:$0xff] }
 0x381   :  { %3940 = vmatprep.mubr.f32.mxu1 %v13168_v56  ;;  %4085 = vmatpush1.msra.mxu0 %v4032_v33  ;;  %v10632_v11 = vpop.permute.xlu0 %4535 }
 0x382   :  { %4173 = vmatprep.subr.mxu1 %v4035_v43  ;;  %7878 = vmatmul.mubr.msk.f32.gmra.mxu1 %vm65_vm0, %v7870_v4  ;;  %v13231_v4 = vld [vmem:[#allocation23_spill] sm:$0xff]  ;;  %v4293_v43 = vsel %vm1783_vm6, %v10381_v29, %v10401_v47  ;;  %v4285_v29 = vsel %vm1783_vm6, %v10395_v6, %v10428_v19 }
 0x383   :  { %4086 = vmatprep.subr.mxu0 %v4029_v48  ;;  %4174 = vmatpush1.msra.mxu1 %v4034_v30  ;;  %v4318_v1 = vmul.f32 %v4297_v24, %v13231_v4  ;;  %v13232_v30 = vld [vmem:[#allocation64_spill] sm:$0xff]  ;;  %v13234_v24 = vld [vmem:[#allocation65_spill] sm:$0xff] }
 0x384   :  { %4087 = vmatpush1.msra.mxu0 %v4028_v5  ;;  %4175 = vmatprep.subr.mxu1 %v4031_v8  ;;  %v10646_v36 = vpop.permute.xlu1 %4543  ;;  %v4288_v48 = vsel %vm1783_vm6, %v13233_v14, %v13232_v30  ;;  %v7881_v5 = vld [vmem:[%s12880_s2 + $0x1c0] sm:$0xff]  ;;  %v4292_v8 = vsel %vm1783_vm6, %v13234_v24, %v13233_v14  ;;  %v4287_v14 = vsel %vm1783_vm6, %v10137_v42, %v10413_v0 }
 0x385   :  { %4176 = vmatpush1.msra.mxu1 %v4030_v61  ;;  %3857 = vmatprep.mubr.f32.mxu0 %v13168_v56  ;;  %v10650_v10 = vpop.permute.xlu0 %4551  ;;  %v13235_v61 = vld [vmem:[#allocation72_spill] sm:$0xff]  ;;  %v4312_v19 = vmul.f32 %v4288_v48, %v13230_v60 }
 0x386   :  { %4355 = vmatprep.subr.mxu0 %v4316_v55  ;;  %7875 = vmatmul.mubr.msk.f32.gmra.mxu0 %vm65_vm0, %v7871_v28  ;;  %v13236_v55 = vld [vmem:[#allocation26_spill] sm:$0xff]  ;;  %v4284_v6 = vsel %vm1783_vm6, %v13232_v30, %v13235_v61  ;;  %v4295_v30 = vsel %vm1783_vm6, %v10162_v59, %v10125_v18 }
 0x387   :  { %3946 = vmatprep.mubr.f32.mxu1 %v13168_v56  ;;  %4444 = vmatprep.subr.mxu1 %v4318_v1  ;;  %v4315_v1 = vmul.f32 %v4293_v43, %v13236_v55  ;;  %v4291_v43 = vsel %vm1783_vm6, %v10125_v18, %v10137_v42  ;;  %v7882_v42 = vld [vmem:[%s12880_s2 + $0x1c8] sm:$0xff]  ;;  %v4283_v18 = vsel %vm1783_vm6, %v10413_v0, %v10162_v59 }
 0x388   :  { %7879 = vmatmul.mubr.msk.f32.gmra.mxu1 %vm65_vm0, %v7871_v28  ;;  %3863 = vmatprep.mubr.f32.mxu0 %v13168_v56  ;;  %v10659_v33 = vpop.permute.xlu1 %4525  ;;  %v4296_v28 = vsel %vm1783_vm6, %v13235_v61, %v13234_v24  ;;  %v13237_v24 = vld [vmem:[#allocation24_spill] sm:$0xff]  ;;  %v4294_v59 = vsel %vm1783_vm6, %v10497_v22, %v10451_v7  ;;  %v4310_v0 = vmul.f32 %v4295_v30, %v13231_v4 }
 0x389   :  { %3952 = vmatprep.mubr.f32.mxu1 %v13168_v56  ;;  %v10662_v12 = vpop.permute.xlu0 %4533  ;;  %v4317_v3 = vmul.f32 %v4285_v29, %v13237_v24  ;;  %v4314_v48 = vmul.f32 %v4296_v28, %v13231_v4  ;;  %v4313_v61 = vmul.f32 %v4284_v6, %v13237_v24  ;;  %v4309_v6 = vmul.f32 %v4283_v18, %v13237_v24 }
 0x38a   :  { %7876 = vmatmul.mubr.msk.f32.gmra.mxu0 %vm65_vm0, %v7872_v53 }
 0x38b   :  { %4120 = vmatprep.mubr.f32.mxu0 %v13168_v56 }
 0x38c   :  { %7880 = vmatmul.mubr.msk.f32.gmra.mxu1 %vm65_vm0, %v7872_v53  ;;  %v10686_v47 = vpop.permute.xlu1 %4541  ;;  %v4311_v53 = vmul.f32 %v4292_v8, %v13236_v55  ;;  %v4308_v8 = vmul.f32 %v4287_v14, %v13230_v60  ;;  %v4290_v14 = vsel %vm1783_vm6, %v10451_v7, %v10460_v50 }
 0x38d   :  { %4209 = vmatprep.mubr.f32.mxu1 %v13168_v56  ;;  %v10698_v52 = vpop.permute.xlu0 %4549 }
 0x38e   :  { %7885 = vmatmul.mubr.msk.f32.vlgmr.msra.gmra.mxu0 %vm65_vm0, %v7881_v5 }
 0x38f   :  { %4356 = vmatpush1.msra.mxu0 %v4315_v1  ;;  %4126 = vmatprep.mubr.f32.mxu0 %v13168_v56  ;;  %v4307_v1 = vmul.f32 %v4291_v43, %v13236_v55 }
 0x390   :  { %7889 = vmatmul.mubr.msk.f32.vlgmr.msra.gmra.mxu1 %vm65_vm0, %v7881_v5  ;;  %4357 = vmatprep.subr.mxu0 %v4312_v19  ;;  %v10723_v29 = vpop.permute.xlu1 %4806  ;;  %v4286_v5 = vsel %vm1783_vm6, %v10460_v50, %v10489_v44  ;;  %v4564_v50 = vsel %vm2082_vm7, %v10520_v57, %v10529_v54 }
 0x391   :  { %4445 = vmatpush1.msra.mxu1 %v4317_v3  ;;  %4358 = vmatpush1.msra.mxu0 %v4311_v53  ;;  %v10734_v28 = vpop.permute.xlu0 %4814  ;;  %v4282_v3 = vsel %vm1783_vm6, %v10489_v44, %v10497_v22  ;;  %v4304_v7 = vmul.f32 %v4286_v5, %v13230_v60  ;;  %v4303_v44 = vmul.f32 %v4290_v14, %v13236_v55  ;;  %v7884_v14 = vld [vmem:[%s12880_s2 + $0x1d8] sm:$0xff] }
 0x392   :  { %4446 = vmatprep.subr.mxu1 %v4314_v48  ;;  %4359 = vmatprep.subr.mxu0 %v4308_v8  ;;  %v4572_v22 = vsel %vm2082_vm7, %v10533_v25, %v10517_v34  ;;  %v4306_v53 = vmul.f32 %v4294_v59, %v13231_v4  ;;  %v4305_v30 = vmul.f32 %v4282_v3, %v13237_v24  ;;  %v7883_v48 = vld [vmem:[%s12880_s2 + $0x1d0] sm:$0xff]  ;;  %v13238_v8 = vld [vmem:[#allocation29_spill] sm:$0xff] }
 0x393   :  { %4447 = vmatpush1.msra.mxu1 %v4313_v61  ;;  %7886 = vmatmul.mubr.msk.f32.gmra.mxu0 %vm65_vm0, %v7882_v42  ;;  %v4591_v61 = vmul.f32 %v4564_v50, %v13238_v8  ;;  %v4568_v59 = vsel %vm2082_vm7, %v10517_v34, %v10520_v57  ;;  %v4560_v34 = vsel %vm2082_vm7, %v10529_v54, %v10533_v25 }
 0x394   :  { %4215 = vmatprep.mubr.f32.mxu1 %v13168_v56  ;;  %4360 = vmatpush1.msra.mxu0 %v4307_v1  ;;  %v10758_v19 = vpop.permute.xlu1 %4822  ;;  %v4567_v57 = vsel %vm2082_vm7, %v10549_v2, %v10560_v45  ;;  %v4562_v54 = vsel %vm2082_vm7, %v10632_v11, %v10646_v36  ;;  %v4566_v25 = vsel %vm2082_vm7, %v10623_v49, %v10632_v11 }
 0x395   :  { %4448 = vmatprep.subr.mxu1 %v4310_v0  ;;  %7890 = vmatmul.mubr.msk.f32.gmra.mxu1 %vm65_vm0, %v7882_v42  ;;  %v10767_v43 = vpop.permute.xlu0 %4830  ;;  %v13239_v42 = vld [vmem:[#allocation27_spill] sm:$0xff]  ;;  %v4563_v0 = vsel %vm2082_vm7, %v10560_v45, %v10585_v39 }
 0x396   :  { %4361 = vmatprep.subr.mxu0 %v4304_v7  ;;  %4449 = vmatpush1.msra.mxu1 %v4309_v6  ;;  %v4593_v18 = vmul.f32 %v4572_v22, %v13239_v42  ;;  %v7893_v6 = vld [vmem:[%s12880_s2 + $0x1e0] sm:$0xff]  ;;  %v4559_v7 = vsel %vm2082_vm7, %v10585_v39, %v10597_v46  ;;  %v4587_v45 = vmul.f32 %v4563_v0, %v13238_v8  ;;  %v13241_v39 = vld [vmem:[#allocation28_spill] sm:$0xff] }
 0x397   :  { %4362 = vmatpush1.msra.mxu0 %v4303_v44  ;;  %4450 = vmatprep.subr.mxu1 %v4306_v53  ;;  %v13240_v44 = vld [vmem:[#allocation30_spill] sm:$0xff]  ;;  %v4571_v53 = vsel %vm2082_vm7, %v10597_v46, %v10549_v2  ;;  %v4588_v46 = vmul.f32 %v4559_v7, %v13241_v39  ;;  %v4561_v0 = vsel %vm2082_vm7, %v10662_v12, %v10686_v47 }
 0x398   :  { %4451 = vmatpush1.msra.mxu1 %v4305_v30  ;;  %4132 = vmatprep.mubr.f32.mxu0 %v13168_v56  ;;  %v10776_v5 = vpop.permute.xlu1 %4804  ;;  %v4590_v22 = vmul.f32 %v4568_v59, %v13240_v44  ;;  %v4592_v30 = vmul.f32 %v4560_v34, %v13241_v39  ;;  %v4586_v2 = vmul.f32 %v4567_v57, %v13240_v44 }
 0x399   :  { %4630 = vmatprep.subr.mxu0 %v4591_v61  ;;  %7887 = vmatmul.mubr.msk.f32.gmra.mxu0 %vm65_vm0, %v7883_v48  ;;  %v10779_v1 = vpop.permute.xlu0 %4812  ;;  %v4589_v11 = vmul.f32 %v4571_v53, %v13239_v42  ;;  %v4583_v61 = vmul.f32 %v4562_v54, %v13238_v8  ;;  %v4582_v59 = vmul.f32 %v4566_v25, %v13240_v44 }
 0x39a   :  { %4221 = vmatprep.mubr.f32.mxu1 %v13168_v56  ;;  %4719 = vmatprep.subr.mxu1 %v4593_v18  ;;  %v7894_v18 = vld [vmem:[%s12880_s2 + $0x1e8] sm:$0xff]  ;;  %v4565_v34 = vsel %vm2082_vm7, %v10659_v33, %v10662_v12  ;;  %v4569_v57 = vsel %vm2082_vm7, %v10698_v52, %v10659_v33  ;;  %v4847_v33 = vsel %vm2381_vm8, %v10767_v43, %v10723_v29 }
 0x39b   :  { %7891 = vmatmul.mubr.msk.f32.gmra.mxu1 %vm65_vm0, %v7883_v48  ;;  %4138 = vmatprep.mubr.f32.mxu0 %v13168_v56  ;;  %v4570_v48 = vsel %vm2082_vm7, %v10650_v10, %v10623_v49  ;;  %v4558_v49 = vsel %vm2082_vm7, %v10646_v36, %v10650_v10  ;;  %v4839_v36 = vsel %vm2381_vm8, %v10734_v28, %v10758_v19 }
 0x39c   :  { %4227 = vmatprep.mubr.f32.mxu1 %v13168_v56  ;;  %v10793_v3 = vpop.permute.xlu1 %4820  ;;  %v4557_v10 = vsel %vm2082_vm7, %v10686_v47, %v10698_v52  ;;  %v4585_v12 = vmul.f32 %v4570_v48, %v13239_v42  ;;  %v4584_v7 = vmul.f32 %v4558_v49, %v13241_v39  ;;  %v4578_v53 = vmul.f32 %v4565_v34, %v13240_v44  ;;  %v13242_v47 = vld [vmem:[#allocation33_spill] sm:$0xff]  ;;  %v7905_v34 = vld [vmem:[%s12880_s2 + $0x200] sm:$0xff] }
 0x39d   :  { %7888 = vmatmul.mubr.msk.f32.gmra.mxu0 %vm65_vm0, %v7884_v14  ;;  %v10803_v50 = vpop.permute.xlu0 %4828  ;;  %v4581_v52 = vmul.f32 %v4569_v57, %v13239_v42  ;;  %v4866_v54 = vmul.f32 %v4839_v36, %v13242_v47  ;;  %v4580_v25 = vmul.f32 %v4557_v10, %v13241_v39  ;;  %v4838_v49 = vsel %vm2381_vm8, %v10779_v1, %v10793_v3  ;;  %v13244_v57 = vld [vmem:[#allocation34_spill] sm:$0xff] }
 0x39e   :  { %4395 = vmatprep.mubr.f32.mxu0 %v13168_v56  ;;  %v4834_v10 = vsel %vm2381_vm8, %v10793_v3, %v10803_v50  ;;  %v7906_v3 = vld [vmem:[%s12880_s2 + $0x208] sm:$0xff] }
 0x39f   :  { %7892 = vmatmul.mubr.msk.f32.gmra.mxu1 %vm65_vm0, %v7884_v14 }
 0x3a0   :  { %4484 = vmatprep.mubr.f32.mxu1 %v13168_v56  ;;  %v10848_v14 = vpop.permute.xlu1 %4802 }
 0x3a1   :  { %7897 = vmatmul.mubr.msk.f32.vlgmr.msra.gmra.mxu0 %vm65_vm0, %v7893_v6 }
 0x3a2   :  { %4631 = vmatpush1.msra.mxu0 %v4590_v22  ;;  %4401 = vmatprep.mubr.f32.mxu0 %v13168_v56  ;;  %v4579_v22 = vmul.f32 %v4561_v0, %v13238_v8  ;;  %v4846_v0 = vsel %vm2381_vm8, %v10803_v50, %v10776_v5 }
 0x3a3   :  { %7901 = vmatmul.mubr.msk.f32.vlgmr.msra.gmra.mxu1 %vm65_vm0, %v7893_v6  ;;  %4632 = vmatprep.subr.mxu0 %v4587_v45  ;;  %v10859_v6 = vpop.permute.xlu0 %4810  ;;  %v7895_v45 = vld [vmem:[%s12880_s2 + $0x1f0] sm:$0xff] }
 0x3a4   :  { %4720 = vmatpush1.msra.mxu1 %v4592_v30  ;;  %4633 = vmatpush1.msra.mxu0 %v4586_v2  ;;  %v13243_v30 = vld [vmem:[#allocation31_spill] sm:$0xff] }
 0x3a5   :  { %4721 = vmatprep.subr.mxu1 %v4589_v11  ;;  %4634 = vmatprep.subr.mxu0 %v4583_v61  ;;  %v4868_v2 = vmul.f32 %v4847_v33, %v13243_v30  ;;  %v7896_v11 = vld [vmem:[%s12880_s2 + $0x1f8] sm:$0xff] }
 0x3a6   :  { %4722 = vmatpush1.msra.mxu1 %v4588_v46  ;;  %7898 = vmatmul.mubr.msk.f32.gmra.mxu0 %vm65_vm0, %v7894_v18  ;;  %v4819_v46 = vpop.permute.xlu1 %4818 }
 0x3a7   :  { %4490 = vmatprep.mubr.f32.mxu1 %v13168_v56  ;;  %4635 = vmatpush1.msra.mxu0 %v4582_v59  ;;  %v4827_v48 = vpop.permute.xlu0 %4826 }
 0x3a8   :  { %4723 = vmatprep.subr.mxu1 %v4585_v12  ;;  %7902 = vmatmul.mubr.msk.f32.gmra.mxu1 %vm65_vm0, %v7894_v18  ;;  %v4843_v18 = vsel %vm2381_vm8, %v10723_v29, %v10734_v28  ;;  %v4835_v29 = vsel %vm2381_vm8, %v10758_v19, %v10767_v43  ;;  %v4842_v28 = vsel %vm2381_vm8, %v10776_v5, %v10779_v1  ;;  %v13245_v1 = vld [vmem:[#allocation32_spill] sm:$0xff] }
 0x3a9   :  { %4636 = vmatprep.subr.mxu0 %v4579_v22  ;;  %4724 = vmatpush1.msra.mxu1 %v4584_v7  ;;  %v4865_v36 = vmul.f32 %v4843_v18, %v13244_v57  ;;  %v4862_v19 = vmul.f32 %v4838_v49, %v13242_v47  ;;  %v4864_v43 = vmul.f32 %v4846_v0, %v13243_v30 }
 0x3aa   :  { %4637 = vmatpush1.msra.mxu0 %v4578_v53  ;;  %4725 = vmatprep.subr.mxu1 %v4581_v52  ;;  %v4801_v61 = vpop.permute.xlu1 %4800  ;;  %v4837_v5 = vsel %vm2381_vm8, %v10859_v6, %v4819_v46  ;;  %v4867_v12 = vmul.f32 %v4835_v29, %v13245_v1  ;;  %v4861_v33 = vmul.f32 %v4842_v28, %v13244_v57  ;;  %v7918_v28 = vld [vmem:[%s12880_s2 + $0x228] sm:$0xff] }
 0x3ab   :  { %4726 = vmatpush1.msra.mxu1 %v4580_v25  ;;  %4407 = vmatprep.mubr.f32.mxu0 %v13168_v56  ;;  %v4809_v59 = vpop.permute.xlu0 %4808  ;;  %v4845_v50 = vsel %vm2381_vm8, %v4827_v48, %v10848_v14  ;;  %v4833_v22 = vsel %vm2381_vm8, %v4819_v46, %v4827_v48  ;;  %v4863_v52 = vmul.f32 %v4834_v10, %v13245_v1  ;;  %v7907_v48 = vld [vmem:[%s12880_s2 + $0x210] sm:$0xff]  ;;  %v7920_v10 = vld [vmem:[%s12880_s2 + $0x238] sm:$0xff] }
 0x3ac   :  { %4905 = vmatprep.subr.mxu0 %v4866_v54  ;;  %7899 = vmatmul.mubr.msk.f32.gmra.mxu0 %vm65_vm0, %v7895_v45  ;;  %v4858_v54 = vmul.f32 %v4837_v5, %v13242_v47  ;;  %v4841_v25 = vsel %vm2381_vm8, %v10848_v14, %v10859_v6  ;;  %v4859_v46 = vmul.f32 %v4833_v22, %v13245_v1 }
 0x3ad   :  { %4496 = vmatprep.mubr.f32.mxu1 %v13168_v56  ;;  %4994 = vmatprep.subr.mxu1 %v4868_v2  ;;  %v4857_v6 = vmul.f32 %v4841_v25, %v13244_v57  ;;  %v4840_v18 = vsel %vm2381_vm8, %v4801_v61, %v4809_v59 }
 0x3ae   :  { %7903 = vmatmul.mubr.msk.f32.gmra.mxu1 %vm65_vm0, %v7895_v45  ;;  %4413 = vmatprep.mubr.f32.mxu0 %v13168_v56  ;;  %v4817_v7 = vpop.permute.xlu1 %4816  ;;  %v4860_v45 = vmul.f32 %v4845_v50, %v13243_v30  ;;  %v4853_v29 = vmul.f32 %v4840_v18, %v13244_v57 }
 0x3af   :  { %4502 = vmatprep.mubr.f32.mxu1 %v13168_v56  ;;  %v4825_v53 = vpop.permute.xlu0 %4824  ;;  %v4836_v2 = vsel %vm2381_vm8, %v4809_v59, %v4817_v7  ;;  %v7917_v59 = vld [vmem:[%s12880_s2 + $0x220] sm:$0xff] }
 0x3b0   :  { %7900 = vmatmul.mubr.msk.f32.gmra.mxu0 %vm65_vm0, %v7896_v11  ;;  %v4844_v14 = vsel %vm2381_vm8, %v4825_v53, %v4801_v61  ;;  %v4832_v49 = vsel %vm2381_vm8, %v4817_v7, %v4825_v53 }
 0x3b1   :  { %4670 = vmatprep.mubr.f32.mxu0 %v13168_v56  ;;  %v4856_v0 = vmul.f32 %v4844_v14, %v13243_v30  ;;  %v4855_v61 = vmul.f32 %v4832_v49, %v13245_v1 }
 0x3b2   :  { %7904 = vmatmul.mubr.msk.f32.gmra.mxu1 %vm65_vm0, %v7896_v11  ;;  %v4854_v11 = vmul.f32 %v4836_v2, %v13242_v47 }
 0x3b3   :  { %4759 = vmatprep.mubr.f32.mxu1 %v13168_v56 }
 0x3b4   :  { %7909 = vmatmul.mubr.msk.f32.vlgmr.msra.gmra.mxu0 %vm65_vm0, %v7905_v34 }
 0x3b5   :  { %4906 = vmatpush1.msra.mxu0 %v4865_v36  ;;  %4676 = vmatprep.mubr.f32.mxu0 %v13168_v56  ;;  %v7919_v36 = vld [vmem:[%s12880_s2 + $0x230] sm:$0xff] }
 0x3b6   :  { %7913 = vmatmul.mubr.msk.f32.vlgmr.msra.gmra.mxu1 %vm65_vm0, %v7905_v34  ;;  %4907 = vmatprep.subr.mxu0 %v4862_v19  ;;  %v7908_v34 = vld [vmem:[%s12880_s2 + $0x218] sm:$0xff]  ;;  %v2763_v19 = vpop.f32.mrf.mxu0 }
 0x3b7   :  { %4995 = vmatpush1.msra.mxu1 %v4867_v12  ;;  %4908 = vmatpush1.msra.mxu0 %v4861_v33 }
 0x3b8   :  { %4996 = vmatprep.subr.mxu1 %v4864_v43  ;;  %7910 = vmatmul.mubr.msk.f32.gmra.mxu0 %vm65_vm0, %v7906_v3  ;;  %v2852_v43 = vpop.f32.mrf.mxu1  ;;  %v11022_v5 = vpop.f32.mrf.mxu0 }
 0x3b9   :  { %4997 = vmatpush1.msra.mxu1 %v4863_v52  ;;  %4765 = vmatprep.mubr.f32.mxu1 %v13168_v56 }
 0x3ba   :  { %7914 = vmatmul.mubr.msk.f32.gmra.mxu1 %vm65_vm0, %v7906_v3  ;;  %4682 = vmatprep.mubr.f32.mxu0 %v13168_v56  ;;  %v11024_v12 = vpop.f32.mrf.mxu1  ;;  %v2769_v33 = vpop.f32.mrf.mxu0 }
 0x3bb   :  { %4909 = vmatprep.subr.mxu0 %v4858_v54  ;;  %4771 = vmatprep.mubr.f32.mxu1 %v13168_v56 }
 0x3bc   :  { %7911 = vmatmul.mubr.msk.f32.gmra.mxu0 %vm65_vm0, %v7907_v48  ;;  %4998 = vmatprep.subr.mxu1 %v4860_v45  ;;  %v2858_v3 = vpop.f32.mrf.mxu1  ;;  %v11026_v50 = vpop.f32.mrf.mxu0 }
 0x3bd   :  { %4910 = vmatpush1.msra.mxu0 %v4857_v6  ;;  %4999 = vmatpush1.msra.mxu1 %v4859_v46 }
 0x3be   :  { %7915 = vmatmul.mubr.msk.f32.gmra.mxu1 %vm65_vm0, %v7907_v48  ;;  %4688 = vmatprep.mubr.f32.mxu0 %v13168_v56  ;;  %v11028_v7 = vpop.f32.mrf.mxu1  ;;  %v2775_v22 = vpop.f32.mrf.mxu0 }
 0x3bf   :  { %4777 = vmatprep.mubr.f32.mxu1 %v13168_v56  ;;  %4911 = vmatprep.subr.mxu0 %v4854_v11  ;;  %v11038_v14 = vpop.permute.xlu1 %2682 }
 0x3c0   :  { %7912 = vmatmul.mubr.msk.f32.gmra.mxu0 %vm65_vm0, %v7908_v34  ;;  %5000 = vmatprep.subr.mxu1 %v4856_v0  ;;  %v2864_v53 = vpop.f32.mrf.mxu1  ;;  %v11030_v52 = vpop.f32.mrf.mxu0 }
 0x3c1   :  { %4912 = vmatpush1.msra.mxu0 %v4853_v29  ;;  %4945 = vmatprep.mubr.f32.mxu0 %v13168_v56 }
 0x3c2   :  { %7916 = vmatmul.mubr.msk.f32.gmra.mxu1 %vm65_vm0, %v7908_v34  ;;  %v11032_v54 = vpop.f32.mrf.mxu1  ;;  %v2781_v25 = vpop.f32.mrf.mxu0 }
 0x3c3   :  { %5001 = vmatpush1.msra.mxu1 %v4855_v61  ;;  %5034 = vmatprep.mubr.f32.mxu1 %v13168_v56  ;;  %v11046_v29 = vpop.permute.xlu1 %2674 }
 0x3c4   :  { %7921 = vmatmul.mubr.msk.f32.vlgmr.msra.gmra.mxu0 %vm65_vm0, %v7917_v59  ;;  %v2870_v45 = vpop.f32.mrf.mxu1  ;;  %v11034_v2 = vpop.f32.mrf.mxu0  ;;  %v2859_v9 = vadd.f32 %v2858_v3, %v11046_v29  ;;  %v2782_v3 = vadd.f32 %v2781_v25, %v11038_v14 }
 0x3c5   :  { %4951 = vmatprep.mubr.f32.mxu0 %v13168_v56  ;;  %v2871_v57 = vadd.f32 %v2870_v45, %v11038_v14  ;;  %v2770_v45 = vadd.f32 %v2769_v33, %v11046_v29 }
 0x3c6   :  { %7925 = vmatmul.mubr.msk.f32.vlgmr.msra.gmra.mxu1 %vm65_vm0, %v7917_v59  ;;  %v11036_v46 = vpop.f32.mrf.mxu1 }
 0x3c7   :  { %5040 = vmatprep.mubr.f32.mxu1 %v13168_v56 }
 0x3c8   :  { %7922 = vmatmul.mubr.msk.f32.gmra.mxu0 %vm65_vm0, %v7918_v28 }
 0x3c9   :  { %4957 = vmatprep.mubr.f32.mxu0 %v13168_v56 }
 0x3ca   :  { %7926 = vmatmul.mubr.msk.f32.gmra.mxu1 %vm65_vm0, %v7918_v28 }
 0x3cb   :  { %5046 = vmatprep.mubr.f32.mxu1 %v13168_v56 }
 0x3cc   :  { %7923 = vmatmul.mubr.msk.f32.gmra.mxu0 %vm65_vm0, %v7919_v36 }
 0x3cd   :  { %4963 = vmatprep.mubr.f32.mxu0 %v13168_v56 }
 0x3ce   :  { %7927 = vmatmul.mubr.msk.f32.gmra.mxu1 %vm65_vm0, %v7919_v36 }
 0x3cf   :  { %5052 = vmatprep.mubr.f32.mxu1 %v13168_v56 }
 0x3d0   :  { %7924 = vmatmul.mubr.msk.f32.gmra.mxu0 %vm65_vm0, %v7920_v10 }
 0x3d1   :  { %5188 = vmatprep.mubr.f32.mxu0 %v13168_v56 }
 0x3d2   :  { %7928 = vmatmul.mubr.msk.f32.gmra.mxu1 %vm65_vm0, %v7920_v10 }
 0x3d3   :  { %5277 = vmatprep.mubr.f32.mxu1 %v13168_v56 }
 0x3de   :  { %v11054_v1 = vpop.permute.xlu1 %2670 }
 0x3df   :  { %v2764_v42 = vadd.f32 %v2763_v19, %v11054_v1  ;;  %v2853_v8 = vadd.f32 %v2852_v43, %v11054_v1 }
 0x401   :  { %v3022_v48 = vpop.f32.mrf.mxu0 }
 0x402   :  { %v3111_v6 = vpop.f32.mrf.mxu1  ;;  %v3134_v4 = vadd.f32 %v3022_v48, %v2764_v42 }
 0x403   :  { %v11040_v11 = vpop.f32.mrf.mxu0  ;;  %v3136_v55 = vadd.f32 %v3111_v6, %v2853_v8 }
 0x404   :  { %v11042_v18 = vpop.f32.mrf.mxu1 }
 0x405   :  { %v3028_v49 = vpop.f32.mrf.mxu0 }
 0x406   :  { %v3117_v0 = vpop.f32.mrf.mxu1  ;;  %v3138_v19 = vadd.f32 %v3028_v49, %v2770_v45 }
 0x407   :  { %v11044_v34 = vpop.f32.mrf.mxu0  ;;  %v3140_v43 = vadd.f32 %v3117_v0, %v2859_v9 }
 0x408   :  { %v11048_v61 = vpop.f32.mrf.mxu1 }
 0x409   :  { %v3034_v59 = vpop.f32.mrf.mxu0 }
 0x40a   :  { %v3123_v28 = vpop.f32.mrf.mxu1 }
 0x40b   :  { %v11050_v36 = vpop.f32.mrf.mxu0 }
 0x40c   :  { %v11052_v10 = vpop.f32.mrf.mxu1 }
 0x40e   :  { %v3040_v30 = vpop.f32.mrf.mxu0 }
 0x40f   :  { %v3146_v0 = vadd.f32 %v3040_v30, %v2782_v3 }
 0x410   :  { %v3129_v47 = vpop.f32.mrf.mxu1  ;;  %v11057_v39 = vpop.f32.mrf.mxu0 }
 0x411   :  { %v3148_v44 = vadd.f32 %v3129_v47, %v2871_v57  ;;  %v11069_v47 = vpop.permute.xlu0 %2678 }
 0x412   :  { %v11061_v24 = vpop.f32.mrf.mxu1 }
 0x414   :  { %v3297_v60 = vpop.f32.mrf.mxu0 }
 0x415   :  { %v3409_v15 = vadd.f32 %v3297_v60, %v3134_v4  ;;  %v3386_v16 = vpop.f32.mrf.mxu1  ;;  %v2776_v60 = vadd.f32 %v2775_v22, %v11069_v47  ;;  %v2865_v4 = vadd.f32 %v2864_v53, %v11069_v47 }
 0x416   :  { %v3411_v58 = vadd.f32 %v3386_v16, %v3136_v55  ;;  %v11063_v17 = vpop.f32.mrf.mxu0 }
 0x417   :  { %v11066_v37 = vpop.f32.mrf.mxu1  ;;  %v3142_v33 = vadd.f32 %v3034_v59, %v2776_v60  ;;  %v3144_v48 = vadd.f32 %v3123_v28, %v2865_v4 }
 0x41a   :  { %v3303_v57 = vpop.f32.mrf.mxu0 }
 0x41b   :  { %v3413_v51 = vadd.f32 %v3303_v57, %v3138_v19 }
 0x41c   :  { %v3392_v42 = vpop.f32.mrf.mxu1  ;;  %v11071_v8 = vpop.f32.mrf.mxu0 }
 0x41d   :  { %v3415_v16 = vadd.f32 %v3392_v42, %v3140_v43 }
 0x41e   :  { %v11075_v55 = vpop.f32.mrf.mxu1 }
 0x420   :  { %v3309_v6 = vpop.f32.mrf.mxu0 }
 0x421   :  { %v3417_v49 = vadd.f32 %v3309_v6, %v3142_v33  ;;  %v3398_v45 = vpop.f32.mrf.mxu1 }
 0x422   :  { %v3419_v32 = vadd.f32 %v3398_v45, %v3144_v48  ;;  %v11078_v9 = vpop.f32.mrf.mxu0 }
 0x423   :  { %v11080_v19 = vpop.f32.mrf.mxu1 }
 0x424   :  { %v3315_v57 = vpop.f32.mrf.mxu0 }
 0x425   :  { %v3421_v22 = vadd.f32 %v3315_v57, %v3146_v0  ;;  %v3404_v43 = vpop.f32.mrf.mxu1 }
 0x426   :  { %v3423_v42 = vadd.f32 %v3404_v43, %v3148_v44  ;;  %v11082_v53 = vpop.f32.mrf.mxu0 }
 0x427   :  { %v11084_v38 = vpop.f32.mrf.mxu1 }
 0x428   :  { %v3572_v59 = vpop.f32.mrf.mxu0 }
 0x429   :  { %v11086_v28 = vadd.f32 %v3572_v59, %v3409_v15  ;;  %v3661_v25 = vpop.f32.mrf.mxu1 }
 0x42a   :  { %v11088_v60 = vadd.f32 %v3661_v25, %v3411_v58  ;;  %v11090_v4 = vpop.f32.mrf.mxu0 }
 0x42b   :  { %v11092_v33 = vpop.f32.mrf.mxu1 }
 0x42d   :  { %v3578_v30 = vpop.f32.mrf.mxu0 }
 0x42e   :  { %v3688_v48 = vadd.f32 %v3578_v30, %v3413_v51 }
 0x42f   :  { %v3667_v6 = vpop.f32.mrf.mxu1  ;;  %v11094_v3 = vpop.f32.mrf.mxu0 }
 0x430   :  { %v3690_v44 = vadd.f32 %v3667_v6, %v3415_v16 }
 0x431   :  { %v11096_v45 = vpop.f32.mrf.mxu1 }
 0x433   :  { %v3584_v0 = vpop.f32.mrf.mxu0 }
 0x434   :  { %v3692_v57 = vadd.f32 %v3584_v0, %v3417_v49 }
 0x435   :  { %v3673_v43 = vpop.f32.mrf.mxu1  ;;  %v11098_v15 = vpop.f32.mrf.mxu0 }
 0x436   :  { %v3694_v59 = vadd.f32 %v3673_v43, %v3419_v32 }
 0x437   :  { %v11100_v58 = vpop.f32.mrf.mxu1  ;;  %v3590_v25 = vpop.f32.mrf.mxu0 }
 0x438   :  { %v11102_v27 = vadd.f32 %v3590_v25, %v3421_v22 }
 0x439   :  { %v3679_v23 = vpop.f32.mrf.mxu1  ;;  %v11104_v21 = vpop.f32.mrf.mxu0 }
 0x43a   :  { %13246 = vst [vmem:[#allocation73_spill] sm:$0xff] %v11102_v27  ;;  %v11106_v51 = vadd.f32 %v3679_v23, %v3423_v42 }
 0x43b   :  { %v11108_v30 = vpop.f32.mrf.mxu1  ;;  %v11110_v16 = vpop.f32.mrf.mxu0 }
 0x43c   :  { %13247 = vst [vmem:[#allocation60_spill] sm:$0xff] %v11106_v51 }
 0x43d   :  { %v11112_v6 = vpop.f32.mrf.mxu1  ;;  %v11114_v49 = vpop.f32.mrf.mxu0 }
 0x43f   :  { %v11116_v0 = vpop.f32.mrf.mxu1 }
 0x440   :  { %v3853_v32 = vpop.f32.mrf.mxu0 }
 0x441   :  { %v11118_v43 = vadd.f32 %v3853_v32, %v3688_v48 }
 0x442   :  { %v3942_v22 = vpop.f32.mrf.mxu1  ;;  %v11120_v25 = vpop.f32.mrf.mxu0 }
 0x443   :  { %13248 = vst [vmem:[#allocation57_spill] sm:$0xff] %v11118_v43  ;;  %13249 = vst [vmem:[#allocation40_spill] sm:$0xff] %v11120_v25  ;;  %v11122_v13 = vadd.f32 %v3942_v22, %v3690_v44 }
 0x444   :  { %v11124_v23 = vpop.f32.mrf.mxu1 }
 0x445   :  { %13250 = vst [vmem:[#allocation51_spill] sm:$0xff] %v11122_v13  ;;  %13251 = vst [vmem:[#allocation54_spill] sm:$0xff] %v11124_v23 }
 0x446   :  { %v3859_v42 = vpop.f32.mrf.mxu0 }
 0x447   :  { %v11126_v41 = vadd.f32 %v3859_v42, %v3692_v57 }
 0x448   :  { %v3948_v26 = vpop.f32.mrf.mxu1  ;;  %v11128_v40 = vpop.f32.mrf.mxu0 }
 0x449   :  { %13252 = vst [vmem:[#allocation52_spill] sm:$0xff] %v11126_v41  ;;  %13253 = vst [vmem:[#allocation63_spill] sm:$0xff] %v11128_v40  ;;  %v11130_v20 = vadd.f32 %v3948_v26, %v3694_v59 }
 0x44a   :  { %v11132_v31 = vpop.f32.mrf.mxu1  ;;  %v11134_v63 = vpop.f32.mrf.mxu0 }
 0x44b   :  { %13254 = vst [vmem:[#allocation69_spill] sm:$0xff] %v11130_v20  ;;  %13255 = vst [vmem:[#allocation67_spill] sm:$0xff] %v11132_v31 }
 0x44c   :  { %13256 = vst [vmem:[#allocation62_spill] sm:$0xff] %v11134_v63  ;;  %v11136_v48 = vpop.f32.mrf.mxu1  ;;  %v11138_v32 = vpop.f32.mrf.mxu0 }
 0x44d   :  { %13257 = vst [vmem:[#allocation61_spill] sm:$0xff] %v11136_v48  ;;  %13258 = vst [vmem:[#allocation66_spill] sm:$0xff] %v11138_v32 }
 0x44e   :  { %v11140_v44 = vpop.f32.mrf.mxu1  ;;  %v4122_v22 = vpop.f32.mrf.mxu0 }
 0x44f   :  { %13259 = vst [vmem:[#allocation59_spill] sm:$0xff] %v11140_v44 }
 0x450   :  { %v11142_v35 = vpop.f32.mrf.mxu1  ;;  %v11144_v57 = vpop.f32.mrf.mxu0 }
 0x452   :  { %v11146_v42 = vpop.f32.mrf.mxu1 }
 0x453   :  { %v11148_v62 = vpop.f32.mrf.mxu0 }
 0x454   :  { %13260 = vst [vmem:[#allocation68_spill] sm:$0xff] %v11148_v62 }
 0x455   :  { %v11150_v26 = vpop.f32.mrf.mxu1  ;;  %v11152_v59 = vpop.f32.mrf.mxu0 }
 0x456   :  { %13261 = vst [vmem:[#allocation55_spill] sm:$0xff] %v11150_v26  ;;  %13262 = vst [vmem:[#allocation56_spill] sm:$0xff] %v11152_v59 }
 0x457   :  { %v11154_v56 = vpop.f32.mrf.mxu1 }
 0x458   :  { %13263 = vst [vmem:[#allocation53_spill] sm:$0xff] %v11154_v56 }
 0x459   :  { %v11156_v20 = vpop.f32.mrf.mxu0 }
 0x45a   :  { %13264 = vst [vmem:[#allocation58_spill] sm:$0xff] %v11156_v20 }
 0x45b   :  { %v11158_v41 = vpop.f32.mrf.mxu1  ;;  %v11160_v13 = vpop.f32.mrf.mxu0 }
 0x45c   :  { %13265 = vst [vmem:[#allocation64_spill] sm:$0xff] %v11158_v41  ;;  %13266 = vst [vmem:[#allocation70_spill] sm:$0xff] %v11160_v13 }
 0x45d   :  { %v11162_v43 = vpop.f32.mrf.mxu1  ;;  %v11164_v44 = vpop.f32.mrf.mxu0 }
 0x45e   :  { %13267 = vst [vmem:[#allocation65_spill] sm:$0xff] %v11162_v43  ;;  %13268 = vst [vmem:[#allocation72_spill] sm:$0xff] %v11164_v44 }
 0x45f   :  { %v11166_v32 = vpop.f32.mrf.mxu1  ;;  %v11168_v48 = vpop.f32.mrf.mxu0 }
 0x460   :  { %13269 = vst [vmem:[#allocation74_spill] sm:$0xff] %v11166_v32  ;;  %13270 = vst [vmem:[#allocation75_spill] sm:$0xff] %v11168_v48 }
 0x461   :  { %v11170_v62 = vpop.f32.mrf.mxu1  ;;  %v4397_v26 = vpop.f32.mrf.mxu0 }
 0x462   :  { %13271 = vst [vmem:[#allocation76_spill] sm:$0xff] %v11170_v62 }
 0x463   :  { %v4486_v59 = vpop.f32.mrf.mxu1  ;;  %v4399_v51 = vpop.f32.mrf.mxu0 }
 0x465   :  { %v11172_v56 = vpop.f32.mrf.mxu1 }
 0x466   :  { %v11174_v20 = vpop.f32.mrf.mxu0 }
 0x467   :  { %13272 = vst [vmem:[#allocation77_spill] sm:$0xff] %v11174_v20 }
 0x468   :  { %v11176_v41 = vpop.f32.mrf.mxu1  ;;  %v11178_v13 = vpop.f32.mrf.mxu0 }
 0x469   :  { %13273 = vst [vmem:[#allocation78_spill] sm:$0xff] %v11176_v41  ;;  %13274 = vst [vmem:[#allocation79_spill] sm:$0xff] %v11178_v13 }
 0x46a   :  { %v11180_v43 = vpop.f32.mrf.mxu1 }
 0x46b   :  { %13275 = vst [vmem:[#allocation80_spill] sm:$0xff] %v11180_v43 }
 0x46c   :  { %v11182_v44 = vpop.f32.mrf.mxu0 }
 0x46d   :  { %13276 = vst [vmem:[#allocation81_spill] sm:$0xff] %v11182_v44  ;;  %v2766_v44 = vadd.f32 %v11022_v5, %v11054_v1  ;;  %v2784_v5 = vadd.f32 %v11034_v2, %v11038_v14 }
 0x46e   :  { %v11184_v32 = vpop.f32.mrf.mxu1  ;;  %v11186_v48 = vpop.f32.mrf.mxu0 }
 0x46f   :  { %13277 = vst [vmem:[#allocation82_spill] sm:$0xff] %v11184_v32  ;;  %13278 = vst [vmem:[#allocation83_spill] sm:$0xff] %v11186_v48  ;;  %v3135_v48 = vadd.f32 %v11040_v11, %v2766_v44  ;;  %v2772_v11 = vadd.f32 %v11026_v50, %v11046_v29 }
 0x470   :  { %v11188_v62 = vpop.f32.mrf.mxu1  ;;  %v11190_v63 = vpop.f32.mrf.mxu0 }
 0x471   :  { %13279 = vst [vmem:[#allocation84_spill] sm:$0xff] %v11188_v62  ;;  %13280 = vst [vmem:[#allocation85_spill] sm:$0xff] %v11190_v63  ;;  %v2855_v62 = vadd.f32 %v11024_v12, %v11054_v1  ;;  %v3959_v12 = vadd.f32 %v11110_v16, %v11086_v28 }
 0x472   :  { %v11192_v27 = vpop.f32.mrf.mxu1  ;;  %v11194_v31 = vpop.f32.mrf.mxu0 }
 0x473   :  { %13281 = vst [vmem:[#allocation86_spill] sm:$0xff] %v11192_v27  ;;  %13282 = vst [vmem:[#allocation87_spill] sm:$0xff] %v11194_v31  ;;  %v3410_v31 = vadd.f32 %v11063_v17, %v3135_v48  ;;  %v2778_v17 = vadd.f32 %v11030_v52, %v11069_v47  ;;  %v4234_v28 = vadd.f32 %v4122_v22, %v3959_v12 }
 0x474   :  { %v11196_v20 = vpop.f32.mrf.mxu1  ;;  %v4672_v41 = vpop.f32.mrf.mxu0  ;;  %v3139_v52 = vadd.f32 %v11044_v34, %v2772_v11 }
 0x475   :  { %13283 = vst [vmem:[#allocation88_spill] sm:$0xff] %v11196_v20  ;;  %v3137_v20 = vadd.f32 %v11042_v18, %v2855_v62  ;;  %v3685_v1 = vadd.f32 %v11090_v4, %v3410_v31  ;;  %v2861_v62 = vadd.f32 %v11028_v7, %v11046_v29  ;;  %v2867_v18 = vadd.f32 %v11032_v54, %v11069_v47 }
 0x476   :  { %v4761_v13 = vpop.f32.mrf.mxu1  ;;  %v4674_v40 = vpop.f32.mrf.mxu0  ;;  %v2873_v7 = vadd.f32 %v11036_v46, %v11038_v14  ;;  %v3143_v54 = vadd.f32 %v11050_v36, %v2778_v17  ;;  %v3147_v46 = vadd.f32 %v11057_v39, %v2784_v5  ;;  %v3414_v34 = vadd.f32 %v11071_v8, %v3139_v52  ;;  %v13286_v17 = vld [vmem:[#allocation54_spill] sm:$0xff]  ;;  %v13292_v52 = vld [vmem:[#allocation61_spill] sm:$0xff] }
 0x477   :  { %v3960_v50 = vadd.f32 %v11114_v49, %v3685_v1  ;;  %v3141_v29 = vadd.f32 %v11048_v61, %v2861_v62  ;;  %v3145_v49 = vadd.f32 %v11052_v10, %v2867_v18  ;;  %v13287_v18 = vld [vmem:[#allocation63_spill] sm:$0xff] }
 0x478   :  { %v4763_v43 = vpop.f32.mrf.mxu1  ;;  %v11200_v32 = vpop.f32.mrf.mxu0  ;;  %v3149_v14 = vadd.f32 %v11061_v24, %v2873_v7  ;;  %v3418_v22 = vadd.f32 %v11078_v9, %v3143_v54  ;;  %v3422_v39 = vadd.f32 %v11082_v53, %v3147_v46  ;;  %v13291_v7 = vld [vmem:[#allocation60_spill] sm:$0xff]  ;;  %v13293_v54 = vld [vmem:[#allocation66_spill] sm:$0xff]  ;;  %v13295_v46 = vld [vmem:[#allocation57_spill] sm:$0xff] }
 0x479   :  { %13284 = vst [vmem:[#allocation89_spill] sm:$0xff] %v11200_v32  ;;  %v3412_v32 = vadd.f32 %v11066_v37, %v3137_v20  ;;  %v3961_v37 = vadd.f32 %v11112_v6, %v11088_v60  ;;  %v4235_v16 = vadd.f32 %v11144_v57, %v3960_v50  ;;  %v4509_v6 = vadd.f32 %v4397_v26, %v4234_v28  ;;  %v13290_v28 = vld [vmem:[#allocation62_spill] sm:$0xff] }
 0x47a   :  { %v11205_v63 = vpop.f32.mrf.mxu1  ;;  %v11207_v27 = vpop.f32.mrf.mxu0  ;;  %v3416_v44 = vadd.f32 %v11075_v55, %v3141_v29  ;;  %v3420_v10 = vadd.f32 %v11080_v19, %v3145_v49  ;;  %v3693_v9 = vadd.f32 %v11098_v15, %v3418_v22  ;;  %v3973_v29 = vadd.f32 %v13292_v52, %v13291_v7  ;;  %v13314_v52 = vld [vmem:[#allocation83_spill] sm:$0xff] }
 0x47b   :  { %v3687_v31 = vadd.f32 %v11092_v33, %v3412_v32  ;;  %v4236_v60 = vadd.f32 %v11142_v35, %v3961_v37  ;;  %v4510_v32 = vadd.f32 %v4399_v51, %v4235_v16  ;;  %v4784_v35 = vadd.f32 %v4672_v41, %v4509_v6  ;;  %v13294_v6 = vld [vmem:[#allocation59_spill] sm:$0xff] }
 0x47c   :  { %v11211_v23 = vpop.f32.mrf.mxu1  ;;  %v11213_v25 = vpop.f32.mrf.mxu0  ;;  %v3689_v41 = vadd.f32 %v11094_v3, %v3414_v34  ;;  %v3691_v55 = vadd.f32 %v11096_v45, %v3416_v44  ;;  %v13299_v44 = vld [vmem:[#allocation56_spill] sm:$0xff] }
 0x47d   :  { %v3962_v33 = vadd.f32 %v11116_v0, %v3687_v31  ;;  %v4511_v0 = vadd.f32 %v4486_v59, %v4236_v60  ;;  %v4785_v5 = vadd.f32 %v4674_v40, %v4510_v32  ;;  %v3697_v40 = vadd.f32 %v11104_v21, %v3422_v39  ;;  %v13289_v21 = vld [vmem:[#allocation73_spill] sm:$0xff] }
 0x47e   :  { %v11229_v2 = vpop.f32.mrf.mxu1  ;;  %v11231_v20 = vpop.f32.mrf.mxu0  ;;  %v3966_v15 = vadd.f32 %v13286_v17, %v3691_v55  ;;  %v3968_v31 = vadd.f32 %v13287_v18, %v3693_v9  ;;  %v13304_v55 = vld [vmem:[#allocation69_spill] sm:$0xff]  ;;  %v13305_v9 = vld [vmem:[#allocation64_spill] sm:$0xff] }
 0x47f   :  { %v4237_v48 = vadd.f32 %v11146_v42, %v3962_v33  ;;  %v4786_v26 = vadd.f32 %v4761_v13, %v4511_v0  ;;  %v3424_v42 = vadd.f32 %v11084_v38, %v3149_v14  ;;  %v13285_v38 = vld [vmem:[#allocation40_spill] sm:$0xff]  ;;  %v3972_v33 = vadd.f32 %v13293_v54, %v3697_v40  ;;  %v13298_v0 = vld [vmem:[#allocation55_spill] sm:$0xff]  ;;  %v13308_v40 = vld [vmem:[#allocation65_spill] sm:$0xff] }
 0x480   :  { %v11242_v47 = vpop.f32.mrf.mxu1  ;;  %v11244_v4 = vpop.f32.mrf.mxu0  ;;  %v3964_v62 = vadd.f32 %v13285_v38, %v3689_v41  ;;  %v13296_v14 = vld [vmem:[#allocation68_spill] sm:$0xff]  ;;  %v13309_v38 = vld [vmem:[#allocation74_spill] sm:$0xff]  ;;  %v13315_v54 = vld [vmem:[#allocation87_spill] sm:$0xff] }
 0x481   :  { %v4512_v57 = vadd.f32 %v11172_v56, %v4237_v48  ;;  %v3695_v56 = vadd.f32 %v11100_v58, %v3420_v10  ;;  %v3699_v13 = vadd.f32 %v11108_v30, %v3424_v42  ;;  %v13288_v58 = vld [vmem:[#allocation67_spill] sm:$0xff]  ;;  %v3971_v30 = vadd.f32 %v13290_v28, %v13289_v21  ;;  %v13300_v10 = vld [vmem:[#allocation53_spill] sm:$0xff] }
 0x482   :  { %v11253_v61 = vpop.f32.mrf.mxu1  ;;  %v11255_v36 = vpop.f32.mrf.mxu0  ;;  %v4238_v34 = vadd.f32 %v13296_v14, %v13295_v46  ;;  %v13297_v48 = vld [vmem:[#allocation51_spill] sm:$0xff]  ;;  %v4239_v22 = vadd.f32 %v13299_v44, %v3964_v62  ;;  %v4241_v39 = vadd.f32 %v13300_v10, %v3966_v15  ;;  %v4248_v62 = vadd.f32 %v13309_v38, %v3973_v29  ;;  %v13311_v15 = vld [vmem:[#allocation85_spill] sm:$0xff] }
 0x483   :  { %v4787_v59 = vadd.f32 %v4763_v43, %v4512_v57  ;;  %v3970_v50 = vadd.f32 %v13288_v58, %v3695_v56  ;;  %v3974_v49 = vadd.f32 %v13294_v6, %v3699_v13  ;;  %v4240_v32 = vadd.f32 %v13298_v0, %v13297_v48  ;;  %v13302_v57 = vld [vmem:[#allocation58_spill] sm:$0xff]  ;;  %v13312_v28 = vld [vmem:[#allocation77_spill] sm:$0xff] }
 0x484   :  { %v11262_v24 = vpop.f32.mrf.mxu1  ;;  %v4947_v8 = vpop.f32.mrf.mxu0  ;;  %v13317_v29 = vld [vmem:[#allocation81_spill] sm:$0xff] }
 0x485   :  { %v5059_v1 = vadd.f32 %v4947_v8, %v4784_v35  ;;  %v13301_v8 = vld [vmem:[#allocation52_spill] sm:$0xff]  ;;  %v4245_v13 = vadd.f32 %v13308_v40, %v3970_v50 }
 0x486   :  { %v4949_v51 = vpop.f32.mrf.mxu0  ;;  %v5036_v19 = vpop.f32.mrf.mxu1  ;;  %v13316_v50 = vld [vmem:[#allocation80_spill] sm:$0xff] }
 0x487   :  { %v11269_v53 = vmax.f32 %v5059_v1, 0.0  ;;  %v5060_v12 = vadd.f32 %v4949_v51, %v4785_v5  ;;  %v5061_v11 = vadd.f32 %v5036_v19, %v4786_v26  ;;  %v4242_v26 = vadd.f32 %v13302_v57, %v13301_v8  ;;  %v13303_v5 = vld [vmem:[#allocation72_spill] sm:$0xff]  ;;  %v13306_v19 = vld [vmem:[#allocation70_spill] sm:$0xff] }
 0x488   :  { %v11275_v3 = vpop.f32.mrf.mxu0  ;;  %v5038_v45 = vpop.f32.mrf.mxu1  ;;  %v4246_v1 = vadd.f32 %v13303_v5, %v3971_v30  ;;  %v4244_v51 = vadd.f32 %v13305_v9, %v13304_v55  ;;  %v4513_v30 = vadd.f32 %v13312_v28, %v4238_v34  ;;  %v4516_v6 = vadd.f32 %v13316_v50, %v4241_v39  ;;  %v13319_v34 = vld [vmem:[#allocation86_spill] sm:$0xff]  ;;  %v13321_v39 = vld [vmem:[#allocation84_spill] sm:$0xff]  ;;  %v7932_v50 = vld [vmem:[%s12880_s2 + $0x2d8] sm:$0xff] }
 0x489   :  { %v11279_v43 = vmax.f32 %v5060_v12, 0.0  ;;  %v5062_v37 = vadd.f32 %v5038_v45, %v4787_v59  ;;  %5318 = vrot.lane.b32.xlu0 %v11269_v53, %s8074_s22  ;;  %v11296_v35 = vmax.f32 %v5061_v11, 0.0  ;;  %v4243_v59 = vadd.f32 %v13306_v19, %v3968_v31  ;;  %v13307_v12 = vld [vmem:[#allocation75_spill] sm:$0xff]  ;;  %v13310_v45 = vld [vmem:[#allocation76_spill] sm:$0xff] }
 0x48a   :  { %v4955_v60 = vpop.f32.mrf.mxu0  ;;  %v11289_v16 = vpop.f32.mrf.mxu1  ;;  %v4247_v11 = vadd.f32 %v13307_v12, %v3972_v33  ;;  %v4249_v17 = vadd.f32 %v13310_v45, %v3974_v49  ;;  %v4521_v18 = vadd.f32 %v13311_v15, %v4246_v1  ;;  %v13313_v31 = vld [vmem:[#allocation79_spill] sm:$0xff]  ;;  %v4517_v46 = vadd.f32 %v13317_v29, %v4242_v26  ;;  %v13318_v49 = vld [vmem:[#allocation82_spill] sm:$0xff] }
 0x48b   :  { %5326 = vrot.lane.b32.xlu1 %v11279_v43, %s8074_s22  ;;  %v11309_v56 = vmax.f32 %v5062_v37, 0.0  ;;  %v4514_v7 = vadd.f32 %v13313_v31, %v4239_v22  ;;  %v4518_v37 = vadd.f32 %v13314_v52, %v4243_v59  ;;  %v4519_v14 = vadd.f32 %v13318_v49, %v4244_v51  ;;  %v13320_v22 = vld [vmem:[#allocation88_spill] sm:$0xff]  ;;  %v7929_v52 = vld [vmem:[%s12880_s2 + $0x2c0] sm:$0xff] }
 0x48c   :  { %v4959_v42 = vpop.f32.mrf.mxu0  ;;  %v5044_v41 = vpop.f32.mrf.mxu1  ;;  %v4522_v33 = vadd.f32 %v13315_v54, %v4247_v11  ;;  %v4796_v48 = vadd.f32 %v11244_v4, %v4521_v18  ;;  %v4523_v10 = vadd.f32 %v13319_v34, %v4248_v62  ;;  %v4524_v8 = vadd.f32 %v13320_v22, %v4249_v17  ;;  %v7930_v54 = vld [vmem:[%s12880_s2 + $0x2c8] sm:$0xff] }
 0x48d   :  { %5334 = vrot.lane.b32.xlu0 %v11296_v35, %s8074_s22  ;;  %v4793_v57 = vadd.f32 %v11231_v20, %v4518_v37  ;;  %v4520_v1 = vadd.f32 %v13321_v39, %v4245_v13  ;;  %v4789_v26 = vadd.f32 %v11207_v27, %v4514_v7  ;;  %v4792_v55 = vadd.f32 %v11213_v25, %v4517_v46 }
 0x48e   :  { %v4961_v58 = vpop.f32.mrf.mxu0  ;;  %v5048_v21 = vpop.f32.mrf.mxu1  ;;  %v4797_v5 = vadd.f32 %v11255_v36, %v4522_v33  ;;  %v4798_v19 = vadd.f32 %v11253_v61, %v4523_v10  ;;  %v4799_v59 = vadd.f32 %v11262_v24, %v4524_v8  ;;  %v13322_v36 = vld [vmem:[#allocation89_spill] sm:$0xff]  ;;  %v4794_v40 = vadd.f32 %v11229_v2, %v4519_v14  ;;  %v13323_v24 = vld [vmem:[#allocation78_spill] sm:$0xff]  ;;  %v7931_v33 = vld [vmem:[%s12880_s2 + $0x2d0] sm:$0xff] }
 0x48f   :  { %5342 = vrot.lane.b32.xlu1 %v11309_v56, %s8074_s22  ;;  %v5068_v12 = vadd.f32 %v4961_v58, %v4793_v57  ;;  %v4788_v11 = vadd.f32 %v13322_v36, %v4513_v30  ;;  %v4795_v27 = vadd.f32 %v11242_v47, %v4520_v1  ;;  %v5067_v13 = vadd.f32 %v4959_v42, %v4792_v55 }
 0x490   :  { %v4965_v0 = vpop.f32.mrf.mxu0  ;;  %v5050_v44 = vpop.f32.mrf.mxu1  ;;  %v5064_v38 = vadd.f32 %v4955_v60, %v4789_v26  ;;  %v4515_v17 = vadd.f32 %v13323_v24, %v4240_v32  ;;  %v4791_v15 = vadd.f32 %v11211_v23, %v4516_v6  ;;  %v5069_v42 = vadd.f32 %v5048_v21, %v4794_v40 }
 0x491   :  { %5593 = vrot.lane.b32.xlu0 %v11269_v53, %s8075_s10  ;;  %v5071_v4 = vadd.f32 %v4965_v0, %v4796_v48  ;;  %v5070_v58 = vadd.f32 %v5050_v44, %v4795_v27  ;;  %v5063_v2 = vadd.f32 %v11275_v3, %v4788_v11  ;;  %v11352_v47 = vmax.f32 %v5068_v12, 0.0 }
 0x492   :  { %v4967_v9 = vpop.f32.mrf.mxu0  ;;  %v5054_v51 = vpop.f32.mrf.mxu1  ;;  %v4790_v28 = vadd.f32 %v11205_v63, %v4515_v17  ;;  %v11360_v32 = vmax.f32 %v5067_v13, 0.0  ;;  %v5066_v23 = vadd.f32 %v5044_v41, %v4791_v15  ;;  %v11363_v30 = vmax.f32 %v5064_v38, 0.0 }
 0x493   :  { %v5072_v20 = vadd.f32 %v4967_v9, %v4797_v5  ;;  %5601 = vrot.lane.b32.xlu1 %v11279_v43, %s8075_s10  ;;  %v5073_v45 = vadd.f32 %v5054_v51, %v4798_v19  ;;  %v11349_v18 = vmax.f32 %v5071_v4, 0.0  ;;  %v11370_v31 = vmax.f32 %v5070_v58, 0.0 }
 0x494   :  { %v5056_v25 = vpop.f32.mrf.mxu1  ;;  %v5065_v21 = vadd.f32 %v11289_v16, %v4790_v28  ;;  %v11375_v63 = vmax.f32 %v5063_v2, 0.0  ;;  %v11377_v41 = vmax.f32 %v5069_v42, 0.0  ;;  %v11381_v7 = vmax.f32 %v5066_v23, 0.0 }
 0x495   :  { %v11343_v62 = vmax.f32 %v5072_v20, 0.0  ;;  %v5074_v61 = vadd.f32 %v5056_v25, %v4799_v59  ;;  %5609 = vrot.lane.b32.xlu0 %v11296_v35, %s8075_s10  ;;  %v11365_v3 = vmax.f32 %v5073_v45, 0.0  ;;  %v13324_v37 = vmov 0.0  }
 0x496   :  { %v11388_v16 = vmax.f32 %v5065_v21, 0.0  ;;  %v8084_v34 = vmov 2  }
 0x497   :  { %v11354_v60 = vmax.f32 %v5074_v61, 0.0  ;;  %5148 = vmatprep.subr.mxu0 %v11343_v62  ;;  %5617 = vrot.lane.b32.xlu1 %v11309_v56, %s8075_s10 }
 0x498   :  { %5149 = vmatpush1.msra.mxu0 %v11349_v18  ;;  %8056 = vset.pattern.permute.xlu0 %v8084_v34 }
 0x499   :  { %5150 = vmatprep.subr.mxu0 %v11352_v47  ;;  %5237 = vmatprep.subr.mxu1 %v11354_v60 }
 0x49a   :  { %5868 = vrot.lane.b32.xlu0 %v11269_v53, %s8076_s11  ;;  %5151 = vmatpush1.msra.mxu0 %v11360_v32 }
 0x49b   :  { %5238 = vmatpush1.msra.mxu1 %v11365_v3  ;;  %5152 = vmatprep.subr.mxu0 %v11363_v30 }
 0x49c   :  { %5239 = vmatprep.subr.mxu1 %v11370_v31  ;;  %5876 = vrot.lane.b32.xlu1 %v11279_v43, %s8076_s11 }
 0x49d   :  { %5153 = vmatpush1.msra.mxu0 %v11375_v63  ;;  %5240 = vmatpush1.msra.mxu1 %v11377_v41 }
 0x49e   :  { %5154 = vmatprep.subr.mxu0 %v11279_v43  ;;  %5241 = vmatprep.subr.mxu1 %v11381_v7 }
 0x49f   :  { %5884 = vrot.lane.b32.xlu0 %v11296_v35, %s8076_s11  ;;  %5155 = vmatpush1.msra.mxu0 %v11269_v53 }
 0x4a0   :  { %5242 = vmatpush1.msra.mxu1 %v11388_v16  ;;  %5892 = vrot.lane.b32.xlu1 %v11309_v56, %s8076_s11 }
 0x4a1   :  { %5243 = vmatprep.subr.mxu1 %v11309_v56  ;;  %7933 = vmatmul.mubr.msk.f32.vlgmr.msra.gmra.mxu0 %vm65_vm0, %v7929_v52 }
 0x4a2   :  { %5244 = vmatpush1.msra.mxu1 %v11296_v35  ;;  %5194 = vmatprep.mubr.f32.mxu0 %v13324_v37 }
 0x4a3   :  { %6143 = vrot.lane.b32.xlu0 %v11269_v53, %s8077_s12  ;;  %7937 = vmatmul.mubr.msk.f32.vlgmr.msra.gmra.mxu1 %vm65_vm0, %v7929_v52 }
 0x4a4   :  { %6151 = vrot.lane.b32.xlu1 %v11279_v43, %s8077_s12  ;;  %5283 = vmatprep.mubr.f32.mxu1 %v13324_v37 }
 0x4a5   :  { %7934 = vmatmul.mubr.msk.f32.gmra.mxu0 %vm65_vm0, %v7930_v54  ;;  %8057 = vset.pattern.permute.xlu1 %v8084_v34 }
 0x4a6   :  { %5200 = vmatprep.mubr.f32.mxu0 %v13324_v37 }
 0x4a7   :  { %6159 = vrot.lane.b32.xlu0 %v11296_v35, %s8077_s12  ;;  %7938 = vmatmul.mubr.msk.f32.gmra.mxu1 %vm65_vm0, %v7930_v54 }
 0x4a8   :  { %6167 = vrot.lane.b32.xlu1 %v11309_v56, %s8077_s12  ;;  %5289 = vmatprep.mubr.f32.mxu1 %v13324_v37 }
 0x4a9   :  { %7935 = vmatmul.mubr.msk.f32.gmra.mxu0 %vm65_vm0, %v7931_v33 }
 0x4aa   :  { %5206 = vmatprep.mubr.f32.mxu0 %v13324_v37 }
 0x4ab   :  { %6418 = vrot.lane.b32.xlu0 %v11269_v53, %s8078_s15  ;;  %7939 = vmatmul.mubr.msk.f32.gmra.mxu1 %vm65_vm0, %v7931_v33 }
 0x4ac   :  { %6426 = vrot.lane.b32.xlu1 %v11279_v43, %s8078_s15  ;;  %5295 = vmatprep.mubr.f32.mxu1 %v13324_v37 }
 0x4ad   :  { %7936 = vmatmul.mubr.msk.f32.gmra.mxu0 %vm65_vm0, %v7932_v50 }
 0x4ae   :  { %5463 = vmatprep.mubr.f32.mxu0 %v13324_v37 }
 0x4af   :  { %6434 = vrot.lane.b32.xlu0 %v11296_v35, %s8078_s15  ;;  %7940 = vmatmul.mubr.msk.f32.gmra.mxu1 %vm65_vm0, %v7932_v50 }
 0x4b0   :  { %6442 = vrot.lane.b32.xlu1 %v11309_v56, %s8078_s15  ;;  %5552 = vmatprep.mubr.f32.mxu1 %v13324_v37 }
 0x4b3   :  { %5320 = vrot.lane.b32.xlu0 %v11375_v63, %s8074_s22 }
 0x4b4   :  { %5328 = vrot.lane.b32.xlu1 %v11363_v30, %s8074_s22 }
 0x4b7   :  { %5336 = vrot.lane.b32.xlu0 %v11388_v16, %s8074_s22 }
 0x4b8   :  { %5344 = vrot.lane.b32.xlu1 %v11381_v7, %s8074_s22 }
 0x4bb   :  { %5595 = vrot.lane.b32.xlu0 %v11375_v63, %s8075_s10 }
 0x4bc   :  { %5603 = vrot.lane.b32.xlu1 %v11363_v30, %s8075_s10 }
 0x4bf   :  { %5611 = vrot.lane.b32.xlu0 %v11388_v16, %s8075_s10 }
 0x4c0   :  { %5619 = vrot.lane.b32.xlu1 %v11381_v7, %s8075_s10 }
 0x4c3   :  { %5870 = vrot.lane.b32.xlu0 %v11375_v63, %s8076_s11 }
 0x4c4   :  { %5878 = vrot.lane.b32.xlu1 %v11363_v30, %s8076_s11 }
 0x4c7   :  { %5886 = vrot.lane.b32.xlu0 %v11388_v16, %s8076_s11 }
 0x4c8   :  { %5894 = vrot.lane.b32.xlu1 %v11381_v7, %s8076_s11 }
 0x4cb   :  { %6145 = vrot.lane.b32.xlu0 %v11375_v63, %s8077_s12 }
 0x4cc   :  { %6153 = vrot.lane.b32.xlu1 %v11363_v30, %s8077_s12 }
 0x4cf   :  { %6161 = vrot.lane.b32.xlu0 %v11388_v16, %s8077_s12 }
 0x4d0   :  { %6169 = vrot.lane.b32.xlu1 %v11381_v7, %s8077_s12 }
 0x4d3   :  { %6420 = vrot.lane.b32.xlu0 %v11375_v63, %s8078_s15 }
 0x4d4   :  { %6428 = vrot.lane.b32.xlu1 %v11363_v30, %s8078_s15 }
 0x4d7   :  { %6436 = vrot.lane.b32.xlu0 %v11388_v16, %s8078_s15 }
 0x4d8   :  { %6444 = vrot.lane.b32.xlu1 %v11381_v7, %s8078_s15 }
 0x4db   :  { %5322 = vrot.lane.b32.xlu0 %v11360_v32, %s8074_s22 }
 0x4dc   :  { %5330 = vrot.lane.b32.xlu1 %v11352_v47, %s8074_s22 }
 0x4df   :  { %5338 = vrot.lane.b32.xlu0 %v11377_v41, %s8074_s22 }
 0x4e0   :  { %5346 = vrot.lane.b32.xlu1 %v11370_v31, %s8074_s22 }
 0x4e3   :  { %5597 = vrot.lane.b32.xlu0 %v11360_v32, %s8075_s10 }
 0x4e4   :  { %5605 = vrot.lane.b32.xlu1 %v11352_v47, %s8075_s10 }
 0x4e7   :  { %5613 = vrot.lane.b32.xlu0 %v11377_v41, %s8075_s10 }
 0x4e8   :  { %5621 = vrot.lane.b32.xlu1 %v11370_v31, %s8075_s10 }
 0x4eb   :  { %5872 = vrot.lane.b32.xlu0 %v11360_v32, %s8076_s11 }
 0x4ec   :  { %5880 = vrot.lane.b32.xlu1 %v11352_v47, %s8076_s11 }
 0x4ef   :  { %5888 = vrot.lane.b32.xlu0 %v11377_v41, %s8076_s11 }
 0x4f0   :  { %5896 = vrot.lane.b32.xlu1 %v11370_v31, %s8076_s11 }
 0x4f3   :  { %6147 = vrot.lane.b32.xlu0 %v11360_v32, %s8077_s12 }
 0x4f4   :  { %6155 = vrot.lane.b32.xlu1 %v11352_v47, %s8077_s12 }
 0x4f7   :  { %6163 = vrot.lane.b32.xlu0 %v11377_v41, %s8077_s12 }
 0x4f8   :  { %6171 = vrot.lane.b32.xlu1 %v11370_v31, %s8077_s12 }
 0x4fb   :  { %6422 = vrot.lane.b32.xlu0 %v11360_v32, %s8078_s15  ;;  %v11518_v6 = vpop.permute.xlu0 %5318 }
 0x4fc   :  { %6430 = vrot.lane.b32.xlu1 %v11352_v47, %s8078_s15 }
 0x4fd   :  { %v11522_v29 = vpop.permute.xlu1 %5326 }
 0x4ff   :  { %6438 = vrot.lane.b32.xlu0 %v11377_v41, %s8078_s15  ;;  %v11526_v46 = vpop.permute.xlu0 %5334 }
 0x500   :  { %6446 = vrot.lane.b32.xlu1 %v11370_v31, %s8078_s15 }
 0x501   :  { %v11530_v49 = vpop.permute.xlu1 %5342 }
 0x503   :  { %6697 = vrot.lane.b32.xlu0 %v11360_v32, %s8079_s27  ;;  %v11534_v14 = vpop.permute.xlu0 %5593 }
 0x504   :  { %6705 = vrot.lane.b32.xlu1 %v11352_v47, %s8079_s27 }
 0x505   :  { %v11538_v48 = vpop.permute.xlu1 %5601 }
 0x507   :  { %6713 = vrot.lane.b32.xlu0 %v11377_v41, %s8079_s27  ;;  %v11542_v0 = vpop.permute.xlu0 %5609 }
 0x508   :  { %6721 = vrot.lane.b32.xlu1 %v11370_v31, %s8079_s27 }
 0x509   :  { %v11546_v44 = vpop.permute.xlu1 %5617 }
 0x50b   :  { %5324 = vrot.lane.b32.xlu0 %v11349_v18, %s8074_s22 }
 0x50c   :  { %5332 = vrot.lane.b32.xlu1 %v11343_v62, %s8074_s22  ;;  %v11552_v10 = vpop.permute.xlu0 %5868 }
 0x50e   :  { %v11554_v22 = vpop.permute.xlu1 %5876 }
 0x50f   :  { %5340 = vrot.lane.b32.xlu0 %v11365_v3, %s8074_s22 }
 0x510   :  { %5348 = vrot.lane.b32.xlu1 %v11354_v60, %s8074_s22 }
 0x511   :  { %v11560_v8 = vpop.permute.xlu0 %5884 }
 0x512   :  { %v11562_v57 = vpop.permute.xlu1 %5892 }
 0x513   :  { %6695 = vrot.lane.b32.xlu0 %v11375_v63, %s8079_s27 }
 0x514   :  { %6703 = vrot.lane.b32.xlu1 %v11363_v30, %s8079_s27 }
 0x515   :  { %v11568_v5 = vpop.permute.xlu0 %6143 }
 0x516   :  { %13325 = vst [vmem:[#allocation40_spill] sm:$0xff] %v11568_v5  ;;  %v11570_v39 = vpop.permute.xlu1 %6151 }
 0x517   :  { %13326 = vst [vmem:[#allocation54_spill] sm:$0xff] %v11570_v39  ;;  %5599 = vrot.lane.b32.xlu0 %v11349_v18, %s8075_s10 }
 0x518   :  { %6719 = vrot.lane.b32.xlu1 %v11381_v7, %s8079_s27 }
 0x519   :  { %v11576_v1 = vpop.permute.xlu0 %6159 }
 0x51a   :  { %13327 = vst [vmem:[#allocation63_spill] sm:$0xff] %v11576_v1  ;;  %v11578_v26 = vpop.permute.xlu1 %6167 }
 0x51b   :  { %13328 = vst [vmem:[#allocation67_spill] sm:$0xff] %v11578_v26  ;;  %5615 = vrot.lane.b32.xlu0 %v11365_v3, %s8075_s10 }
 0x51c   :  { %5607 = vrot.lane.b32.xlu1 %v11343_v62, %s8075_s10 }
 0x51d   :  { %v11584_v55 = vpop.permute.xlu0 %6418 }
 0x51e   :  { %13329 = vst [vmem:[#allocation73_spill] sm:$0xff] %v11584_v55  ;;  %v11586_v4 = vpop.permute.xlu1 %6426 }
 0x51f   :  { %13330 = vst [vmem:[#allocation62_spill] sm:$0xff] %v11586_v4  ;;  %5874 = vrot.lane.b32.xlu0 %v11349_v18, %s8076_s11 }
 0x520   :  { %5623 = vrot.lane.b32.xlu1 %v11354_v60, %s8075_s10 }
 0x521   :  { %v11592_v9 = vpop.permute.xlu0 %6434 }
 0x522   :  { %13331 = vst [vmem:[#allocation60_spill] sm:$0xff] %v11592_v9  ;;  %v11594_v51 = vpop.permute.xlu1 %6442 }
 0x523   :  { %13332 = vst [vmem:[#allocation61_spill] sm:$0xff] %v11594_v51  ;;  %5890 = vrot.lane.b32.xlu0 %v11365_v3, %s8076_s11 }
 0x524   :  { %6701 = vrot.lane.b32.xlu1 %v11279_v43, %s8079_s27 }
 0x525   :  { %v11600_v19 = vpop.permute.xlu0 %5320 }
 0x526   :  { %v11602_v59 = vpop.permute.xlu1 %5328 }
 0x527   :  { %6149 = vrot.lane.b32.xlu0 %v11349_v18, %s8077_s12 }
 0x528   :  { %6717 = vrot.lane.b32.xlu1 %v11309_v56, %s8079_s27 }
 0x529   :  { %v11608_v12 = vpop.permute.xlu0 %5336 }
 0x52a   :  { %v11610_v20 = vpop.permute.xlu1 %5344 }
 0x52b   :  { %6165 = vrot.lane.b32.xlu0 %v11365_v3, %s8077_s12 }
 0x52c   :  { %5882 = vrot.lane.b32.xlu1 %v11343_v62, %s8076_s11 }
 0x52d   :  { %v11616_v36 = vpop.permute.xlu0 %5595 }
 0x52e   :  { %v11618_v11 = vpop.permute.xlu1 %5603 }
 0x52f   :  { %6424 = vrot.lane.b32.xlu0 %v11349_v18, %s8078_s15 }
 0x530   :  { %5898 = vrot.lane.b32.xlu1 %v11354_v60, %s8076_s11 }
 0x531   :  { %v11624_v40 = vpop.permute.xlu0 %5611 }
 0x532   :  { %v11626_v27 = vpop.permute.xlu1 %5619 }
 0x533   :  { %6440 = vrot.lane.b32.xlu0 %v11365_v3, %s8078_s15 }
 0x534   :  { %6980 = vrot.lane.b32.xlu1 %v11352_v47, %s8081_s17 }
 0x535   :  { %v11632_v13 = vpop.permute.xlu0 %5870 }
 0x536   :  { %v11634_v25 = vpop.permute.xlu1 %5878 }
 0x537   :  { %6699 = vrot.lane.b32.xlu0 %v11349_v18, %s8079_s27 }
 0x538   :  { %6996 = vrot.lane.b32.xlu1 %v11370_v31, %s8081_s17 }
 0x539   :  { %v11640_v38 = vpop.permute.xlu0 %5886 }
 0x53a   :  { %v11642_v45 = vpop.permute.xlu1 %5894 }
 0x53b   :  { %6715 = vrot.lane.b32.xlu0 %v11365_v3, %s8079_s27 }
 0x53c   :  { %6157 = vrot.lane.b32.xlu1 %v11343_v62, %s8077_s12 }
 0x53d   :  { %v11648_v61 = vpop.permute.xlu0 %6145 }
 0x53e   :  { %v11650_v24 = vpop.permute.xlu1 %6153 }
 0x53f   :  { %6711 = vrot.lane.b32.xlu0 %v11388_v16, %s8079_s27 }
 0x540   :  { %6173 = vrot.lane.b32.xlu1 %v11354_v60, %s8077_s12 }
 0x541   :  { %v11656_v17 = vpop.permute.xlu0 %6161 }
 0x542   :  { %13333 = vst [vmem:[#allocation66_spill] sm:$0xff] %v11656_v17  ;;  %v11658_v15 = vpop.permute.xlu1 %6169 }
 0x543   :  { %13334 = vst [vmem:[#allocation59_spill] sm:$0xff] %v11658_v15  ;;  %6693 = vrot.lane.b32.xlu0 %v11269_v53, %s8079_s27 }
 0x544   :  { %6978 = vrot.lane.b32.xlu1 %v11363_v30, %s8081_s17 }
 0x545   :  { %v11664_v58 = vpop.permute.xlu0 %6420 }
 0x546   :  { %13335 = vst [vmem:[#allocation57_spill] sm:$0xff] %v11664_v58  ;;  %v11666_v2 = vpop.permute.xlu1 %6428 }
 0x547   :  { %13336 = vst [vmem:[#allocation68_spill] sm:$0xff] %v11666_v2  ;;  %6709 = vrot.lane.b32.xlu0 %v11296_v35, %s8079_s27 }
 0x548   :  { %6994 = vrot.lane.b32.xlu1 %v11381_v7, %s8081_s17 }
 0x549   :  { %v6437_v42 = vpop.permute.xlu0 %6436 }
 0x54a   :  { %v11675_v23 = vsel %vm1484_vm5, %v11666_v2, %v6437_v42  ;;  %v11677_v21 = vpop.permute.xlu1 %6444 }
 0x54b   :  { %13338 = vst [vmem:[#allocation51_spill] sm:$0xff] %v11675_v23  ;;  %13339 = vst [vmem:[#allocation55_spill] sm:$0xff] %v11677_v21  ;;  %v11682_v52 = vsel %vm1484_vm5, %v6437_v42, %v11677_v21  ;;  %6974 = vrot.lane.b32.xlu0 %v11349_v18, %s8081_s17 }
 0x54c   :  { %13340 = vst [vmem:[#allocation56_spill] sm:$0xff] %v11682_v52  ;;  %6432 = vrot.lane.b32.xlu1 %v11343_v62, %s8078_s15 }
 0x54d   :  { %v11688_v54 = vpop.permute.xlu0 %5322 }
 0x54e   :  { %v11690_v33 = vpop.permute.xlu1 %5330 }
 0x54f   :  { %6990 = vrot.lane.b32.xlu0 %v11365_v3, %s8081_s17 }
 0x550   :  { %6448 = vrot.lane.b32.xlu1 %v11354_v60, %s8078_s15 }
 0x551   :  { %v11696_v50 = vpop.permute.xlu0 %5338 }
 0x552   :  { %v11698_v34 = vpop.permute.xlu1 %5346 }
 0x553   :  { %6972 = vrot.lane.b32.xlu0 %v11360_v32, %s8081_s17 }
 0x554   :  { %6976 = vrot.lane.b32.xlu1 %v11279_v43, %s8081_s17 }
 0x555   :  { %v11704_v42 = vpop.permute.xlu0 %5597 }
 0x556   :  { %v11706_v52 = vpop.permute.xlu1 %5605 }
 0x557   :  { %6988 = vrot.lane.b32.xlu0 %v11377_v41, %s8081_s17 }
 0x558   :  { %6992 = vrot.lane.b32.xlu1 %v11309_v56, %s8081_s17 }
 0x559   :  { %v11712_v51 = vpop.permute.xlu0 %5613 }
 0x55a   :  { %v11714_v21 = vpop.permute.xlu1 %5621 }
 0x55b   :  { %6970 = vrot.lane.b32.xlu0 %v11375_v63, %s8081_s17 }
 0x55c   :  { %6707 = vrot.lane.b32.xlu1 %v11343_v62, %s8079_s27 }
 0x55d   :  { %v5873_v55 = vpop.permute.xlu0 %5872 }
 0x55e   :  { %v5881_v23 = vpop.permute.xlu1 %5880 }
 0x55f   :  { %v11722_v4 = vsel %vm886_vm3, %v5873_v55, %v5881_v23  ;;  %6986 = vrot.lane.b32.xlu0 %v11388_v16, %s8081_s17 }
 0x560   :  { %6723 = vrot.lane.b32.xlu1 %v11354_v60, %s8079_s27 }
 0x561   :  { %v5889_v9 = vpop.permute.xlu0 %5888 }
 0x562   :  { %v11730_v58 = vsel %vm886_vm3, %v5881_v23, %v5889_v9  ;;  %v5897_v2 = vpop.permute.xlu1 %5896 }
 0x563   :  { %v11734_v1 = vsel %vm886_vm3, %v5889_v9, %v5897_v2  ;;  %v11738_v26 = vsel %vm886_vm3, %v5897_v2, %v5873_v55  ;;  %6968 = vrot.lane.b32.xlu0 %v11269_v53, %s8081_s17 }
 0x564   :  { %7255 = vrot.lane.b32.xlu1 %v11352_v47, %s8082_s30 }
 0x565   :  { %v6148_v5 = vpop.permute.xlu0 %6147 }
 0x566   :  { %v6156_v39 = vpop.permute.xlu1 %6155 }
 0x567   :  { %v11746_v23 = vsel %vm1185_vm4, %v6148_v5, %v6156_v39  ;;  %6984 = vrot.lane.b32.xlu0 %v11296_v35, %s8081_s17 }
 0x568   :  { %7271 = vrot.lane.b32.xlu1 %v11370_v31, %s8082_s30 }
 0x569   :  { %v6164_v55 = vpop.permute.xlu0 %6163 }
 0x56a   :  { %v11754_v9 = vsel %vm1185_vm4, %v6156_v39, %v6164_v55  ;;  %v6172_v2 = vpop.permute.xlu1 %6171 }
 0x56b   :  { %13341 = vst [vmem:[#allocation53_spill] sm:$0xff] %v11754_v9  ;;  %v11758_v47 = vsel %vm1185_vm4, %v6164_v55, %v6172_v2  ;;  %v11762_v17 = vsel %vm1185_vm4, %v6172_v2, %v6148_v5  ;;  %7249 = vrot.lane.b32.xlu0 %v11349_v18, %s8082_s30 }
 0x56c   :  { %6982 = vrot.lane.b32.xlu1 %v11343_v62, %s8081_s17 }
 0x56d   :  { %v6423_v31 = vpop.permute.xlu0 %6422 }
 0x56e   :  { %v6431_v15 = vpop.permute.xlu1 %6430 }
 0x56f   :  { %v11770_v39 = vsel %vm1484_vm5, %v6423_v31, %v6431_v15  ;;  %7265 = vrot.lane.b32.xlu0 %v11365_v3, %s8082_s30 }
 0x570   :  { %13342 = vst [vmem:[#allocation52_spill] sm:$0xff] %v11770_v39  ;;  %6998 = vrot.lane.b32.xlu1 %v11354_v60, %s8081_s17 }
 0x571   :  { %v6439_v5 = vpop.permute.xlu0 %6438 }
 0x572   :  { %v11778_v55 = vsel %vm1484_vm5, %v6431_v15, %v6439_v5  ;;  %v6447_v18 = vpop.permute.xlu1 %6446 }
 0x573   :  { %v11782_v2 = vsel %vm1484_vm5, %v6439_v5, %v6447_v18  ;;  %v11786_v9 = vsel %vm1484_vm5, %v6447_v18, %v6423_v31  ;;  %7247 = vrot.lane.b32.xlu0 %v11360_v32, %s8082_s30 }
 0x574   :  { %13343 = vst [vmem:[#allocation58_spill] sm:$0xff] %v11782_v2  ;;  %7253 = vrot.lane.b32.xlu1 %v11363_v30, %s8082_s30 }
 0x575   :  { %v6698_v3 = vpop.permute.xlu0 %6697 }
 0x576   :  { %v6706_v39 = vpop.permute.xlu1 %6705 }
 0x577   :  { %v11794_v15 = vsel %vm1783_vm6, %v6698_v3, %v6706_v39  ;;  %7263 = vrot.lane.b32.xlu0 %v11377_v41, %s8082_s30 }
 0x578   :  { %13344 = vst [vmem:[#allocation72_spill] sm:$0xff] %v11794_v15  ;;  %7269 = vrot.lane.b32.xlu1 %v11381_v7, %s8082_s30  ;;  %v13350_v15 = vld [vmem:[#allocation6_spill] sm:$0xff] }
 0x579   :  { %v6714_v31 = vpop.permute.xlu0 %6713 }
 0x57a   :  { %v11802_v5 = vsel %vm1783_vm6, %v6706_v39, %v6714_v31  ;;  %v6722_v32 = vpop.permute.xlu1 %6721 }
 0x57b   :  { %13345 = vst [vmem:[#allocation69_spill] sm:$0xff] %v11802_v5  ;;  %v11806_v30 = vsel %vm1783_vm6, %v6714_v31, %v6722_v32  ;;  %v11810_v18 = vsel %vm1783_vm6, %v6722_v32, %v6698_v3  ;;  %7245 = vrot.lane.b32.xlu0 %v11375_v63, %s8082_s30  ;;  %v13348_v31 = vld [vmem:[#allocation5_spill] sm:$0xff]  ;;  %v5360_v63 = vsel %vm290_vm1, %v11688_v54, %v11690_v33 }
 0x57c   :  { %13346 = vst [vmem:[#allocation64_spill] sm:$0xff] %v11806_v30  ;;  %13347 = vst [vmem:[#allocation70_spill] sm:$0xff] %v11810_v18  ;;  %7257 = vrot.lane.b32.xlu1 %v11343_v62, %s8082_s30 }
 0x57d   :  { %v5325_v41 = vpop.permute.xlu0 %5324 }
 0x57e   :  { %v5333_v7 = vpop.permute.xlu1 %5332 }
 0x57f   :  { %v5361_v39 = vsel %vm290_vm1, %v5325_v41, %v5333_v7  ;;  %7261 = vrot.lane.b32.xlu0 %v11388_v16, %s8082_s30 }
 0x580   :  { %v5384_v30 = vmul.f32 %v5361_v39, %v13348_v31  ;;  %7273 = vrot.lane.b32.xlu1 %v11354_v60, %s8082_s30  ;;  %v5352_v60 = vsel %vm290_vm1, %v11696_v50, %v11698_v34 }
 0x581   :  { %v5341_v3 = vpop.permute.xlu0 %5340 }
 0x582   :  { %v5349_v62 = vpop.permute.xlu1 %5348  ;;  %5423 = vmatprep.subr.mxu0 %v5384_v30  ;;  %v5357_v32 = vsel %vm290_vm1, %v5333_v7, %v5341_v3  ;;  %v5364_v30 = vsel %vm290_vm1, %v11698_v34, %v11688_v54  ;;  %v13349_v7 = vld [vmem:[#allocation3_spill] sm:$0xff]  ;;  %v5356_v54 = vsel %vm290_vm1, %v11690_v33, %v11696_v50  ;;  %v5382_v33 = vmul.f32 %v5352_v60, %v13350_v15 }
 0x583   :  { %v5353_v18 = vsel %vm290_vm1, %v5341_v3, %v5349_v62  ;;  %v5365_v16 = vsel %vm290_vm1, %v5349_v62, %v5325_v41  ;;  %7243 = vrot.lane.b32.xlu0 %v11269_v53, %s8082_s30  ;;  %v5358_v53 = vsel %vm290_vm1, %v11518_v6, %v11522_v29  ;;  %v5359_v41 = vsel %vm290_vm1, %v11600_v19, %v11602_v59 }
 0x584   :  { %v5383_v39 = vmul.f32 %v5365_v16, %v13349_v7  ;;  %v5386_v3 = vmul.f32 %v5353_v18, %v13350_v15  ;;  %7251 = vrot.lane.b32.xlu1 %v11279_v43, %s8082_s30  ;;  %v5380_v62 = vmul.f32 %v5360_v63, %v13348_v31  ;;  %v5351_v43 = vsel %vm290_vm1, %v11608_v12, %v11610_v20  ;;  %v13351_v16 = vld [vmem:[#allocation4_spill] sm:$0xff] }
 0x585   :  { %v6696_v34 = vpop.permute.xlu0 %6695  ;;  %v5363_v18 = vsel %vm290_vm1, %v11610_v20, %v11600_v19  ;;  %v5385_v5 = vmul.f32 %v5357_v32, %v13351_v16  ;;  %v5379_v63 = vmul.f32 %v5364_v30, %v13349_v7  ;;  %v5355_v19 = vsel %vm290_vm1, %v11602_v59, %v11608_v12 }
 0x586   :  { %v11869_v2 = vpop.permute.xlu1 %6703  ;;  %5424 = vmatpush1.msra.mxu0 %v5383_v39  ;;  %5512 = vmatprep.subr.mxu1 %v5386_v3  ;;  %v5381_v20 = vmul.f32 %v5356_v54, %v13351_v16  ;;  %v5376_v32 = vmul.f32 %v5359_v41, %v13348_v31  ;;  %v5350_v60 = vsel %vm290_vm1, %v11526_v46, %v11530_v49  ;;  %v8069_v3 = vld [vmem:[%s12882_s3 + $0x18] sm:$0xff]  ;;  %v8070_v41 = vld [vmem:[%s12882_s3 + $0x10] sm:$0xff]  ;;  %v13352_v54 = vld [vmem:[#allocation7_spill] sm:$0xff] }
 0x587   :  { %v11876_v50 = vsel %vm1783_vm6, %v6696_v34, %v11869_v2  ;;  %7259 = vrot.lane.b32.xlu0 %v11296_v35, %s8082_s30  ;;  %5425 = vmatprep.subr.mxu0 %v5380_v62  ;;  %v5362_v35 = vsel %vm290_vm1, %v11530_v49, %v11518_v6  ;;  %v5375_v59 = vmul.f32 %v5363_v18, %v13349_v7  ;;  %v7942_v18 = vld [vmem:[%s12880_s2 + $0x248] sm:$0xff] }
 0x588   :  { %5513 = vmatpush1.msra.mxu1 %v5385_v5  ;;  %7267 = vrot.lane.b32.xlu1 %v11309_v56, %s8082_s30  ;;  %v5354_v56 = vsel %vm290_vm1, %v11522_v29, %v11526_v46  ;;  %v5378_v30 = vmul.f32 %v5351_v43, %v13350_v15  ;;  %v5372_v39 = vmul.f32 %v5358_v53, %v13348_v31  ;;  %v7941_v31 = vld [vmem:[%s12880_s2 + $0x240] sm:$0xff] }
 0x589   :  { %5514 = vmatprep.subr.mxu1 %v5382_v33  ;;  %v5600_v12 = vpop.permute.xlu0 %5599  ;;  %5426 = vmatpush1.msra.mxu0 %v5379_v63  ;;  %v5377_v6 = vmul.f32 %v5355_v19, %v13351_v16  ;;  %v5371_v29 = vmul.f32 %v5362_v35, %v13349_v7  ;;  %v5374_v46 = vmul.f32 %v5350_v60, %v13350_v15  ;;  %v8071_v43 = vld [vmem:[%s12882_s3] sm:$0xff] }
 0x58a   :  { %5427 = vmatprep.subr.mxu0 %v5376_v32  ;;  %5515 = vmatpush1.msra.mxu1 %v5381_v20  ;;  %v11901_v5 = vpop.permute.xlu1 %6719  ;;  %v5373_v53 = vmul.f32 %v5354_v56, %v13351_v16  ;;  %v8072_v16 = vld [vmem:[%s12882_s3 + $0x8] sm:$0xff]  ;;  %v5635_v33 = vsel %vm587_vm2, %v11704_v42, %v11706_v52  ;;  %v5639_v20 = vsel %vm587_vm2, %v11714_v21, %v11704_v42  ;;  %v7943_v42 = vld [vmem:[%s12880_s2 + $0x250] sm:$0xff] }
 0x58b   :  { %v11909_v49 = vsel %vm1783_vm6, %v11901_v5, %v6696_v34  ;;  %5109 = vperm.xlu0 %8056, %v8069_v3   ;;  %5428 = vmatpush1.msra.mxu0 %v5375_v59  ;;  %v13353_v59 = vld [vmem:[#allocation8_spill] sm:$0xff] }
 0x58c   :  { %5516 = vmatprep.subr.mxu1 %v5378_v30  ;;  %5429 = vmatprep.subr.mxu0 %v5372_v39  ;;  %v13354_v30 = vld [vmem:[#allocation10_spill] sm:$0xff] }
 0x58d   :  { %5517 = vmatpush1.msra.mxu1 %v5377_v6  ;;  %5105 = vperm.xlu1 %8057, %v8070_v41   ;;  %v5616_v62 = vpop.permute.xlu0 %5615  ;;  %v5655_v6 = vmul.f32 %v5635_v33, %v13352_v54  ;;  %v13355_v41 = vld [vmem:[#allocation9_spill] sm:$0xff] }
 0x58e   :  { %5518 = vmatprep.subr.mxu1 %v5374_v46  ;;  %5430 = vmatpush1.msra.mxu0 %v5371_v29  ;;  %v5608_v7 = vpop.permute.xlu1 %5607  ;;  %v5634_v29 = vsel %vm587_vm2, %v11616_v36, %v11618_v11  ;;  %v5638_v46 = vsel %vm587_vm2, %v11626_v27, %v11616_v36  ;;  %v5633_v36 = vsel %vm587_vm2, %v11534_v14, %v11538_v48 }
 0x58f   :  { %7945 = vmatmul.mubr.msk.f32.vlgmr.msra.gmra.mxu0 %vm65_vm0, %v7941_v31  ;;  %5519 = vmatpush1.msra.mxu1 %v5373_v53  ;;  %v5636_v15 = vsel %vm587_vm2, %v5600_v12, %v5608_v7  ;;  %v5632_v35 = vsel %vm587_vm2, %v5608_v7, %v5616_v62  ;;  %v5654_v53 = vmul.f32 %v5639_v20, %v13353_v59 }
 0x590   :  { %v5659_v34 = vmul.f32 %v5636_v15, %v13352_v54  ;;  %5097 = vperm.xlu0 %8056, %v8071_v43   ;;  %7949 = vmatmul.mubr.msk.f32.vlgmr.msra.gmra.mxu1 %vm65_vm0, %v7941_v31  ;;  %v5626_v7 = vsel %vm587_vm2, %v11624_v40, %v11626_v27  ;;  %v5630_v27 = vsel %vm587_vm2, %v11618_v11, %v11624_v40 }
 0x591   :  { %5101 = vperm.xlu1 %8057, %v8072_v16   ;;  %v11937_v63 = vpop.permute.xlu0 %5874  ;;  %5469 = vmatprep.mubr.f32.mxu0 %v13324_v37  ;;  %v5651_v43 = vmul.f32 %v5634_v29, %v13352_v54  ;;  %v5650_v16 = vmul.f32 %v5638_v46, %v13353_v59  ;;  %v5629_v11 = vsel %vm587_vm2, %v11538_v48, %v11542_v0  ;;  %v13357_v46 = vld [vmem:[#allocation12_spill] sm:$0xff] }
 0x592   :  { %5558 = vmatprep.mubr.f32.mxu1 %v13324_v37  ;;  %v5624_v19 = vpop.permute.xlu1 %5623  ;;  %5698 = vmatprep.subr.mxu0 %v5659_v34  ;;  %v5653_v40 = vmul.f32 %v5626_v7, %v13354_v30  ;;  %v5648_v48 = vmul.f32 %v5629_v11, %v13355_v41  ;;  %v5909_v7 = vsel %vm886_vm3, %v11632_v13, %v11634_v25 }
 0x593   :  { %7946 = vmatmul.mubr.msk.f32.gmra.mxu0 %vm65_vm0, %v7942_v18  ;;  %v5628_v32 = vsel %vm587_vm2, %v5616_v62, %v5624_v19  ;;  %v5640_v60 = vsel %vm587_vm2, %v5624_v19, %v5600_v12  ;;  %v5627_v12 = vsel %vm587_vm2, %v11712_v51, %v11714_v21  ;;  %v5631_v21 = vsel %vm587_vm2, %v11706_v52, %v11712_v51  ;;  %v7944_v51 = vld [vmem:[%s12880_s2 + $0x258] sm:$0xff] }
 0x594   :  { %v5658_v56 = vmul.f32 %v5640_v60, %v13353_v59  ;;  %v5661_v39 = vmul.f32 %v5628_v32, %v13354_v30  ;;  %7950 = vmatmul.mubr.msk.f32.gmra.mxu1 %vm65_vm0, %v7942_v18  ;;  %5475 = vmatprep.mubr.f32.mxu0 %v13324_v37  ;;  %v5660_v62 = vmul.f32 %v5632_v35, %v13355_v41 }
 0x595   :  { %v11968_v3 = vpop.permute.xlu0 %5890  ;;  %5564 = vmatprep.mubr.f32.mxu1 %v13324_v37  ;;  %v5657_v15 = vmul.f32 %v5627_v12, %v13354_v30  ;;  %v5625_v52 = vsel %vm587_vm2, %v11542_v0, %v11546_v44  ;;  %v5637_v18 = vsel %vm587_vm2, %v11546_v44, %v11534_v14  ;;  %v5656_v33 = vmul.f32 %v5631_v21, %v13355_v41  ;;  %v7953_v0 = vld [vmem:[%s12880_s2 + $0x260] sm:$0xff] }
 0x596   :  { %v11979_v31 = vpop.permute.xlu1 %6701  ;;  %5699 = vmatpush1.msra.mxu0 %v5658_v56  ;;  %5787 = vmatprep.subr.mxu1 %v5661_v39  ;;  %v5652_v14 = vmul.f32 %v5630_v27, %v13355_v41  ;;  %v5647_v44 = vmul.f32 %v5633_v36, %v13352_v54  ;;  %v5646_v20 = vmul.f32 %v5637_v18, %v13353_v59  ;;  %v13356_v59 = vld [vmem:[#allocation11_spill] sm:$0xff] }
 0x597   :  { %7947 = vmatmul.mubr.msk.f32.gmra.mxu0 %vm65_vm0, %v7943_v42  ;;  %5700 = vmatprep.subr.mxu0 %v5655_v6  ;;  %v5649_v32 = vmul.f32 %v5625_v52, %v13354_v30  ;;  %v7954_v39 = vld [vmem:[%s12880_s2 + $0x268] sm:$0xff]  ;;  %v5930_v36 = vmul.f32 %v11722_v4, %v13356_v59  ;;  %v5913_v52 = vsel %vm886_vm3, %v11642_v45, %v11632_v13 }
 0x598   :  { %7951 = vmatmul.mubr.msk.f32.gmra.mxu1 %vm65_vm0, %v7943_v42  ;;  %5481 = vmatprep.mubr.f32.mxu0 %v13324_v37  ;;  %v5929_v27 = vmul.f32 %v11738_v26, %v13357_v46  ;;  %v5901_v18 = vsel %vm886_vm3, %v11640_v38, %v11642_v45  ;;  %v7956_v26 = vld [vmem:[%s12880_s2 + $0x278] sm:$0xff]  ;;  %v5926_v13 = vmul.f32 %v5909_v7, %v13356_v59  ;;  %v7967_v7 = vld [vmem:[%s12880_s2 + $0x290] sm:$0xff] }
 0x599   :  { %5788 = vmatpush1.msra.mxu1 %v5660_v62  ;;  %v12010_v34 = vpop.permute.xlu0 %6149  ;;  %5701 = vmatpush1.msra.mxu0 %v5654_v53  ;;  %v13358_v53 = vld [vmem:[#allocation14_spill] sm:$0xff]  ;;  %v5905_v45 = vsel %vm886_vm3, %v11634_v25, %v11640_v38 }
 0x59a   :  { %5789 = vmatprep.subr.mxu1 %v5657_v15  ;;  %5570 = vmatprep.mubr.f32.mxu1 %v13324_v37  ;;  %v12020_v19 = vpop.permute.xlu1 %6717  ;;  %v13359_v15 = vld [vmem:[#allocation13_spill] sm:$0xff]  ;;  %v5932_v4 = vmul.f32 %v11734_v1, %v13358_v53  ;;  %v5908_v1 = vsel %vm886_vm3, %v11552_v10, %v11554_v22  ;;  %v5928_v25 = vmul.f32 %v5901_v18, %v13358_v53 }
 0x59b   :  { %7948 = vmatmul.mubr.msk.f32.gmra.mxu0 %vm65_vm0, %v7944_v51  ;;  %5702 = vmatprep.subr.mxu0 %v5651_v43  ;;  %v5931_v11 = vmul.f32 %v11730_v58, %v13359_v15  ;;  %v5922_v38 = vmul.f32 %v5908_v1, %v13356_v59 }
 0x59c   :  { %5790 = vmatpush1.msra.mxu1 %v5656_v33  ;;  %5703 = vmatpush1.msra.mxu0 %v5650_v16  ;;  %v5912_v33 = vsel %vm886_vm3, %v11562_v57, %v11552_v10  ;;  %v5904_v10 = vsel %vm886_vm3, %v11554_v22, %v11560_v8 }
 0x59d   :  { %7952 = vmatmul.mubr.msk.f32.gmra.mxu1 %vm65_vm0, %v7944_v51  ;;  %5791 = vmatprep.subr.mxu1 %v5653_v40  ;;  %v12033_v60 = vpop.permute.xlu0 %6165  ;;  %v5900_v40 = vsel %vm886_vm3, %v11560_v8, %v11562_v57  ;;  %v5921_v57 = vmul.f32 %v5912_v33, %v13357_v46  ;;  %v7965_v8 = vld [vmem:[%s12880_s2 + $0x280] sm:$0xff] }
 0x59e   :  { %5704 = vmatprep.subr.mxu0 %v5647_v44  ;;  %5792 = vmatpush1.msra.mxu1 %v5652_v14  ;;  %v5883_v35 = vpop.permute.xlu1 %5882  ;;  %v5925_v14 = vmul.f32 %v5913_v52, %v13357_v46  ;;  %v5927_v44 = vmul.f32 %v5905_v45, %v13359_v15  ;;  %v5924_v22 = vmul.f32 %v5900_v40, %v13358_v53  ;;  %v13368_v45 = vld [vmem:[#allocation67_spill] sm:$0xff]  ;;  %v7968_v40 = vld [vmem:[%s12880_s2 + $0x298] sm:$0xff] }
 0x59f   :  { %5793 = vmatprep.subr.mxu1 %v5649_v32  ;;  %5705 = vmatpush1.msra.mxu0 %v5646_v20  ;;  %v5911_v54 = vsel %vm886_vm3, %v11937_v63, %v5883_v35  ;;  %v5907_v29 = vsel %vm886_vm3, %v5883_v35, %v11968_v3 }
 0x5a0   :  { %5738 = vmatprep.mubr.f32.mxu0 %v13324_v37  ;;  %5794 = vmatpush1.msra.mxu1 %v5648_v48  ;;  %v5934_v56 = vmul.f32 %v5911_v54, %v13356_v59  ;;  %v5935_v51 = vmul.f32 %v5907_v29, %v13359_v15  ;;  %v5923_v48 = vmul.f32 %v5904_v10, %v13359_v15  ;;  %v13364_v15 = vld [vmem:[#allocation59_spill] sm:$0xff] }
 0x5a1   :  { %7957 = vmatmul.mubr.msk.f32.vlgmr.msra.gmra.mxu0 %vm65_vm0, %v7953_v0  ;;  %5827 = vmatprep.mubr.f32.mxu1 %v13324_v37  ;;  %v12046_v30 = vpop.permute.xlu0 %6424  ;;  %v6188_v1 = vsel %vm1185_vm4, %v13364_v15, %v11648_v61 }
 0x5a2   :  { %7961 = vmatmul.mubr.msk.f32.vlgmr.msra.gmra.mxu1 %vm65_vm0, %v7953_v0  ;;  %5744 = vmatprep.mubr.f32.mxu0 %v13324_v37  ;;  %v5899_v42 = vpop.permute.xlu1 %5898  ;;  %v13360_v0 = vld [vmem:[#allocation15_spill] sm:$0xff] }
 0x5a3   :  { %5833 = vmatprep.mubr.f32.mxu1 %v13324_v37  ;;  %v5903_v6 = vsel %vm886_vm3, %v11968_v3, %v5899_v42  ;;  %v5915_v12 = vsel %vm886_vm3, %v5899_v42, %v11937_v63  ;;  %5973 = vmatprep.subr.mxu0 %v5934_v56  ;;  %v7955_v63 = vld [vmem:[%s12880_s2 + $0x270] sm:$0xff]  ;;  %v7966_v56 = vld [vmem:[%s12880_s2 + $0x288] sm:$0xff] }
 0x5a4   :  { %v5933_v21 = vmul.f32 %v5915_v12, %v13357_v46  ;;  %v5936_v41 = vmul.f32 %v5903_v6, %v13358_v53  ;;  %v13361_v12 = vld [vmem:[#allocation18_spill] sm:$0xff]  ;;  %v13362_v46 = vld [vmem:[#allocation16_spill] sm:$0xff] }
 0x5a5   :  { %7958 = vmatmul.mubr.msk.f32.gmra.mxu0 %vm65_vm0, %v7954_v39  ;;  %v12066_v62 = vpop.permute.xlu0 %6440  ;;  %v6204_v52 = vmul.f32 %v11762_v17, %v13362_v46 }
 0x5a6   :  { %7962 = vmatmul.mubr.msk.f32.gmra.mxu1 %vm65_vm0, %v7954_v39  ;;  %5750 = vmatprep.mubr.f32.mxu0 %v13324_v37  ;;  %v12075_v3 = vpop.permute.xlu1 %6980 }
 0x5a7   :  { %5839 = vmatprep.mubr.f32.mxu1 %v13324_v37  ;;  %5974 = vmatpush1.msra.mxu0 %v5933_v21 }
 0x5a8   :  { %6062 = vmatprep.subr.mxu1 %v5936_v41  ;;  %5975 = vmatprep.subr.mxu0 %v5930_v36  ;;  %v6205_v41 = vmul.f32 %v11746_v23, %v13360_v0  ;;  %v13363_v36 = vld [vmem:[#allocation17_spill] sm:$0xff]  ;;  %v6207_v23 = vmul.f32 %v11758_v47, %v13361_v12 }
 0x5a9   :  { %7959 = vmatmul.mubr.msk.f32.gmra.mxu0 %vm65_vm0, %v7955_v63  ;;  %6063 = vmatpush1.msra.mxu1 %v5935_v51  ;;  %v12092_v43 = vpop.permute.xlu0 %6699  ;;  %v13365_v51 = vld [vmem:[#allocation66_spill] sm:$0xff] }
 0x5aa   :  { %7963 = vmatmul.mubr.msk.f32.gmra.mxu1 %vm65_vm0, %v7955_v63  ;;  %6064 = vmatprep.subr.mxu1 %v5932_v4  ;;  %v12107_v16 = vpop.permute.xlu1 %6996  ;;  %v6176_v4 = vsel %vm1185_vm4, %v13365_v51, %v13364_v15  ;;  %v6180_v47 = vsel %vm1185_vm4, %v11650_v24, %v13365_v51  ;;  %v13375_v51 = vld [vmem:[#allocation68_spill] sm:$0xff] }
 0x5ab   :  { %5756 = vmatprep.mubr.f32.mxu0 %v13324_v37  ;;  %5976 = vmatpush1.msra.mxu0 %v5929_v27 }
 0x5ac   :  { %5845 = vmatprep.mubr.f32.mxu1 %v13324_v37  ;;  %5977 = vmatprep.subr.mxu0 %v5926_v13  ;;  %v13367_v13 = vld [vmem:[#allocation40_spill] sm:$0xff] }
 0x5ad   :  { %7960 = vmatmul.mubr.msk.f32.gmra.mxu0 %vm65_vm0, %v7956_v26  ;;  %6065 = vmatpush1.msra.mxu1 %v5931_v11  ;;  %v12133_v58 = vpop.permute.xlu0 %6715  ;;  %v13369_v11 = vld [vmem:[#allocation53_spill] sm:$0xff] }
 0x5ae   :  { %7964 = vmatmul.mubr.msk.f32.gmra.mxu1 %vm65_vm0, %v7956_v26  ;;  %5978 = vmatpush1.msra.mxu0 %v5925_v14  ;;  %v6158_v20 = vpop.permute.xlu1 %6157  ;;  %v13366_v26 = vld [vmem:[#allocation54_spill] sm:$0xff]  ;;  %v13370_v14 = vld [vmem:[#allocation63_spill] sm:$0xff] }
 0x5af   :  { %6066 = vmatprep.subr.mxu1 %v5928_v25  ;;  %5979 = vmatprep.subr.mxu0 %v5922_v38  ;;  %v6186_v32 = vsel %vm1185_vm4, %v12010_v34, %v6158_v20  ;;  %v6182_v42 = vsel %vm1185_vm4, %v6158_v20, %v12033_v60  ;;  %v6183_v33 = vsel %vm1185_vm4, %v13367_v13, %v13366_v26 }
 0x5b0   :  { %6067 = vmatpush1.msra.mxu1 %v5927_v44  ;;  %5980 = vmatpush1.msra.mxu0 %v5921_v57  ;;  %v6209_v35 = vmul.f32 %v6186_v32, %v13360_v0  ;;  %v6210_v63 = vmul.f32 %v6182_v42, %v13363_v36  ;;  %v6175_v10 = vsel %vm1185_vm4, %v13370_v14, %v13368_v45 }
 0x5b1   :  { %6068 = vmatprep.subr.mxu1 %v5924_v22  ;;  %6013 = vmatprep.mubr.f32.mxu0 %v13324_v37  ;;  %v12148_v54 = vpop.permute.xlu0 %6711  ;;  %v6203_v25 = vmul.f32 %v6176_v4, %v13361_v12  ;;  %v6179_v38 = vsel %vm1185_vm4, %v13366_v26, %v13370_v14  ;;  %v6202_v57 = vmul.f32 %v6180_v47, %v13363_v36  ;;  %v13376_v4 = vld [vmem:[#allocation57_spill] sm:$0xff]  ;;  %v13377_v47 = vld [vmem:[#allocation52_spill] sm:$0xff] }
 0x5b2   :  { %7969 = vmatmul.mubr.msk.f32.vlgmr.msra.gmra.mxu0 %vm65_vm0, %v7965_v8  ;;  %6069 = vmatpush1.msra.mxu1 %v5923_v48  ;;  %v6174_v59 = vpop.permute.xlu1 %6173  ;;  %v6200_v44 = vmul.f32 %v6188_v1, %v13362_v46  ;;  %v6199_v48 = vmul.f32 %v6175_v10, %v13361_v12 }
 0x5b3   :  { %6102 = vmatprep.mubr.f32.mxu1 %v13324_v37  ;;  %6019 = vmatprep.mubr.f32.mxu0 %v13324_v37  ;;  %v6178_v39 = vsel %vm1185_vm4, %v12033_v60, %v6174_v59  ;;  %v6190_v6 = vsel %vm1185_vm4, %v6174_v59, %v12010_v34  ;;  %v6184_v34 = vsel %vm1185_vm4, %v11648_v61, %v11650_v24 }
 0x5b4   :  { %7973 = vmatmul.mubr.msk.f32.vlgmr.msra.gmra.mxu1 %vm65_vm0, %v7965_v8  ;;  %v6211_v29 = vmul.f32 %v6178_v39, %v13361_v12  ;;  %6248 = vmatprep.subr.mxu0 %v6209_v35  ;;  %v6208_v21 = vmul.f32 %v6190_v6, %v13362_v46  ;;  %v6201_v17 = vmul.f32 %v6184_v34, %v13360_v0  ;;  %v13371_v39 = vld [vmem:[#allocation21_spill] sm:$0xff]  ;;  %v13372_v12 = vld [vmem:[#allocation22_spill] sm:$0xff]  ;;  %v7978_v34 = vld [vmem:[%s12880_s2 + $0x2a8] sm:$0xff] }
 0x5b5   :  { %6108 = vmatprep.mubr.f32.mxu1 %v13324_v37  ;;  %v12169_v53 = vpop.permute.xlu0 %6693  ;;  %v6187_v24 = vsel %vm1185_vm4, %v13368_v45, %v13367_v13  ;;  %v6206_v61 = vmul.f32 %v13369_v11, %v13363_v36  ;;  %v6197_v8 = vmul.f32 %v6183_v33, %v13360_v0  ;;  %v7977_v0 = vld [vmem:[%s12880_s2 + $0x2a0] sm:$0xff]  ;;  %v6479_v1 = vmul.f32 %v13377_v47, %v13372_v12  ;;  %v13380_v13 = vld [vmem:[#allocation51_spill] sm:$0xff]  ;;  %v7979_v45 = vld [vmem:[%s12880_s2 + $0x2b0] sm:$0xff] }
 0x5b6   :  { %7970 = vmatmul.mubr.msk.f32.gmra.mxu0 %vm65_vm0, %v7966_v56  ;;  %v12174_v60 = vpop.permute.xlu1 %6978  ;;  %6337 = vmatprep.subr.mxu1 %v6211_v29  ;;  %v6196_v22 = vmul.f32 %v6187_v24, %v13362_v46  ;;  %v6476_v33 = vmul.f32 %v13380_v13, %v13371_v39  ;;  %v13381_v24 = vld [vmem:[#allocation73_spill] sm:$0xff] }
 0x5b7   :  { %6025 = vmatprep.mubr.f32.mxu0 %v13324_v37  ;;  %6249 = vmatpush1.msra.mxu0 %v6208_v21  ;;  %v13388_v47 = vld [vmem:[#allocation69_spill] sm:$0xff] }
 0x5b8   :  { %7974 = vmatmul.mubr.msk.f32.gmra.mxu1 %vm65_vm0, %v7966_v56  ;;  %6250 = vmatprep.subr.mxu0 %v6205_v41  ;;  %v6198_v56 = vmul.f32 %v6179_v38, %v13363_v36  ;;  %v13373_v36 = vld [vmem:[#allocation19_spill] sm:$0xff] }
 0x5b9   :  { %6114 = vmatprep.mubr.f32.mxu1 %v13324_v37  ;;  %6338 = vmatpush1.msra.mxu1 %v6210_v63  ;;  %v12195_v27 = vpop.permute.xlu0 %6709 }
 0x5ba   :  { %7971 = vmatmul.mubr.msk.f32.gmra.mxu0 %vm65_vm0, %v7967_v7  ;;  %6339 = vmatprep.subr.mxu1 %v6207_v23  ;;  %v12207_v18 = vpop.permute.xlu1 %6994  ;;  %v13374_v23 = vld [vmem:[#allocation20_spill] sm:$0xff] }
 0x5bb   :  { %6031 = vmatprep.mubr.f32.mxu0 %v13324_v37  ;;  %6251 = vmatpush1.msra.mxu0 %v6204_v52  ;;  %v6459_v52 = vsel %vm1484_vm5, %v13376_v4, %v13375_v51 }
 0x5bc   :  { %7975 = vmatmul.mubr.msk.f32.gmra.mxu1 %vm65_vm0, %v7967_v7  ;;  %6252 = vmatprep.subr.mxu0 %v6201_v17  ;;  %v6480_v7 = vmul.f32 %v11778_v55, %v13371_v39  ;;  %v13378_v55 = vld [vmem:[#allocation60_spill] sm:$0xff]  ;;  %v13379_v17 = vld [vmem:[#allocation62_spill] sm:$0xff]  ;;  %v6475_v14 = vmul.f32 %v6459_v52, %v13372_v12 }
 0x5bd   :  { %6120 = vmatprep.mubr.f32.mxu1 %v13324_v37  ;;  %6340 = vmatpush1.msra.mxu1 %v6206_v61  ;;  %v12236_v20 = vpop.permute.xlu0 %6974  ;;  %v6454_v26 = vsel %vm1484_vm5, %v13379_v17, %v13378_v55  ;;  %v6458_v11 = vsel %vm1484_vm5, %v13381_v24, %v13379_v17  ;;  %v6482_v61 = vmul.f32 %v11786_v9, %v13373_v36 }
 0x5be   :  { %7972 = vmatmul.mubr.msk.f32.gmra.mxu0 %vm65_vm0, %v7968_v40  ;;  %6341 = vmatprep.subr.mxu1 %v6203_v25  ;;  %v6433_v32 = vpop.permute.xlu1 %6432  ;;  %v13382_v25 = vld [vmem:[#allocation55_spill] sm:$0xff]  ;;  %v6472_v9 = vmul.f32 %v6454_v26, %v13371_v39 }
 0x5bf   :  { %6253 = vmatpush1.msra.mxu0 %v6200_v44  ;;  %6342 = vmatpush1.msra.mxu1 %v6202_v57  ;;  %v6457_v35 = vsel %vm1484_vm5, %v6433_v32, %v12066_v62  ;;  %v6461_v59 = vsel %vm1484_vm5, %v12046_v30, %v6433_v32  ;;  %v6463_v38 = vsel %vm1484_vm5, %v13382_v25, %v13376_v4  ;;  %v7980_v44 = vld [vmem:[%s12880_s2 + $0x2b8] sm:$0xff]  ;;  %v13384_v32 = vld [vmem:[#allocation58_spill] sm:$0xff]  ;;  %v13389_v26 = vld [vmem:[#allocation23_spill] sm:$0xff] }
 0x5c0   :  { %7976 = vmatmul.mubr.msk.f32.gmra.mxu1 %vm65_vm0, %v7968_v40  ;;  %6254 = vmatprep.subr.mxu0 %v6197_v8  ;;  %v6484_v42 = vmul.f32 %v6457_v35, %v13371_v39  ;;  %v6483_v29 = vmul.f32 %v6461_v59, %v13372_v12  ;;  %v6471_v57 = vmul.f32 %v6458_v11, %v13372_v12  ;;  %v13385_v39 = vld [vmem:[#allocation56_spill] sm:$0xff] }
 0x5c1   :  { %6343 = vmatprep.subr.mxu1 %v6199_v48  ;;  %6255 = vmatpush1.msra.mxu0 %v6196_v22  ;;  %v12254_v6 = vpop.permute.xlu0 %6990  ;;  %v13383_v22 = vld [vmem:[#allocation61_spill] sm:$0xff]  ;;  %v6481_v48 = vmul.f32 %v13384_v32, %v13374_v23  ;;  %v7991_v11 = vld [vmem:[%s12880_s2 + $0x2f0] sm:$0xff] }
 0x5c2   :  { %6288 = vmatprep.mubr.f32.mxu0 %v13324_v37  ;;  %6344 = vmatpush1.msra.mxu1 %v6198_v56  ;;  %v6449_v46 = vpop.permute.xlu1 %6448  ;;  %v6462_v8 = vsel %vm1484_vm5, %v13383_v22, %v13381_v24  ;;  %v6450_v59 = vsel %vm1484_vm5, %v13378_v55, %v13383_v22  ;;  %v6478_v56 = vmul.f32 %v6463_v38, %v13373_v36 }
 0x5c3   :  { %7981 = vmatmul.mubr.msk.f32.vlgmr.msra.gmra.mxu0 %vm65_vm0, %v7977_v0  ;;  %6377 = vmatprep.mubr.f32.mxu1 %v13324_v37  ;;  %v6453_v21 = vsel %vm1484_vm5, %v12066_v62, %v6449_v46  ;;  %v6465_v41 = vsel %vm1484_vm5, %v6449_v46, %v12046_v30  ;;  %v7989_v46 = vld [vmem:[%s12880_s2 + $0x2e0] sm:$0xff]  ;;  %v6730_v55 = vsel %vm1783_vm6, %v11869_v2, %v12148_v54 }
 0x5c4   :  { %7985 = vmatmul.mubr.msk.f32.vlgmr.msra.gmra.mxu1 %vm65_vm0, %v7977_v0  ;;  %6294 = vmatprep.mubr.f32.mxu0 %v13324_v37  ;;  %v6486_v63 = vmul.f32 %v6465_v41, %v13373_v36  ;;  %v6485_v30 = vmul.f32 %v6453_v21, %v13374_v23  ;;  %v6473_v41 = vmul.f32 %v6450_v59, %v13374_v23 }
 0x5c5   :  { %6383 = vmatprep.mubr.f32.mxu1 %v13324_v37  ;;  %6523 = vmatprep.subr.mxu0 %v6484_v42  ;;  %v12275_v62 = vpop.permute.xlu0 %6972  ;;  %v6477_v42 = vmul.f32 %v13385_v39, %v13374_v23  ;;  %v7990_v23 = vld [vmem:[%s12880_s2 + $0x2e8] sm:$0xff]  ;;  %v6753_v59 = vmul.f32 %v11909_v49, %v13389_v26 }
 0x5c6   :  { %6524 = vmatpush1.msra.mxu0 %v6483_v29  ;;  %v12278_v15 = vpop.permute.xlu1 %6976  ;;  %6612 = vmatprep.subr.mxu1 %v6486_v63  ;;  %v6474_v29 = vmul.f32 %v6462_v8, %v13373_v36  ;;  %v13387_v36 = vld [vmem:[#allocation26_spill] sm:$0xff]  ;;  %v13393_v8 = vld [vmem:[#allocation64_spill] sm:$0xff] }
 0x5c7   :  { %7982 = vmatmul.mubr.msk.f32.gmra.mxu0 %vm65_vm0, %v7978_v34  ;;  %6525 = vmatprep.subr.mxu0 %v6480_v7  ;;  %v6750_v25 = vmul.f32 %v11876_v50, %v13387_v36  ;;  %v7992_v50 = vld [vmem:[%s12880_s2 + $0x2f8] sm:$0xff] }
 0x5c8   :  { %7986 = vmatmul.mubr.msk.f32.gmra.mxu1 %vm65_vm0, %v7978_v34  ;;  %6300 = vmatprep.mubr.f32.mxu0 %v13324_v37  ;;  %v13386_v34 = vld [vmem:[#allocation25_spill] sm:$0xff] }
 0x5c9   :  { %6389 = vmatprep.mubr.f32.mxu1 %v13324_v37  ;;  %6526 = vmatpush1.msra.mxu0 %v6479_v1  ;;  %v12305_v40 = vpop.permute.xlu0 %6988  ;;  %v6755_v1 = vmul.f32 %v13388_v47, %v13386_v34  ;;  %v6751_v2 = vmul.f32 %v6730_v55, %v13386_v34 }
 0x5ca   :  { %6527 = vmatprep.subr.mxu0 %v6476_v33  ;;  %6613 = vmatpush1.msra.mxu1 %v6485_v30  ;;  %v12308_v10 = vpop.permute.xlu1 %6992 }
 0x5cb   :  { %7983 = vmatmul.mubr.msk.f32.gmra.mxu0 %vm65_vm0, %v7979_v45  ;;  %6614 = vmatprep.subr.mxu1 %v6482_v61  ;;  %v6729_v61 = vsel %vm1783_vm6, %v11979_v31, %v12195_v27 }
 0x5cc   :  { %7987 = vmatmul.mubr.msk.f32.gmra.mxu1 %vm65_vm0, %v7979_v45  ;;  %6528 = vmatpush1.msra.mxu0 %v6475_v14  ;;  %v13391_v45 = vld [vmem:[#allocation24_spill] sm:$0xff]  ;;  %v6747_v22 = vmul.f32 %v6729_v61, %v13386_v34 }
 0x5cd   :  { %6306 = vmatprep.mubr.f32.mxu0 %v13324_v37  ;;  %6529 = vmatprep.subr.mxu0 %v6472_v9  ;;  %v12328_v35 = vpop.permute.xlu0 %6970  ;;  %v13392_v9 = vld [vmem:[#allocation70_spill] sm:$0xff]  ;;  %v6756_v32 = vmul.f32 %v13393_v8, %v13391_v45 }
 0x5ce   :  { %6395 = vmatprep.mubr.f32.mxu1 %v13324_v37  ;;  %6530 = vmatpush1.msra.mxu0 %v6471_v57  ;;  %v6708_v0 = vpop.permute.xlu1 %6707  ;;  %v6757_v57 = vmul.f32 %v13392_v9, %v13389_v26 }
 0x5cf   :  { %7984 = vmatmul.mubr.msk.f32.gmra.mxu0 %vm65_vm0, %v7980_v44  ;;  %6615 = vmatpush1.msra.mxu1 %v6481_v48  ;;  %v6732_v12 = vsel %vm1783_vm6, %v6708_v0, %v12133_v58  ;;  %v6736_v21 = vsel %vm1783_vm6, %v12092_v43, %v6708_v0 }
 0x5d0   :  { %7988 = vmatmul.mubr.msk.f32.gmra.mxu1 %vm65_vm0, %v7980_v44  ;;  %6616 = vmatprep.subr.mxu1 %v6478_v56  ;;  %v6759_v63 = vmul.f32 %v6732_v12, %v13386_v34  ;;  %v6758_v30 = vmul.f32 %v6736_v21, %v13387_v36  ;;  %v6733_v44 = vsel %vm1783_vm6, %v12169_v53, %v11979_v31 }
 0x5d1   :  { %6617 = vmatpush1.msra.mxu1 %v6477_v42  ;;  %6563 = vmatprep.mubr.f32.mxu0 %v13324_v37  ;;  %v12353_v7 = vpop.permute.xlu0 %6986  ;;  %v6726_v31 = vsel %vm1783_vm6, %v12148_v54, %v11901_v5  ;;  %v6737_v56 = vsel %vm1783_vm6, %v12020_v19, %v12169_v53  ;;  %v6746_v0 = vmul.f32 %v6733_v44, %v13387_v36  ;;  %v13394_v42 = vld [vmem:[#allocation29_spill] sm:$0xff] }
 0x5d2   :  { %6618 = vmatprep.subr.mxu1 %v6474_v29  ;;  %6652 = vmatprep.mubr.f32.mxu1 %v13324_v37  ;;  %v6724_v51 = vpop.permute.xlu1 %6723  ;;  %v6725_v5 = vsel %vm1783_vm6, %v12195_v27, %v12020_v19  ;;  %v6752_v53 = vmul.f32 %v6726_v31, %v13391_v45  ;;  %v8001_v19 = vld [vmem:[%s12880_s2 + $0x300] sm:$0xff]  ;;  %v6749_v27 = vmul.f32 %v6737_v56, %v13389_v26 }
 0x5d3   :  { %7993 = vmatmul.mubr.msk.f32.vlgmr.msra.gmra.mxu0 %vm65_vm0, %v7989_v46  ;;  %6619 = vmatpush1.msra.mxu1 %v6473_v41  ;;  %v6728_v4 = vsel %vm1783_vm6, %v12133_v58, %v6724_v51  ;;  %v6740_v52 = vsel %vm1783_vm6, %v6724_v51, %v12092_v43  ;;  %v13390_v43 = vld [vmem:[#allocation72_spill] sm:$0xff]  ;;  %v7006_v21 = vsel %vm2082_vm7, %v12075_v3, %v12305_v40  ;;  %v13395_v41 = vld [vmem:[#allocation30_spill] sm:$0xff] }
 0x5d4   :  { %7997 = vmatmul.mubr.msk.f32.vlgmr.msra.gmra.mxu1 %vm65_vm0, %v7989_v46  ;;  %6569 = vmatprep.mubr.f32.mxu0 %v13324_v37  ;;  %v6761_v13 = vmul.f32 %v6740_v52, %v13389_v26  ;;  %v6754_v33 = vmul.f32 %v13390_v43, %v13387_v36  ;;  %v6760_v24 = vmul.f32 %v6728_v4, %v13391_v45  ;;  %v13397_v43 = vld [vmem:[#allocation28_spill] sm:$0xff] }
 0x5d5   :  { %6658 = vmatprep.mubr.f32.mxu1 %v13324_v37  ;;  %6798 = vmatprep.subr.mxu0 %v6759_v63  ;;  %v12376_v17 = vpop.permute.xlu0 %6968  ;;  %v6748_v46 = vmul.f32 %v6725_v5, %v13391_v45  ;;  %v7010_v36 = vsel %vm2082_vm7, %v12275_v62, %v12075_v3  ;;  %v7005_v51 = vsel %vm2082_vm7, %v12174_v60, %v12353_v7  ;;  %v13399_v5 = vld [vmem:[#allocation34_spill] sm:$0xff] }
 0x5d6   :  { %6799 = vmatpush1.msra.mxu0 %v6758_v30  ;;  %v12379_v58 = vpop.permute.xlu1 %7255  ;;  %6887 = vmatprep.subr.mxu1 %v6761_v13  ;;  %v7030_v4 = vmul.f32 %v7006_v21, %v13394_v42  ;;  %v7014_v52 = vsel %vm2082_vm7, %v12107_v16, %v12275_v62  ;;  %v7029_v47 = vmul.f32 %v7010_v36, %v13395_v41 }
 0x5d7   :  { %7994 = vmatmul.mubr.msk.f32.gmra.mxu0 %vm65_vm0, %v7990_v23  ;;  %6800 = vmatprep.subr.mxu0 %v6755_v1  ;;  %v13396_v1 = vld [vmem:[#allocation27_spill] sm:$0xff]  ;;  %v7009_v26 = vsel %vm2082_vm7, %v12328_v35, %v12174_v60  ;;  %v7026_v13 = vmul.f32 %v7005_v51, %v13394_v42  ;;  %v7008_v9 = vsel %vm2082_vm7, %v12376_v17, %v12278_v15 }
 0x5d8   :  { %7998 = vmatmul.mubr.msk.f32.gmra.mxu1 %vm65_vm0, %v7990_v23  ;;  %6575 = vmatprep.mubr.f32.mxu0 %v13324_v37  ;;  %v8002_v23 = vld [vmem:[%s12880_s2 + $0x308] sm:$0xff] }
 0x5d9   :  { %6664 = vmatprep.mubr.f32.mxu1 %v13324_v37  ;;  %6801 = vmatpush1.msra.mxu0 %v6754_v33  ;;  %v12396_v14 = vpop.permute.xlu0 %6984  ;;  %v8003_v33 = vld [vmem:[%s12880_s2 + $0x310] sm:$0xff] }
 0x5da   :  { %6802 = vmatprep.subr.mxu0 %v6751_v2  ;;  %v12400_v38 = vpop.permute.xlu1 %7271  ;;  %6888 = vmatpush1.msra.mxu1 %v6760_v24  ;;  %v7004_v45 = vsel %vm2082_vm7, %v12278_v15, %v12396_v14  ;;  %v7032_v24 = vmul.f32 %v7014_v52, %v13396_v1  ;;  %v7002_v2 = vsel %vm2082_vm7, %v12305_v40, %v12107_v16  ;;  %v8004_v40 = vld [vmem:[%s12880_s2 + $0x318] sm:$0xff] }
 0x5db   :  { %7995 = vmatmul.mubr.msk.f32.gmra.mxu0 %vm65_vm0, %v7991_v11  ;;  %6889 = vmatprep.subr.mxu1 %v6757_v57  ;;  %v7022_v16 = vmul.f32 %v7004_v45, %v13394_v42  ;;  %v7031_v57 = vmul.f32 %v7002_v2, %v13397_v43 }
 0x5dc   :  { %7999 = vmatmul.mubr.msk.f32.gmra.mxu1 %vm65_vm0, %v7991_v11  ;;  %6803 = vmatpush1.msra.mxu0 %v6750_v25  ;;  %v7025_v11 = vmul.f32 %v7009_v26, %v13395_v41  ;;  %v7013_v25 = vsel %vm2082_vm7, %v12207_v18, %v12328_v35  ;;  %v7001_v35 = vsel %vm2082_vm7, %v12353_v7, %v12207_v18 }
 0x5dd   :  { %6581 = vmatprep.mubr.f32.mxu0 %v13324_v37  ;;  %v12421_v48 = vpop.permute.xlu0 %7249  ;;  %6804 = vmatprep.subr.mxu0 %v6747_v22  ;;  %v7028_v44 = vmul.f32 %v7013_v25, %v13396_v1  ;;  %v7012_v22 = vsel %vm2082_vm7, %v12308_v10, %v12376_v17  ;;  %v7000_v18 = vsel %vm2082_vm7, %v12396_v14, %v12308_v10  ;;  %v13398_v14 = vld [vmem:[#allocation33_spill] sm:$0xff]  ;;  %v8026_v25 = vld [vmem:[%s12880_s2 + $0x348] sm:$0xff] }
 0x5de   :  { %6670 = vmatprep.mubr.f32.mxu1 %v13324_v37  ;;  %v6983_v39 = vpop.permute.xlu1 %6982  ;;  %6890 = vmatpush1.msra.mxu1 %v6756_v32  ;;  %v7027_v17 = vmul.f32 %v7001_v35, %v13397_v43  ;;  %v8013_v32 = vld [vmem:[%s12880_s2 + $0x320] sm:$0xff]  ;;  %v7024_v10 = vmul.f32 %v7012_v22, %v13396_v1 }
 0x5df   :  { %7996 = vmatmul.mubr.msk.f32.gmra.mxu0 %vm65_vm0, %v7992_v50  ;;  %v7007_v49 = vsel %vm2082_vm7, %v6983_v39, %v12254_v6  ;;  %v7011_v54 = vsel %vm2082_vm7, %v12236_v20, %v6983_v39  ;;  %6891 = vmatprep.subr.mxu1 %v6753_v59 }
 0x5e0   :  { %6805 = vmatpush1.msra.mxu0 %v6746_v0  ;;  %8000 = vmatmul.mubr.msk.f32.gmra.mxu1 %vm65_vm0, %v7992_v50  ;;  %v7034_v12 = vmul.f32 %v7007_v49, %v13394_v42  ;;  %v7033_v34 = vmul.f32 %v7011_v54, %v13395_v41  ;;  %v7021_v50 = vmul.f32 %v7008_v9, %v13395_v41  ;;  %v8027_v9 = vld [vmem:[%s12880_s2 + $0x350] sm:$0xff] }
 0x5e1   :  { %6838 = vmatprep.mubr.f32.mxu0 %v13324_v37  ;;  %v12450_v29 = vpop.permute.xlu0 %7265  ;;  %6892 = vmatpush1.msra.mxu1 %v6752_v53  ;;  %v7023_v0 = vmul.f32 %v7000_v18, %v13397_v43 }
 0x5e2   :  { %6927 = vmatprep.mubr.f32.mxu1 %v13324_v37  ;;  %v6999_v63 = vpop.permute.xlu1 %6998  ;;  %6893 = vmatprep.subr.mxu1 %v6749_v27  ;;  %v8014_v27 = vld [vmem:[%s12880_s2 + $0x328] sm:$0xff] }
 0x5e3   :  { %8005 = vmatmul.mubr.msk.f32.vlgmr.msra.gmra.mxu0 %vm65_vm0, %v8001_v19  ;;  %v7015_v30 = vsel %vm2082_vm7, %v6999_v63, %v12236_v20  ;;  %6894 = vmatpush1.msra.mxu1 %v6748_v46  ;;  %v7003_v3 = vsel %vm2082_vm7, %v12254_v6, %v6999_v63 }
 0x5e4   :  { %6844 = vmatprep.mubr.f32.mxu0 %v13324_v37  ;;  %8009 = vmatmul.mubr.msk.f32.vlgmr.msra.gmra.mxu1 %vm65_vm0, %v8001_v19  ;;  %v7036_v55 = vmul.f32 %v7015_v30, %v13396_v1  ;;  %v7035_v62 = vmul.f32 %v7003_v3, %v13397_v43  ;;  %v13401_v30 = vld [vmem:[#allocation32_spill] sm:$0xff] }
 0x5e5   :  { %7073 = vmatprep.subr.mxu0 %v7034_v12  ;;  %v12480_v20 = vpop.permute.xlu0 %7247  ;;  %6933 = vmatprep.mubr.f32.mxu1 %v13324_v37  ;;  %v8015_v3 = vld [vmem:[%s12880_s2 + $0x330] sm:$0xff] }
 0x5e6   :  { %7074 = vmatpush1.msra.mxu0 %v7033_v34  ;;  %v12489_v6 = vpop.permute.xlu1 %7253  ;;  %7162 = vmatprep.subr.mxu1 %v7036_v55  ;;  %v7285_v53 = vsel %vm2381_vm8, %v12480_v20, %v12379_v58  ;;  %v7289_v21 = vsel %vm2381_vm8, %v12400_v38, %v12480_v20 }
 0x5e7   :  { %8006 = vmatmul.mubr.msk.f32.gmra.mxu0 %vm65_vm0, %v8002_v23  ;;  %7075 = vmatprep.subr.mxu0 %v7030_v4  ;;  %v7304_v41 = vmul.f32 %v7285_v53, %v13399_v5 }
 0x5e8   :  { %6850 = vmatprep.mubr.f32.mxu0 %v13324_v37  ;;  %7076 = vmatpush1.msra.mxu0 %v7029_v47 }
 0x5e9   :  { %8010 = vmatmul.mubr.msk.f32.gmra.mxu1 %vm65_vm0, %v8002_v23  ;;  %7077 = vmatprep.subr.mxu0 %v7026_v13  ;;  %v12507_v60 = vpop.permute.xlu0 %7263 }
 0x5ea   :  { %6939 = vmatprep.mubr.f32.mxu1 %v13324_v37  ;;  %v12516_v61 = vpop.permute.xlu1 %7269  ;;  %7163 = vmatpush1.msra.mxu1 %v7035_v62  ;;  %v7281_v39 = vsel %vm2381_vm8, %v12379_v58, %v12507_v60  ;;  %v7277_v23 = vsel %vm2381_vm8, %v12507_v60, %v12400_v38  ;;  %v8016_v62 = vld [vmem:[%s12880_s2 + $0x338] sm:$0xff] }
 0x5eb   :  { %8007 = vmatmul.mubr.msk.f32.gmra.mxu0 %vm65_vm0, %v8003_v33  ;;  %7164 = vmatprep.subr.mxu1 %v7032_v24  ;;  %v7305_v12 = vmul.f32 %v7281_v39, %v13398_v14  ;;  %v7306_v55 = vmul.f32 %v7277_v23, %v13401_v30  ;;  %v13402_v23 = vld [vmem:[#allocation39_spill] sm:$0xff] }
 0x5ec   :  { %7078 = vmatpush1.msra.mxu0 %v7025_v11  ;;  %6856 = vmatprep.mubr.f32.mxu0 %v13324_v37 }
 0x5ed   :  { %8011 = vmatmul.mubr.msk.f32.gmra.mxu1 %vm65_vm0, %v8003_v33  ;;  %v7246_v15 = vpop.permute.xlu0 %7245  ;;  %7079 = vmatprep.subr.mxu0 %v7022_v16  ;;  %v8028_v16 = vld [vmem:[%s12880_s2 + $0x358] sm:$0xff] }
 0x5ee   :  { %6945 = vmatprep.mubr.f32.mxu1 %v13324_v37  ;;  %v7258_v8 = vpop.permute.xlu1 %7257  ;;  %7165 = vmatpush1.msra.mxu1 %v7031_v57  ;;  %v7288_v52 = vsel %vm2381_vm8, %v12516_v61, %v7246_v15  ;;  %v5279_v57 = vpop.f32.mrf.mxu1 }
 0x5ef   :  { %8008 = vmatmul.mubr.msk.f32.gmra.mxu0 %vm65_vm0, %v8004_v40  ;;  %v7282_v7 = vsel %vm2381_vm8, %v7258_v8, %v12450_v29  ;;  %7166 = vmatprep.subr.mxu1 %v7028_v44  ;;  %v7286_v31 = vsel %vm2381_vm8, %v12421_v48, %v7258_v8 }
 0x5f0   :  { %7080 = vmatpush1.msra.mxu0 %v7021_v50  ;;  %7113 = vmatprep.mubr.f32.mxu0 %v13324_v37  ;;  %v7309_v59 = vmul.f32 %v7282_v7, %v13398_v14  ;;  %v7308_v49 = vmul.f32 %v7286_v31, %v13399_v5 }
 0x5f1   :  { %8012 = vmatmul.mubr.msk.f32.gmra.mxu1 %vm65_vm0, %v8004_v40  ;;  %v7262_v56 = vpop.permute.xlu0 %7261  ;;  %v5190_v40 = vpop.f32.mrf.mxu0 }
 0x5f2   :  { %7167 = vmatpush1.msra.mxu1 %v7027_v17  ;;  %7202 = vmatprep.mubr.f32.mxu1 %v13324_v37  ;;  %v7274_v54 = vpop.permute.xlu1 %7273  ;;  %v7280_v19 = vsel %vm2381_vm8, %v12489_v6, %v7262_v56 }
 0x5f3   :  { %7168 = vmatprep.subr.mxu1 %v7024_v10  ;;  %8017 = vmatmul.mubr.msk.f32.vlgmr.msra.gmra.mxu0 %vm65_vm0, %v8013_v32  ;;  %v7278_v42 = vsel %vm2381_vm8, %v12450_v29, %v7274_v54  ;;  %v7290_v58 = vsel %vm2381_vm8, %v7274_v54, %v12421_v48  ;;  %v13400_v29 = vld [vmem:[#allocation31_spill] sm:$0xff]  ;;  %v7284_v48 = vsel %vm2381_vm8, %v7246_v15, %v12489_v6  ;;  %v5192_v35 = vpop.f32.mrf.mxu0  ;;  %v5281_v15 = vpop.f32.mrf.mxu1 }
 0x5f4   :  { %7169 = vmatpush1.msra.mxu1 %v7023_v0  ;;  %7119 = vmatprep.mubr.f32.mxu0 %v13324_v37  ;;  %v7311_v34 = vmul.f32 %v7290_v58, %v13400_v29  ;;  %v7301_v36 = vmul.f32 %v7280_v19, %v13398_v14  ;;  %v7310_v51 = vmul.f32 %v7278_v42, %v13401_v30 }
 0x5f5   :  { %8021 = vmatmul.mubr.msk.f32.vlgmr.msra.gmra.mxu1 %vm65_vm0, %v8013_v32  ;;  %7348 = vmatprep.subr.mxu0 %v7309_v59  ;;  %v7244_v46 = vpop.permute.xlu0 %7243  ;;  %v7307_v4 = vmul.f32 %v7289_v21, %v13400_v29  ;;  %v7300_v47 = vmul.f32 %v7284_v48, %v13399_v5  ;;  %v7276_v6 = vsel %vm2381_vm8, %v7262_v56, %v12516_v61  ;;  %v8025_v61 = vld [vmem:[%s12880_s2 + $0x340] sm:$0xff]  ;;  %v5196_v44 = vpop.f32.mrf.mxu0 }
 0x5f6   :  { %7208 = vmatprep.mubr.f32.mxu1 %v13324_v37  ;;  %7349 = vmatpush1.msra.mxu0 %v7308_v49  ;;  %v7252_v63 = vpop.permute.xlu1 %7251  ;;  %v7303_v45 = vmul.f32 %v7288_v52, %v13400_v29  ;;  %v7302_v60 = vmul.f32 %v7276_v6, %v13401_v30  ;;  %v5285_v22 = vpop.f32.mrf.mxu1 }
 0x5f7   :  { %8018 = vmatmul.mubr.msk.f32.gmra.mxu0 %vm65_vm0, %v8014_v27  ;;  %7350 = vmatprep.subr.mxu0 %v7305_v12  ;;  %v7283_v13 = vsel %vm2381_vm8, %v7244_v46, %v7252_v63  ;;  %v5198_v50 = vpop.f32.mrf.mxu0 }
 0x5f8   :  { %7125 = vmatprep.mubr.f32.mxu0 %v13324_v37  ;;  %7351 = vmatpush1.msra.mxu0 %v7304_v41  ;;  %v7296_v2 = vmul.f32 %v7283_v13, %v13399_v5  ;;  %v5287_v8 = vpop.f32.mrf.mxu1 }
 0x5f9   :  { %8022 = vmatmul.mubr.msk.f32.gmra.mxu1 %vm65_vm0, %v8014_v27  ;;  %7352 = vmatprep.subr.mxu0 %v7301_v36  ;;  %v7260_v20 = vpop.permute.xlu0 %7259  ;;  %v5202_v18 = vpop.f32.mrf.mxu0 }
 0x5fa   :  { %7214 = vmatprep.mubr.f32.mxu1 %v13324_v37  ;;  %7437 = vmatprep.subr.mxu1 %v7311_v34  ;;  %v7279_v38 = vsel %vm2381_vm8, %v7252_v63, %v7260_v20  ;;  %v7268_v1 = vpop.permute.xlu1 %7267  ;;  %v5291_v7 = vpop.f32.mrf.mxu1 }
 0x5fb   :  { %8019 = vmatmul.mubr.msk.f32.gmra.mxu0 %vm65_vm0, %v8015_v3  ;;  %7438 = vmatpush1.msra.mxu1 %v7310_v51  ;;  %v7287_v26 = vsel %vm2381_vm8, %v7268_v1, %v7244_v46  ;;  %v7297_v43 = vmul.f32 %v7279_v38, %v13398_v14  ;;  %v7275_v33 = vsel %vm2381_vm8, %v7260_v20, %v7268_v1  ;;  %v5204_v17 = vpop.f32.mrf.mxu0  ;;  %v13403_v20 = vld [vmem:[#allocation35_spill] sm:$0xff] }
 0x5fc   :  { %7353 = vmatpush1.msra.mxu0 %v7300_v47  ;;  %7439 = vmatprep.subr.mxu1 %v7307_v4  ;;  %v7299_v24 = vmul.f32 %v7287_v26, %v13400_v29  ;;  %v7298_v11 = vmul.f32 %v7275_v33, %v13401_v30  ;;  %v5293_v32 = vpop.f32.mrf.mxu1 }
 0x5fd   :  { %8023 = vmatmul.mubr.msk.f32.gmra.mxu1 %vm65_vm0, %v8015_v3  ;;  %7131 = vmatprep.mubr.f32.mxu0 %v13324_v37  ;;  %v5208_v31 = vpop.f32.mrf.mxu0 }
 0x5fe   :  { %7220 = vmatprep.mubr.f32.mxu1 %v13324_v37  ;;  %7440 = vmatpush1.msra.mxu1 %v7306_v55  ;;  %v12676_v10 = vpop.f32.mrf.mxu1  ;;  %v13404_v55 = vld [vmem:[#allocation71_spill] sm:$0xff] }
 0x5ff   :  { %8020 = vmatmul.mubr.msk.f32.gmra.mxu0 %vm65_vm0, %v8016_v62  ;;  %7441 = vmatprep.subr.mxu1 %v7303_v45  ;;  %v12678_v14 = vpop.f32.mrf.mxu0 }
 0x600   :  { %7442 = vmatpush1.msra.mxu1 %v7302_v60  ;;  %7354 = vmatprep.subr.mxu0 %v7297_v43  ;;  %v12680_v59 = vpop.f32.mrf.mxu1  ;;  %v13405_v43 = vld [vmem:[#allocation44_spill] sm:$0xff] }
 0x601   :  { %8024 = vmatmul.mubr.msk.f32.gmra.mxu1 %vm65_vm0, %v8016_v62  ;;  %7355 = vmatpush1.msra.mxu0 %v7296_v2 }
 0x602   :  { %7388 = vmatprep.mubr.f32.mxu0 %v13324_v37  ;;  %7443 = vmatprep.subr.mxu1 %v7299_v24  ;;  %v13406_v24 = vld [vmem:[#allocation49_spill] sm:$0xff] }
 0x603   :  { %8029 = vmatmul.mubr.msk.f32.vlgmr.msra.gmra.mxu0 %vm65_vm0, %v8025_v61  ;;  %7444 = vmatpush1.msra.mxu1 %v7298_v11 }
 0x604   :  { %7477 = vmatprep.mubr.f32.mxu1 %v13324_v37  ;;  %7394 = vmatprep.mubr.f32.mxu0 %v13324_v37 }
 0x605   :  { %8033 = vmatmul.mubr.msk.f32.vlgmr.msra.gmra.mxu1 %vm65_vm0, %v8025_v61 }
 0x606   :  { %7483 = vmatprep.mubr.f32.mxu1 %v13324_v37  ;;  %v12682_v0 = vpop.permute.xlu0 %5109 }
 0x607   :  { %8030 = vmatmul.mubr.msk.f32.gmra.mxu0 %vm65_vm0, %v8026_v25 }
 0x608   :  { %7400 = vmatprep.mubr.f32.mxu0 %v13324_v37  ;;  %v5106_v53 = vpop.permute.xlu1 %5105 }
 0x609   :  { %8034 = vmatmul.mubr.msk.f32.gmra.mxu1 %vm65_vm0, %v8026_v25  ;;  %v5203_v11 = vadd.f32 %v5202_v18, %v5106_v53 }
 0x60a   :  { %7489 = vmatprep.mubr.f32.mxu1 %v13324_v37 }
 0x60b   :  { %8031 = vmatmul.mubr.msk.f32.gmra.mxu0 %vm65_vm0, %v8027_v9  ;;  %v5098_v42 = vpop.permute.xlu0 %5097 }
 0x60c   :  { %7406 = vmatprep.mubr.f32.mxu0 %v13324_v37  ;;  %v5191_v21 = vadd.f32 %v5190_v40, %v5098_v42  ;;  %v5102_v29 = vpop.permute.xlu1 %5101  ;;  %v5280_v34 = vadd.f32 %v5279_v57, %v5098_v42  ;;  %v5193_v48 = vadd.f32 %v5192_v35, %v5098_v42  ;;  %v5282_v36 = vadd.f32 %v5281_v15, %v5098_v42 }
 0x60d   :  { %8035 = vmatmul.mubr.msk.f32.gmra.mxu1 %vm65_vm0, %v8027_v9  ;;  %v5197_v4 = vadd.f32 %v5196_v44, %v5102_v29  ;;  %v5286_v47 = vadd.f32 %v5285_v22, %v5102_v29  ;;  %v5199_v26 = vadd.f32 %v5198_v50, %v5102_v29  ;;  %v5288_v33 = vadd.f32 %v5287_v8, %v5102_v29  ;;  %v13408_v22 = vld [vmem:[#allocation37_spill] sm:$0xff] }
 0x60e   :  { %7495 = vmatprep.mubr.f32.mxu1 %v13324_v37  ;;  %v5302_v3 = vadd.f32 %v5191_v21, %v13402_v23  ;;  %v5304_v52 = vadd.f32 %v5280_v34, %v13403_v20  ;;  %v5303_v6 = vadd.f32 %v5193_v48, %v13404_v55  ;;  %v5305_v62 = vadd.f32 %v5282_v36, %v13405_v43  ;;  %v13410_v36 = vld [vmem:[#allocation47_spill] sm:$0xff] }
 0x60f   :  { %8032 = vmatmul.mubr.msk.f32.gmra.mxu0 %vm65_vm0, %v8028_v16  ;;  %v5306_v2 = vadd.f32 %v5197_v4, %v13406_v24  ;;  %v5292_v57 = vadd.f32 %v5291_v7, %v5106_v53  ;;  %v5307_v50 = vadd.f32 %v5199_v26, %v13408_v22  ;;  %v5294_v29 = vadd.f32 %v5293_v32, %v5106_v53 }
 0x610   :  { %7602 = vmatprep.mubr.f32.mxu0 %v13324_v37  ;;  %v5209_v23 = vadd.f32 %v5208_v31, %v12682_v0  ;;  %v5211_v32 = vadd.f32 %v12678_v14, %v12682_v0  ;;  %v13413_v31 = vld [vmem:[#allocation38_spill] sm:$0xff] }
 0x611   :  { %8036 = vmatmul.mubr.msk.f32.gmra.mxu1 %vm65_vm0, %v8028_v16  ;;  %v13407_v16 = vld [vmem:[#allocation41_spill] sm:$0xff]  ;;  %v5313_v26 = vadd.f32 %v5294_v29, %v13413_v31 }
 0x612   :  { %7673 = vmatprep.mubr.f32.mxu1 %v13324_v37  ;;  %v5308_v40 = vadd.f32 %v5286_v47, %v13407_v16  ;;  %v13412_v47 = vld [vmem:[#allocation45_spill] sm:$0xff] }
 0x64f   :  { %v5465_v37 = vpop.f32.mrf.mxu0 }
 0x650   :  { %v5554_v56 = vpop.f32.mrf.mxu1  ;;  %v5577_v1 = vadd.f32 %v5465_v37, %v5302_v3  ;;  %v5205_v37 = vadd.f32 %v5204_v17, %v5106_v53  ;;  %v5298_v17 = vadd.f32 %v12676_v10, %v12682_v0  ;;  %v13414_v10 = vld [vmem:[#allocation36_spill] sm:$0xff] }
 0x651   :  { %v5467_v39 = vpop.f32.mrf.mxu0  ;;  %v5579_v13 = vadd.f32 %v5554_v56, %v5304_v52 }
 0x652   :  { %v5556_v5 = vpop.f32.mrf.mxu1  ;;  %v5578_v60 = vadd.f32 %v5467_v39, %v5303_v6  ;;  %v13409_v39 = vld [vmem:[#allocation50_spill] sm:$0xff] }
 0x653   :  { %v5471_v49 = vpop.f32.mrf.mxu0  ;;  %v5580_v9 = vadd.f32 %v5556_v5, %v5305_v62  ;;  %v5309_v21 = vadd.f32 %v5288_v33, %v13409_v39  ;;  %v5310_v5 = vadd.f32 %v5203_v11, %v13410_v36  ;;  %v5314_v33 = vadd.f32 %v5209_v23, %v13414_v10 }
 0x654   :  { %v5560_v54 = vpop.f32.mrf.mxu1  ;;  %v5581_v44 = vadd.f32 %v5471_v49, %v5306_v2  ;;  %v13411_v49 = vld [vmem:[#allocation48_spill] sm:$0xff] }
 0x655   :  { %v5473_v19 = vpop.f32.mrf.mxu0  ;;  %v5583_v42 = vadd.f32 %v5560_v54, %v5308_v40  ;;  %v5312_v20 = vadd.f32 %v5292_v57, %v13411_v49 }
 0x656   :  { %v5562_v27 = vpop.f32.mrf.mxu1  ;;  %v5582_v48 = vadd.f32 %v5473_v19, %v5307_v50  ;;  %v5311_v19 = vadd.f32 %v5205_v37, %v13412_v47 }
 0x657   :  { %v5477_v58 = vpop.f32.mrf.mxu0  ;;  %v5584_v4 = vadd.f32 %v5562_v27, %v5309_v21  ;;  %v5300_v27 = vadd.f32 %v12680_v59, %v12682_v0  ;;  %v13417_v0 = vld [vmem:[#allocation46_spill] sm:$0xff] }
 0x658   :  { %v5566_v12 = vpop.f32.mrf.mxu1  ;;  %v5585_v53 = vadd.f32 %v5477_v58, %v5310_v5  ;;  %v13415_v58 = vld [vmem:[#allocation43_spill] sm:$0xff] }
 0x659   :  { %v5479_v46 = vpop.f32.mrf.mxu0  ;;  %v5587_v6 = vadd.f32 %v5566_v12, %v5312_v20  ;;  %v5316_v24 = vadd.f32 %v5298_v17, %v13415_v58 }
 0x65a   :  { %v12684_v41 = vpop.f32.mrf.mxu1  ;;  %v5586_v62 = vadd.f32 %v5479_v46, %v5311_v19  ;;  %v5317_v46 = vadd.f32 %v5300_v27, %v13417_v0 }
 0x65b   :  { %v12686_v63 = vpop.f32.mrf.mxu0  ;;  %v5588_v14 = vadd.f32 %v12684_v41, %v5313_v26 }
 0x65c   :  { %v5589_v12 = vadd.f32 %v12686_v63, %v5314_v33 }
 0x65d   :  { %v12688_v30 = vpop.f32.mrf.mxu1  ;;  %v12690_v51 = vpop.f32.mrf.mxu0 }
 0x65e   :  { %v5591_v59 = vadd.f32 %v12688_v30, %v5316_v24 }
 0x65f   :  { %v12694_v38 = vpop.f32.mrf.mxu1 }
 0x660   :  { %v5592_v50 = vadd.f32 %v12694_v38, %v5317_v46 }
 0x661   :  { %v5740_v45 = vpop.f32.mrf.mxu0 }
 0x662   :  { %v12699_v61 = vadd.f32 %v5740_v45, %v5577_v1  ;;  %v5829_v25 = vpop.f32.mrf.mxu1 }
 0x663   :  { %v5854_v35 = vadd.f32 %v5829_v25, %v5579_v13  ;;  %v5742_v15 = vpop.f32.mrf.mxu0  ;;  %v13416_v25 = vld [vmem:[#allocation42_spill] sm:$0xff] }
 0x664   :  { %v5853_v56 = vadd.f32 %v5742_v15, %v5578_v60  ;;  %v5831_v8 = vpop.f32.mrf.mxu1 }
 0x665   :  { %v5855_v18 = vadd.f32 %v5831_v8, %v5580_v9  ;;  %v5746_v34 = vpop.f32.mrf.mxu0  ;;  %v5315_v9 = vadd.f32 %v5211_v32, %v13416_v25 }
 0x666   :  { %v5856_v7 = vadd.f32 %v5746_v34, %v5581_v44  ;;  %v5835_v3 = vpop.f32.mrf.mxu1 }
 0x667   :  { %v5858_v52 = vadd.f32 %v5835_v3, %v5583_v42  ;;  %v5748_v54 = vpop.f32.mrf.mxu0  ;;  %v5590_v44 = vadd.f32 %v12690_v51, %v5315_v9 }
 0x668   :  { %v5857_v1 = vadd.f32 %v5748_v54, %v5582_v48  ;;  %v5837_v55 = vpop.f32.mrf.mxu1 }
 0x669   :  { %v5859_v13 = vadd.f32 %v5837_v55, %v5584_v4  ;;  %v5752_v43 = vpop.f32.mrf.mxu0 }
 0x66a   :  { %v5860_v45 = vadd.f32 %v5752_v43, %v5585_v53  ;;  %v5841_v60 = vpop.f32.mrf.mxu1 }
 0x66b   :  { %v5862_v2 = vadd.f32 %v5841_v60, %v5587_v6  ;;  %v5754_v11 = vpop.f32.mrf.mxu0 }
 0x66c   :  { %v5861_v16 = vadd.f32 %v5754_v11, %v5586_v62  ;;  %v5843_v40 = vpop.f32.mrf.mxu1 }
 0x66d   :  { %v5863_v57 = vadd.f32 %v5843_v40, %v5588_v14  ;;  %v5758_v15 = vpop.f32.mrf.mxu0 }
 0x66e   :  { %v5864_v22 = vadd.f32 %v5758_v15, %v5589_v12  ;;  %v5847_v41 = vpop.f32.mrf.mxu1 }
 0x66f   :  { %v5866_v37 = vadd.f32 %v5847_v41, %v5591_v59  ;;  %v5760_v8 = vpop.f32.mrf.mxu0 }
 0x670   :  { %v5865_v42 = vadd.f32 %v5760_v8, %v5590_v44  ;;  %v5849_v63 = vpop.f32.mrf.mxu1 }
 0x671   :  { %v5867_v39 = vadd.f32 %v5849_v63, %v5592_v50 }
 0x672   :  { %v6015_v21 = vpop.f32.mrf.mxu0 }
 0x673   :  { %v6127_v29 = vadd.f32 %v6015_v21, %v12699_v61 }
 0x674   :  { %v6104_v34 = vpop.f32.mrf.mxu1  ;;  %v6017_v30 = vpop.f32.mrf.mxu0 }
 0x675   :  { %v6129_v48 = vadd.f32 %v6104_v34, %v5854_v35  ;;  %v6128_v36 = vadd.f32 %v6017_v30, %v5853_v56 }
 0x676   :  { %v6106_v5 = vpop.f32.mrf.mxu1  ;;  %v6021_v23 = vpop.f32.mrf.mxu0 }
 0x677   :  { %v6130_v3 = vadd.f32 %v6106_v5, %v5855_v18  ;;  %v6131_v51 = vadd.f32 %v6021_v23, %v5856_v7 }
 0x678   :  { %v6110_v4 = vpop.f32.mrf.mxu1  ;;  %v6023_v49 = vpop.f32.mrf.mxu0 }
 0x679   :  { %v6133_v20 = vadd.f32 %v6110_v4, %v5858_v52  ;;  %v6132_v38 = vadd.f32 %v6023_v49, %v5857_v1 }
 0x67a   :  { %v6112_v17 = vpop.f32.mrf.mxu1  ;;  %v6027_v54 = vpop.f32.mrf.mxu0 }
 0x67b   :  { %v6134_v32 = vadd.f32 %v6112_v17, %v5859_v13  ;;  %v6135_v53 = vadd.f32 %v6027_v54, %v5860_v45 }
 0x67c   :  { %v6116_v47 = vpop.f32.mrf.mxu1  ;;  %v6029_v19 = vpop.f32.mrf.mxu0 }
 0x67d   :  { %v6137_v55 = vadd.f32 %v6116_v47, %v5862_v2  ;;  %v12725_v61 = vadd.f32 %v6029_v19, %v5861_v16 }
 0x67e   :  { %v6118_v6 = vpop.f32.mrf.mxu1  ;;  %v6033_v35 = vpop.f32.mrf.mxu0 }
 0x67f   :  { %v12727_v56 = vadd.f32 %v6118_v6, %v5863_v57  ;;  %v12729_v31 = vadd.f32 %v6033_v35, %v5864_v22 }
 0x680   :  { %v6122_v18 = vpop.f32.mrf.mxu1  ;;  %v6035_v7 = vpop.f32.mrf.mxu0 }
 0x681   :  { %v12731_v26 = vadd.f32 %v6122_v18, %v5866_v37  ;;  %v12733_v52 = vadd.f32 %v6035_v7, %v5865_v42 }
 0x682   :  { %v6124_v1 = vpop.f32.mrf.mxu1 }
 0x683   :  { %v12735_v27 = vadd.f32 %v6124_v1, %v5867_v39  ;;  %v6290_v13 = vpop.f32.mrf.mxu0 }
 0x684   :  { %v12737_v43 = vadd.f32 %v6290_v13, %v6127_v29  ;;  %v6379_v62 = vpop.f32.mrf.mxu1 }
 0x685   :  { %v12739_v10 = vadd.f32 %v6379_v62, %v6129_v48  ;;  %v6292_v33 = vpop.f32.mrf.mxu0 }
 0x686   :  { %v12741_v45 = vadd.f32 %v6292_v33, %v6128_v36  ;;  %v6381_v60 = vpop.f32.mrf.mxu1 }
 0x687   :  { %v12743_v14 = vadd.f32 %v6381_v60, %v6130_v3  ;;  %v6296_v58 = vpop.f32.mrf.mxu0 }
 0x688   :  { %v12745_v24 = vadd.f32 %v6296_v58, %v6131_v51  ;;  %v6385_v2 = vpop.f32.mrf.mxu1 }
 0x689   :  { %v12747_v11 = vadd.f32 %v6385_v2, %v6133_v20  ;;  %v6298_v12 = vpop.f32.mrf.mxu0 }
 0x68a   :  { %v12749_v25 = vadd.f32 %v6298_v12, %v6132_v38  ;;  %v6387_v9 = vpop.f32.mrf.mxu1 }
 0x68b   :  { %v12751_v16 = vadd.f32 %v6387_v9, %v6134_v32  ;;  %v6302_v40 = vpop.f32.mrf.mxu0 }
 0x68c   :  { %v12753_v59 = vadd.f32 %v6302_v40, %v6135_v53  ;;  %v6391_v0 = vpop.f32.mrf.mxu1 }
 0x68d   :  { %v12755_v46 = vadd.f32 %v6391_v0, %v6137_v55  ;;  %v6304_v57 = vpop.f32.mrf.mxu0 }
 0x68e   :  { %v6393_v15 = vpop.f32.mrf.mxu1 }
 0x68f   :  { %v6308_v44 = vpop.f32.mrf.mxu0 }
 0x690   :  { %v6397_v22 = vpop.f32.mrf.mxu1 }
 0x691   :  { %v6310_v41 = vpop.f32.mrf.mxu0 }
 0x692   :  { %v6399_v50 = vpop.f32.mrf.mxu1 }
 0x693   :  { %v6565_v37 = vpop.f32.mrf.mxu0 }
 0x694   :  { %v6654_v8 = vpop.f32.mrf.mxu1 }
 0x695   :  { %v6567_v42 = vpop.f32.mrf.mxu0 }
 0x696   :  { %v6656_v63 = vpop.f32.mrf.mxu1 }
 0x697   :  { %v6571_v39 = vpop.f32.mrf.mxu0 }
 0x698   :  { %v6660_v21 = vpop.f32.mrf.mxu1 }
 0x699   :  { %v6573_v29 = vpop.f32.mrf.mxu0 }
 0x69a   :  { %v6662_v34 = vpop.f32.mrf.mxu1 }
 0x69b   :  { %v6577_v30 = vpop.f32.mrf.mxu0 }
 0x69c   :  { %v6666_v48 = vpop.f32.mrf.mxu1 }
 0x69d   :  { %v6579_v36 = vpop.f32.mrf.mxu0 }
 0x69e   :  { %v6668_v5 = vpop.f32.mrf.mxu1 }
 0x69f   :  { %v6583_v23 = vpop.f32.mrf.mxu0 }
 0x6a0   :  { %v6672_v3 = vpop.f32.mrf.mxu1 }
 0x6a1   :  { %v6585_v51 = vpop.f32.mrf.mxu0 }
 0x6a2   :  { %v6674_v4 = vpop.f32.mrf.mxu1 }
 0x6a3   :  { %v6840_v49 = vpop.f32.mrf.mxu0 }
 0x6a4   :  { %v6929_v20 = vpop.f32.mrf.mxu1 }
 0x6a5   :  { %v6842_v38 = vpop.f32.mrf.mxu0 }
 0x6a6   :  { %v6931_v17 = vpop.f32.mrf.mxu1 }
 0x6a7   :  { %v12757_v54 = vpop.f32.mrf.mxu0 }
 0x6a9   :  { %v12759_v32 = vpop.f32.mrf.mxu1  ;;  %v12761_v53 = vpop.f32.mrf.mxu0 }
 0x6ab   :  { %v12763_v47 = vpop.f32.mrf.mxu1  ;;  %v12765_v19 = vpop.f32.mrf.mxu0 }
 0x6ad   :  { %v12767_v55 = vpop.f32.mrf.mxu1  ;;  %v12769_v6 = vpop.f32.mrf.mxu0 }
 0x6af   :  { %v12771_v35 = vpop.f32.mrf.mxu1  ;;  %v6858_v18 = vpop.f32.mrf.mxu0 }
 0x6b1   :  { %v12773_v7 = vpop.f32.mrf.mxu1  ;;  %v12775_v1 = vpop.f32.mrf.mxu0 }
 0x6b2   :  { %13418 = vst [vmem:[#allocation75_spill] sm:$0xff] %v12775_v1 }
 0x6b3   :  { %v12777_v13 = vpop.f32.mrf.mxu1  ;;  %v12779_v62 = vpop.f32.mrf.mxu0 }
 0x6b4   :  { %13419 = vst [vmem:[#allocation65_spill] sm:$0xff] %v12777_v13  ;;  %13420 = vst [vmem:[#allocation74_spill] sm:$0xff] %v12779_v62 }
 0x6b5   :  { %v12781_v33 = vpop.f32.mrf.mxu1  ;;  %v12783_v60 = vpop.f32.mrf.mxu0 }
 0x6b6   :  { %13421 = vst [vmem:[#allocation76_spill] sm:$0xff] %v12781_v33  ;;  %13422 = vst [vmem:[#allocation85_spill] sm:$0xff] %v12783_v60 }
 0x6b7   :  { %v12785_v58 = vpop.f32.mrf.mxu1  ;;  %v12787_v2 = vpop.f32.mrf.mxu0 }
 0x6b8   :  { %13423 = vst [vmem:[#allocation77_spill] sm:$0xff] %v12785_v58  ;;  %13424 = vst [vmem:[#allocation79_spill] sm:$0xff] %v12787_v2 }
 0x6b9   :  { %v12789_v12 = vpop.f32.mrf.mxu1  ;;  %v12791_v9 = vpop.f32.mrf.mxu0 }
 0x6ba   :  { %13425 = vst [vmem:[#allocation83_spill] sm:$0xff] %v12789_v12  ;;  %13426 = vst [vmem:[#allocation87_spill] sm:$0xff] %v12791_v9  ;;  %v6411_v12 = vadd.f32 %v6304_v57, %v12725_v61  ;;  %v6678_v61 = vadd.f32 %v6567_v42, %v12741_v45 }
 0x6bb   :  { %v12793_v40 = vpop.f32.mrf.mxu1  ;;  %v12795_v0 = vpop.f32.mrf.mxu0 }
 0x6bc   :  { %13427 = vst [vmem:[#allocation80_spill] sm:$0xff] %v12793_v40  ;;  %13428 = vst [vmem:[#allocation81_spill] sm:$0xff] %v12795_v0  ;;  %v6413_v40 = vadd.f32 %v6393_v15, %v12727_v56  ;;  %v6680_v56 = vadd.f32 %v6656_v63, %v12743_v14 }
 0x6bd   :  { %v12797_v28 = vpop.f32.mrf.mxu1  ;;  %v12799_v13 = vpop.f32.mrf.mxu0 }
 0x6be   :  { %13429 = vst [vmem:[#allocation82_spill] sm:$0xff] %v12797_v28  ;;  %13430 = vst [vmem:[#allocation86_spill] sm:$0xff] %v12799_v13  ;;  %v6414_v28 = vadd.f32 %v6308_v44, %v12729_v31  ;;  %v6415_v13 = vadd.f32 %v6310_v41, %v12733_v52  ;;  %v6681_v31 = vadd.f32 %v6571_v39, %v12745_v24 }
 0x6bf   :  { %v12801_v62 = vpop.f32.mrf.mxu1  ;;  %v7133_v33 = vpop.f32.mrf.mxu0  ;;  %v6682_v52 = vadd.f32 %v6573_v29, %v12749_v25  ;;  %v6686_v44 = vadd.f32 %v6579_v36, %v6411_v12  ;;  %v6688_v45 = vadd.f32 %v6668_v5, %v6413_v40  ;;  %v6955_v63 = vadd.f32 %v6931_v17, %v6680_v56  ;;  %v13438_v17 = vld [vmem:[#allocation76_spill] sm:$0xff] }
 0x6c0   :  { %13431 = vst [vmem:[#allocation88_spill] sm:$0xff] %v12801_v62  ;;  %v6416_v62 = vadd.f32 %v6397_v22, %v12731_v26  ;;  %v6683_v26 = vadd.f32 %v6660_v21, %v12747_v11  ;;  %v6689_v41 = vadd.f32 %v6583_v23, %v6414_v28  ;;  %v6953_v11 = vadd.f32 %v6842_v38, %v6678_v61 }
 0x6c1   :  { %v12803_v60 = vpop.f32.mrf.mxu1  ;;  %v7135_v58 = vpop.f32.mrf.mxu0  ;;  %v6963_v5 = vadd.f32 %v12771_v35, %v6688_v45 }
 0x6c2   :  { %13432 = vst [vmem:[#allocation84_spill] sm:$0xff] %v12803_v60  ;;  %v6417_v60 = vadd.f32 %v6399_v50, %v12735_v27  ;;  %v6684_v27 = vadd.f32 %v6662_v34, %v12751_v16  ;;  %v6691_v50 = vadd.f32 %v6672_v3, %v6416_v62  ;;  %v6956_v16 = vadd.f32 %v12757_v54, %v6681_v31  ;;  %v13435_v3 = vld [vmem:[#allocation75_spill] sm:$0xff] }
 0x6c3   :  { %v12805_v1 = vpop.f32.mrf.mxu1  ;;  %v12807_v2 = vpop.f32.mrf.mxu0  ;;  %v6961_v34 = vadd.f32 %v12769_v6, %v6686_v44  ;;  %v13440_v6 = vld [vmem:[#allocation77_spill] sm:$0xff] }
 0x6c4   :  { %13433 = vst [vmem:[#allocation89_spill] sm:$0xff] %v12805_v1  ;;  %13434 = vst [vmem:[#allocation78_spill] sm:$0xff] %v12807_v2  ;;  %v6677_v1 = vadd.f32 %v6565_v37, %v12737_v43  ;;  %v6679_v2 = vadd.f32 %v6654_v8, %v12739_v10  ;;  %v6685_v43 = vadd.f32 %v6577_v30, %v12753_v59  ;;  %v13444_v12 = vld [vmem:[#allocation81_spill] sm:$0xff] }
 0x6c5   :  { %v12811_v9 = vpop.f32.mrf.mxu0  ;;  %v12813_v0 = vpop.f32.mrf.mxu1  ;;  %v6687_v10 = vadd.f32 %v6666_v48, %v12755_v46  ;;  %v6690_v37 = vadd.f32 %v6585_v51, %v6415_v13  ;;  %v6692_v8 = vadd.f32 %v6674_v4, %v6417_v60  ;;  %v6958_v59 = vadd.f32 %v12759_v32, %v6683_v26  ;;  %v13436_v4 = vld [vmem:[#allocation65_spill] sm:$0xff]  ;;  %v13442_v35 = vld [vmem:[#allocation86_spill] sm:$0xff]  ;;  %v13443_v60 = vld [vmem:[#allocation87_spill] sm:$0xff] }
 0x6c6   :  { %v6952_v24 = vadd.f32 %v6840_v49, %v6677_v1  ;;  %v6954_v42 = vadd.f32 %v6929_v20, %v6679_v2  ;;  %v6957_v46 = vadd.f32 %v12761_v53, %v6682_v52  ;;  %v6959_v21 = vadd.f32 %v12763_v47, %v6684_v27  ;;  %v13437_v20 = vld [vmem:[#allocation74_spill] sm:$0xff]  ;;  %v13439_v32 = vld [vmem:[#allocation85_spill] sm:$0xff]  ;;  %v13441_v1 = vld [vmem:[#allocation79_spill] sm:$0xff] }
 0x6c7   :  { %v12823_v57 = vpop.f32.mrf.mxu0  ;;  %v12825_v15 = vpop.f32.mrf.mxu1  ;;  %v6960_v29 = vadd.f32 %v12765_v19, %v6685_v43  ;;  %v6962_v28 = vadd.f32 %v12767_v55, %v6687_v10  ;;  %v6964_v30 = vadd.f32 %v6858_v18, %v6689_v41  ;;  %v6966_v23 = vadd.f32 %v12773_v7, %v6691_v50  ;;  %v13446_v27 = vld [vmem:[#allocation88_spill] sm:$0xff] }
 0x6c8   :  { %v6965_v51 = vadd.f32 %v13435_v3, %v6690_v37  ;;  %v6967_v49 = vadd.f32 %v13436_v4, %v6692_v8  ;;  %v7227_v38 = vadd.f32 %v13437_v20, %v6952_v24  ;;  %v7229_v54 = vadd.f32 %v13438_v17, %v6954_v42  ;;  %v13448_v41 = vld [vmem:[#allocation80_spill] sm:$0xff]  ;;  %v13449_v37 = vld [vmem:[#allocation82_spill] sm:$0xff] }
 0x6c9   :  { %v7398_v22 = vpop.f32.mrf.mxu0  ;;  %v12833_v14 = vpop.f32.mrf.mxu1  ;;  %v7228_v53 = vadd.f32 %v13439_v32, %v6953_v11  ;;  %v7239_v47 = vadd.f32 %v7133_v33, %v6964_v30  ;;  %v7230_v18 = vadd.f32 %v13440_v6, %v6955_v63  ;;  %v7231_v13 = vadd.f32 %v13441_v1, %v6956_v16  ;;  %v13445_v61 = vld [vmem:[#allocation84_spill] sm:$0xff] }
 0x6ca   :  { %v7236_v62 = vadd.f32 %v13442_v35, %v6961_v34  ;;  %v7240_v7 = vadd.f32 %v7135_v58, %v6965_v51  ;;  %v7232_v2 = vadd.f32 %v13443_v60, %v6957_v46  ;;  %v7235_v40 = vadd.f32 %v13444_v12, %v6960_v29  ;;  %v13450_v29 = vld [vmem:[#allocation83_spill] sm:$0xff]  ;;  %v7698_v60 = vld [vmem:[%s12882_s3] sm:$0x1] }
 0x6cb   :  { %v7402_v25 = vpop.f32.mrf.mxu0  ;;  %v7487_v39 = vpop.f32.mrf.mxu1  ;;  %v7241_v56 = vadd.f32 %v13445_v61, %v6966_v23  ;;  %v7238_v33 = vadd.f32 %v13446_v27, %v6963_v5  ;;  %v13447_v43 = vld [vmem:[#allocation89_spill] sm:$0xff]  ;;  %v7234_v50 = vadd.f32 %v13448_v41, %v6959_v21  ;;  %v7237_v8 = vadd.f32 %v13449_v37, %v6962_v28  ;;  %v13451_v28 = vld [vmem:[#allocation78_spill] sm:$0xff] }
 0x6cc   :  { %v7242_v10 = vadd.f32 %v13447_v43, %v6967_v49  ;;  %v7510_v58 = vadd.f32 %v7402_v25, %v7235_v40  ;;  %v7507_v11 = vadd.f32 %v7398_v22, %v7232_v2  ;;  %v7233_v34 = vadd.f32 %v13450_v29, %v6958_v59  ;;  %v13452_v2 = vld [vmem:[#allocation2_spill] sm:$0xff] }
 0x6cd   :  { %v7404_v48 = vpop.f32.mrf.mxu0  ;;  %v7491_v36 = vpop.f32.mrf.mxu1  ;;  %v7506_v30 = vadd.f32 %v12823_v57, %v7231_v13  ;;  %v7509_v3 = vadd.f32 %v7487_v39, %v7234_v50  ;;  %v7502_v25 = vadd.f32 %v13451_v28, %v7227_v38  ;;  %v7505_v20 = vadd.f32 %v12825_v15, %v7230_v18  ;;  %v7534_v15 = vld [vmem:[%s12883_s4] sm:$0x1] }
 0x6ce   :  { %v7511_v44 = vadd.f32 %v7404_v48, %v7236_v62  ;;  %v7512_v5 = vadd.f32 %v7491_v36, %v7237_v8  ;;  %v7503_v48 = vadd.f32 %v12811_v9, %v7228_v53  ;;  %v7508_v4 = vadd.f32 %v12833_v14, %v7233_v34 }
 0x6cf   :  { %v7408_v19 = vpop.f32.mrf.mxu0  ;;  %v7493_v55 = vpop.f32.mrf.mxu1  ;;  %v7526_v22 = vmax.f32 %v7510_v58, 0.0  ;;  %v7523_v59 = vmax.f32 %v7507_v11, 0.0  ;;  %v7504_v57 = vadd.f32 %v12813_v0, %v7229_v54  ;;  %v7522_v9 = vmax.f32 %v7506_v30, 0.0 }
 0x6d0   :  { %v7514_v31 = vadd.f32 %v7408_v19, %v7239_v47  ;;  %v7513_v63 = vadd.f32 %v7493_v55, %v7238_v33  ;;  %v7527_v51 = vmax.f32 %v7511_v44, 0.0  ;;  %v7528_v39 = vmax.f32 %v7512_v5, 0.0 }
 0x6d1   :  { %v7410_v26 = vpop.f32.mrf.mxu0  ;;  %v7497_v52 = vpop.f32.mrf.mxu1  ;;  %v7519_v36 = vmax.f32 %v7503_v48, 0.0  ;;  %v7525_v32 = vmax.f32 %v7509_v3, 0.0  ;;  %v7518_v14 = vmax.f32 %v7502_v25, 0.0  ;;  %v7524_v38 = vmax.f32 %v7508_v4, 0.0 }
 0x6d2   :  { %v7515_v45 = vadd.f32 %v7410_v26, %v7240_v7  ;;  %v7516_v24 = vadd.f32 %v7497_v52, %v7241_v56  ;;  %v7530_v23 = vmax.f32 %v7514_v31, 0.0  ;;  %v7529_v17 = vmax.f32 %v7513_v63, 0.0 }
 0x6d3   :  { %v7499_v42 = vpop.f32.mrf.mxu1  ;;  %v7521_v53 = vmax.f32 %v7505_v20, 0.0  ;;  %v7520_v0 = vmax.f32 %v7504_v57, 0.0  ;;  %v8085_v54 = vmov 3   ;;  %vm7686_vm10 = vcmp.eq.s32.totalorder %v13452_v2, 0 }
 0x6d4   :  { %v7531_v16 = vmax.f32 %v7515_v45, 0.0  ;;  %v7517_v46 = vadd.f32 %v7499_v42, %v7242_v10  ;;  %v7532_v49 = vmax.f32 %v7516_v24, 0.0  ;;  %8058 = vset.pattern.permute.xlu0 %v8085_v54  ;;  %vm7694_vm11 = vcmp.eq.s32.totalorder %v13452_v2, 1 }
 0x6d6   :  { %v7533_v21 = vmax.f32 %v7517_v46, 0.0  ;;  %7562 = vmatprep.subr.mxu0 %v7531_v16 }
 0x6d7   :  { %7563 = vmatpush1.msra.mxu0 %v7530_v23 }
 0x6d8   :  { %7564 = vmatprep.subr.mxu0 %v7527_v51  ;;  %7633 = vmatprep.subr.mxu1 %v7533_v21 }
 0x6d9   :  { %7565 = vmatpush1.msra.mxu0 %v7526_v22  ;;  %7634 = vmatpush1.msra.mxu1 %v7532_v49 }
 0x6da   :  { %7566 = vmatprep.subr.mxu0 %v7523_v59  ;;  %7635 = vmatprep.subr.mxu1 %v7529_v17 }
 0x6db   :  { %7567 = vmatpush1.msra.mxu0 %v7522_v9  ;;  %7636 = vmatpush1.msra.mxu1 %v7528_v39 }
 0x6dc   :  { %7568 = vmatprep.subr.mxu0 %v7519_v36  ;;  %7637 = vmatprep.subr.mxu1 %v7525_v32 }
 0x6dd   :  { %7569 = vmatpush1.msra.mxu0 %v7518_v14  ;;  %7638 = vmatpush1.msra.mxu1 %v7524_v38 }
 0x6de   :  { %7639 = vmatprep.subr.mxu1 %v7521_v53  ;;  %8037 = vmatmul.mubr.msk.f32.vlgmr.msra.gmra.mxu0 %vm65_vm0, %v7534_v15 }
 0x6df   :  { %7640 = vmatpush1.msra.mxu1 %v7520_v0 }
 0x6e0   :  { %8038 = vmatmul.mubr.msk.f32.vlgmr.msra.gmra.mxu1 %vm65_vm0, %v7534_v15 }
 0x79e   :  { %v7604_v47 = vpop.f32.mrf.mxu0 }
 0x79f   :  { %v7681_v19 = vsel %vm7680_vm9, %v7604_v47, 0.0 }
 0x7a0   :  { %v7675_v55 = vpop.f32.mrf.mxu1  ;;  %v7606_v6 = vpop.f32.mrf.mxu0 }
 0x7a1   :  { %v7682_v18 = vsel %vm7680_vm9, %v7606_v6, 0.0  ;;  %v7689_v35 = vsel %vm7680_vm9, %v7675_v55, 0.0 }
 0x7a2   :  { %v7677_v1 = vpop.f32.mrf.mxu1  ;;  %v7683_v13 = vadd.f32 %v7682_v18, %v7681_v19 }
 0x7a3   :  { %v7690_v62 = vsel %vm7680_vm9, %v7677_v1, 0.0 }
 0x7a4   :  { %v7691_v7 = vadd.f32 %v7690_v62, %v7689_v35  ;;  %7684 = vadd.xlane.f32.xlu1 %v7683_v13 }
 0x7a6   :  { %7692 = vadd.xlane.f32.xlu0 %v7691_v7 }
 0x7bc   :  { %7701 = vperm.xlu0 %8058, %v7698_v60  }
 0x82d   :  { %v7685_v12 = vpop.xlane.xlu1 %7684 }
 0x82e   :  { %v7687_v61 = vsel %vm7686_vm10, %v7685_v12, 0.0 }
 0x82f   :  { %v7693_v40 = vpop.xlane.xlu0 %7692 }
 0x830   :  { %v7695_v56 = vsel %vm7694_vm11, %v7693_v40, 0.0 }
 0x831   :  { %v7696_v31 = vadd.f32 %v7695_v56, %v7687_v61 }
 0x833   :  { %v7697_v26 = vmul.f32 0.00390625, %v7696_v31 }
 0x837   :  { %v7702_v52 = vpop.permute.xlu0 %7701 }
 0x838   :  { %v7704_v27 = vadd.f32 %v7702_v52, %v7697_v26 }
 0x83a   :  { %7705 = vst [vmem:[%s12884_s5] sm:$0x1] %v7704_v27 }

</bundles_post_ra>
